<compile_context>
chip_gen: v6e
topology: v6e:2x2x1
jax: 0.10.0
libtpu: 0.0.40
codegen_flags: <defaults>
</compile_context>

<pallas_src>
import functools

import jax
import jax.numpy as jnp
from jax import lax
from jax.experimental import pallas as pl
from jax.experimental.pallas import tpu as pltpu

N, CIN, H, W = 1, 224, 14, 14
COUT = 1344
EPS = 1e-3


def fused_add_conv_bn_kernel(a_ref, b_ref, w_ref, gamma_ref, beta_ref, o_ref,
                             *, inv_m, use_bf16):
    # Layouts (NCHW-native, N = 1):
    #   a_ref, b_ref : (Cin, M)   M = H*W       residual-add inputs
    #   w_ref        : (CB,  Cin) CB = Cout block (1x1 conv weight)
    #   gamma, beta  : (CB,  1)
    #   o_ref        : (CB,  M)
    x = a_ref[...] + b_ref[...]                                   # residual add (VPU)
    w = w_ref[...]

    if use_bf16:
        x_mm = x.astype(jnp.bfloat16)
        w_mm = w.astype(jnp.bfloat16)
    else:
        x_mm, w_mm = x, w

    # 1x1 conv == matmul on the MXU: y[c, j] = sum_k W[c, k] * x[k, j]
    y = jnp.dot(w_mm, x_mm, preferred_element_type=jnp.float32)   # (CB, M)

    # Per-channel batch mean via linearity of the conv:
    #   sum_j y[c, j] = sum_k W[c, k] * (sum_j x[k, j])
    # -> a tiny (CB, Cin) @ (Cin, 1) matmul instead of a full reduce over y.
    x_rowsum = jnp.sum(x, axis=1, keepdims=True)                  # (Cin, 1)
    mean = jnp.dot(w, x_rowsum, preferred_element_type=jnp.float32) * inv_m  # (CB, 1)

    # Numerically stable two-pass biased variance (multiply by 1/M, no division).
    diff = y - mean
    var = jnp.sum(diff * diff, axis=1, keepdims=True) * inv_m     # (CB, 1)

    # Fold the BN affine into one pass over y: (y - mean) * scale + beta
    scale = gamma_ref[...] * lax.rsqrt(var + EPS)                 # (CB, 1), rsqrt -> EUP
    o_ref[...] = diff * scale + beta_ref[...]


def add_conv_bn(x304, x289, conv_w, gamma, beta, *, cout_block=None,
                use_bf16_matmul=False):
    """x304, x289: NCHW (1, CIN, H, W); conv_w: (COUT, CIN, 1, 1)."""
    n, c, h, w = x304.shape
    assert n == 1 and c == CIN
    m = h * w

    # All reshapes below are free (no transposes, no extra HBM round trips).
    a2d = x304.reshape(c, m)                 # (Cin, H*W)
    b2d = x289.reshape(c, m)
    w2d = conv_w.reshape(COUT, CIN)          # (Cout, Cin, 1, 1) -> (Cout, Cin)
    gamma2d = gamma.reshape(COUT, 1)
    beta2d = beta.reshape(COUT, 1)

    if cout_block is None:
        # v7x: 2 TensorCores -> split Cout (768 + 576, partial last block is masked)
        # and mark the axis parallel.  v5e/v6e: single TC, keep one full block.
        kind = jax.devices()[0].device_kind.lower()
        cout_block = 768 if "v7" in kind else COUT
    grid = (pl.cdiv(COUT, cout_block),)

    kernel = functools.partial(
        fused_add_conv_bn_kernel,
        inv_m=1.0 / float(m),
        use_bf16=use_bf16_matmul,
    )

    out2d = pl.pallas_call(
        kernel,
        out_shape=jax.ShapeDtypeStruct((COUT, m), jnp.float32),
        grid=grid,
        in_specs=[
            pl.BlockSpec((c, m), lambda i: (0, 0)),            # a  (full)
            pl.BlockSpec((c, m), lambda i: (0, 0)),            # b  (full)
            pl.BlockSpec((cout_block, c), lambda i: (i, 0)),   # W  (Cout-blocked)
            pl.BlockSpec((cout_block, 1), lambda i: (i, 0)),   # gamma
            pl.BlockSpec((cout_block, 1), lambda i: (i, 0)),   # beta
        ],
        out_specs=pl.BlockSpec((cout_block, m), lambda i: (i, 0)),
        compiler_params=pltpu.CompilerParams(
            dimension_semantics=("parallel",),
        ),
    )(a2d, b2d, w2d, gamma2d, beta2d)

    # (Cout, H*W) -> (1, Cout, H, W): free reshape.
    return out2d.reshape(n, COUT, h, w)


def reference(x304, x289, conv_w, gamma, beta):
    """Pure-JAX reference of the module's forward pass (training-mode BN)."""
    x = (x304 + x289).reshape(CIN, H * W)
    w2d = conv_w.reshape(COUT, CIN)
    y = jnp.dot(w2d, x, precision=lax.Precision.HIGHEST)
    mean = jnp.mean(y, axis=1, keepdims=True)
    var = jnp.mean((y - mean) ** 2, axis=1, keepdims=True)
    out = (y - mean) / jnp.sqrt(var + EPS) * gamma.reshape(COUT, 1) + beta.reshape(COUT, 1)
    return out.reshape(1, COUT, H, W)


if __name__ == "__main__":
    key = jax.random.PRNGKey(0)
    k1, k2, k3 = jax.random.split(key, 3)

    # Inputs (same shapes the PyTorch module implies).
    x304 = jax.random.normal(k1, (N, CIN, H, W), dtype=jnp.float32)
    x289 = jax.random.normal(k2, (N, CIN, H, W), dtype=jnp.float32)

    # Deterministic synthetic parameters:
    # Conv2d weight (Cout, Cin, 1, 1), kaiming-uniform-like scale.
    bound = 1.0 / (CIN ** 0.5)
    conv_w = jax.random.uniform(
        k3, (COUT, CIN, 1, 1), dtype=jnp.float32, minval=-bound, maxval=bound
    )
    # BatchNorm2d affine params: PyTorch default init (gamma=1, beta=0).
    gamma = jnp.ones((COUT,), dtype=jnp.float32)
    beta = jnp.zeros((COUT,), dtype=jnp.float32)

    out = add_conv_bn(x304, x289, conv_w, gamma, beta)
    jax.block_until_ready(out)
    assert out.shape == (N, COUT, H, W)

    ref = reference(x304, x289, conv_w, gamma, beta)
    max_err = float(jnp.max(jnp.abs(out - ref)))
    assert jnp.allclose(out, ref, atol=2e-3, rtol=2e-3), f"max abs err = {max_err}"

    print("KERNEL_OK")
</pallas_src>

<mosaic_0001>
module attributes {stable_mosaic.version = 11 : i64} {
  func.func @fused_add_conv_bn_kernel(%arg0: i32, %arg1: memref<224x196xf32, #tpu.memory_space<vmem>>, %arg2: memref<224x196xf32, #tpu.memory_space<vmem>>, %arg3: memref<1344x224xf32, #tpu.memory_space<vmem>>, %arg4: memref<1344x1xf32, #tpu.memory_space<vmem>>, %arg5: memref<1344x1xf32, #tpu.memory_space<vmem>>, %arg6: memref<1344x196xf32, #tpu.memory_space<vmem>>) attributes {dimension_semantics = [#tpu.dimension_semantics<parallel>], iteration_bounds = array<i64: 1>, scalar_prefetch = 0 : i64, scratch_operands = 0 : i64, tpu.core_type = #tpu.core_type<tc>, window_params = [{pipeline_mode = #tpu.pipeline_mode<synchronous>, transform_indices = @transform_0, window_bounds = array<i64: 224, 196>}, {pipeline_mode = #tpu.pipeline_mode<synchronous>, transform_indices = @transform_1, window_bounds = array<i64: 224, 196>}, {transform_indices = @transform_2, window_bounds = array<i64: 1344, 224>}, {transform_indices = @transform_3, window_bounds = array<i64: 1344, 1>}, {transform_indices = @transform_4, window_bounds = array<i64: 1344, 1>}, {transform_indices = @transform_5, window_bounds = array<i64: 1344, 196>}]} {
    %c0 = arith.constant 0 : index
    %c0_0 = arith.constant 0 : index
    %0 = vector.load %arg1[%c0, %c0_0] : memref<224x196xf32, #tpu.memory_space<vmem>>, vector<224x196xf32>
    %c0_1 = arith.constant 0 : index
    %c0_2 = arith.constant 0 : index
    %1 = vector.load %arg2[%c0_1, %c0_2] : memref<224x196xf32, #tpu.memory_space<vmem>>, vector<224x196xf32>
    %2 = arith.addf %0, %1 : vector<224x196xf32>
    %c0_3 = arith.constant 0 : index
    %c0_4 = arith.constant 0 : index
    %3 = vector.load %arg3[%c0_3, %c0_4] : memref<1344x224xf32, #tpu.memory_space<vmem>>, vector<1344x224xf32>
    %cst = arith.constant dense<0.000000e+00> : vector<1344x196xf32>
    %4 = tpu.matmul %3, %2, %cst {dimension_numbers = #tpu.dot_dimension_numbers<[1], [0], [0], [1], [0, 0, 1, 1], [], []>} : vector<1344x224xf32>, vector<224x196xf32>, vector<1344x196xf32> -> vector<1344x196xf32>
    %cst_5 = arith.constant dense<0.000000e+00> : vector<224xf32>
    %5 = vector.multi_reduction <add>, %2, %cst_5 [1] : vector<224x196xf32> to vector<224xf32>
    %6 = vector.shape_cast %5 : vector<224xf32> to vector<224x1xf32>
    %cst_6 = arith.constant dense<0.000000e+00> : vector<1344x1xf32>
    %7 = tpu.matmul %3, %6, %cst_6 {dimension_numbers = #tpu.dot_dimension_numbers<[1], [0], [0], [1], [0, 0, 1, 1], [], []>} : vector<1344x224xf32>, vector<224x1xf32>, vector<1344x1xf32> -> vector<1344x1xf32>
    %cst_7 = arith.constant 0.00510204071 : f32
    %8 = vector.broadcast %cst_7 : f32 to vector<1344x1xf32>
    %9 = arith.mulf %7, %8 : vector<1344x1xf32>
    %10 = vector.broadcast %9 : vector<1344x1xf32> to vector<1344x196xf32>
    %11 = arith.subf %4, %10 : vector<1344x196xf32>
    %12 = arith.mulf %11, %11 : vector<1344x196xf32>
    %cst_8 = arith.constant dense<0.000000e+00> : vector<1344xf32>
    %13 = vector.multi_reduction <add>, %12, %cst_8 [1] : vector<1344x196xf32> to vector<1344xf32>
    %14 = vector.shape_cast %13 : vector<1344xf32> to vector<1344x1xf32>
    %cst_9 = arith.constant 0.00510204071 : f32
    %15 = vector.broadcast %cst_9 : f32 to vector<1344x1xf32>
    %16 = arith.mulf %14, %15 : vector<1344x1xf32>
    %c0_10 = arith.constant 0 : index
    %c0_11 = arith.constant 0 : index
    %17 = vector.load %arg4[%c0_10, %c0_11] : memref<1344x1xf32, #tpu.memory_space<vmem>>, vector<1344x1xf32>
    %cst_12 = arith.constant 1.000000e-03 : f32
    %18 = vector.broadcast %cst_12 : f32 to vector<1344x1xf32>
    %19 = arith.addf %16, %18 : vector<1344x1xf32>
    %20 = math.rsqrt %19 : vector<1344x1xf32>
    %21 = arith.mulf %17, %20 : vector<1344x1xf32>
    %22 = vector.broadcast %21 : vector<1344x1xf32> to vector<1344x196xf32>
    %23 = arith.mulf %11, %22 : vector<1344x196xf32>
    %c0_13 = arith.constant 0 : index
    %c0_14 = arith.constant 0 : index
    %24 = vector.load %arg5[%c0_13, %c0_14] : memref<1344x1xf32, #tpu.memory_space<vmem>>, vector<1344x1xf32>
    %25 = vector.broadcast %24 : vector<1344x1xf32> to vector<1344x196xf32>
    %26 = arith.addf %23, %25 : vector<1344x196xf32>
    %c0_15 = arith.constant 0 : index
    %c0_16 = arith.constant 0 : index
    %27 = vector.load %arg6[%c0_15, %c0_16] : memref<1344x196xf32, #tpu.memory_space<vmem>>, vector<1344x196xf32>
    tpu.vector_store %arg6[%c0_15, %c0_16], %26 {strides = array<i32>} : memref<1344x196xf32, #tpu.memory_space<vmem>>, vector<1344x196xf32>,
    return
  }
  func.func @transform_0(%arg0: i32) -> (i32, i32) {
    %c0_i32 = arith.constant 0 : i32
    %c0_i32_0 = arith.constant 0 : i32
    %c0_i32_1 = arith.constant 0 : i32
    return %c0_i32, %c0_i32_0 : i32, i32
  }
  func.func @transform_1(%arg0: i32) -> (i32, i32) {
    %c0_i32 = arith.constant 0 : i32
    %c0_i32_0 = arith.constant 0 : i32
    %c0_i32_1 = arith.constant 0 : i32
    return %c0_i32, %c0_i32_0 : i32, i32
  }
  func.func @transform_2(%arg0: i32) -> (i32, i32) {
    %c0_i32 = arith.constant 0 : i32
    %c0_i32_0 = arith.constant 0 : i32
    return %arg0, %c0_i32 : i32, i32
  }
  func.func @transform_3(%arg0: i32) -> (i32, i32) {
    %c0_i32 = arith.constant 0 : i32
    %c0_i32_0 = arith.constant 0 : i32
    return %arg0, %c0_i32 : i32, i32
  }
  func.func @transform_4(%arg0: i32) -> (i32, i32) {
    %c0_i32 = arith.constant 0 : i32
    %c0_i32_0 = arith.constant 0 : i32
    return %arg0, %c0_i32 : i32, i32
  }
  func.func @transform_5(%arg0: i32) -> (i32, i32) {
    %c0_i32 = arith.constant 0 : i32
    %c0_i32_0 = arith.constant 0 : i32
    return %arg0, %c0_i32 : i32, i32
  }
}

</mosaic_0001>

<bundles_post_ra>
// kernel: tpu_custom_call.1
= control target key start
LH: loop header
LB: loop body
LE: loop exit
PB: predicated region body
PF: predicated region fallthrough
CT: control target
= control target key end

     0   :  { %vm2102_vm0 = vcmask 556032   ;;  %vm524_vm1 = vcmask 785408   ;;  %s18060_s0 = inlined_call_operand.vmem [shape: f32[224,196], index: 0, kind: input, shape index: {}]   ;;  %s18061_s1 = inlined_call_operand.vmem [shape: f32[224,196], index: 1, kind: input, shape index: {}]   ;;  %s18062_s4 = inlined_call_operand.vmem [shape: f32[1344,1], index: 4, kind: input, shape index: {}]   ;;  %s18063_s2 = inlined_call_operand.vmem [shape: f32[1344,224], index: 2, kind: input, shape index: {}]   ;;  %s18064_s3 = inlined_call_operand.vmem [shape: f32[1344,1], index: 3, kind: input, shape index: {}]   ;;  %s18065_s5 = inlined_call_operand.vmem [shape: f32[1344,196], index: 5, kind: output, shape index: {}]  }
   0x1   :  { %v24_v0 = vld [vmem:[%s18060_s0 + $0x20] sm:$0xff]  ;;  %v25_v1 = vld [vmem:[%s18060_s0 + $0x28] sm:$0xff]  ;;  %v26_v10 = vld [vmem:[%s18060_s0 + $0x30] sm:$0xff] }
   0x2   :  { %v80_v2 = vld [vmem:[%s18061_s1 + $0x20] sm:$0xff]  ;;  %v81_v3 = vld [vmem:[%s18061_s1 + $0x28] sm:$0xff]  ;;  %v27_v13 = vld [vmem:[%s18060_s0 + $0x38] sm:$0xff] }
   0x3   :  { %v9892_v4 = vadd.f32 %v80_v2, %v24_v0  ;;  %v20_v5 = vld [vmem:[%s18060_s0] sm:$0xff]  ;;  %v21_v6 = vld [vmem:[%s18060_s0 + $0x8] sm:$0xff]  ;;  %v9900_v7 = vadd.f32 %v81_v3, %v25_v1  ;;  %v82_v14 = vld [vmem:[%s18061_s1 + $0x30] sm:$0xff] }
   0x4   :  { %v76_v8 = vld [vmem:[%s18061_s1] sm:$0xff]  ;;  %v77_v9 = vld [vmem:[%s18061_s1 + $0x8] sm:$0xff]  ;;  %v83_v15 = vld [vmem:[%s18061_s1 + $0x38] sm:$0xff]  ;;  %v9926_v17 = vadd.f32 %v82_v14, %v26_v10 }
   0x5   :  { %v9911_v11 = vadd.f32 %v76_v8, %v20_v5  ;;  %v9913_v12 = vadd.f32 %v77_v9, %v21_v6  ;;  %v2111_v16 = vsel %vm2102_vm0, %v9900_v7, 0.0  ;;  %v9928_v18 = vadd.f32 %v83_v15, %v27_v13  ;;  %v22_v19 = vld [vmem:[%s18060_s0 + $0x10] sm:$0xff]  ;;  %v23_v20 = vld [vmem:[%s18060_s0 + $0x18] sm:$0xff]  ;;  %v28_v33 = vld [vmem:[%s18060_s0 + $0x40] sm:$0xff] }
   0x6   :  { %v78_v21 = vld [vmem:[%s18061_s1 + $0x10] sm:$0xff]  ;;  %v2112_v22 = vadd.f32 %v2111_v16, %v9892_v4  ;;  %v79_v24 = vld [vmem:[%s18061_s1 + $0x18] sm:$0xff]  ;;  %v29_v37 = vld [vmem:[%s18060_s0 + $0x48] sm:$0xff] }
   0x7   :  { %v2103_v23 = vsel %vm2102_vm0, %v9913_v12, 0.0  ;;  %v9945_v25 = vadd.f32 %v78_v21, %v22_v19  ;;  %v30_v26 = vld [vmem:[%s18060_s0 + $0x50] sm:$0xff]  ;;  %v31_v27 = vld [vmem:[%s18060_s0 + $0x58] sm:$0xff]  ;;  %v2115_v29 = vsel %vm2102_vm0, %v9928_v18, 0.0  ;;  %v9956_v30 = vadd.f32 %v79_v24, %v23_v20  ;;  %v84_v38 = vld [vmem:[%s18061_s1 + $0x40] sm:$0xff] }
   0x8   :  { %v2104_v28 = vadd.f32 %v2103_v23, %v9911_v11  ;;  %v86_v31 = vld [vmem:[%s18061_s1 + $0x50] sm:$0xff]  ;;  %v87_v32 = vld [vmem:[%s18061_s1 + $0x58] sm:$0xff]  ;;  %2113 = vadd.xlane.f32.xlu1 %v2112_v22  ;;  %v2116_v34 = vadd.f32 %v2115_v29, %v9926_v17  ;;  %v85_v39 = vld [vmem:[%s18061_s1 + $0x48] sm:$0xff]  ;;  %v9983_v41 = vadd.f32 %v84_v38, %v28_v33 }
   0x9   :  { %v9968_v35 = vadd.f32 %v86_v31, %v30_v26  ;;  %v9970_v36 = vadd.f32 %v87_v32, %v31_v27  ;;  %v2107_v40 = vsel %vm2102_vm0, %v9956_v30, 0.0  ;;  %v9985_v42 = vadd.f32 %v85_v39, %v29_v37  ;;  %v34_v43 = vld [vmem:[%s18060_s0 + $0x70] sm:$0xff]  ;;  %v35_v44 = vld [vmem:[%s18060_s0 + $0x78] sm:$0xff]  ;;  %v32_v49 = vld [vmem:[%s18060_s0 + $0x60] sm:$0xff] }
   0xa   :  { %2105 = vadd.xlane.f32.xlu0 %v2104_v28  ;;  %v90_v45 = vld [vmem:[%s18061_s1 + $0x70] sm:$0xff]  ;;  %v2108_v46 = vadd.f32 %v2107_v40, %v9945_v25  ;;  %v91_v48 = vld [vmem:[%s18061_s1 + $0x78] sm:$0xff]  ;;  %v33_v50 = vld [vmem:[%s18060_s0 + $0x68] sm:$0xff] }
   0xb   :  { %v2123_v47 = vsel %vm2102_vm0, %v9970_v36, 0.0  ;;  %v2119_v51 = vsel %vm2102_vm0, %v9985_v42, 0.0  ;;  %v10010_v52 = vadd.f32 %v91_v48, %v35_v44  ;;  %v88_v53 = vld [vmem:[%s18061_s1 + $0x60] sm:$0xff]  ;;  %v89_v54 = vld [vmem:[%s18061_s1 + $0x68] sm:$0xff]  ;;  %v10019_v56 = vadd.f32 %v90_v45, %v34_v43  ;;  %v38_v58 = vld [vmem:[%s18060_s0 + $0x90] sm:$0xff] }
   0xc   :  { %2117 = vadd.xlane.f32.xlu1 %v2116_v34  ;;  %v2124_v55 = vadd.f32 %v2123_v47, %v9968_v35  ;;  %v10021_v57 = vadd.f32 %v89_v54, %v33_v50  ;;  %v39_v59 = vld [vmem:[%s18060_s0 + $0x98] sm:$0xff]  ;;  %v2120_v61 = vadd.f32 %v2119_v51, %v9983_v41  ;;  %v10035_v63 = vadd.f32 %v88_v53, %v32_v49  ;;  %v94_v0 = vld [vmem:[%s18061_s1 + $0x90] sm:$0xff]  ;;  %v36_v2 = vld [vmem:[%s18060_s0 + $0x80] sm:$0xff] }
   0xd   :  { %v95_v60 = vld [vmem:[%s18061_s1 + $0x98] sm:$0xff]  ;;  %v2131_v62 = vsel %vm2102_vm0, %v10010_v52, 0.0  ;;  %v37_v3 = vld [vmem:[%s18060_s0 + $0x88] sm:$0xff]  ;;  %v92_v6 = vld [vmem:[%s18061_s1 + $0x80] sm:$0xff]  ;;  %v10065_v15 = vadd.f32 %v94_v0, %v38_v58 }
   0xe   :  { %2109 = vadd.xlane.f32.xlu0 %v2108_v46  ;;  %v10040_v1 = vadd.f32 %v95_v60, %v39_v59  ;;  %v2127_v5 = vsel %vm2102_vm0, %v10021_v57, 0.0  ;;  %v93_v8 = vld [vmem:[%s18061_s1 + $0x88] sm:$0xff]  ;;  %v43_v9 = vld [vmem:[%s18060_s0 + $0xb8] sm:$0xff]  ;;  %v2132_v14 = vadd.f32 %v2131_v62, %v10019_v56  ;;  %v42_v16 = vld [vmem:[%s18060_s0 + $0xb0] sm:$0xff]  ;;  %v10079_v23 = vadd.f32 %v92_v6, %v36_v2 }
   0xf   :  { %v10059_v10 = vadd.f32 %v93_v8, %v37_v3  ;;  %v99_v13 = vld [vmem:[%s18061_s1 + $0xb8] sm:$0xff]  ;;  %v41_v19 = vld [vmem:[%s18060_s0 + $0xa8] sm:$0xff]  ;;  %v2128_v21 = vadd.f32 %v2127_v5, %v10035_v63  ;;  %v98_v24 = vld [vmem:[%s18061_s1 + $0xb0] sm:$0xff] }
  0x10   :  { %2125 = vadd.xlane.f32.xlu1 %v2124_v55  ;;  %v97_v20 = vld [vmem:[%s18061_s1 + $0xa8] sm:$0xff]  ;;  %v2139_v22 = vsel %vm2102_vm0, %v10040_v1, 0.0  ;;  %v10084_v26 = vadd.f32 %v99_v13, %v43_v9  ;;  %v40_v27 = vld [vmem:[%s18060_s0 + $0xa0] sm:$0xff]  ;;  %v47_v32 = vld [vmem:[%s18060_s0 + $0xd8] sm:$0xff]  ;;  %v154_v44 = vadd.f32 %v98_v24, %v42_v16 }
  0x11   :  { %v96_v28 = vld [vmem:[%s18061_s1 + $0xa0] sm:$0xff]  ;;  %v2135_v29 = vsel %vm2102_vm0, %v10059_v10, 0.0  ;;  %v10094_v31 = vadd.f32 %v97_v20, %v41_v19  ;;  %v103_v33 = vld [vmem:[%s18061_s1 + $0xd8] sm:$0xff]  ;;  %v46_v34 = vld [vmem:[%s18060_s0 + $0xd0] sm:$0xff]  ;;  %v2140_v43 = vadd.f32 %v2139_v22, %v10065_v15 }
  0x12   :  { %2121 = vadd.xlane.f32.xlu0 %v2120_v61  ;;  %v102_v37 = vld [vmem:[%s18061_s1 + $0xd0] sm:$0xff]  ;;  %v45_v38 = vld [vmem:[%s18060_s0 + $0xc8] sm:$0xff]  ;;  %v10118_v45 = vadd.f32 %v96_v28, %v40_v27  ;;  %v51_v46 = vld [vmem:[%s18060_s0 + $0xf8] sm:$0xff]  ;;  %v2136_v49 = vadd.f32 %v2135_v29, %v10079_v23  ;;  %v2147_v50 = vsel %vm2102_vm0, %v10084_v26, 0.0  ;;  %v159_v51 = vadd.f32 %v103_v33, %v47_v32 }
  0x13   :  { %v101_v39 = vld [vmem:[%s18061_s1 + $0xc8] sm:$0xff]  ;;  %v50_v40 = vld [vmem:[%s18060_s0 + $0xf0] sm:$0xff]  ;;  %v107_v48 = vld [vmem:[%s18061_s1 + $0xf8] sm:$0xff]  ;;  %v2143_v59 = vsel %vm2102_vm0, %v10094_v31, 0.0  ;;  %v2148_v5 = vadd.f32 %v2147_v50, %v154_v44  ;;  %v158_v6 = vadd.f32 %v102_v37, %v46_v34 }
  0x14   :  { %2133 = vadd.xlane.f32.xlu1 %v2132_v14  ;;  %v106_v47 = vld [vmem:[%s18061_s1 + $0xf0] sm:$0xff]  ;;  %v163_v53 = vadd.f32 %v107_v48, %v51_v46  ;;  %v48_v54 = vld [vmem:[%s18060_s0 + $0xe0] sm:$0xff]  ;;  %v49_v55 = vld [vmem:[%s18060_s0 + $0xe8] sm:$0xff]  ;;  %v157_v62 = vadd.f32 %v101_v39, %v45_v38  ;;  %v2144_v9 = vadd.f32 %v2143_v59, %v10118_v45  ;;  %v2155_v13 = vsel %vm2102_vm0, %v159_v51, 0.0 }
  0x15   :  { %v104_v58 = vld [vmem:[%s18061_s1 + $0xe0] sm:$0xff]  ;;  %v162_v0 = vadd.f32 %v106_v47, %v50_v40  ;;  %v105_v2 = vld [vmem:[%s18061_s1 + $0xe8] sm:$0xff]  ;;  %v55_v19 = vld [vmem:[%s18060_s0 + $0x118] sm:$0xff]  ;;  %v2156_v24 = vadd.f32 %v2155_v13, %v158_v6 }
  0x16   :  { %2129 = vadd.xlane.f32.xlu0 %v2128_v21  ;;  %v44_v60 = vld [vmem:[%s18060_s0 + $0xc0] sm:$0xff]  ;;  %v161_v3 = vadd.f32 %v105_v2, %v49_v55  ;;  %1029 = vmatprep.subr.mxu0 %v163_v53  ;;  %v160_v8 = vadd.f32 %v104_v58, %v48_v54  ;;  %v2151_v16 = vsel %vm2102_vm0, %v157_v62, 0.0  ;;  %v111_v20 = vld [vmem:[%s18061_s1 + $0x118] sm:$0xff]  ;;  %v53_v21 = vld [vmem:[%s18060_s0 + $0x108] sm:$0xff]  ;;  %v2163_v28 = vsel %vm2102_vm0, %v163_v53, 0.0 }
  0x17   :  { %v100_v61 = vld [vmem:[%s18061_s1 + $0xc0] sm:$0xff]  ;;  %1030 = vmatpush1.msra.mxu0 %v162_v0  ;;  %v109_v22 = vld [vmem:[%s18061_s1 + $0x108] sm:$0xff]  ;;  %v54_v29 = vld [vmem:[%s18060_s0 + $0x110] sm:$0xff]  ;;  %v10174_v33 = vadd.f32 %v111_v20, %v55_v19  ;;  %v2164_v48 = vadd.f32 %v2163_v28, %v162_v0 }
  0x18   :  { %2141 = vadd.xlane.f32.xlu1 %v2140_v43  ;;  %v156_v14 = vadd.f32 %v100_v61, %v44_v60  ;;  %1031 = vmatprep.subr.mxu0 %v161_v3  ;;  %v110_v32 = vld [vmem:[%s18061_s1 + $0x110] sm:$0xff]  ;;  %v52_v34 = vld [vmem:[%s18060_s0 + $0x100] sm:$0xff]  ;;  %v2159_v37 = vsel %vm2102_vm0, %v161_v3, 0.0  ;;  %v10183_v39 = vadd.f32 %v109_v22, %v53_v21  ;;  %v59_v40 = vld [vmem:[%s18060_s0 + $0x138] sm:$0xff] }
  0x19   :  { %1032 = vmatpush1.msra.mxu0 %v160_v8  ;;  %v108_v38 = vld [vmem:[%s18061_s1 + $0x100] sm:$0xff]  ;;  %v115_v43 = vld [vmem:[%s18061_s1 + $0x138] sm:$0xff]  ;;  %v57_v46 = vld [vmem:[%s18060_s0 + $0x128] sm:$0xff]  ;;  %v2160_v50 = vadd.f32 %v2159_v37, %v160_v8 }
  0x1a   :  { %2137 = vadd.xlane.f32.xlu0 %v2136_v49  ;;  %1033 = vmatprep.subr.mxu0 %v159_v51  ;;  %v2152_v27 = vadd.f32 %v2151_v16, %v156_v14  ;;  %v113_v47 = vld [vmem:[%s18061_s1 + $0x128] sm:$0xff]  ;;  %v10198_v49 = vadd.f32 %v110_v32, %v54_v29  ;;  %v2171_v51 = vsel %vm2102_vm0, %v10174_v33, 0.0  ;;  %v10202_v53 = vadd.f32 %v108_v38, %v52_v34  ;;  %v58_v54 = vld [vmem:[%s18060_s0 + $0x130] sm:$0xff]  ;;  %v112_v59 = vld [vmem:[%s18061_s1 + $0x120] sm:$0xff] }
  0x1b   :  { %1034 = vmatpush1.msra.mxu0 %v158_v6  ;;  %v10210_v55 = vadd.f32 %v115_v43, %v59_v40  ;;  %v2167_v58 = vsel %vm2102_vm0, %v10183_v39, 0.0  ;;  %v10221_v60 = vadd.f32 %v113_v47, %v57_v46  ;;  %v63_v61 = vld [vmem:[%s18060_s0 + $0x158] sm:$0xff]  ;;  %v117_v0 = vld [vmem:[%s18061_s1 + $0x148] sm:$0xff]  ;;  %v62_v8 = vld [vmem:[%s18060_s0 + $0x150] sm:$0xff]  ;;  %v9848_v47 = vmov 0.0  }
  0x1c   :  { %2149 = vadd.xlane.f32.xlu1 %v2148_v5  ;;  %1035 = vmatprep.subr.mxu0 %v157_v62  ;;  %v119_v62 = vld [vmem:[%s18061_s1 + $0x158] sm:$0xff]  ;;  %v2172_v2 = vadd.f32 %v2171_v51, %v10198_v49  ;;  %v121_v21 = vld [vmem:[%s18061_s1 + $0x168] sm:$0xff]  ;;  %v66_v29 = vld [vmem:[%s18060_s0 + $0x170] sm:$0xff] }
  0x1d   :  { %1036 = vmatpush1.msra.mxu0 %v156_v14  ;;  %v2179_v5 = vsel %vm2102_vm0, %v10210_v55, 0.0  ;;  %v2175_v13 = vsel %vm2102_vm0, %v10221_v60, 0.0  ;;  %v116_v14 = vld [vmem:[%s18061_s1 + $0x140] sm:$0xff]  ;;  %v67_v19 = vld [vmem:[%s18060_s0 + $0x178] sm:$0xff]  ;;  %v125_v46 = vld [vmem:[%s18061_s1 + $0x188] sm:$0xff]  ;;  %2215 = vmatprep.subr.mxu1 %v9848_v47 }
  0x1e   :  { %2145 = vadd.xlane.f32.xlu0 %v2144_v9  ;;  %1037 = vmatprep.subr.mxu0 %v10084_v26  ;;  %v114_v26 = vld [vmem:[%s18061_s1 + $0x130] sm:$0xff]  ;;  %v10252_v9 = vadd.f32 %v119_v62, %v63_v61  ;;  %v123_v20 = vld [vmem:[%s18061_s1 + $0x178] sm:$0xff]  ;;  %v120_v37 = vld [vmem:[%s18061_s1 + $0x160] sm:$0xff] }
  0x1f   :  { %1038 = vmatpush1.msra.mxu0 %v154_v44  ;;  %v56_v44 = vld [vmem:[%s18060_s0 + $0x120] sm:$0xff]  ;;  %v10238_v3 = vadd.f32 %v114_v26, %v58_v54  ;;  %v10294_v32 = vadd.f32 %v123_v20, %v67_v19  ;;  %v71_v40 = vld [vmem:[%s18060_s0 + $0x198] sm:$0xff]  ;;  %v70_v26 = vld [vmem:[%s18060_s0 + $0x190] sm:$0xff] }
  0x20   :  { %2157 = vadd.xlane.f32.xlu1 %v2156_v24  ;;  %1039 = vmatprep.subr.mxu0 %v10094_v31  ;;  %v61_v31 = vld [vmem:[%s18060_s0 + $0x148] sm:$0xff]  ;;  %v10244_v6 = vadd.f32 %v112_v59, %v56_v44  ;;  %v127_v43 = vld [vmem:[%s18061_s1 + $0x198] sm:$0xff]  ;;  %v124_v59 = vld [vmem:[%s18061_s1 + $0x180] sm:$0xff] }
  0x21   :  { %1040 = vmatpush1.msra.mxu0 %v10118_v45  ;;  %v2168_v45 = vadd.f32 %v2167_v58, %v10202_v53  ;;  %v10263_v16 = vadd.f32 %v117_v0, %v61_v31  ;;  %v2180_v22 = vadd.f32 %v2179_v5, %v10238_v3  ;;  %v2195_v51 = vsel %vm2102_vm0, %v10294_v32, 0.0  ;;  %v75_v62 = vld [vmem:[%s18060_s0 + $0x1b8] sm:$0xff]  ;;  %v129_v0 = vld [vmem:[%s18061_s1 + $0x1a8] sm:$0xff] }
  0x22   :  { %2153 = vadd.xlane.f32.xlu0 %v2152_v27  ;;  %1041 = vmatprep.subr.mxu0 %v10040_v1  ;;  %v118_v1 = vld [vmem:[%s18061_s1 + $0x150] sm:$0xff]  ;;  %v2187_v27 = vsel %vm2102_vm0, %v10252_v9, 0.0  ;;  %v183_v44 = vadd.f32 %v127_v43, %v71_v40  ;;  %v131_v31 = vld [vmem:[%s18061_s1 + $0x1b8] sm:$0xff]  ;;  %v10486_v40 = vld [vmem:[%s18063_s2 + $0x20] sm:$0xff] }
  0x23   :  { %1042 = vmatpush1.msra.mxu0 %v10065_v15  ;;  %v60_v15 = vld [vmem:[%s18060_s0 + $0x140] sm:$0xff]  ;;  %v10280_v24 = vadd.f32 %v118_v1, %v62_v8  ;;  %v2183_v34 = vsel %vm2102_vm0, %v10263_v16, 0.0  ;;  %v74_v1 = vld [vmem:[%s18060_s0 + $0x1b0] sm:$0xff]  ;;  %v10491_v43 = vld [vmem:[%s18063_s2 + $0x38] sm:$0xff] }
  0x24   :  { %2165 = vadd.xlane.f32.xlu1 %v2164_v48  ;;  %1043 = vmatprep.subr.mxu0 %v10059_v10  ;;  %v65_v10 = vld [vmem:[%s18060_s0 + $0x168] sm:$0xff]  ;;  %v10286_v28 = vadd.f32 %v116_v14, %v60_v15  ;;  %v187_v15 = vadd.f32 %v131_v31, %v75_v62  ;;  %v128_v14 = vld [vmem:[%s18061_s1 + $0x1a0] sm:$0xff]  ;;  %v10567_v31 = vld [vmem:[%s18063_s2 + $0x78] sm:$0xff] }
  0x25   :  { %1044 = vmatpush1.msra.mxu0 %v10079_v23  ;;  %v2176_v23 = vadd.f32 %v2175_v13, %v10244_v6  ;;  %v10305_v38 = vadd.f32 %v121_v21, %v65_v10  ;;  %v2188_v48 = vadd.f32 %v2187_v27, %v10280_v24  ;;  %v7499_v27 = vld [vmem:[%s18062_s4 + $0x58] sm:$0xff]  ;;  %v10562_v62 = vld [vmem:[%s18063_s2 + $0x60] sm:$0xff] }
  0x26   :  { %2161 = vadd.xlane.f32.xlu0 %v2160_v50  ;;  %1045 = vmatprep.subr.mxu0 %v10010_v52  ;;  %v122_v52 = vld [vmem:[%s18061_s1 + $0x170] sm:$0xff]  ;;  %v2211_v21 = vsel %vm2102_vm0, %v187_v15, 0.0 }
  0x27   :  { %1046 = vmatpush1.msra.mxu0 %v10019_v56  ;;  %v64_v56 = vld [vmem:[%s18060_s0 + $0x160] sm:$0xff]  ;;  %v10323_v50 = vadd.f32 %v122_v52, %v66_v29  ;;  %v2191_v58 = vsel %vm2102_vm0, %v10305_v38, 0.0  ;;  %v10453_v29 = vld [vmem:[%s18063_s2 + $0x18] sm:$0xff]  ;;  %v7502_v52 = vld [vmem:[%s18062_s4 + $0x70] sm:$0xff] }
  0x28   :  { %2173 = vadd.xlane.f32.xlu1 %v2172_v2  ;;  %1047 = vmatprep.subr.mxu0 %v10021_v57  ;;  %v69_v57 = vld [vmem:[%s18060_s0 + $0x188] sm:$0xff]  ;;  %v10329_v54 = vadd.f32 %v120_v37, %v64_v56  ;;  %v10467_v56 = vld [vmem:[%s18063_s2 + $0x10] sm:$0xff]  ;;  %v7504_v37 = vld [vmem:[%s18062_s4 + $0x80] sm:$0xff] }
  0x29   :  { %1048 = vmatpush1.msra.mxu0 %v10035_v63  ;;  %v2184_v63 = vadd.f32 %v2183_v34, %v10286_v28  ;;  %v181_v61 = vadd.f32 %v125_v46, %v69_v57  ;;  %v2196_v2 = vadd.f32 %v2195_v51, %v10323_v50  ;;  %v10472_v34 = vld [vmem:[%s18063_s2 + $0x28] sm:$0xff]  ;;  %v7506_v57 = vld [vmem:[%s18062_s4 + $0x90] sm:$0xff]  ;;  %v7507_v51 = vld [vmem:[%s18062_s4 + $0x98] sm:$0xff] }
  0x2a   :  { %2169 = vadd.xlane.f32.xlu0 %v2168_v45  ;;  %1049 = vmatprep.subr.mxu0 %v9970_v36  ;;  %v126_v36 = vld [vmem:[%s18061_s1 + $0x190] sm:$0xff]  ;;  %v2192_v5 = vadd.f32 %v2191_v58, %v10329_v54  ;;  %v7505_v46 = vld [vmem:[%s18062_s4 + $0x88] sm:$0xff] }
  0x2b   :  { %1050 = vmatpush1.msra.mxu0 %v9968_v35  ;;  %v68_v35 = vld [vmem:[%s18060_s0 + $0x180] sm:$0xff]  ;;  %v182_v45 = vadd.f32 %v126_v36, %v70_v26  ;;  %v2199_v13 = vsel %vm2102_vm0, %v181_v61, 0.0  ;;  %v10529_v26 = vld [vmem:[%s18063_s2 + $0x58] sm:$0xff]  ;;  %v7510_v36 = vld [vmem:[%s18062_s4 + $0xb0] sm:$0xff] }
  0x2c   :  { %2181 = vadd.xlane.f32.xlu1 %v2180_v22  ;;  %1051 = vmatprep.subr.mxu0 %v9985_v42  ;;  %v73_v42 = vld [vmem:[%s18060_s0 + $0x1a8] sm:$0xff]  ;;  %v180_v8 = vadd.f32 %v124_v59, %v68_v35  ;;  %v10543_v35 = vld [vmem:[%s18063_s2 + $0x50] sm:$0xff]  ;;  %v7512_v59 = vld [vmem:[%s18062_s4 + $0xc0] sm:$0xff] }
  0x2d   :  { %1052 = vmatpush1.msra.mxu0 %v9983_v41  ;;  %v2203_v41 = vsel %vm2102_vm0, %v183_v44, 0.0  ;;  %v185_v19 = vadd.f32 %v129_v0, %v73_v42  ;;  %v10548_v58 = vld [vmem:[%s18063_s2 + $0x68] sm:$0xff]  ;;  %v7514_v42 = vld [vmem:[%s18062_s4 + $0xd0] sm:$0xff] }
  0x2e   :  { %2177 = vadd.xlane.f32.xlu0 %v2176_v23  ;;  %1053 = vmatprep.subr.mxu0 %v9928_v18  ;;  %v130_v18 = vld [vmem:[%s18061_s1 + $0x1b0] sm:$0xff]  ;;  %v2204_v20 = vadd.f32 %v2203_v41, %v182_v45  ;;  %v7513_v0 = vld [vmem:[%s18062_s4 + $0xc8] sm:$0xff]  ;;  %v7515_v41 = vld [vmem:[%s18062_s4 + $0xd8] sm:$0xff] }
  0x2f   :  { %1054 = vmatpush1.msra.mxu0 %v9926_v17  ;;  %v72_v17 = vld [vmem:[%s18060_s0 + $0x1a0] sm:$0xff]  ;;  %v186_v10 = vadd.f32 %v130_v18, %v74_v1  ;;  %v2207_v23 = vsel %vm2102_vm0, %v185_v19, 0.0  ;;  %v10605_v1 = vld [vmem:[%s18063_s2 + $0x98] sm:$0xff]  ;;  %v7518_v18 = vld [vmem:[%s18062_s4 + $0xf0] sm:$0xff] }
  0x30   :  { %2189 = vadd.xlane.f32.xlu1 %v2188_v48  ;;  %1055 = vmatprep.subr.mxu0 %v9900_v7  ;;  %v2200_v7 = vadd.f32 %v2199_v13, %v180_v8  ;;  %v184_v22 = vadd.f32 %v128_v14, %v72_v17  ;;  %v10505_v48 = vld [vmem:[%s18063_s2 + $0x30] sm:$0xff]  ;;  %v10624_v17 = vld [vmem:[%s18063_s2 + $0xa8] sm:$0xff]  ;;  %v7520_v14 = vld [vmem:[%s18062_s4 + $0x100] sm:$0xff] }
  0x31   :  { %1056 = vmatpush1.msra.mxu0 %v9892_v4  ;;  %v2212_v4 = vadd.f32 %v2211_v21, %v186_v10  ;;  %v10619_v13 = vld [vmem:[%s18063_s2 + $0x90] sm:$0xff]  ;;  %v7521_v21 = vld [vmem:[%s18062_s4 + $0x108] sm:$0xff] }
  0x32   :  { %2185 = vadd.xlane.f32.xlu0 %v2184_v63  ;;  %1057 = vmatprep.subr.mxu0 %v9956_v30  ;;  %v2208_v30 = vadd.f32 %v2207_v23, %v184_v22  ;;  %v7508_v63 = vld [vmem:[%s18062_s4 + $0xa0] sm:$0xff] }
  0x33   :  { %1058 = vmatpush1.msra.mxu0 %v9945_v25  ;;  %v9849_v25 = vmov 0  }
  0x34   :  { %2197 = vadd.xlane.f32.xlu1 %v2196_v2  ;;  %1059 = vmatprep.subr.mxu0 %v9913_v12  ;;  %v7490_v12 = vld [vmem:[%s18062_s4 + $0x10] sm:$0xff] }
  0x35   :  { %1060 = vmatpush1.msra.mxu0 %v9911_v11  ;;  %9511 = vset.pattern.permute.xlu0 %v9849_v25  ;;  %v7488_v11 = vld [vmem:[%s18062_s4] sm:$0xff]  ;;  %v10581_v2 = vld [vmem:[%s18063_s2 + $0x70] sm:$0xff] }
  0x36   :  { %2193 = vadd.xlane.f32.xlu0 %v2192_v5  ;;  %1069 = vmatprep.subr.mxu0 %v187_v15  ;;  %v7516_v5 = vld [vmem:[%s18062_s4 + $0xe0] sm:$0xff]  ;;  %v7517_v15 = vld [vmem:[%s18062_s4 + $0xe8] sm:$0xff] }
  0x37   :  { %1070 = vmatpush2.msra.mxu0 %v186_v10  ;;  %9510 = vset.pattern.permute.xlu1 %v9849_v25  ;;  %v10643_v10 = vld [vmem:[%s18063_s2 + $0xb8] sm:$0xff]  ;;  %v7524_v25 = vld [vmem:[%s18062_s4 + $0x120] sm:$0xff] }
  0x38   :  { %2205 = vadd.xlane.f32.xlu1 %v2204_v20  ;;  %1071 = vmatprep.subr.mxu0 %v185_v19  ;;  %v7519_v19 = vld [vmem:[%s18062_s4 + $0xf8] sm:$0xff]  ;;  %v10638_v20 = vld [vmem:[%s18063_s2 + $0xa0] sm:$0xff] }
  0x39   :  { %1072 = vmatpush2.msra.mxu0 %v184_v22  ;;  %v10657_v22 = vld [vmem:[%s18063_s2 + $0xb0] sm:$0xff] }
  0x3a   :  { %2201 = vadd.xlane.f32.xlu0 %v2200_v7  ;;  %1073 = vmatprep.subr.mxu0 %v183_v44  ;;  %v7509_v44 = vld [vmem:[%s18062_s4 + $0xa8] sm:$0xff]  ;;  %v7522_v7 = vld [vmem:[%s18062_s4 + $0x110] sm:$0xff] }
  0x3b   :  { %1074 = vmatpush2.msra.mxu0 %v182_v45  ;;  %v10586_v45 = vld [vmem:[%s18063_s2 + $0x88] sm:$0xff] }
  0x3c   :  { %2213 = vadd.xlane.f32.xlu1 %v2212_v4  ;;  %1075 = vmatprep.subr.mxu0 %v181_v61  ;;  %v7511_v61 = vld [vmem:[%s18062_s4 + $0xb8] sm:$0xff]  ;;  %v10664_v4 = vld [vmem:[%s18063_s2 + $0xc8] sm:$0xff] }
  0x3d   :  { %1076 = vmatpush2.msra.mxu0 %v180_v8  ;;  %v10600_v8 = vld [vmem:[%s18063_s2 + $0x80] sm:$0xff] }
  0x3e   :  { %2209 = vadd.xlane.f32.xlu0 %v2208_v30  ;;  %1077 = vmatprep.subr.mxu0 %v10294_v32  ;;  %v7501_v32 = vld [vmem:[%s18062_s4 + $0x68] sm:$0xff] }
  0x3f   :  { %1078 = vmatpush2.msra.mxu0 %v10323_v50  ;;  %v10510_v50 = vld [vmem:[%s18063_s2 + $0x48] sm:$0xff] }
  0x40   :  { %1079 = vmatprep.subr.mxu0 %v10305_v38  ;;  %v7503_v38 = vld [vmem:[%s18062_s4 + $0x78] sm:$0xff] }
  0x41   :  { %1080 = vmatpush2.msra.mxu0 %v10329_v54  ;;  %v10524_v54 = vld [vmem:[%s18063_s2 + $0x40] sm:$0xff] }
  0x42   :  { %1081 = vmatprep.subr.mxu0 %v10252_v9  ;;  %v7497_v9 = vld [vmem:[%s18062_s4 + $0x48] sm:$0xff] }
  0x43   :  { %1082 = vmatpush2.msra.mxu0 %v10280_v24  ;;  %v189_v24 = vld [vmem:[%s18063_s2 + $0x8] sm:$0xff] }
  0x44   :  { %1083 = vmatprep.subr.mxu0 %v10263_v16  ;;  %v7500_v16 = vld [vmem:[%s18062_s4 + $0x60] sm:$0xff]  ;;  %9340 = vmatprep.mubr.msk.f32.mxu1 %vm524_vm1, %v189_v24 }
  0x45   :  { %1084 = vmatpush2.msra.mxu0 %v10286_v28  ;;  %v10447_v28 = vld [vmem:[%s18063_s2] sm:$0xff]  ;;  %9172 = vmatprep.mubr.msk.f32.mxu0 %vm524_vm1, %v189_v24  ;;  %v7527_v24 = vld [vmem:[%s18062_s4 + $0x138] sm:$0xff] }
  0x46   :  { %1085 = vmatprep.subr.mxu0 %v10210_v55  ;;  %v7489_v55 = vld [vmem:[%s18062_s4 + $0x8] sm:$0xff] }
  0x47   :  { %1086 = vmatpush2.msra.mxu0 %v10238_v3  ;;  %v7495_v3 = vld [vmem:[%s18062_s4 + $0x38] sm:$0xff] }
  0x48   :  { %1087 = vmatprep.subr.mxu0 %v10221_v60  ;;  %v7492_v60 = vld [vmem:[%s18062_s4 + $0x20] sm:$0xff] }
  0x49   :  { %1088 = vmatpush2.msra.mxu0 %v10244_v6  ;;  %v7498_v6 = vld [vmem:[%s18062_s4 + $0x50] sm:$0xff] }
  0x4a   :  { %1089 = vmatprep.subr.mxu0 %v10174_v33  ;;  %v7491_v33 = vld [vmem:[%s18062_s4 + $0x18] sm:$0xff] }
  0x4b   :  { %1090 = vmatpush2.msra.mxu0 %v10198_v49  ;;  %v7493_v49 = vld [vmem:[%s18062_s4 + $0x28] sm:$0xff] }
  0x4c   :  { %1091 = vmatprep.subr.mxu0 %v10183_v39  ;;  %v7494_v39 = vld [vmem:[%s18062_s4 + $0x30] sm:$0xff] }
  0x4d   :  { %7658 = vperm.xlu1 %9510, %v7488_v11   ;;  %1092 = vmatpush2.msra.mxu0 %v10202_v53  ;;  %v7496_v53 = vld [vmem:[%s18062_s4 + $0x40] sm:$0xff]  ;;  %v7523_v11 = vld [vmem:[%s18062_s4 + $0x118] sm:$0xff] }
  0x4e   :  { %1094 = vmatmul.mubr.f32.vlgmr.msra.gmra.mxu0 %v10447_v28 }
  0x4f   :  { %9173 = vmatprep.mubr.msk.f32.mxu0 %vm524_vm1, %v10453_v29 }
  0x51   :  { %7668 = vperm.xlu1 %9510, %v7490_v12   ;;  %v10680_v12 = vld [vmem:[%s18063_s2 + $0xc0] sm:$0xff] }
  0x52   :  { %1100 = vmatmul.mubr.f32.gmra.mxu0 %v10467_v56 }
  0x53   :  { %9174 = vmatprep.mubr.msk.f32.mxu0 %vm524_vm1, %v10472_v34 }
  0x54   :  { %7663 = vperm.xlu0 %9511, %v7489_v55  }
  0x55   :  { %7678 = vperm.xlu1 %9510, %v7492_v60   ;;  %v10687_v60 = vld [vmem:[%s18063_s2 + $0xd8] sm:$0xff] }
  0x56   :  { %1106 = vmatmul.mubr.f32.gmra.mxu0 %v10486_v40 }
  0x57   :  { %9175 = vmatprep.mubr.msk.f32.mxu0 %vm524_vm1, %v10491_v43 }
  0x58   :  { %7673 = vperm.xlu0 %9511, %v7491_v33  }
  0x59   :  { %7688 = vperm.xlu1 %9510, %v7494_v39   ;;  %v7526_v39 = vld [vmem:[%s18062_s4 + $0x130] sm:$0xff] }
  0x5a   :  { %1112 = vmatmul.mubr.f32.gmra.mxu0 %v10505_v48 }
  0x5b   :  { %9176 = vmatprep.mubr.msk.f32.mxu0 %vm524_vm1, %v10510_v50 }
  0x5c   :  { %7683 = vperm.xlu0 %9511, %v7493_v49   ;;  %v7525_v49 = vld [vmem:[%s18062_s4 + $0x128] sm:$0xff] }
  0x5d   :  { %7698 = vperm.xlu1 %9510, %v7496_v53   ;;  %v10703_v53 = vld [vmem:[%s18063_s2 + $0xd0] sm:$0xff] }
  0x5e   :  { %1118 = vmatmul.mubr.f32.gmra.mxu0 %v10524_v54 }
  0x5f   :  { %9177 = vmatprep.mubr.msk.f32.mxu0 %vm524_vm1, %v10529_v26 }
  0x60   :  { %7693 = vperm.xlu0 %9511, %v7495_v3  }
  0x61   :  { %7708 = vperm.xlu1 %9510, %v7498_v6   ;;  %v10710_v6 = vld [vmem:[%s18063_s2 + $0xe8] sm:$0xff] }
  0x62   :  { %1124 = vmatmul.mubr.f32.gmra.mxu0 %v10543_v35 }
  0x63   :  { %9178 = vmatprep.mubr.msk.f32.mxu0 %vm524_vm1, %v10548_v58 }
  0x64   :  { %7703 = vperm.xlu0 %9511, %v7497_v9  }
  0x65   :  { %7718 = vperm.xlu1 %9510, %v7500_v16   ;;  %v7528_v16 = vld [vmem:[%s18062_s4 + $0x140] sm:$0xff] }
  0x66   :  { %1130 = vmatmul.mubr.f32.gmra.mxu0 %v10562_v62 }
  0x67   :  { %9179 = vmatprep.mubr.msk.f32.mxu0 %vm524_vm1, %v10567_v31 }
  0x68   :  { %7713 = vperm.xlu0 %9511, %v7499_v27   ;;  %v10726_v27 = vld [vmem:[%s18063_s2 + $0xe0] sm:$0xff] }
  0x69   :  { %7728 = vperm.xlu1 %9510, %v7502_v52  }
  0x6a   :  { %1136 = vmatmul.mubr.f32.gmra.mxu0 %v10581_v2 }
  0x6b   :  { %9180 = vmatprep.mubr.msk.f32.mxu0 %vm524_vm1, %v10586_v45 }
  0x6c   :  { %7723 = vperm.xlu0 %9511, %v7501_v32   ;;  %v10733_v32 = vld [vmem:[%s18063_s2 + $0xf8] sm:$0xff] }
  0x6d   :  { %7738 = vperm.xlu1 %9510, %v7504_v37  }
  0x6e   :  { %1142 = vmatmul.mubr.f32.gmra.mxu0 %v10600_v8 }
  0x6f   :  { %9181 = vmatprep.mubr.msk.f32.mxu0 %vm524_vm1, %v10605_v1 }
  0x70   :  { %7733 = vperm.xlu0 %9511, %v7503_v38   ;;  %v7530_v38 = vld [vmem:[%s18062_s4 + $0x150] sm:$0xff] }
  0x71   :  { %7748 = vperm.xlu1 %9510, %v7506_v57   ;;  %v7529_v57 = vld [vmem:[%s18062_s4 + $0x148] sm:$0xff] }
  0x72   :  { %1148 = vmatmul.mubr.f32.gmra.mxu0 %v10619_v13 }
  0x73   :  { %9182 = vmatprep.mubr.msk.f32.mxu0 %vm524_vm1, %v10624_v17 }
  0x74   :  { %7743 = vperm.xlu0 %9511, %v7505_v46   ;;  %v10749_v46 = vld [vmem:[%s18063_s2 + $0xf0] sm:$0xff] }
  0x75   :  { %7758 = vperm.xlu1 %9510, %v7508_v63  }
  0x76   :  { %1154 = vmatmul.mubr.f32.gmra.mxu0 %v10638_v20 }
  0x77   :  { %9183 = vmatprep.mubr.msk.f32.mxu0 %vm524_vm1, %v10643_v10 }
  0x78   :  { %7753 = vperm.xlu0 %9511, %v7507_v51   ;;  %v10756_v51 = vld [vmem:[%s18063_s2 + $0x108] sm:$0xff] }
  0x79   :  { %7768 = vperm.xlu1 %9510, %v7510_v36  }
  0x7a   :  { %1160 = vmatmul.mubr.f32.gmra.mxu0 %v10657_v22 }
  0x7b   :  { %9184 = vmatprep.mubr.msk.f32.mxu0 %vm524_vm1, %v10664_v4 }
  0x7c   :  { %7763 = vperm.xlu0 %9511, %v7509_v44   ;;  %v7532_v44 = vld [vmem:[%s18062_s4 + $0x160] sm:$0xff] }
  0x7d   :  { %7778 = vperm.xlu1 %9510, %v7512_v59   ;;  %v7531_v59 = vld [vmem:[%s18062_s4 + $0x158] sm:$0xff] }
  0x7e   :  { %1166 = vmatmul.mubr.f32.gmra.mxu0 %v10680_v12 }
  0x7f   :  { %9185 = vmatprep.mubr.msk.f32.mxu0 %vm524_vm1, %v10687_v60 }
  0x80   :  { %7773 = vperm.xlu0 %9511, %v7511_v61   ;;  %v10772_v61 = vld [vmem:[%s18063_s2 + $0x100] sm:$0xff] }
  0x81   :  { %7788 = vperm.xlu1 %9510, %v7514_v42  }
  0x82   :  { %1172 = vmatmul.mubr.f32.gmra.mxu0 %v10703_v53 }
  0x83   :  { %9186 = vmatprep.mubr.msk.f32.mxu0 %vm524_vm1, %v10710_v6 }
  0x84   :  { %7783 = vperm.xlu0 %9511, %v7513_v0   ;;  %v10777_v0 = vld [vmem:[%s18063_s2 + $0x118] sm:$0xff] }
  0x85   :  { %7798 = vperm.xlu1 %9510, %v7516_v5  }
  0x86   :  { %1178 = vmatmul.mubr.f32.gmra.mxu0 %v10726_v27 }
  0x87   :  { %9187 = vmatprep.mubr.msk.f32.mxu0 %vm524_vm1, %v10733_v32 }
  0x88   :  { %7793 = vperm.xlu0 %9511, %v7515_v41   ;;  %v7534_v41 = vld [vmem:[%s18062_s4 + $0x170] sm:$0xff] }
  0x89   :  { %7808 = vperm.xlu1 %9510, %v7518_v18   ;;  %v7533_v18 = vld [vmem:[%s18062_s4 + $0x168] sm:$0xff] }
  0x8a   :  { %1184 = vmatmul.mubr.f32.gmra.mxu0 %v10749_v46 }
  0x8b   :  { %9188 = vmatprep.mubr.msk.f32.mxu0 %vm524_vm1, %v10756_v51 }
  0x8c   :  { %7803 = vperm.xlu0 %9511, %v7517_v15   ;;  %v10791_v15 = vld [vmem:[%s18063_s2 + $0x110] sm:$0xff] }
  0x8d   :  { %7818 = vperm.xlu1 %9510, %v7520_v14  }
  0x8e   :  { %1190 = vmatmul.mubr.f32.gmra.mxu0 %v10772_v61 }
  0x8f   :  { %9189 = vmatprep.mubr.msk.f32.mxu0 %vm524_vm1, %v10777_v0 }
  0x90   :  { %7813 = vperm.xlu0 %9511, %v7519_v19   ;;  %v10796_v19 = vld [vmem:[%s18063_s2 + $0x128] sm:$0xff] }
  0x91   :  { %v10659_v23 = vpop.xlane.xlu1 %2113  ;;  %7828 = vperm.xlu1 %9510, %v7522_v7  }
  0x92   :  { %1196 = vmatmul.mubr.f32.gmra.mxu0 %v10791_v15 }
  0x93   :  { %v10667_v30 = vpop.xlane.xlu0 %2105  ;;  %9190 = vmatprep.mubr.msk.f32.mxu0 %vm524_vm1, %v10796_v19 }
  0x94   :  { %7823 = vperm.xlu0 %9511, %v7521_v21   ;;  %v7536_v21 = vld [vmem:[%s18062_s4 + $0x180] sm:$0xff] }
  0x95   :  { %v10682_v55 = vpop.xlane.xlu1 %2117  ;;  %7838 = vperm.xlu1 %9510, %v7524_v25   ;;  %v7535_v25 = vld [vmem:[%s18062_s4 + $0x178] sm:$0xff] }
  0x97   :  { %v10690_v33 = vpop.xlane.xlu0 %2109 }
  0x98   :  { %7833 = vperm.xlu0 %9511, %v7523_v11   ;;  %v10810_v11 = vld [vmem:[%s18063_s2 + $0x120] sm:$0xff] }
  0x99   :  { %v10705_v3 = vpop.xlane.xlu1 %2125  ;;  %7848 = vperm.xlu1 %9510, %v7526_v39   ;;  %1202 = vmatmul.mubr.f32.gmra.mxu0 %v10810_v11 }
  0x9b   :  { %v10713_v9 = vpop.xlane.xlu0 %2121 }
  0x9c   :  { %7843 = vperm.xlu0 %9511, %v7525_v49   ;;  %v10815_v49 = vld [vmem:[%s18063_s2 + $0x138] sm:$0xff] }
  0x9d   :  { %v10728_v52 = vpop.xlane.xlu1 %2133  ;;  %7858 = vperm.xlu1 %9510, %v7528_v16   ;;  %9191 = vmatprep.mubr.msk.f32.mxu0 %vm524_vm1, %v10815_v49 }
  0x9f   :  { %v10736_v37 = vpop.xlane.xlu0 %2129 }
  0xa0   :  { %7853 = vperm.xlu0 %9511, %v7527_v24   ;;  %v7538_v24 = vld [vmem:[%s18062_s4 + $0x190] sm:$0xff] }
  0xa1   :  { %v10751_v63 = vpop.xlane.xlu1 %2141  ;;  %7868 = vperm.xlu1 %9510, %v7530_v38   ;;  %v7537_v38 = vld [vmem:[%s18062_s4 + $0x188] sm:$0xff] }
  0xa3   :  { %v10759_v36 = vpop.xlane.xlu0 %2137 }
  0xa4   :  { %7863 = vperm.xlu0 %9511, %v7529_v57  }
  0xa5   :  { %v2150_v42 = vpop.xlane.xlu1 %2149  ;;  %7878 = vperm.xlu1 %9510, %v7532_v44   ;;  %v10833_v44 = vld [vmem:[%s18063_s2 + $0x130] sm:$0xff] }
  0xa6   :  { %1208 = vmatmul.mubr.f32.gmra.mxu0 %v10833_v44 }
  0xa7   :  { %v2146_v5 = vpop.xlane.xlu0 %2145 }
  0xa8   :  { %7873 = vperm.xlu0 %9511, %v7531_v59  }
  0xa9   :  { %v2158_v14 = vpop.xlane.xlu1 %2157  ;;  %7888 = vperm.xlu1 %9510, %v7534_v41   ;;  %v7540_v41 = vld [vmem:[%s18062_s4 + $0x1a0] sm:$0xff] }
  0xab   :  { %v2154_v7 = vpop.xlane.xlu0 %2153 }
  0xac   :  { %7883 = vperm.xlu0 %9511, %v7533_v18   ;;  %v10845_v18 = vld [vmem:[%s18063_s2 + $0x148] sm:$0xff] }
  0xad   :  { %v2166_v39 = vpop.xlane.xlu1 %2165  ;;  %7898 = vperm.xlu1 %9510, %v7536_v21   ;;  %9192 = vmatprep.mubr.msk.f32.mxu0 %vm524_vm1, %v10845_v18 }
  0xae   :  { %2216 = vmatpush1.msra.mxu1 %v2166_v39 }
  0xaf   :  { %v2162_v16 = vpop.xlane.xlu0 %2161  ;;  %2217 = vmatprep.subr.mxu1 %v9848_v47 }
  0xb0   :  { %7893 = vperm.xlu0 %9511, %v7535_v25   ;;  %2218 = vmatpush1.msra.mxu1 %v2162_v16  ;;  %v10858_v25 = vld [vmem:[%s18063_s2 + $0x140] sm:$0xff]  ;;  %v10870_v16 = vld [vmem:[%s18063_s2 + $0x158] sm:$0xff] }
  0xb1   :  { %2219 = vmatprep.subr.mxu1 %v9848_v47  ;;  %v10828_v57 = vpop.xlane.xlu1 %2173  ;;  %7908 = vperm.xlu1 %9510, %v7538_v24  }
  0xb2   :  { %2220 = vmatpush1.msra.mxu1 %v2158_v14  ;;  %v7539_v14 = vld [vmem:[%s18062_s4 + $0x198] sm:$0xff]  ;;  %1214 = vmatmul.mubr.f32.gmra.mxu0 %v10858_v25 }
  0xb3   :  { %v10835_v59 = vpop.xlane.xlu0 %2169  ;;  %2221 = vmatprep.subr.mxu1 %v9848_v47  ;;  %9193 = vmatprep.mubr.msk.f32.mxu0 %vm524_vm1, %v10870_v16 }
  0xb4   :  { %7903 = vperm.xlu0 %9511, %v7537_v38   ;;  %2222 = vmatpush1.msra.mxu1 %v2154_v7  ;;  %v7542_v7 = vld [vmem:[%s18062_s4 + $0x1b0] sm:$0xff] }
  0xb5   :  { %2223 = vmatprep.subr.mxu1 %v9848_v47  ;;  %v10853_v21 = vpop.xlane.xlu1 %2181  ;;  %7918 = vperm.xlu1 %9510, %v7540_v41   ;;  %v10883_v38 = vld [vmem:[%s18063_s2 + $0x150] sm:$0xff] }
  0xb6   :  { %2224 = vmatpush1.msra.mxu1 %v2150_v42  ;;  %v7541_v42 = vld [vmem:[%s18062_s4 + $0x1a8] sm:$0xff]  ;;  %1220 = vmatmul.mubr.f32.gmra.mxu0 %v10883_v38 }
  0xb7   :  { %v10860_v39 = vpop.xlane.xlu0 %2177  ;;  %2225 = vmatprep.subr.mxu1 %v9848_v47 }
  0xb8   :  { %7913 = vperm.xlu0 %9511, %v7539_v14   ;;  %2226 = vmatpush1.msra.mxu1 %v2146_v5  ;;  %v7544_v5 = vld [vmem:[%s18062_s4 + $0x1c0] sm:$0xff]  ;;  %v10896_v14 = vld [vmem:[%s18063_s2 + $0x168] sm:$0xff] }
  0xb9   :  { %2227 = vmatprep.subr.mxu1 %v9848_v47  ;;  %v10878_v24 = vpop.xlane.xlu1 %2189  ;;  %7928 = vperm.xlu1 %9510, %v7542_v7   ;;  %v10908_v7 = vld [vmem:[%s18063_s2 + $0x160] sm:$0xff] }
  0xba   :  { %2228 = vmatpush1.msra.mxu1 %v10751_v63  ;;  %v7543_v63 = vld [vmem:[%s18062_s4 + $0x1b8] sm:$0xff]  ;;  %9194 = vmatprep.mubr.msk.f32.mxu0 %vm524_vm1, %v10896_v14  ;;  %18485 = vst [vmem:[#allocation2_spill] sm:$0xff] %v10908_v7 }
  0xbb   :  { %2229 = vmatprep.subr.mxu1 %v9848_v47  ;;  %v10891_v41 = vpop.xlane.xlu0 %2185  ;;  %1226 = vmatmul.mubr.f32.gmra.mxu0 %v10908_v7 }
  0xbc   :  { %7923 = vperm.xlu0 %9511, %v7541_v42   ;;  %2230 = vmatpush1.msra.mxu1 %v10759_v36  ;;  %v7546_v36 = vld [vmem:[%s18062_s4 + $0x1d0] sm:$0xff] }
  0xbd   :  { %2231 = vmatprep.subr.mxu1 %v9848_v47  ;;  %7938 = vperm.xlu1 %9510, %v7544_v5   ;;  %v10916_v42 = vpop.xlane.xlu1 %2197  ;;  %v10921_v5 = vld [vmem:[%s18063_s2 + $0x178] sm:$0xff] }
  0xbe   :  { %2232 = vmatpush1.msra.mxu1 %v10728_v52  ;;  %v7545_v52 = vld [vmem:[%s18062_s4 + $0x1c8] sm:$0xff]  ;;  %9195 = vmatprep.mubr.msk.f32.mxu0 %vm524_vm1, %v10921_v5 }
  0xbf   :  { %2233 = vmatprep.subr.mxu1 %v9848_v47  ;;  %v10930_v7 = vpop.xlane.xlu0 %2193 }
  0xc0   :  { %7933 = vperm.xlu0 %9511, %v7543_v63   ;;  %2234 = vmatpush1.msra.mxu1 %v10736_v37  ;;  %v10935_v63 = vld [vmem:[%s18063_s2 + $0x170] sm:$0xff]  ;;  %v7548_v37 = vld [vmem:[%s18062_s4 + $0x1e0] sm:$0xff] }
  0xc1   :  { %2235 = vmatprep.subr.mxu1 %v9848_v47  ;;  %7948 = vperm.xlu1 %9510, %v7546_v36   ;;  %18486 = vst [vmem:[#allocation3_spill] sm:$0xff] %v10935_v63  ;;  %v10946_v36 = vld [vmem:[%s18063_s2 + $0x188] sm:$0xff] }
  0xc2   :  { %2236 = vmatpush1.msra.mxu1 %v10705_v3  ;;  %1232 = vmatmul.mubr.f32.gmra.mxu0 %v10935_v63  ;;  %18487 = vst [vmem:[#allocation4_spill] sm:$0xff] %v10946_v36  ;;  %v7547_v3 = vld [vmem:[%s18062_s4 + $0x1d8] sm:$0xff]  ;;  %v2206_v63 = vpop.xlane.xlu1 %2205 }
  0xc3   :  { %2237 = vmatprep.subr.mxu1 %v9848_v47  ;;  %9196 = vmatprep.mubr.msk.f32.mxu0 %vm524_vm1, %v10946_v36  ;;  %v2202_v36 = vpop.xlane.xlu0 %2201 }
  0xc4   :  { %7943 = vperm.xlu0 %9511, %v7545_v52   ;;  %2238 = vmatpush1.msra.mxu1 %v10713_v9  ;;  %v10958_v52 = vld [vmem:[%s18063_s2 + $0x180] sm:$0xff]  ;;  %v7550_v9 = vld [vmem:[%s18062_s4 + $0x1f0] sm:$0xff] }
  0xc5   :  { %2239 = vmatprep.subr.mxu1 %v9848_v47  ;;  %7958 = vperm.xlu1 %9510, %v7548_v37   ;;  %18488 = vst [vmem:[#allocation5_spill] sm:$0xff] %v10958_v52  ;;  %v10969_v37 = vld [vmem:[%s18063_s2 + $0x198] sm:$0xff] }
  0xc6   :  { %2240 = vmatpush1.msra.mxu1 %v10682_v55  ;;  %1238 = vmatmul.mubr.f32.gmra.mxu0 %v10958_v52  ;;  %v7549_v55 = vld [vmem:[%s18062_s4 + $0x1e8] sm:$0xff]  ;;  %v2214_v52 = vpop.xlane.xlu1 %2213 }
  0xc7   :  { %2241 = vmatprep.subr.mxu1 %v9848_v47  ;;  %9197 = vmatprep.mubr.msk.f32.mxu0 %vm524_vm1, %v10969_v37 }
  0xc8   :  { %7953 = vperm.xlu0 %9511, %v7547_v3   ;;  %2242 = vmatpush1.msra.mxu1 %v10659_v23  ;;  %v10981_v3 = vld [vmem:[%s18063_s2 + $0x190] sm:$0xff]  ;;  %v7552_v23 = vld [vmem:[%s18062_s4 + $0x200] sm:$0xff] }
  0xc9   :  { %2243 = vmatprep.subr.mxu1 %v9848_v47  ;;  %7968 = vperm.xlu1 %9510, %v7550_v9   ;;  %18489 = vst [vmem:[#allocation6_spill] sm:$0xff] %v10981_v3  ;;  %v10992_v9 = vld [vmem:[%s18063_s2 + $0x1a8] sm:$0xff] }
  0xca   :  { %2244 = vmatpush1.msra.mxu1 %v10690_v33  ;;  %1244 = vmatmul.mubr.f32.gmra.mxu0 %v10981_v3  ;;  %18490 = vst [vmem:[#allocation7_spill] sm:$0xff] %v10992_v9  ;;  %v7551_v33 = vld [vmem:[%s18062_s4 + $0x1f8] sm:$0xff]  ;;  %v2210_v3 = vpop.xlane.xlu0 %2209 }
  0xcb   :  { %2245 = vmatprep.subr.mxu1 %v9848_v47  ;;  %9198 = vmatprep.mubr.msk.f32.mxu0 %vm524_vm1, %v10992_v9  ;;  %v11014_v9 = vld [vmem:[%s18063_s2 + $0x1b8] sm:$0xff] }
  0xcc   :  { %7963 = vperm.xlu0 %9511, %v7549_v55   ;;  %2246 = vmatpush1.msra.mxu1 %v10667_v30  ;;  %v11004_v55 = vld [vmem:[%s18063_s2 + $0x1a0] sm:$0xff]  ;;  %v7554_v30 = vld [vmem:[%s18062_s4 + $0x210] sm:$0xff] }
  0xcd   :  { %2255 = vmatprep.subr.mxu1 %v9848_v47  ;;  %7978 = vperm.xlu1 %9510, %v7552_v23   ;;  %v7553_v23 = vld [vmem:[%s18062_s4 + $0x208] sm:$0xff] }
  0xce   :  { %2256 = vmatpush2.msra.mxu1 %v2214_v52  ;;  %1250 = vmatmul.mubr.f32.gmra.mxu0 %v11004_v55  ;;  %v11025_v52 = vld [vmem:[%s18063_s2 + $0x1b0] sm:$0xff] }
  0xcf   :  { %2257 = vmatprep.subr.mxu1 %v9848_v47  ;;  %9199 = vmatprep.mubr.msk.f32.mxu0 %vm524_vm1, %v11014_v9 }
  0xd0   :  { %7973 = vperm.xlu0 %9511, %v7551_v33   ;;  %2258 = vmatpush2.msra.mxu1 %v2210_v3  ;;  %v7556_v3 = vld [vmem:[%s18062_s4 + $0x220] sm:$0xff]  ;;  %v11035_v33 = vld [vmem:[%s18063_s2 + $0x1c8] sm:$0xff] }
  0xd1   :  { %2259 = vmatprep.subr.mxu1 %v9848_v47  ;;  %7988 = vperm.xlu1 %9510, %v7554_v30   ;;  %v7555_v30 = vld [vmem:[%s18062_s4 + $0x218] sm:$0xff] }
  0xd2   :  { %2260 = vmatpush2.msra.mxu1 %v2206_v63  ;;  %1256 = vmatmul.mubr.f32.gmra.mxu0 %v11025_v52  ;;  %v11046_v63 = vld [vmem:[%s18063_s2 + $0x1c0] sm:$0xff] }
  0xd3   :  { %2261 = vmatprep.subr.mxu1 %v9848_v47  ;;  %9200 = vmatprep.mubr.msk.f32.mxu0 %vm524_vm1, %v11035_v33 }
  0xd4   :  { %7983 = vperm.xlu0 %9511, %v7553_v23   ;;  %2262 = vmatpush2.msra.mxu1 %v2202_v36  ;;  %v11054_v36 = vld [vmem:[%s18063_s2 + $0x1d8] sm:$0xff]  ;;  %v11069_v23 = vld [vmem:[%s18063_s2 + $0x1e8] sm:$0xff] }
  0xd5   :  { %2263 = vmatprep.subr.mxu1 %v9848_v47  ;;  %7998 = vperm.xlu1 %9510, %v7556_v3  }
  0xd6   :  { %2264 = vmatpush2.msra.mxu1 %v10916_v42  ;;  %1262 = vmatmul.mubr.f32.gmra.mxu0 %v11046_v63  ;;  %v11063_v42 = vld [vmem:[%s18063_s2 + $0x1d0] sm:$0xff] }
  0xd7   :  { %2265 = vmatprep.subr.mxu1 %v9848_v47  ;;  %9201 = vmatprep.mubr.msk.f32.mxu0 %vm524_vm1, %v11054_v36 }
  0xd8   :  { %7993 = vperm.xlu0 %9511, %v7555_v30   ;;  %2266 = vmatpush2.msra.mxu1 %v10930_v7  ;;  %v11086_v7 = vld [vmem:[%s18063_s2 + $0x1f8] sm:$0xff] }
  0xd9   :  { %2267 = vmatprep.subr.mxu1 %v9848_v47 }
  0xda   :  { %2268 = vmatpush2.msra.mxu1 %v10878_v24  ;;  %1268 = vmatmul.mubr.f32.gmra.mxu0 %v11063_v42  ;;  %v11080_v24 = vld [vmem:[%s18063_s2 + $0x1e0] sm:$0xff] }
  0xdb   :  { %2269 = vmatprep.subr.mxu1 %v9848_v47  ;;  %9202 = vmatprep.mubr.msk.f32.mxu0 %vm524_vm1, %v11069_v23 }
  0xdc   :  { %2270 = vmatpush2.msra.mxu1 %v10891_v41  ;;  %v11103_v41 = vld [vmem:[%s18063_s2 + $0x208] sm:$0xff] }
  0xdd   :  { %2271 = vmatprep.subr.mxu1 %v9848_v47 }
  0xde   :  { %2272 = vmatpush2.msra.mxu1 %v10853_v21  ;;  %1274 = vmatmul.mubr.f32.gmra.mxu0 %v11080_v24  ;;  %v11097_v21 = vld [vmem:[%s18063_s2 + $0x1f0] sm:$0xff] }
  0xdf   :  { %2273 = vmatprep.subr.mxu1 %v9848_v47  ;;  %9203 = vmatprep.mubr.msk.f32.mxu0 %vm524_vm1, %v11086_v7 }
  0xe0   :  { %2274 = vmatpush2.msra.mxu1 %v10860_v39  ;;  %v11121_v39 = vld [vmem:[%s18063_s2 + $0x218] sm:$0xff] }
  0xe1   :  { %2275 = vmatprep.subr.mxu1 %v9848_v47 }
  0xe2   :  { %2276 = vmatpush2.msra.mxu1 %v10828_v57  ;;  %1280 = vmatmul.mubr.f32.gmra.mxu0 %v11097_v21  ;;  %v11114_v57 = vld [vmem:[%s18063_s2 + $0x200] sm:$0xff] }
  0xe3   :  { %2277 = vmatprep.subr.mxu1 %v9848_v47  ;;  %9204 = vmatprep.mubr.msk.f32.mxu0 %vm524_vm1, %v11103_v41  ;;  %v11130_v47 = vld [vmem:[%s18063_s2 + $0x210] sm:$0xff] }
  0xe4   :  { %2278 = vmatpush2.msra.mxu1 %v10835_v59 }
  0xe5   :  { %2280 = vmatmul.mubr.f32.vlgmr.msra.gmra.mxu1 %v10447_v28  ;;  %v11137_v28 = vld [vmem:[%s18063_s2 + $0x228] sm:$0xff] }
  0xe6   :  { %9341 = vmatprep.mubr.msk.f32.mxu1 %vm524_vm1, %v10453_v29  ;;  %1286 = vmatmul.mubr.f32.gmra.mxu0 %v11114_v57  ;;  %v11146_v29 = vld [vmem:[%s18063_s2 + $0x220] sm:$0xff] }
  0xe7   :  { %9205 = vmatprep.mubr.msk.f32.mxu0 %vm524_vm1, %v11121_v39 }
  0xe9   :  { %2285 = vmatmul.mubr.f32.gmra.mxu1 %v10467_v56  ;;  %v11153_v56 = vld [vmem:[%s18063_s2 + $0x238] sm:$0xff] }
  0xea   :  { %9342 = vmatprep.mubr.msk.f32.mxu1 %vm524_vm1, %v10472_v34  ;;  %1292 = vmatmul.mubr.f32.gmra.mxu0 %v11130_v47  ;;  %v11162_v34 = vld [vmem:[%s18063_s2 + $0x230] sm:$0xff] }
  0xeb   :  { %9206 = vmatprep.mubr.msk.f32.mxu0 %vm524_vm1, %v11137_v28 }
  0xed   :  { %2290 = vmatmul.mubr.f32.gmra.mxu1 %v10486_v40  ;;  %v18491_v40 = vld [vmem:[#allocation2_spill] sm:$0xff] }
  0xee   :  { %9343 = vmatprep.mubr.msk.f32.mxu1 %vm524_vm1, %v10491_v43  ;;  %1298 = vmatmul.mubr.f32.gmra.mxu0 %v11146_v29  ;;  %v18492_v43 = vld [vmem:[#allocation3_spill] sm:$0xff] }
  0xef   :  { %9207 = vmatprep.mubr.msk.f32.mxu0 %vm524_vm1, %v11153_v56 }
  0xf1   :  { %2295 = vmatmul.mubr.f32.gmra.mxu1 %v10505_v48  ;;  %v18493_v48 = vld [vmem:[#allocation4_spill] sm:$0xff] }
  0xf2   :  { %9344 = vmatprep.mubr.msk.f32.mxu1 %vm524_vm1, %v10510_v50  ;;  %1304 = vmatmul.mubr.f32.gmra.mxu0 %v11162_v34  ;;  %v18494_v50 = vld [vmem:[#allocation5_spill] sm:$0xff] }
  0xf5   :  { %2300 = vmatmul.mubr.f32.gmra.mxu1 %v10524_v54  ;;  %v18495_v54 = vld [vmem:[#allocation6_spill] sm:$0xff] }
  0xf6   :  { %9345 = vmatprep.mubr.msk.f32.mxu1 %vm524_vm1, %v10529_v26  ;;  %v18496_v26 = vld [vmem:[#allocation7_spill] sm:$0xff] }
  0xf9   :  { %2305 = vmatmul.mubr.f32.gmra.mxu1 %v10543_v35  ;;  %v261_v35 = vld [vmem:[%s18063_s2 + $0x248] sm:$0xff] }
  0xfa   :  { %9346 = vmatprep.mubr.msk.f32.mxu1 %vm524_vm1, %v10548_v58  ;;  %v260_v58 = vld [vmem:[%s18063_s2 + $0x240] sm:$0xff]  ;;  %9208 = vmatprep.mubr.msk.f32.mxu0 %vm524_vm1, %v261_v35 }
  0xfb   :  { %1310 = vmatmul.mubr.f32.gmra.mxu0 %v260_v58 }
  0xfd   :  { %2310 = vmatmul.mubr.f32.gmra.mxu1 %v10562_v62  ;;  %v263_v62 = vld [vmem:[%s18063_s2 + $0x258] sm:$0xff] }
  0xfe   :  { %9347 = vmatprep.mubr.msk.f32.mxu1 %vm524_vm1, %v10567_v31  ;;  %v262_v31 = vld [vmem:[%s18063_s2 + $0x250] sm:$0xff]  ;;  %9209 = vmatprep.mubr.msk.f32.mxu0 %vm524_vm1, %v263_v62 }
  0xff   :  { %1316 = vmatmul.mubr.f32.gmra.mxu0 %v262_v31 }
 0x101   :  { %2315 = vmatmul.mubr.f32.gmra.mxu1 %v10581_v2  ;;  %v11268_v2 = vpop.permute.xlu1 %7658 }
 0x102   :  { %9348 = vmatprep.mubr.msk.f32.mxu1 %vm524_vm1, %v10586_v45 }
 0x105   :  { %2320 = vmatmul.mubr.f32.gmra.mxu1 %v10600_v8  ;;  %v11274_v45 = vpop.permute.xlu1 %7668  ;;  %v11279_v8 = vpop.permute.xlu0 %7663 }
 0x106   :  { %9349 = vmatprep.mubr.msk.f32.mxu1 %vm524_vm1, %v10605_v1 }
 0x109   :  { %2325 = vmatmul.mubr.f32.gmra.mxu1 %v10619_v13  ;;  %v11282_v1 = vpop.permute.xlu1 %7678  ;;  %v11285_v13 = vpop.permute.xlu0 %7673 }
 0x10a   :  { %9350 = vmatprep.mubr.msk.f32.mxu1 %vm524_vm1, %v10624_v17 }
 0x10d   :  { %2330 = vmatmul.mubr.f32.gmra.mxu1 %v10638_v20  ;;  %v11287_v17 = vpop.permute.xlu1 %7688  ;;  %v11289_v20 = vpop.permute.xlu0 %7683 }
 0x10e   :  { %9351 = vmatprep.mubr.msk.f32.mxu1 %vm524_vm1, %v10643_v10 }
 0x111   :  { %2335 = vmatmul.mubr.f32.gmra.mxu1 %v10657_v22  ;;  %v11291_v10 = vpop.permute.xlu1 %7698  ;;  %v265_v22 = vld [vmem:[%s18063_s2 + $0x268] sm:$0xff] }
 0x112   :  { %9352 = vmatprep.mubr.msk.f32.mxu1 %vm524_vm1, %v10664_v4  ;;  %18497 = vst [vmem:[#allocation2_spill] sm:$0xff] %v11291_v10  ;;  %v264_v4 = vld [vmem:[%s18063_s2 + $0x260] sm:$0xff]  ;;  %9210 = vmatprep.mubr.msk.f32.mxu0 %vm524_vm1, %v265_v22 }
 0x113   :  { %1322 = vmatmul.mubr.f32.gmra.mxu0 %v264_v4 }
 0x115   :  { %2340 = vmatmul.mubr.f32.gmra.mxu1 %v10680_v12  ;;  %v11301_v12 = vpop.permute.xlu0 %7693 }
 0x116   :  { %9353 = vmatprep.mubr.msk.f32.mxu1 %vm524_vm1, %v10687_v60  ;;  %v11303_v60 = vpop.permute.xlu1 %7708 }
 0x117   :  { %18498 = vst [vmem:[#allocation3_spill] sm:$0xff] %v11303_v60 }
 0x119   :  { %2345 = vmatmul.mubr.f32.gmra.mxu1 %v10703_v53  ;;  %v11305_v53 = vpop.permute.xlu0 %7703 }
 0x11a   :  { %9354 = vmatprep.mubr.msk.f32.mxu1 %vm524_vm1, %v10710_v6  ;;  %18499 = vst [vmem:[#allocation4_spill] sm:$0xff] %v11305_v53  ;;  %v267_v6 = vld [vmem:[%s18063_s2 + $0x278] sm:$0xff] }
 0x11b   :  { %9211 = vmatprep.mubr.msk.f32.mxu0 %vm524_vm1, %v267_v6 }
 0x11d   :  { %2350 = vmatmul.mubr.f32.gmra.mxu1 %v10726_v27  ;;  %v266_v27 = vld [vmem:[%s18063_s2 + $0x270] sm:$0xff] }
 0x11e   :  { %9355 = vmatprep.mubr.msk.f32.mxu1 %vm524_vm1, %v10733_v32  ;;  %v11315_v32 = vpop.permute.xlu1 %7718  ;;  %1328 = vmatmul.mubr.f32.gmra.mxu0 %v266_v27 }
 0x11f   :  { %18500 = vst [vmem:[#allocation5_spill] sm:$0xff] %v11315_v32 }
 0x121   :  { %2355 = vmatmul.mubr.f32.gmra.mxu1 %v10749_v46  ;;  %v11317_v46 = vpop.permute.xlu0 %7713 }
 0x122   :  { %9356 = vmatprep.mubr.msk.f32.mxu1 %vm524_vm1, %v10756_v51  ;;  %18501 = vst [vmem:[#allocation6_spill] sm:$0xff] %v11317_v46  ;;  %v11319_v51 = vpop.permute.xlu1 %7728 }
 0x123   :  { %18502 = vst [vmem:[#allocation7_spill] sm:$0xff] %v11319_v51 }
 0x125   :  { %2360 = vmatmul.mubr.f32.gmra.mxu1 %v10772_v61  ;;  %v11321_v61 = vpop.permute.xlu0 %7723 }
 0x126   :  { %9357 = vmatprep.mubr.msk.f32.mxu1 %vm524_vm1, %v10777_v0  ;;  %18503 = vst [vmem:[#allocation8_spill] sm:$0xff] %v11321_v61  ;;  %v11323_v0 = vpop.permute.xlu1 %7738 }
 0x127   :  { %18504 = vst [vmem:[#allocation9_spill] sm:$0xff] %v11323_v0 }
 0x129   :  { %2365 = vmatmul.mubr.f32.gmra.mxu1 %v10791_v15  ;;  %v11325_v15 = vpop.permute.xlu0 %7733 }
 0x12a   :  { %9358 = vmatprep.mubr.msk.f32.mxu1 %vm524_vm1, %v10796_v19  ;;  %18505 = vst [vmem:[#allocation10_spill] sm:$0xff] %v11325_v15  ;;  %v11327_v19 = vpop.permute.xlu1 %7748 }
 0x12b   :  { %18506 = vst [vmem:[#allocation11_spill] sm:$0xff] %v11327_v19 }
 0x12d   :  { %2370 = vmatmul.mubr.f32.gmra.mxu1 %v10810_v11  ;;  %v11329_v11 = vpop.permute.xlu0 %7743 }
 0x12e   :  { %9359 = vmatprep.mubr.msk.f32.mxu1 %vm524_vm1, %v10815_v49  ;;  %18507 = vst [vmem:[#allocation12_spill] sm:$0xff] %v11329_v11  ;;  %v11331_v49 = vpop.permute.xlu1 %7758 }
 0x12f   :  { %18508 = vst [vmem:[#allocation13_spill] sm:$0xff] %v11331_v49 }
 0x131   :  { %2375 = vmatmul.mubr.f32.gmra.mxu1 %v10833_v44 }
 0x132   :  { %9360 = vmatprep.mubr.msk.f32.mxu1 %vm524_vm1, %v10845_v18 }
 0x135   :  { %2380 = vmatmul.mubr.f32.gmra.mxu1 %v10858_v25  ;;  %v11333_v25 = vpop.permute.xlu0 %7753 }
 0x136   :  { %9361 = vmatprep.mubr.msk.f32.mxu1 %vm524_vm1, %v10870_v16  ;;  %18509 = vst [vmem:[#allocation14_spill] sm:$0xff] %v11333_v25 }
 0x139   :  { %2385 = vmatmul.mubr.f32.gmra.mxu1 %v10883_v38  ;;  %v11335_v38 = vpop.permute.xlu1 %7768 }
 0x13a   :  { %9362 = vmatprep.mubr.msk.f32.mxu1 %vm524_vm1, %v10896_v14  ;;  %18510 = vst [vmem:[#allocation15_spill] sm:$0xff] %v11335_v38 }
 0x13d   :  { %2390 = vmatmul.mubr.f32.gmra.mxu1 %v18491_v40  ;;  %v11339_v3 = vpop.permute.xlu1 %7778 }
 0x13e   :  { %9363 = vmatprep.mubr.msk.f32.mxu1 %vm524_vm1, %v10921_v5  ;;  %18512 = vst [vmem:[#allocation17_spill] sm:$0xff] %v11339_v3 }
 0x141   :  { %2395 = vmatmul.mubr.f32.gmra.mxu1 %v18492_v43  ;;  %v271_v43 = vld [vmem:[%s18063_s2 + $0x298] sm:$0xff] }
 0x142   :  { %9364 = vmatprep.mubr.msk.f32.mxu1 %vm524_vm1, %v18493_v48 }
 0x145   :  { %2400 = vmatmul.mubr.f32.gmra.mxu1 %v18494_v50  ;;  %v270_v50 = vld [vmem:[%s18063_s2 + $0x290] sm:$0xff] }
 0x146   :  { %9365 = vmatprep.mubr.msk.f32.mxu1 %vm524_vm1, %v10969_v37 }
 0x149   :  { %2405 = vmatmul.mubr.f32.gmra.mxu1 %v18495_v54 }
 0x14a   :  { %9366 = vmatprep.mubr.msk.f32.mxu1 %vm524_vm1, %v18496_v26 }
 0x14d   :  { %2410 = vmatmul.mubr.f32.gmra.mxu1 %v11004_v55 }
 0x14e   :  { %9367 = vmatprep.mubr.msk.f32.mxu1 %vm524_vm1, %v11014_v9  ;;  %v11337_v9 = vpop.permute.xlu0 %7763 }
 0x14f   :  { %18511 = vst [vmem:[#allocation16_spill] sm:$0xff] %v11337_v9 }
 0x151   :  { %2415 = vmatmul.mubr.f32.gmra.mxu1 %v11025_v52 }
 0x152   :  { %9368 = vmatprep.mubr.msk.f32.mxu1 %vm524_vm1, %v11035_v33 }
 0x155   :  { %2420 = vmatmul.mubr.f32.gmra.mxu1 %v11046_v63 }
 0x156   :  { %9369 = vmatprep.mubr.msk.f32.mxu1 %vm524_vm1, %v11054_v36  ;;  %v11341_v36 = vpop.permute.xlu0 %7773 }
 0x157   :  { %18513 = vst [vmem:[#allocation18_spill] sm:$0xff] %v11341_v36 }
 0x159   :  { %2425 = vmatmul.mubr.f32.gmra.mxu1 %v11063_v42 }
 0x15a   :  { %9370 = vmatprep.mubr.msk.f32.mxu1 %vm524_vm1, %v11069_v23  ;;  %v269_v23 = vld [vmem:[%s18063_s2 + $0x288] sm:$0xff] }
 0x15b   :  { %9212 = vmatprep.mubr.msk.f32.mxu0 %vm524_vm1, %v269_v23 }
 0x15d   :  { %2430 = vmatmul.mubr.f32.gmra.mxu1 %v11080_v24  ;;  %v11346_v24 = vpop.permute.xlu1 %7788 }
 0x15e   :  { %9371 = vmatprep.mubr.msk.f32.mxu1 %vm524_vm1, %v11086_v7  ;;  %18514 = vst [vmem:[#allocation19_spill] sm:$0xff] %v11346_v24 }
 0x161   :  { %2435 = vmatmul.mubr.f32.gmra.mxu1 %v11097_v21  ;;  %v268_v21 = vld [vmem:[%s18063_s2 + $0x280] sm:$0xff] }
 0x162   :  { %9372 = vmatprep.mubr.msk.f32.mxu1 %vm524_vm1, %v11103_v41  ;;  %1334 = vmatmul.mubr.f32.gmra.mxu0 %v268_v21 }
 0x163   :  { %9213 = vmatprep.mubr.msk.f32.mxu0 %vm524_vm1, %v271_v43 }
 0x165   :  { %2440 = vmatmul.mubr.f32.gmra.mxu1 %v11114_v57 }
 0x166   :  { %9373 = vmatprep.mubr.msk.f32.mxu1 %vm524_vm1, %v11121_v39  ;;  %v11353_v39 = vpop.permute.xlu0 %7783  ;;  %1340 = vmatmul.mubr.f32.gmra.mxu0 %v270_v50 }
 0x167   :  { %18515 = vst [vmem:[#allocation20_spill] sm:$0xff] %v11353_v39 }
 0x169   :  { %2445 = vmatmul.mubr.f32.gmra.mxu1 %v11130_v47 }
 0x16a   :  { %9374 = vmatprep.mubr.msk.f32.mxu1 %vm524_vm1, %v11137_v28  ;;  %v11360_v48 = vpop.permute.xlu0 %7793 }
 0x16b   :  { %18517 = vst [vmem:[#allocation22_spill] sm:$0xff] %v11360_v48 }
 0x16d   :  { %2450 = vmatmul.mubr.f32.gmra.mxu1 %v11146_v29  ;;  %v11355_v29 = vpop.permute.xlu1 %7798 }
 0x16e   :  { %9375 = vmatprep.mubr.msk.f32.mxu1 %vm524_vm1, %v11153_v56  ;;  %18516 = vst [vmem:[#allocation21_spill] sm:$0xff] %v11355_v29 }
 0x171   :  { %2455 = vmatmul.mubr.f32.gmra.mxu1 %v11162_v34  ;;  %v11367_v26 = vpop.permute.xlu1 %7808 }
 0x172   :  { %9376 = vmatprep.mubr.msk.f32.mxu1 %vm524_vm1, %v261_v35  ;;  %18518 = vst [vmem:[#allocation23_spill] sm:$0xff] %v11367_v26 }
 0x175   :  { %2460 = vmatmul.mubr.f32.gmra.mxu1 %v260_v58 }
 0x176   :  { %9377 = vmatprep.mubr.msk.f32.mxu1 %vm524_vm1, %v263_v62 }
 0x179   :  { %2465 = vmatmul.mubr.f32.gmra.mxu1 %v262_v31  ;;  %v11369_v31 = vpop.permute.xlu0 %7803 }
 0x17a   :  { %9378 = vmatprep.mubr.msk.f32.mxu1 %vm524_vm1, %v265_v22  ;;  %18519 = vst [vmem:[#allocation24_spill] sm:$0xff] %v11369_v31 }
 0x17d   :  { %2470 = vmatmul.mubr.f32.gmra.mxu1 %v264_v4 }
 0x17e   :  { %9379 = vmatprep.mubr.msk.f32.mxu1 %vm524_vm1, %v267_v6  ;;  %v11371_v6 = vpop.permute.xlu1 %7818 }
 0x17f   :  { %18520 = vst [vmem:[#allocation25_spill] sm:$0xff] %v11371_v6 }
 0x181   :  { %2475 = vmatmul.mubr.f32.gmra.mxu1 %v266_v27 }
 0x182   :  { %9380 = vmatprep.mubr.msk.f32.mxu1 %vm524_vm1, %v269_v23 }
 0x185   :  { %2480 = vmatmul.mubr.f32.gmra.mxu1 %v268_v21 }
 0x186   :  { %9381 = vmatprep.mubr.msk.f32.mxu1 %vm524_vm1, %v271_v43 }
 0x189   :  { %2485 = vmatmul.mubr.f32.gmra.mxu1 %v270_v50 }
 0x1a5   :  { %v2281_v44 = vpop.f32.mrf.mxu1 }
 0x1a6   :  { %v3120_v59 = vmul.f32 0.0051020407, %v2281_v44 }
 0x1a7   :  { %v2283_v18 = vpop.f32.mrf.mxu1 }
 0x1a8   :  { %3290 = vperm.xlu0 %9511, %v3120_v59   ;;  %v11373_v18 = vpop.permute.xlu0 %7813 }
 0x1a9   :  { %v2286_v16 = vpop.f32.mrf.mxu1  ;;  %18521 = vst [vmem:[#allocation26_spill] sm:$0xff] %v11373_v18 }
 0x1aa   :  { %v3121_v14 = vmul.f32 0.0051020407, %v2286_v16 }
 0x1ab   :  { %v2288_v5 = vpop.f32.mrf.mxu1 }
 0x1ac   :  { %3295 = vperm.xlu1 %9510, %v3121_v14   ;;  %v11375_v14 = vpop.permute.xlu1 %7828 }
 0x1ad   :  { %v2291_v37 = vpop.f32.mrf.mxu1  ;;  %18522 = vst [vmem:[#allocation27_spill] sm:$0xff] %v11375_v14 }
 0x1ae   :  { %v3122_v55 = vmul.f32 0.0051020407, %v2291_v37 }
 0x1af   :  { %v2293_v52 = vpop.f32.mrf.mxu1 }
 0x1b0   :  { %3300 = vperm.xlu1 %9510, %v3122_v55   ;;  %v11377_v52 = vpop.permute.xlu0 %7823 }
 0x1b1   :  { %v2296_v33 = vpop.f32.mrf.mxu1  ;;  %18523 = vst [vmem:[#allocation28_spill] sm:$0xff] %v11377_v52 }
 0x1b2   :  { %v3123_v30 = vmul.f32 0.0051020407, %v2296_v33 }
 0x1b3   :  { %v2298_v63 = vpop.f32.mrf.mxu1 }
 0x1b4   :  { %3305 = vperm.xlu1 %9510, %v3123_v30   ;;  %v11379_v63 = vpop.permute.xlu1 %7838  ;;  %v11381_v21 = vpop.permute.xlu0 %7833 }
 0x1b5   :  { %v2301_v42 = vpop.f32.mrf.mxu1  ;;  %18524 = vst [vmem:[#allocation29_spill] sm:$0xff] %v11379_v63  ;;  %18525 = vst [vmem:[#allocation30_spill] sm:$0xff] %v11381_v21 }
 0x1b6   :  { %v3124_v7 = vmul.f32 0.0051020407, %v2301_v42 }
 0x1b7   :  { %v2303_v41 = vpop.f32.mrf.mxu1 }
 0x1b8   :  { %3310 = vperm.xlu1 %9510, %v3124_v7  }
 0x1b9   :  { %v2306_v57 = vpop.f32.mrf.mxu1 }
 0x1ba   :  { %v3125_v47 = vmul.f32 0.0051020407, %v2306_v57  ;;  %v11383_v57 = vpop.permute.xlu1 %7848 }
 0x1bb   :  { %v2308_v28 = vpop.f32.mrf.mxu1  ;;  %18526 = vst [vmem:[#allocation31_spill] sm:$0xff] %v11383_v57 }
 0x1bc   :  { %3315 = vperm.xlu1 %9510, %v3125_v47  }
 0x1bd   :  { %v2311_v56 = vpop.f32.mrf.mxu1 }
 0x1be   :  { %v3126_v34 = vmul.f32 0.0051020407, %v2311_v56  ;;  %v11387_v50 = vpop.permute.xlu1 %7858 }
 0x1bf   :  { %v2313_v40 = vpop.f32.mrf.mxu1  ;;  %18528 = vst [vmem:[#allocation33_spill] sm:$0xff] %v11387_v50 }
 0x1c0   :  { %3320 = vperm.xlu1 %9510, %v3126_v34   ;;  %v11385_v34 = vpop.permute.xlu0 %7843 }
 0x1c1   :  { %v2316_v54 = vpop.f32.mrf.mxu1  ;;  %18527 = vst [vmem:[#allocation32_spill] sm:$0xff] %v11385_v34 }
 0x1c2   :  { %v3127_v35 = vmul.f32 0.0051020407, %v2316_v54 }
 0x1c3   :  { %v2318_v58 = vpop.f32.mrf.mxu1 }
 0x1c4   :  { %3325 = vperm.xlu1 %9510, %v3127_v35  }
 0x1c5   :  { %v2321_v62 = vpop.f32.mrf.mxu1 }
 0x1c6   :  { %v3128_v22 = vmul.f32 0.0051020407, %v2321_v62  ;;  %v11389_v62 = vpop.permute.xlu0 %7853 }
 0x1c7   :  { %v2323_v4 = vpop.f32.mrf.mxu1  ;;  %18529 = vst [vmem:[#allocation34_spill] sm:$0xff] %v11389_v62 }
 0x1c8   :  { %3330 = vperm.xlu1 %9510, %v3128_v22   ;;  %v11391_v4 = vpop.permute.xlu1 %7868 }
 0x1c9   :  { %v2326_v27 = vpop.f32.mrf.mxu1  ;;  %18530 = vst [vmem:[#allocation35_spill] sm:$0xff] %v11391_v4 }
 0x1ca   :  { %v3129_v44 = vmul.f32 0.0051020407, %v2326_v27 }
 0x1cb   :  { %v2328_v59 = vpop.f32.mrf.mxu1 }
 0x1cc   :  { %3335 = vperm.xlu0 %9511, %v3129_v44  }
 0x1cd   :  { %v2331_v16 = vpop.f32.mrf.mxu1 }
 0x1ce   :  { %v3130_v5 = vmul.f32 0.0051020407, %v2331_v16  ;;  %v11393_v16 = vpop.permute.xlu0 %7863 }
 0x1cf   :  { %v2333_v37 = vpop.f32.mrf.mxu1  ;;  %18531 = vst [vmem:[#allocation36_spill] sm:$0xff] %v11393_v16 }
 0x1d0   :  { %3340 = vperm.xlu1 %9510, %v3130_v5   ;;  %v273_v37 = vld [vmem:[%s18063_s2 + $0x2a8] sm:$0xff] }
 0x1d1   :  { %v2336_v55 = vpop.f32.mrf.mxu1  ;;  %9382 = vmatprep.mubr.msk.f32.mxu1 %vm524_vm1, %v273_v37  ;;  %9214 = vmatprep.mubr.msk.f32.mxu0 %vm524_vm1, %v273_v37 }
 0x1d2   :  { %v3131_v33 = vmul.f32 0.0051020407, %v2336_v55 }
 0x1d3   :  { %v2338_v30 = vpop.f32.mrf.mxu1 }
 0x1d4   :  { %3345 = vperm.xlu0 %9511, %v3131_v33   ;;  %v272_v33 = vld [vmem:[%s18063_s2 + $0x2a0] sm:$0xff]  ;;  %v11403_v30 = vpop.permute.xlu1 %7878 }
 0x1d5   :  { %v2341_v42 = vpop.f32.mrf.mxu1  ;;  %18532 = vst [vmem:[#allocation37_spill] sm:$0xff] %v11403_v30  ;;  %2490 = vmatmul.mubr.f32.gmra.mxu1 %v272_v33  ;;  %1346 = vmatmul.mubr.f32.gmra.mxu0 %v272_v33 }
 0x1d6   :  { %v3132_v23 = vmul.f32 0.0051020407, %v2341_v42 }
 0x1d7   :  { %v2343_v7 = vpop.f32.mrf.mxu1 }
 0x1d8   :  { %3350 = vperm.xlu1 %9510, %v3132_v23  }
 0x1d9   :  { %v2346_v41 = vpop.f32.mrf.mxu1 }
 0x1da   :  { %v3133_v47 = vmul.f32 0.0051020407, %v2346_v41  ;;  %v11405_v41 = vpop.permute.xlu0 %7873 }
 0x1db   :  { %v2348_v28 = vpop.f32.mrf.mxu1  ;;  %18533 = vst [vmem:[#allocation38_spill] sm:$0xff] %v11405_v41 }
 0x1dc   :  { %3355 = vperm.xlu0 %9511, %v3133_v47   ;;  %v11407_v28 = vpop.permute.xlu1 %7888 }
 0x1dd   :  { %v2351_v56 = vpop.f32.mrf.mxu1  ;;  %18534 = vst [vmem:[#allocation39_spill] sm:$0xff] %v11407_v28 }
 0x1de   :  { %v3134_v40 = vmul.f32 0.0051020407, %v2351_v56 }
 0x1df   :  { %v2353_v43 = vpop.f32.mrf.mxu1 }
 0x1e0   :  { %3360 = vperm.xlu1 %9510, %v3134_v40   ;;  %v275_v43 = vld [vmem:[%s18063_s2 + $0x2b8] sm:$0xff] }
 0x1e1   :  { %v2356_v54 = vpop.f32.mrf.mxu1  ;;  %9383 = vmatprep.mubr.msk.f32.mxu1 %vm524_vm1, %v275_v43  ;;  %9215 = vmatprep.mubr.msk.f32.mxu0 %vm524_vm1, %v275_v43 }
 0x1e2   :  { %v3135_v35 = vmul.f32 0.0051020407, %v2356_v54 }
 0x1e3   :  { %v2358_v58 = vpop.f32.mrf.mxu1 }
 0x1e4   :  { %3365 = vperm.xlu0 %9511, %v3135_v35   ;;  %v274_v35 = vld [vmem:[%s18063_s2 + $0x2b0] sm:$0xff]  ;;  %v11417_v58 = vpop.permute.xlu0 %7883 }
 0x1e5   :  { %v2361_v22 = vpop.f32.mrf.mxu1  ;;  %18535 = vst [vmem:[#allocation40_spill] sm:$0xff] %v11417_v58  ;;  %2495 = vmatmul.mubr.f32.gmra.mxu1 %v274_v35  ;;  %1352 = vmatmul.mubr.f32.gmra.mxu0 %v274_v35 }
 0x1e6   :  { %v3136_v27 = vmul.f32 0.0051020407, %v2361_v22 }
 0x1e7   :  { %v2363_v44 = vpop.f32.mrf.mxu1 }
 0x1e8   :  { %3370 = vperm.xlu1 %9510, %v3136_v27   ;;  %v11419_v44 = vpop.permute.xlu1 %7898 }
 0x1e9   :  { %v2366_v59 = vpop.f32.mrf.mxu1  ;;  %18536 = vst [vmem:[#allocation41_spill] sm:$0xff] %v11419_v44 }
 0x1ea   :  { %v3137_v5 = vmul.f32 0.0051020407, %v2366_v59 }
 0x1eb   :  { %v2368_v55 = vpop.f32.mrf.mxu1 }
 0x1ec   :  { %3375 = vperm.xlu0 %9511, %v3137_v5   ;;  %v11421_v55 = vpop.permute.xlu0 %7893 }
 0x1ed   :  { %v2371_v42 = vpop.f32.mrf.mxu1  ;;  %18537 = vst [vmem:[#allocation42_spill] sm:$0xff] %v11421_v55 }
 0x1ee   :  { %v3138_v23 = vmul.f32 0.0051020407, %v2371_v42  ;;  %v11423_v42 = vpop.permute.xlu1 %7908 }
 0x1ef   :  { %v2373_v7 = vpop.f32.mrf.mxu1  ;;  %18538 = vst [vmem:[#allocation43_spill] sm:$0xff] %v11423_v42 }
 0x1f0   :  { %3380 = vperm.xlu1 %9510, %v3138_v23  }
 0x1f1   :  { %v2376_v47 = vpop.f32.mrf.mxu1 }
 0x1f2   :  { %v3139_v56 = vmul.f32 0.0051020407, %v2376_v47 }
 0x1f3   :  { %v2378_v40 = vpop.f32.mrf.mxu1 }
 0x1f4   :  { %3385 = vperm.xlu0 %9511, %v3139_v56   ;;  %v11425_v56 = vpop.permute.xlu0 %7903 }
 0x1f5   :  { %v2381_v54 = vpop.f32.mrf.mxu1  ;;  %18539 = vst [vmem:[#allocation44_spill] sm:$0xff] %v11425_v56 }
 0x1f6   :  { %v3140_v22 = vmul.f32 0.0051020407, %v2381_v54  ;;  %v11427_v54 = vpop.permute.xlu1 %7918 }
 0x1f7   :  { %v2383_v27 = vpop.f32.mrf.mxu1  ;;  %18540 = vst [vmem:[#allocation45_spill] sm:$0xff] %v11427_v54 }
 0x1f8   :  { %3390 = vperm.xlu1 %9510, %v3140_v22  }
 0x1f9   :  { %v2386_v59 = vpop.f32.mrf.mxu1 }
 0x1fa   :  { %v3141_v5 = vmul.f32 0.0051020407, %v2386_v59  ;;  %v11429_v59 = vpop.permute.xlu0 %7913 }
 0x1fb   :  { %v2388_v37 = vpop.f32.mrf.mxu1  ;;  %18541 = vst [vmem:[#allocation46_spill] sm:$0xff] %v11429_v59 }
 0x1fc   :  { %3395 = vperm.xlu0 %9511, %v3141_v5   ;;  %v11431_v37 = vpop.permute.xlu1 %7928 }
 0x1fd   :  { %v2391_v33 = vpop.f32.mrf.mxu1  ;;  %18542 = vst [vmem:[#allocation47_spill] sm:$0xff] %v11431_v37 }
 0x1fe   :  { %v3142_v23 = vmul.f32 0.0051020407, %v2391_v33  ;;  %v11433_v42 = vpop.permute.xlu0 %7923 }
 0x1ff   :  { %v2393_v7 = vpop.f32.mrf.mxu1  ;;  %18543 = vst [vmem:[#allocation48_spill] sm:$0xff] %v11433_v42 }
 0x200   :  { %3400 = vperm.xlu1 %9510, %v3142_v23   ;;  %v11435_v56 = vpop.permute.xlu1 %7938 }
 0x201   :  { %v2396_v47 = vpop.f32.mrf.mxu1  ;;  %18544 = vst [vmem:[#allocation49_spill] sm:$0xff] %v11435_v56 }
 0x202   :  { %v3143_v40 = vmul.f32 0.0051020407, %v2396_v47  ;;  %v11437_v54 = vpop.permute.xlu0 %7933 }
 0x203   :  { %v2398_v43 = vpop.f32.mrf.mxu1  ;;  %18545 = vst [vmem:[#allocation50_spill] sm:$0xff] %v11437_v54 }
 0x204   :  { %3405 = vperm.xlu0 %9511, %v3143_v40   ;;  %v11439_v59 = vpop.permute.xlu1 %7948 }
 0x205   :  { %v2401_v35 = vpop.f32.mrf.mxu1  ;;  %18546 = vst [vmem:[#allocation51_spill] sm:$0xff] %v11439_v59  ;;  %v279_v59 = vld [vmem:[%s18063_s2 + $0x2d8] sm:$0xff] }
 0x206   :  { %v3144_v22 = vmul.f32 0.0051020407, %v2401_v35  ;;  %v11441_v37 = vpop.permute.xlu0 %7943 }
 0x207   :  { %v2403_v27 = vpop.f32.mrf.mxu1  ;;  %18547 = vst [vmem:[#allocation52_spill] sm:$0xff] %v11441_v37 }
 0x208   :  { %3410 = vperm.xlu1 %9510, %v3144_v22   ;;  %v11443_v42 = vpop.permute.xlu1 %7958 }
 0x209   :  { %v2406_v5 = vpop.f32.mrf.mxu1  ;;  %18548 = vst [vmem:[#allocation53_spill] sm:$0xff] %v11443_v42 }
 0x20a   :  { %v3145_v33 = vmul.f32 0.0051020407, %v2406_v5  ;;  %v11448_v56 = vpop.permute.xlu0 %7953 }
 0x20b   :  { %v2408_v7 = vpop.f32.mrf.mxu1  ;;  %18549 = vst [vmem:[#allocation54_spill] sm:$0xff] %v11448_v56 }
 0x20c   :  { %3415 = vperm.xlu0 %9511, %v3145_v33  }
 0x20d   :  { %v2411_v23 = vpop.f32.mrf.mxu1 }
 0x20e   :  { %v3146_v47 = vmul.f32 0.0051020407, %v2411_v23 }
 0x20f   :  { %v2413_v43 = vpop.f32.mrf.mxu1 }
 0x210   :  { %3420 = vperm.xlu1 %9510, %v3146_v47  }
 0x211   :  { %v2416_v40 = vpop.f32.mrf.mxu1 }
 0x212   :  { %v3147_v35 = vmul.f32 0.0051020407, %v2416_v40 }
 0x213   :  { %v2418_v27 = vpop.f32.mrf.mxu1 }
 0x214   :  { %3425 = vperm.xlu0 %9511, %v3147_v35   ;;  %v277_v35 = vld [vmem:[%s18063_s2 + $0x2c8] sm:$0xff] }
 0x215   :  { %v2421_v22 = vpop.f32.mrf.mxu1  ;;  %9384 = vmatprep.mubr.msk.f32.mxu1 %vm524_vm1, %v277_v35  ;;  %9216 = vmatprep.mubr.msk.f32.mxu0 %vm524_vm1, %v277_v35 }
 0x216   :  { %v3148_v5 = vmul.f32 0.0051020407, %v2421_v22  ;;  %v276_v22 = vld [vmem:[%s18063_s2 + $0x2c0] sm:$0xff] }
 0x217   :  { %v2423_v7 = vpop.f32.mrf.mxu1  ;;  %2500 = vmatmul.mubr.f32.gmra.mxu1 %v276_v22  ;;  %1358 = vmatmul.mubr.f32.gmra.mxu0 %v276_v22  ;;  %v278_v22 = vld [vmem:[%s18063_s2 + $0x2d0] sm:$0xff] }
 0x218   :  { %3430 = vperm.xlu1 %9510, %v3148_v5   ;;  %v11455_v7 = vpop.permute.xlu1 %7968  ;;  %9385 = vmatprep.mubr.msk.f32.mxu1 %vm524_vm1, %v279_v59 }
 0x219   :  { %v2426_v33 = vpop.f32.mrf.mxu1  ;;  %18550 = vst [vmem:[#allocation55_spill] sm:$0xff] %v11455_v7  ;;  %9217 = vmatprep.mubr.msk.f32.mxu0 %vm524_vm1, %v279_v59 }
 0x21a   :  { %v3149_v23 = vmul.f32 0.0051020407, %v2426_v33 }
 0x21b   :  { %v2428_v43 = vpop.f32.mrf.mxu1  ;;  %2505 = vmatmul.mubr.f32.gmra.mxu1 %v278_v22  ;;  %1364 = vmatmul.mubr.f32.gmra.mxu0 %v278_v22 }
 0x21c   :  { %3435 = vperm.xlu0 %9511, %v3149_v23   ;;  %v11459_v42 = vpop.permute.xlu1 %7978 }
 0x21d   :  { %v2431_v47 = vpop.f32.mrf.mxu1  ;;  %18552 = vst [vmem:[#allocation57_spill] sm:$0xff] %v11459_v42 }
 0x21e   :  { %v3150_v40 = vmul.f32 0.0051020407, %v2431_v47  ;;  %v11457_v47 = vpop.permute.xlu0 %7963 }
 0x21f   :  { %v2433_v27 = vpop.f32.mrf.mxu1  ;;  %18551 = vst [vmem:[#allocation56_spill] sm:$0xff] %v11457_v47 }
 0x220   :  { %3440 = vperm.xlu1 %9510, %v3150_v40  }
 0x221   :  { %v2436_v5 = vpop.f32.mrf.mxu1 }
 0x222   :  { %v3151_v33 = vmul.f32 0.0051020407, %v2436_v5  ;;  %v1095_v5 = vpop.f32.mrf.mxu0 }
 0x223   :  { %v2438_v23 = vpop.f32.mrf.mxu1 }
 0x224   :  { %3445 = vperm.xlu0 %9511, %v3151_v33   ;;  %v11469_v23 = vpop.permute.xlu0 %7973 }
 0x225   :  { %v2441_v43 = vpop.f32.mrf.mxu1  ;;  %18553 = vst [vmem:[#allocation58_spill] sm:$0xff] %v11469_v23 }
 0x226   :  { %v3152_v40 = vmul.f32 0.0051020407, %v2441_v43 }
 0x227   :  { %v2443_v27 = vpop.f32.mrf.mxu1 }
 0x228   :  { %3450 = vperm.xlu1 %9510, %v3152_v40   ;;  %v11471_v40 = vpop.permute.xlu1 %7988  ;;  %v1097_v27 = vpop.f32.mrf.mxu0 }
 0x229   :  { %v2446_v56 = vpop.f32.mrf.mxu1  ;;  %18554 = vst [vmem:[#allocation59_spill] sm:$0xff] %v11471_v40  ;;  %v11473_v7 = vpop.permute.xlu0 %7983 }
 0x22a   :  { %v3153_v35 = vmul.f32 0.0051020407, %v2446_v56  ;;  %18555 = vst [vmem:[#allocation60_spill] sm:$0xff] %v11473_v7  ;;  %v1101_v47 = vpop.f32.mrf.mxu0 }
 0x22b   :  { %v2448_v33 = vpop.f32.mrf.mxu1 }
 0x22c   :  { %3455 = vperm.xlu0 %9511, %v3153_v35   ;;  %v11475_v54 = vpop.permute.xlu1 %7998  ;;  %v1103_v33 = vpop.f32.mrf.mxu0 }
 0x22d   :  { %v2451_v43 = vpop.f32.mrf.mxu1  ;;  %18556 = vst [vmem:[#allocation61_spill] sm:$0xff] %v11475_v54  ;;  %v11479_v22 = vpop.permute.xlu0 %7993 }
 0x22e   :  { %18557 = vst [vmem:[#allocation62_spill] sm:$0xff] %v11479_v22  ;;  %v1107_v55 = vpop.f32.mrf.mxu0 }
 0x22f   :  { %v2453_v56 = vpop.f32.mrf.mxu1 }
 0x230   :  { %v3296_v23 = vpop.permute.xlu1 %3295 }
 0x231   :  { %v2456_v42 = vpop.f32.mrf.mxu1  ;;  %v3291_v28 = vpop.permute.xlu0 %3290  ;;  %v11483_v56 = vsub.f32 %v1103_v33, %v3296_v23  ;;  %v11487_v30 = vsub.f32 %v1101_v47, %v3296_v23 }
 0x232   :  { %v11485_v58 = vsub.f32 %v1097_v27, %v3291_v28  ;;  %v11489_v54 = vsub.f32 %v1095_v5, %v3291_v28 }
 0x233   :  { %v2458_v37 = vpop.f32.mrf.mxu1  ;;  %v4466_v27 = vmul.f32 %v11487_v30, %v11487_v30 }
 0x234   :  { %v3301_v7 = vpop.permute.xlu1 %3300  ;;  %v1109_v37 = vpop.f32.mrf.mxu0  ;;  %v4464_v28 = vmul.f32 %v11489_v54, %v11489_v54 }
 0x235   :  { %v11477_v59 = vpop.f32.mrf.mxu1  ;;  %v11493_v22 = vsub.f32 %v1109_v37, %v3301_v7  ;;  %v11501_v4 = vsub.f32 %v1107_v55, %v3301_v7 }
 0x237   :  { %v2463_v44 = vpop.f32.mrf.mxu1  ;;  %v4469_v47 = vmul.f32 %v11493_v22, %v11493_v22  ;;  %v4468_v37 = vmul.f32 %v11501_v4, %v11501_v4 }
 0x238   :  { %v4467_v44 = vmul.f32 %v11483_v56, %v11483_v56 }
 0x239   :  { %v11481_v35 = vpop.f32.mrf.mxu1  ;;  %v4808_v50 = vsel %vm2102_vm0, %v4469_v47, 0.0 }
 0x23a   :  { %v4804_v5 = vsel %vm2102_vm0, %v4467_v44, 0.0  ;;  %v4809_v7 = vadd.f32 %v4808_v50, %v4468_v37  ;;  %v281_v44 = vld [vmem:[%s18063_s2 + $0x2e8] sm:$0xff]  ;;  %v283_v50 = vld [vmem:[%s18063_s2 + $0x2f8] sm:$0xff] }
 0x23b   :  { %v2468_v40 = vpop.f32.mrf.mxu1  ;;  %v4805_v16 = vadd.f32 %v4804_v5, %v4466_v27  ;;  %9386 = vmatprep.mubr.msk.f32.mxu1 %vm524_vm1, %v281_v44  ;;  %9218 = vmatprep.mubr.msk.f32.mxu0 %vm524_vm1, %v281_v44  ;;  %v3155_v27 = vmul.f32 0.0051020407, %v2456_v42 }
 0x23c   :  { %v4465_v40 = vmul.f32 %v11485_v58, %v11485_v58 }
 0x23d   :  { %v11495_v41 = vpop.f32.mrf.mxu1 }
 0x23e   :  { %v4800_v23 = vsel %vm2102_vm0, %v4465_v40, 0.0  ;;  %v280_v40 = vld [vmem:[%s18063_s2 + $0x2e0] sm:$0xff] }
 0x23f   :  { %v2473_v33 = vpop.f32.mrf.mxu1  ;;  %2510 = vmatmul.mubr.f32.gmra.mxu1 %v280_v40  ;;  %1370 = vmatmul.mubr.f32.gmra.mxu0 %v280_v40 }
 0x240   :  { %v4801_v33 = vadd.f32 %v4800_v23, %v4464_v28  ;;  %9387 = vmatprep.mubr.msk.f32.mxu1 %vm524_vm1, %v283_v50  ;;  %9219 = vmatprep.mubr.msk.f32.mxu0 %vm524_vm1, %v283_v50  ;;  %v1113_v28 = vpop.f32.mrf.mxu0 }
 0x241   :  { %v11512_v55 = vpop.f32.mrf.mxu1 }
 0x242   :  { %v1115_v47 = vpop.f32.mrf.mxu0 }
 0x243   :  { %v2478_v62 = vpop.f32.mrf.mxu1 }
 0x244   :  { %v282_v62 = vld [vmem:[%s18063_s2 + $0x2f0] sm:$0xff]  ;;  %v1119_v5 = vpop.f32.mrf.mxu0 }
 0x245   :  { %2515 = vmatmul.mubr.f32.gmra.mxu1 %v282_v62  ;;  %1376 = vmatmul.mubr.f32.gmra.mxu0 %v282_v62  ;;  %v11536_v40 = vpop.f32.mrf.mxu1 }
 0x247   :  { %v2483_v50 = vpop.f32.mrf.mxu1 }
 0x249   :  { %v11550_v57 = vpop.f32.mrf.mxu1 }
 0x24b   :  { %4806 = vadd.xlane.f32.xlu0 %v4805_v16  ;;  %v3154_v16 = vmul.f32 0.0051020407, %v2451_v43  ;;  %v3306_v43 = vpop.permute.xlu1 %3305 }
 0x24c   :  { %4802 = vadd.xlane.f32.xlu1 %v4801_v33  ;;  %v11530_v23 = vsub.f32 %v1115_v47, %v3306_v43  ;;  %v1121_v33 = vpop.f32.mrf.mxu0 }
 0x24f   :  { %4810 = vadd.xlane.f32.xlu0 %v4809_v7  ;;  %v3311_v37 = vpop.permute.xlu1 %3310  ;;  %v11532_v7 = vsub.f32 %v1113_v28, %v3306_v43 }
 0x250   :  { %v11534_v44 = vsub.f32 %v1121_v33, %v3311_v37  ;;  %v11540_v42 = vsub.f32 %v1119_v5, %v3311_v37  ;;  %v2488_v5 = vpop.f32.mrf.mxu1  ;;  %v285_v37 = vld [vmem:[%s18063_s2 + $0x308] sm:$0xff] }
 0x251   :  { %v4470_v62 = vmul.f32 %v11532_v7, %v11532_v7  ;;  %9388 = vmatprep.mubr.msk.f32.mxu1 %vm524_vm1, %v285_v37  ;;  %9220 = vmatprep.mubr.msk.f32.mxu0 %vm524_vm1, %v285_v37 }
 0x252   :  { %v4472_v28 = vmul.f32 %v11540_v42, %v11540_v42 }
 0x25d   :  { %3460 = vperm.xlu1 %9510, %v3154_v16   ;;  %v4471_v16 = vmul.f32 %v11530_v23, %v11530_v23 }
 0x25f   :  { %v4812_v47 = vsel %vm2102_vm0, %v4471_v16, 0.0  ;;  %v284_v16 = vld [vmem:[%s18063_s2 + $0x300] sm:$0xff] }
 0x260   :  { %v4813_v43 = vadd.f32 %v4812_v47, %v4470_v62  ;;  %2520 = vmatmul.mubr.f32.gmra.mxu1 %v284_v16  ;;  %1382 = vmatmul.mubr.f32.gmra.mxu0 %v284_v16  ;;  %v3156_v62 = vmul.f32 0.0051020407, %v11477_v59  ;;  %v286_v47 = vld [vmem:[%s18063_s2 + $0x310] sm:$0xff] }
 0x265   :  { %3465 = vperm.xlu0 %9511, %v3155_v27   ;;  %v4473_v27 = vmul.f32 %v11534_v44, %v11534_v44 }
 0x267   :  { %v4816_v33 = vsel %vm2102_vm0, %v4473_v27, 0.0  ;;  %v287_v27 = vld [vmem:[%s18063_s2 + $0x318] sm:$0xff] }
 0x268   :  { %v4817_v50 = vadd.f32 %v4816_v33, %v4472_v28  ;;  %9389 = vmatprep.mubr.msk.f32.mxu1 %vm524_vm1, %v287_v27  ;;  %9221 = vmatprep.mubr.msk.f32.mxu0 %vm524_vm1, %v287_v27  ;;  %v3157_v28 = vmul.f32 0.0051020407, %v11481_v35  ;;  %v3316_v33 = vpop.permute.xlu1 %3315 }
 0x269   :  { %2525 = vmatmul.mubr.f32.gmra.mxu1 %v286_v47  ;;  %1388 = vmatmul.mubr.f32.gmra.mxu0 %v286_v47 }
 0x26c   :  { %v3321_v37 = vpop.permute.xlu1 %3320 }
 0x281   :  { %4814 = vadd.xlane.f32.xlu1 %v4813_v43  ;;  %v1125_v43 = vpop.f32.mrf.mxu0 }
 0x283   :  { %v1127_v59 = vpop.f32.mrf.mxu0 }
 0x284   :  { %4818 = vadd.xlane.f32.xlu0 %v4817_v50  ;;  %v11570_v5 = vsub.f32 %v1127_v59, %v3316_v33 }
 0x285   :  { %v1131_v50 = vpop.f32.mrf.mxu0 }
 0x286   :  { %v4475_v27 = vmul.f32 %v11570_v5, %v11570_v5  ;;  %v11580_v35 = vsub.f32 %v1131_v50, %v3321_v37 }
 0x287   :  { %v1133_v16 = vpop.f32.mrf.mxu0 }
 0x288   :  { %v11574_v34 = vsub.f32 %v1133_v16, %v3321_v37  ;;  %v4820_v21 = vsel %vm2102_vm0, %v4475_v27, 0.0  ;;  %v289_v37 = vld [vmem:[%s18063_s2 + $0x328] sm:$0xff]  ;;  %v3158_v27 = vmul.f32 0.0051020407, %v11495_v41 }
 0x289   :  { %9390 = vmatprep.mubr.msk.f32.mxu1 %vm524_vm1, %v289_v37  ;;  %9222 = vmatprep.mubr.msk.f32.mxu0 %vm524_vm1, %v289_v37 }
 0x28a   :  { %v4477_v59 = vmul.f32 %v11574_v34, %v11574_v34 }
 0x28c   :  { %v4824_v16 = vsel %vm2102_vm0, %v4477_v59, 0.0  ;;  %v290_v59 = vld [vmem:[%s18063_s2 + $0x330] sm:$0xff] }
 0x292   :  { %3470 = vperm.xlu1 %9510, %v3156_v62   ;;  %v11572_v62 = vsub.f32 %v1125_v43, %v3316_v33  ;;  %v4476_v43 = vmul.f32 %v11580_v35, %v11580_v35 }
 0x295   :  { %v11576_v63 = vpop.f32.mrf.mxu1 }
 0x297   :  { %v2493_v47 = vpop.f32.mrf.mxu1 }
 0x298   :  { %v4825_v47 = vadd.f32 %v4824_v16, %v4476_v43  ;;  %v3159_v43 = vmul.f32 0.0051020407, %v11512_v55  ;;  %v3326_v16 = vpop.permute.xlu1 %3325 }
 0x29a   :  { %3475 = vperm.xlu0 %9511, %v3157_v28   ;;  %v4474_v28 = vmul.f32 %v11572_v62, %v11572_v62 }
 0x29c   :  { %v4821_v33 = vadd.f32 %v4820_v21, %v4474_v28  ;;  %v288_v21 = vld [vmem:[%s18063_s2 + $0x320] sm:$0xff]  ;;  %v291_v28 = vld [vmem:[%s18063_s2 + $0x338] sm:$0xff]  ;;  %v3331_v37 = vpop.permute.xlu1 %3330 }
 0x29d   :  { %2530 = vmatmul.mubr.f32.gmra.mxu1 %v288_v21  ;;  %1394 = vmatmul.mubr.f32.gmra.mxu0 %v288_v21 }
 0x29e   :  { %9391 = vmatprep.mubr.msk.f32.mxu1 %vm524_vm1, %v291_v28  ;;  %9223 = vmatprep.mubr.msk.f32.mxu0 %vm524_vm1, %v291_v28 }
 0x2a1   :  { %2535 = vmatmul.mubr.f32.gmra.mxu1 %v290_v59  ;;  %1400 = vmatmul.mubr.f32.gmra.mxu0 %v290_v59 }
 0x2a5   :  { %v11590_v14 = vpop.f32.mrf.mxu1 }
 0x2a7   :  { %v2498_v50 = vpop.f32.mrf.mxu1 }
 0x2b6   :  { %4822 = vadd.xlane.f32.xlu1 %v4821_v33  ;;  %v1137_v33 = vpop.f32.mrf.mxu0 }
 0x2b8   :  { %v1139_v41 = vpop.f32.mrf.mxu0 }
 0x2b9   :  { %4826 = vadd.xlane.f32.xlu0 %v4825_v47  ;;  %v11610_v50 = vsub.f32 %v1139_v41, %v3326_v16 }
 0x2ba   :  { %v1143_v47 = vpop.f32.mrf.mxu0 }
 0x2bb   :  { %v4479_v28 = vmul.f32 %v11610_v50, %v11610_v50  ;;  %v11620_v55 = vsub.f32 %v1143_v47, %v3331_v37 }
 0x2bc   :  { %v1145_v21 = vpop.f32.mrf.mxu0 }
 0x2bd   :  { %v11614_v52 = vsub.f32 %v1145_v21, %v3331_v37  ;;  %18559 = vst [vmem:[#allocation64_spill] sm:$0xff] %v11620_v55  ;;  %v4828_v18 = vsel %vm2102_vm0, %v4479_v28, 0.0  ;;  %v293_v37 = vld [vmem:[%s18063_s2 + $0x348] sm:$0xff]  ;;  %v3160_v28 = vmul.f32 0.0051020407, %v11536_v40 }
 0x2be   :  { %9392 = vmatprep.mubr.msk.f32.mxu1 %vm524_vm1, %v293_v37  ;;  %9224 = vmatprep.mubr.msk.f32.mxu0 %vm524_vm1, %v293_v37  ;;  %v3341_v37 = vpop.permute.xlu1 %3340 }
 0x2bf   :  { %18558 = vst [vmem:[#allocation63_spill] sm:$0xff] %v11614_v52  ;;  %v4481_v41 = vmul.f32 %v11614_v52, %v11614_v52 }
 0x2c1   :  { %v4832_v21 = vsel %vm2102_vm0, %v4481_v41, 0.0  ;;  %v294_v41 = vld [vmem:[%s18063_s2 + $0x350] sm:$0xff] }
 0x2c7   :  { %3480 = vperm.xlu1 %9510, %v3158_v27   ;;  %v11612_v27 = vsub.f32 %v1137_v33, %v3326_v16  ;;  %v4480_v33 = vmul.f32 %v11620_v55, %v11620_v55 }
 0x2cf   :  { %3485 = vperm.xlu0 %9511, %v3159_v43   ;;  %v4478_v43 = vmul.f32 %v11612_v27, %v11612_v27 }
 0x2d1   :  { %v4829_v16 = vadd.f32 %v4828_v18, %v4478_v43  ;;  %v292_v18 = vld [vmem:[%s18063_s2 + $0x340] sm:$0xff]  ;;  %v295_v43 = vld [vmem:[%s18063_s2 + $0x358] sm:$0xff] }
 0x2d2   :  { %2540 = vmatmul.mubr.f32.gmra.mxu1 %v292_v18  ;;  %1406 = vmatmul.mubr.f32.gmra.mxu0 %v292_v18 }
 0x2d3   :  { %9393 = vmatprep.mubr.msk.f32.mxu1 %vm524_vm1, %v295_v43  ;;  %9225 = vmatprep.mubr.msk.f32.mxu0 %vm524_vm1, %v295_v43 }
 0x2d6   :  { %2545 = vmatmul.mubr.f32.gmra.mxu1 %v294_v41  ;;  %1412 = vmatmul.mubr.f32.gmra.mxu0 %v294_v41 }
 0x2d7   :  { %v11616_v6 = vpop.f32.mrf.mxu1 }
 0x2d9   :  { %v2503_v59 = vpop.f32.mrf.mxu1 }
 0x2da   :  { %v4833_v59 = vadd.f32 %v4832_v21, %v4480_v33  ;;  %v3161_v33 = vmul.f32 0.0051020407, %v11550_v57 }
 0x2db   :  { %v11630_v26 = vpop.f32.mrf.mxu1 }
 0x2dd   :  { %v2508_v47 = vpop.f32.mrf.mxu1 }
 0x2eb   :  { %4830 = vadd.xlane.f32.xlu1 %v4829_v16  ;;  %v1149_v16 = vpop.f32.mrf.mxu0 }
 0x2ed   :  { %v1151_v40 = vpop.f32.mrf.mxu0 }
 0x2ee   :  { %4834 = vadd.xlane.f32.xlu0 %v4833_v59  ;;  %v3336_v59 = vpop.permute.xlu0 %3335 }
 0x2ef   :  { %v1155_v21 = vpop.f32.mrf.mxu0  ;;  %v11650_v47 = vsub.f32 %v1151_v40, %v3336_v59 }
 0x2f0   :  { %v11660_v57 = vsub.f32 %v1155_v21, %v3341_v37 }
 0x2f1   :  { %18560 = vst [vmem:[#allocation65_spill] sm:$0xff] %v11650_v47  ;;  %v1157_v18 = vpop.f32.mrf.mxu0  ;;  %v4483_v43 = vmul.f32 %v11650_v47, %v11650_v47 }
 0x2f2   :  { %v11654_v31 = vsub.f32 %v1157_v18, %v3341_v37  ;;  %18563 = vst [vmem:[#allocation68_spill] sm:$0xff] %v11660_v57  ;;  %v297_v37 = vld [vmem:[%s18063_s2 + $0x368] sm:$0xff] }
 0x2f3   :  { %v4836_v48 = vsel %vm2102_vm0, %v4483_v43, 0.0  ;;  %9394 = vmatprep.mubr.msk.f32.mxu1 %vm524_vm1, %v297_v37  ;;  %9226 = vmatprep.mubr.msk.f32.mxu0 %vm524_vm1, %v297_v37  ;;  %v3162_v43 = vmul.f32 0.0051020407, %v11576_v63  ;;  %v3351_v37 = vpop.permute.xlu1 %3350 }
 0x2f4   :  { %18562 = vst [vmem:[#allocation67_spill] sm:$0xff] %v11654_v31  ;;  %v4485_v40 = vmul.f32 %v11654_v31, %v11654_v31 }
 0x2f6   :  { %v4840_v18 = vsel %vm2102_vm0, %v4485_v40, 0.0  ;;  %v298_v40 = vld [vmem:[%s18063_s2 + $0x370] sm:$0xff] }
 0x2fc   :  { %3490 = vperm.xlu1 %9510, %v3160_v28   ;;  %v11652_v28 = vsub.f32 %v1149_v16, %v3336_v59  ;;  %v4484_v16 = vmul.f32 %v11660_v57, %v11660_v57 }
 0x2fe   :  { %18561 = vst [vmem:[#allocation66_spill] sm:$0xff] %v11652_v28 }
 0x2ff   :  { %v11656_v29 = vpop.f32.mrf.mxu1 }
 0x301   :  { %v2513_v41 = vpop.f32.mrf.mxu1 }
 0x302   :  { %v4841_v41 = vadd.f32 %v4840_v18, %v4484_v16  ;;  %v3163_v16 = vmul.f32 0.0051020407, %v11590_v14 }
 0x304   :  { %3495 = vperm.xlu0 %9511, %v3161_v33   ;;  %v4482_v33 = vmul.f32 %v11652_v28, %v11652_v28 }
 0x305   :  { %v11670_v24 = vpop.f32.mrf.mxu1 }
 0x306   :  { %v4837_v59 = vadd.f32 %v4836_v48, %v4482_v33  ;;  %v296_v48 = vld [vmem:[%s18063_s2 + $0x360] sm:$0xff]  ;;  %v299_v33 = vld [vmem:[%s18063_s2 + $0x378] sm:$0xff] }
 0x307   :  { %v2518_v21 = vpop.f32.mrf.mxu1  ;;  %2550 = vmatmul.mubr.f32.gmra.mxu1 %v296_v48  ;;  %1418 = vmatmul.mubr.f32.gmra.mxu0 %v296_v48 }
 0x308   :  { %9395 = vmatprep.mubr.msk.f32.mxu1 %vm524_vm1, %v299_v33  ;;  %9227 = vmatprep.mubr.msk.f32.mxu0 %vm524_vm1, %v299_v33 }
 0x30b   :  { %2555 = vmatmul.mubr.f32.gmra.mxu1 %v298_v40  ;;  %1424 = vmatmul.mubr.f32.gmra.mxu0 %v298_v40 }
 0x320   :  { %4838 = vadd.xlane.f32.xlu1 %v4837_v59  ;;  %v1161_v59 = vpop.f32.mrf.mxu0  ;;  %v11696_v3 = vpop.f32.mrf.mxu1 }
 0x322   :  { %v1163_v63 = vpop.f32.mrf.mxu0  ;;  %v2523_v40 = vpop.f32.mrf.mxu1 }
 0x323   :  { %4842 = vadd.xlane.f32.xlu0 %v4841_v41  ;;  %v3346_v41 = vpop.permute.xlu0 %3345 }
 0x324   :  { %v1167_v18 = vpop.f32.mrf.mxu0  ;;  %v11690_v21 = vsub.f32 %v1163_v63, %v3346_v41 }
 0x325   :  { %v11700_v14 = vsub.f32 %v1167_v18, %v3351_v37 }
 0x326   :  { %18564 = vst [vmem:[#allocation69_spill] sm:$0xff] %v11690_v21  ;;  %v1169_v48 = vpop.f32.mrf.mxu0  ;;  %v4487_v33 = vmul.f32 %v11690_v21, %v11690_v21 }
 0x327   :  { %v11694_v39 = vsub.f32 %v1169_v48, %v3351_v37  ;;  %18567 = vst [vmem:[#allocation72_spill] sm:$0xff] %v11700_v14  ;;  %v301_v37 = vld [vmem:[%s18063_s2 + $0x388] sm:$0xff] }
 0x328   :  { %v4844_v36 = vsel %vm2102_vm0, %v4487_v33, 0.0  ;;  %9396 = vmatprep.mubr.msk.f32.mxu1 %vm524_vm1, %v301_v37  ;;  %9228 = vmatprep.mubr.msk.f32.mxu0 %vm524_vm1, %v301_v37  ;;  %v3164_v33 = vmul.f32 0.0051020407, %v11616_v6  ;;  %v3361_v37 = vpop.permute.xlu1 %3360 }
 0x329   :  { %18566 = vst [vmem:[#allocation71_spill] sm:$0xff] %v11694_v39  ;;  %v4489_v63 = vmul.f32 %v11694_v39, %v11694_v39  ;;  %v11710_v38 = vpop.f32.mrf.mxu1 }
 0x32b   :  { %v4848_v48 = vsel %vm2102_vm0, %v4489_v63, 0.0  ;;  %v2528_v18 = vpop.f32.mrf.mxu1  ;;  %v302_v63 = vld [vmem:[%s18063_s2 + $0x390] sm:$0xff] }
 0x331   :  { %3500 = vperm.xlu1 %9510, %v3162_v43   ;;  %v11692_v43 = vsub.f32 %v1161_v59, %v3346_v41  ;;  %v4488_v59 = vmul.f32 %v11700_v14, %v11700_v14 }
 0x333   :  { %18565 = vst [vmem:[#allocation70_spill] sm:$0xff] %v11692_v43  ;;  %v4849_v40 = vadd.f32 %v4848_v48, %v4488_v59  ;;  %v3165_v59 = vmul.f32 0.0051020407, %v11630_v26 }
 0x339   :  { %3505 = vperm.xlu0 %9511, %v3163_v16   ;;  %v4486_v16 = vmul.f32 %v11692_v43, %v11692_v43 }
 0x33b   :  { %v4845_v41 = vadd.f32 %v4844_v36, %v4486_v16  ;;  %v300_v36 = vld [vmem:[%s18063_s2 + $0x380] sm:$0xff]  ;;  %v303_v16 = vld [vmem:[%s18063_s2 + $0x398] sm:$0xff] }
 0x33c   :  { %2560 = vmatmul.mubr.f32.gmra.mxu1 %v300_v36  ;;  %1430 = vmatmul.mubr.f32.gmra.mxu0 %v300_v36 }
 0x33d   :  { %9397 = vmatprep.mubr.msk.f32.mxu1 %vm524_vm1, %v303_v16  ;;  %9229 = vmatprep.mubr.msk.f32.mxu0 %vm524_vm1, %v303_v16 }
 0x340   :  { %2565 = vmatmul.mubr.f32.gmra.mxu1 %v302_v63  ;;  %1436 = vmatmul.mubr.f32.gmra.mxu0 %v302_v63 }
 0x355   :  { %4846 = vadd.xlane.f32.xlu1 %v4845_v41  ;;  %v1173_v41 = vpop.f32.mrf.mxu0 }
 0x357   :  { %v1175_v6 = vpop.f32.mrf.mxu0 }
 0x358   :  { %4850 = vadd.xlane.f32.xlu0 %v4849_v40  ;;  %v3356_v40 = vpop.permute.xlu0 %3355 }
 0x359   :  { %v1179_v48 = vpop.f32.mrf.mxu0  ;;  %v11730_v18 = vsub.f32 %v1175_v6, %v3356_v40 }
 0x35a   :  { %v11740_v26 = vsub.f32 %v1179_v48, %v3361_v37 }
 0x35b   :  { %18568 = vst [vmem:[#allocation73_spill] sm:$0xff] %v11730_v18  ;;  %v1181_v36 = vpop.f32.mrf.mxu0  ;;  %v4491_v16 = vmul.f32 %v11730_v18, %v11730_v18 }
 0x35c   :  { %v11734_v9 = vsub.f32 %v1181_v36, %v3361_v37  ;;  %18571 = vst [vmem:[#allocation76_spill] sm:$0xff] %v11740_v26  ;;  %v305_v37 = vld [vmem:[%s18063_s2 + $0x3a8] sm:$0xff] }
 0x35d   :  { %v11736_v49 = vpop.f32.mrf.mxu1  ;;  %v4852_v25 = vsel %vm2102_vm0, %v4491_v16, 0.0  ;;  %9398 = vmatprep.mubr.msk.f32.mxu1 %vm524_vm1, %v305_v37  ;;  %9230 = vmatprep.mubr.msk.f32.mxu0 %vm524_vm1, %v305_v37  ;;  %v3166_v16 = vmul.f32 0.0051020407, %v11656_v29  ;;  %v3371_v37 = vpop.permute.xlu1 %3370 }
 0x35e   :  { %18570 = vst [vmem:[#allocation75_spill] sm:$0xff] %v11734_v9  ;;  %v4493_v6 = vmul.f32 %v11734_v9, %v11734_v9 }
 0x35f   :  { %v2533_v63 = vpop.f32.mrf.mxu1 }
 0x360   :  { %v4856_v36 = vsel %vm2102_vm0, %v4493_v6, 0.0  ;;  %v306_v6 = vld [vmem:[%s18063_s2 + $0x3b0] sm:$0xff] }
 0x361   :  { %v11750_v19 = vpop.f32.mrf.mxu1 }
 0x363   :  { %v2538_v48 = vpop.f32.mrf.mxu1 }
 0x366   :  { %3510 = vperm.xlu1 %9510, %v3164_v33   ;;  %v11732_v33 = vsub.f32 %v1173_v41, %v3356_v40  ;;  %v4492_v41 = vmul.f32 %v11740_v26, %v11740_v26 }
 0x368   :  { %18569 = vst [vmem:[#allocation74_spill] sm:$0xff] %v11732_v33  ;;  %v4857_v63 = vadd.f32 %v4856_v36, %v4492_v41  ;;  %v3167_v41 = vmul.f32 0.0051020407, %v11670_v24 }
 0x36e   :  { %3515 = vperm.xlu0 %9511, %v3165_v59   ;;  %v4490_v59 = vmul.f32 %v11732_v33, %v11732_v33 }
 0x370   :  { %v4853_v40 = vadd.f32 %v4852_v25, %v4490_v59  ;;  %v304_v25 = vld [vmem:[%s18063_s2 + $0x3a0] sm:$0xff]  ;;  %v307_v59 = vld [vmem:[%s18063_s2 + $0x3b8] sm:$0xff] }
 0x371   :  { %2570 = vmatmul.mubr.f32.gmra.mxu1 %v304_v25  ;;  %1442 = vmatmul.mubr.f32.gmra.mxu0 %v304_v25 }
 0x372   :  { %9399 = vmatprep.mubr.msk.f32.mxu1 %vm524_vm1, %v307_v59  ;;  %9231 = vmatprep.mubr.msk.f32.mxu0 %vm524_vm1, %v307_v59 }
 0x375   :  { %2575 = vmatmul.mubr.f32.gmra.mxu1 %v306_v6  ;;  %1448 = vmatmul.mubr.f32.gmra.mxu0 %v306_v6 }
 0x38a   :  { %4854 = vadd.xlane.f32.xlu1 %v4853_v40  ;;  %v1185_v40 = vpop.f32.mrf.mxu0 }
 0x38c   :  { %v1187_v29 = vpop.f32.mrf.mxu0 }
 0x38d   :  { %4858 = vadd.xlane.f32.xlu0 %v4857_v63  ;;  %v3366_v63 = vpop.permute.xlu0 %3365 }
 0x38e   :  { %v1191_v36 = vpop.f32.mrf.mxu0  ;;  %v11770_v48 = vsub.f32 %v1187_v29, %v3366_v63 }
 0x38f   :  { %v11780_v24 = vsub.f32 %v1191_v36, %v3371_v37 }
 0x390   :  { %18572 = vst [vmem:[#allocation77_spill] sm:$0xff] %v11770_v48  ;;  %v1193_v25 = vpop.f32.mrf.mxu0  ;;  %v4495_v59 = vmul.f32 %v11770_v48, %v11770_v48 }
 0x391   :  { %v11774_v11 = vsub.f32 %v1193_v25, %v3371_v37  ;;  %18575 = vst [vmem:[#allocation80_spill] sm:$0xff] %v11780_v24  ;;  %v309_v37 = vld [vmem:[%s18063_s2 + $0x3c8] sm:$0xff] }
 0x392   :  { %v11776_v0 = vpop.f32.mrf.mxu1  ;;  %v4860_v15 = vsel %vm2102_vm0, %v4495_v59, 0.0  ;;  %9400 = vmatprep.mubr.msk.f32.mxu1 %vm524_vm1, %v309_v37  ;;  %9232 = vmatprep.mubr.msk.f32.mxu0 %vm524_vm1, %v309_v37  ;;  %v3168_v59 = vmul.f32 0.0051020407, %v11696_v3  ;;  %v3381_v37 = vpop.permute.xlu1 %3380 }
 0x393   :  { %18574 = vst [vmem:[#allocation79_spill] sm:$0xff] %v11774_v11  ;;  %v4497_v29 = vmul.f32 %v11774_v11, %v11774_v11 }
 0x394   :  { %v2543_v6 = vpop.f32.mrf.mxu1 }
 0x395   :  { %v4864_v25 = vsel %vm2102_vm0, %v4497_v29, 0.0  ;;  %v310_v29 = vld [vmem:[%s18063_s2 + $0x3d0] sm:$0xff] }
 0x396   :  { %v11790_v51 = vpop.f32.mrf.mxu1 }
 0x398   :  { %v2548_v36 = vpop.f32.mrf.mxu1 }
 0x39b   :  { %3520 = vperm.xlu1 %9510, %v3166_v16   ;;  %v11772_v16 = vsub.f32 %v1185_v40, %v3366_v63  ;;  %v4496_v40 = vmul.f32 %v11780_v24, %v11780_v24 }
 0x39d   :  { %18573 = vst [vmem:[#allocation78_spill] sm:$0xff] %v11772_v16  ;;  %v4865_v6 = vadd.f32 %v4864_v25, %v4496_v40  ;;  %v3169_v40 = vmul.f32 0.0051020407, %v11710_v38 }
 0x3a3   :  { %3525 = vperm.xlu0 %9511, %v3167_v41   ;;  %v4494_v41 = vmul.f32 %v11772_v16, %v11772_v16 }
 0x3a5   :  { %v4861_v63 = vadd.f32 %v4860_v15, %v4494_v41  ;;  %v308_v15 = vld [vmem:[%s18063_s2 + $0x3c0] sm:$0xff]  ;;  %v311_v41 = vld [vmem:[%s18063_s2 + $0x3d8] sm:$0xff] }
 0x3a6   :  { %2580 = vmatmul.mubr.f32.gmra.mxu1 %v308_v15  ;;  %1454 = vmatmul.mubr.f32.gmra.mxu0 %v308_v15 }
 0x3a7   :  { %9401 = vmatprep.mubr.msk.f32.mxu1 %vm524_vm1, %v311_v41  ;;  %9233 = vmatprep.mubr.msk.f32.mxu0 %vm524_vm1, %v311_v41 }
 0x3aa   :  { %2585 = vmatmul.mubr.f32.gmra.mxu1 %v310_v29  ;;  %1460 = vmatmul.mubr.f32.gmra.mxu0 %v310_v29 }
 0x3bf   :  { %4862 = vadd.xlane.f32.xlu1 %v4861_v63  ;;  %v1197_v63 = vpop.f32.mrf.mxu0 }
 0x3c1   :  { %v1199_v3 = vpop.f32.mrf.mxu0 }
 0x3c2   :  { %4866 = vadd.xlane.f32.xlu0 %v4865_v6  ;;  %v3376_v6 = vpop.permute.xlu0 %3375 }
 0x3c3   :  { %v1203_v25 = vpop.f32.mrf.mxu0  ;;  %v11810_v36 = vsub.f32 %v1199_v3, %v3376_v6 }
 0x3c4   :  { %v11820_v38 = vsub.f32 %v1203_v25, %v3381_v37 }
 0x3c5   :  { %18576 = vst [vmem:[#allocation81_spill] sm:$0xff] %v11810_v36  ;;  %v1205_v15 = vpop.f32.mrf.mxu0  ;;  %v4499_v41 = vmul.f32 %v11810_v36, %v11810_v36 }
 0x3c6   :  { %v11814_v11 = vsub.f32 %v1205_v15, %v3381_v37  ;;  %18579 = vst [vmem:[#allocation84_spill] sm:$0xff] %v11820_v38  ;;  %v313_v37 = vld [vmem:[%s18063_s2 + $0x3e8] sm:$0xff] }
 0x3c7   :  { %v11816_v24 = vpop.f32.mrf.mxu1  ;;  %v4868_v48 = vsel %vm2102_vm0, %v4499_v41, 0.0  ;;  %9402 = vmatprep.mubr.msk.f32.mxu1 %vm524_vm1, %v313_v37  ;;  %9234 = vmatprep.mubr.msk.f32.mxu0 %vm524_vm1, %v313_v37  ;;  %v3170_v41 = vmul.f32 0.0051020407, %v11736_v49  ;;  %v3391_v37 = vpop.permute.xlu1 %3390 }
 0x3c8   :  { %18578 = vst [vmem:[#allocation83_spill] sm:$0xff] %v11814_v11  ;;  %v4501_v3 = vmul.f32 %v11814_v11, %v11814_v11 }
 0x3c9   :  { %v2553_v29 = vpop.f32.mrf.mxu1 }
 0x3ca   :  { %v4872_v15 = vsel %vm2102_vm0, %v4501_v3, 0.0  ;;  %v314_v3 = vld [vmem:[%s18063_s2 + $0x3f0] sm:$0xff] }
 0x3cb   :  { %v11830_v16 = vpop.f32.mrf.mxu1 }
 0x3cd   :  { %v2558_v25 = vpop.f32.mrf.mxu1 }
 0x3d0   :  { %3530 = vperm.xlu1 %9510, %v3168_v59   ;;  %v11812_v59 = vsub.f32 %v1197_v63, %v3376_v6  ;;  %v4500_v63 = vmul.f32 %v11820_v38, %v11820_v38 }
 0x3d2   :  { %18577 = vst [vmem:[#allocation82_spill] sm:$0xff] %v11812_v59  ;;  %v4873_v29 = vadd.f32 %v4872_v15, %v4500_v63  ;;  %v3171_v63 = vmul.f32 0.0051020407, %v11750_v19 }
 0x3d8   :  { %3535 = vperm.xlu0 %9511, %v3169_v40   ;;  %v4498_v40 = vmul.f32 %v11812_v59, %v11812_v59 }
 0x3da   :  { %v4869_v6 = vadd.f32 %v4868_v48, %v4498_v40  ;;  %v312_v48 = vld [vmem:[%s18063_s2 + $0x3e0] sm:$0xff]  ;;  %v315_v40 = vld [vmem:[%s18063_s2 + $0x3f8] sm:$0xff] }
 0x3db   :  { %2590 = vmatmul.mubr.f32.gmra.mxu1 %v312_v48  ;;  %1466 = vmatmul.mubr.f32.gmra.mxu0 %v312_v48 }
 0x3dc   :  { %9403 = vmatprep.mubr.msk.f32.mxu1 %vm524_vm1, %v315_v40  ;;  %9235 = vmatprep.mubr.msk.f32.mxu0 %vm524_vm1, %v315_v40 }
 0x3df   :  { %2595 = vmatmul.mubr.f32.gmra.mxu1 %v314_v3  ;;  %1472 = vmatmul.mubr.f32.gmra.mxu0 %v314_v3 }
 0x3f4   :  { %4870 = vadd.xlane.f32.xlu1 %v4869_v6  ;;  %v1209_v6 = vpop.f32.mrf.mxu0 }
 0x3f6   :  { %v1211_v49 = vpop.f32.mrf.mxu0 }
 0x3f7   :  { %4874 = vadd.xlane.f32.xlu0 %v4873_v29  ;;  %v3386_v29 = vpop.permute.xlu0 %3385 }
 0x3f8   :  { %v1215_v15 = vpop.f32.mrf.mxu0  ;;  %v11850_v25 = vsub.f32 %v1211_v49, %v3386_v29 }
 0x3f9   :  { %v11860_v19 = vsub.f32 %v1215_v15, %v3391_v37 }
 0x3fa   :  { %18580 = vst [vmem:[#allocation85_spill] sm:$0xff] %v11850_v25  ;;  %v1217_v48 = vpop.f32.mrf.mxu0  ;;  %v4503_v40 = vmul.f32 %v11850_v25, %v11850_v25 }
 0x3fb   :  { %v11854_v11 = vsub.f32 %v1217_v48, %v3391_v37  ;;  %18583 = vst [vmem:[#allocation88_spill] sm:$0xff] %v11860_v19  ;;  %v317_v37 = vld [vmem:[%s18063_s2 + $0x408] sm:$0xff] }
 0x3fc   :  { %v11856_v38 = vpop.f32.mrf.mxu1  ;;  %v4876_v36 = vsel %vm2102_vm0, %v4503_v40, 0.0  ;;  %9404 = vmatprep.mubr.msk.f32.mxu1 %vm524_vm1, %v317_v37  ;;  %9236 = vmatprep.mubr.msk.f32.mxu0 %vm524_vm1, %v317_v37  ;;  %v3172_v40 = vmul.f32 0.0051020407, %v11776_v0  ;;  %v3401_v37 = vpop.permute.xlu1 %3400 }
 0x3fd   :  { %18582 = vst [vmem:[#allocation87_spill] sm:$0xff] %v11854_v11  ;;  %v4505_v49 = vmul.f32 %v11854_v11, %v11854_v11 }
 0x3fe   :  { %v2563_v3 = vpop.f32.mrf.mxu1 }
 0x3ff   :  { %v4880_v48 = vsel %vm2102_vm0, %v4505_v49, 0.0  ;;  %v318_v49 = vld [vmem:[%s18063_s2 + $0x410] sm:$0xff] }
 0x400   :  { %v11870_v59 = vpop.f32.mrf.mxu1 }
 0x402   :  { %v2568_v15 = vpop.f32.mrf.mxu1 }
 0x405   :  { %3540 = vperm.xlu1 %9510, %v3170_v41   ;;  %v11852_v41 = vsub.f32 %v1209_v6, %v3386_v29  ;;  %v4504_v6 = vmul.f32 %v11860_v19, %v11860_v19 }
 0x407   :  { %18581 = vst [vmem:[#allocation86_spill] sm:$0xff] %v11852_v41  ;;  %v4881_v3 = vadd.f32 %v4880_v48, %v4504_v6  ;;  %v3173_v6 = vmul.f32 0.0051020407, %v11790_v51 }
 0x40d   :  { %3545 = vperm.xlu0 %9511, %v3171_v63   ;;  %v4502_v63 = vmul.f32 %v11852_v41, %v11852_v41 }
 0x40f   :  { %v4877_v29 = vadd.f32 %v4876_v36, %v4502_v63  ;;  %v316_v36 = vld [vmem:[%s18063_s2 + $0x400] sm:$0xff]  ;;  %v319_v63 = vld [vmem:[%s18063_s2 + $0x418] sm:$0xff] }
 0x410   :  { %2600 = vmatmul.mubr.f32.gmra.mxu1 %v316_v36  ;;  %1478 = vmatmul.mubr.f32.gmra.mxu0 %v316_v36 }
 0x411   :  { %9405 = vmatprep.mubr.msk.f32.mxu1 %vm524_vm1, %v319_v63  ;;  %9237 = vmatprep.mubr.msk.f32.mxu0 %vm524_vm1, %v319_v63 }
 0x414   :  { %2605 = vmatmul.mubr.f32.gmra.mxu1 %v318_v49  ;;  %1484 = vmatmul.mubr.f32.gmra.mxu0 %v318_v49 }
 0x429   :  { %4878 = vadd.xlane.f32.xlu1 %v4877_v29  ;;  %v1221_v29 = vpop.f32.mrf.mxu0 }
 0x42b   :  { %v1223_v0 = vpop.f32.mrf.mxu0 }
 0x42c   :  { %4882 = vadd.xlane.f32.xlu0 %v4881_v3  ;;  %v3396_v3 = vpop.permute.xlu0 %3395 }
 0x42d   :  { %v1227_v48 = vpop.f32.mrf.mxu0  ;;  %v11890_v15 = vsub.f32 %v1223_v0, %v3396_v3 }
 0x42e   :  { %v11900_v51 = vsub.f32 %v1227_v48, %v3401_v37 }
 0x42f   :  { %18584 = vst [vmem:[#allocation89_spill] sm:$0xff] %v11890_v15  ;;  %v1229_v36 = vpop.f32.mrf.mxu0  ;;  %v4507_v63 = vmul.f32 %v11890_v15, %v11890_v15 }
 0x430   :  { %v11894_v11 = vsub.f32 %v1229_v36, %v3401_v37  ;;  %18587 = vst [vmem:[#allocation92_spill] sm:$0xff] %v11900_v51  ;;  %v321_v37 = vld [vmem:[%s18063_s2 + $0x428] sm:$0xff] }
 0x431   :  { %v11896_v19 = vpop.f32.mrf.mxu1  ;;  %v4884_v25 = vsel %vm2102_vm0, %v4507_v63, 0.0  ;;  %9406 = vmatprep.mubr.msk.f32.mxu1 %vm524_vm1, %v321_v37  ;;  %9238 = vmatprep.mubr.msk.f32.mxu0 %vm524_vm1, %v321_v37  ;;  %v3174_v63 = vmul.f32 0.0051020407, %v11816_v24  ;;  %v3411_v37 = vpop.permute.xlu1 %3410 }
 0x432   :  { %18586 = vst [vmem:[#allocation91_spill] sm:$0xff] %v11894_v11  ;;  %v4509_v0 = vmul.f32 %v11894_v11, %v11894_v11 }
 0x433   :  { %v2573_v49 = vpop.f32.mrf.mxu1 }
 0x434   :  { %v4888_v36 = vsel %vm2102_vm0, %v4509_v0, 0.0  ;;  %v322_v0 = vld [vmem:[%s18063_s2 + $0x430] sm:$0xff] }
 0x435   :  { %v11910_v41 = vpop.f32.mrf.mxu1 }
 0x437   :  { %v2578_v48 = vpop.f32.mrf.mxu1 }
 0x43a   :  { %3550 = vperm.xlu1 %9510, %v3172_v40   ;;  %v11892_v40 = vsub.f32 %v1221_v29, %v3396_v3  ;;  %v4508_v29 = vmul.f32 %v11900_v51, %v11900_v51 }
 0x43c   :  { %18585 = vst [vmem:[#allocation90_spill] sm:$0xff] %v11892_v40  ;;  %v4889_v49 = vadd.f32 %v4888_v36, %v4508_v29  ;;  %v3175_v29 = vmul.f32 0.0051020407, %v11830_v16 }
 0x442   :  { %3555 = vperm.xlu0 %9511, %v3173_v6   ;;  %v4506_v6 = vmul.f32 %v11892_v40, %v11892_v40 }
 0x444   :  { %v4885_v3 = vadd.f32 %v4884_v25, %v4506_v6  ;;  %v320_v25 = vld [vmem:[%s18063_s2 + $0x420] sm:$0xff]  ;;  %v323_v6 = vld [vmem:[%s18063_s2 + $0x438] sm:$0xff] }
 0x445   :  { %2610 = vmatmul.mubr.f32.gmra.mxu1 %v320_v25  ;;  %1490 = vmatmul.mubr.f32.gmra.mxu0 %v320_v25 }
 0x446   :  { %9407 = vmatprep.mubr.msk.f32.mxu1 %vm524_vm1, %v323_v6  ;;  %9239 = vmatprep.mubr.msk.f32.mxu0 %vm524_vm1, %v323_v6 }
 0x449   :  { %2615 = vmatmul.mubr.f32.gmra.mxu1 %v322_v0  ;;  %1496 = vmatmul.mubr.f32.gmra.mxu0 %v322_v0 }
 0x45e   :  { %4886 = vadd.xlane.f32.xlu1 %v4885_v3  ;;  %v1233_v3 = vpop.f32.mrf.mxu0 }
 0x460   :  { %v1235_v24 = vpop.f32.mrf.mxu0 }
 0x461   :  { %4890 = vadd.xlane.f32.xlu0 %v4889_v49  ;;  %v3406_v49 = vpop.permute.xlu0 %3405 }
 0x462   :  { %v1239_v36 = vpop.f32.mrf.mxu0  ;;  %v11930_v48 = vsub.f32 %v1235_v24, %v3406_v49 }
 0x463   :  { %v11940_v16 = vsub.f32 %v1239_v36, %v3411_v37 }
 0x464   :  { %18588 = vst [vmem:[#allocation93_spill] sm:$0xff] %v11930_v48  ;;  %v1241_v25 = vpop.f32.mrf.mxu0  ;;  %v4511_v6 = vmul.f32 %v11930_v48, %v11930_v48 }
 0x465   :  { %v11934_v11 = vsub.f32 %v1241_v25, %v3411_v37  ;;  %18591 = vst [vmem:[#allocation96_spill] sm:$0xff] %v11940_v16  ;;  %v325_v37 = vld [vmem:[%s18063_s2 + $0x448] sm:$0xff] }
 0x466   :  { %v11936_v51 = vpop.f32.mrf.mxu1  ;;  %v4892_v15 = vsel %vm2102_vm0, %v4511_v6, 0.0  ;;  %9408 = vmatprep.mubr.msk.f32.mxu1 %vm524_vm1, %v325_v37  ;;  %9240 = vmatprep.mubr.msk.f32.mxu0 %vm524_vm1, %v325_v37  ;;  %v3176_v6 = vmul.f32 0.0051020407, %v11856_v38  ;;  %v3421_v37 = vpop.permute.xlu1 %3420 }
 0x467   :  { %18590 = vst [vmem:[#allocation95_spill] sm:$0xff] %v11934_v11  ;;  %v4513_v24 = vmul.f32 %v11934_v11, %v11934_v11 }
 0x468   :  { %v2583_v0 = vpop.f32.mrf.mxu1 }
 0x469   :  { %v4896_v25 = vsel %vm2102_vm0, %v4513_v24, 0.0  ;;  %v326_v24 = vld [vmem:[%s18063_s2 + $0x450] sm:$0xff] }
 0x46a   :  { %v11950_v40 = vpop.f32.mrf.mxu1 }
 0x46c   :  { %v2588_v36 = vpop.f32.mrf.mxu1 }
 0x46f   :  { %3560 = vperm.xlu1 %9510, %v3174_v63   ;;  %v11932_v63 = vsub.f32 %v1233_v3, %v3406_v49  ;;  %v4512_v3 = vmul.f32 %v11940_v16, %v11940_v16 }
 0x471   :  { %18589 = vst [vmem:[#allocation94_spill] sm:$0xff] %v11932_v63  ;;  %v4897_v0 = vadd.f32 %v4896_v25, %v4512_v3  ;;  %v3177_v3 = vmul.f32 0.0051020407, %v11870_v59 }
 0x477   :  { %3565 = vperm.xlu0 %9511, %v3175_v29   ;;  %v4510_v29 = vmul.f32 %v11932_v63, %v11932_v63 }
 0x479   :  { %v4893_v49 = vadd.f32 %v4892_v15, %v4510_v29  ;;  %v324_v15 = vld [vmem:[%s18063_s2 + $0x440] sm:$0xff]  ;;  %v327_v29 = vld [vmem:[%s18063_s2 + $0x458] sm:$0xff] }
 0x47a   :  { %2620 = vmatmul.mubr.f32.gmra.mxu1 %v324_v15  ;;  %1502 = vmatmul.mubr.f32.gmra.mxu0 %v324_v15 }
 0x47b   :  { %9409 = vmatprep.mubr.msk.f32.mxu1 %vm524_vm1, %v327_v29  ;;  %9241 = vmatprep.mubr.msk.f32.mxu0 %vm524_vm1, %v327_v29 }
 0x47e   :  { %2625 = vmatmul.mubr.f32.gmra.mxu1 %v326_v24  ;;  %1508 = vmatmul.mubr.f32.gmra.mxu0 %v326_v24 }
 0x493   :  { %4894 = vadd.xlane.f32.xlu1 %v4893_v49  ;;  %v1245_v49 = vpop.f32.mrf.mxu0 }
 0x495   :  { %v1247_v38 = vpop.f32.mrf.mxu0 }
 0x496   :  { %4898 = vadd.xlane.f32.xlu0 %v4897_v0  ;;  %v3416_v0 = vpop.permute.xlu0 %3415 }
 0x497   :  { %v1251_v25 = vpop.f32.mrf.mxu0  ;;  %v11970_v36 = vsub.f32 %v1247_v38, %v3416_v0 }
 0x498   :  { %v11980_v59 = vsub.f32 %v1251_v25, %v3421_v37 }
 0x499   :  { %18592 = vst [vmem:[#allocation97_spill] sm:$0xff] %v11970_v36  ;;  %v1253_v15 = vpop.f32.mrf.mxu0  ;;  %v4515_v29 = vmul.f32 %v11970_v36, %v11970_v36 }
 0x49a   :  { %v11974_v11 = vsub.f32 %v1253_v15, %v3421_v37  ;;  %18595 = vst [vmem:[#allocation100_spill] sm:$0xff] %v11980_v59  ;;  %v329_v37 = vld [vmem:[%s18063_s2 + $0x468] sm:$0xff] }
 0x49b   :  { %v11976_v16 = vpop.f32.mrf.mxu1  ;;  %v4900_v48 = vsel %vm2102_vm0, %v4515_v29, 0.0  ;;  %9410 = vmatprep.mubr.msk.f32.mxu1 %vm524_vm1, %v329_v37  ;;  %9242 = vmatprep.mubr.msk.f32.mxu0 %vm524_vm1, %v329_v37  ;;  %v3178_v29 = vmul.f32 0.0051020407, %v11896_v19  ;;  %v3431_v37 = vpop.permute.xlu1 %3430 }
 0x49c   :  { %18594 = vst [vmem:[#allocation99_spill] sm:$0xff] %v11974_v11  ;;  %v4517_v38 = vmul.f32 %v11974_v11, %v11974_v11 }
 0x49d   :  { %v2593_v24 = vpop.f32.mrf.mxu1 }
 0x49e   :  { %v4904_v15 = vsel %vm2102_vm0, %v4517_v38, 0.0  ;;  %v330_v38 = vld [vmem:[%s18063_s2 + $0x470] sm:$0xff] }
 0x49f   :  { %v11990_v63 = vpop.f32.mrf.mxu1 }
 0x4a1   :  { %v2598_v25 = vpop.f32.mrf.mxu1 }
 0x4a4   :  { %3570 = vperm.xlu1 %9510, %v3176_v6   ;;  %v11972_v6 = vsub.f32 %v1245_v49, %v3416_v0  ;;  %v4516_v49 = vmul.f32 %v11980_v59, %v11980_v59 }
 0x4a6   :  { %18593 = vst [vmem:[#allocation98_spill] sm:$0xff] %v11972_v6  ;;  %v4905_v24 = vadd.f32 %v4904_v15, %v4516_v49  ;;  %v3179_v49 = vmul.f32 0.0051020407, %v11910_v41 }
 0x4ac   :  { %3575 = vperm.xlu0 %9511, %v3177_v3   ;;  %v4514_v3 = vmul.f32 %v11972_v6, %v11972_v6 }
 0x4ae   :  { %v4901_v0 = vadd.f32 %v4900_v48, %v4514_v3  ;;  %v328_v48 = vld [vmem:[%s18063_s2 + $0x460] sm:$0xff]  ;;  %v331_v3 = vld [vmem:[%s18063_s2 + $0x478] sm:$0xff] }
 0x4af   :  { %2630 = vmatmul.mubr.f32.gmra.mxu1 %v328_v48  ;;  %1514 = vmatmul.mubr.f32.gmra.mxu0 %v328_v48 }
 0x4b0   :  { %9411 = vmatprep.mubr.msk.f32.mxu1 %vm524_vm1, %v331_v3  ;;  %9243 = vmatprep.mubr.msk.f32.mxu0 %vm524_vm1, %v331_v3 }
 0x4b3   :  { %2635 = vmatmul.mubr.f32.gmra.mxu1 %v330_v38  ;;  %1520 = vmatmul.mubr.f32.gmra.mxu0 %v330_v38 }
 0x4c8   :  { %4902 = vadd.xlane.f32.xlu1 %v4901_v0  ;;  %v1257_v0 = vpop.f32.mrf.mxu0 }
 0x4ca   :  { %v1259_v19 = vpop.f32.mrf.mxu0 }
 0x4cb   :  { %4906 = vadd.xlane.f32.xlu0 %v4905_v24  ;;  %v3426_v24 = vpop.permute.xlu0 %3425 }
 0x4cc   :  { %v1263_v15 = vpop.f32.mrf.mxu0  ;;  %v12010_v25 = vsub.f32 %v1259_v19, %v3426_v24 }
 0x4cd   :  { %v12020_v41 = vsub.f32 %v1263_v15, %v3431_v37 }
 0x4ce   :  { %18596 = vst [vmem:[#allocation101_spill] sm:$0xff] %v12010_v25  ;;  %v1265_v48 = vpop.f32.mrf.mxu0  ;;  %v4519_v3 = vmul.f32 %v12010_v25, %v12010_v25 }
 0x4cf   :  { %v12014_v11 = vsub.f32 %v1265_v48, %v3431_v37  ;;  %18599 = vst [vmem:[#allocation104_spill] sm:$0xff] %v12020_v41  ;;  %v333_v37 = vld [vmem:[%s18063_s2 + $0x488] sm:$0xff] }
 0x4d0   :  { %v12016_v59 = vpop.f32.mrf.mxu1  ;;  %v4908_v36 = vsel %vm2102_vm0, %v4519_v3, 0.0  ;;  %9412 = vmatprep.mubr.msk.f32.mxu1 %vm524_vm1, %v333_v37  ;;  %9244 = vmatprep.mubr.msk.f32.mxu0 %vm524_vm1, %v333_v37  ;;  %v3180_v3 = vmul.f32 0.0051020407, %v11936_v51 }
 0x4d1   :  { %18598 = vst [vmem:[#allocation103_spill] sm:$0xff] %v12014_v11  ;;  %v4521_v19 = vmul.f32 %v12014_v11, %v12014_v11 }
 0x4d2   :  { %v2603_v38 = vpop.f32.mrf.mxu1 }
 0x4d3   :  { %v4912_v48 = vsel %vm2102_vm0, %v4521_v19, 0.0  ;;  %v335_v19 = vld [vmem:[%s18063_s2 + $0x498] sm:$0xff] }
 0x4d4   :  { %v12030_v6 = vpop.f32.mrf.mxu1 }
 0x4d6   :  { %v2608_v15 = vpop.f32.mrf.mxu1 }
 0x4d7   :  { %v3441_v15 = vpop.permute.xlu1 %3440 }
 0x4d9   :  { %3580 = vperm.xlu1 %9510, %v3178_v29   ;;  %v12012_v29 = vsub.f32 %v1257_v0, %v3426_v24  ;;  %v4520_v0 = vmul.f32 %v12020_v41, %v12020_v41 }
 0x4db   :  { %18597 = vst [vmem:[#allocation102_spill] sm:$0xff] %v12012_v29  ;;  %v4913_v38 = vadd.f32 %v4912_v48, %v4520_v0  ;;  %v334_v0 = vld [vmem:[%s18063_s2 + $0x490] sm:$0xff] }
 0x4e1   :  { %3585 = vperm.xlu0 %9511, %v3179_v49   ;;  %v4518_v49 = vmul.f32 %v12012_v29, %v12012_v29 }
 0x4e3   :  { %v4909_v24 = vadd.f32 %v4908_v36, %v4518_v49  ;;  %v332_v36 = vld [vmem:[%s18063_s2 + $0x480] sm:$0xff]  ;;  %v3181_v49 = vmul.f32 0.0051020407, %v11950_v40 }
 0x4e4   :  { %2640 = vmatmul.mubr.f32.gmra.mxu1 %v332_v36  ;;  %1526 = vmatmul.mubr.f32.gmra.mxu0 %v332_v36 }
 0x4e5   :  { %9413 = vmatprep.mubr.msk.f32.mxu1 %vm524_vm1, %v335_v19  ;;  %9245 = vmatprep.mubr.msk.f32.mxu0 %vm524_vm1, %v335_v19 }
 0x4e8   :  { %2645 = vmatmul.mubr.f32.gmra.mxu1 %v334_v0  ;;  %1532 = vmatmul.mubr.f32.gmra.mxu0 %v334_v0 }
 0x4fd   :  { %4910 = vadd.xlane.f32.xlu1 %v4909_v24  ;;  %v1269_v24 = vpop.f32.mrf.mxu0 }
 0x4ff   :  { %v1271_v51 = vpop.f32.mrf.mxu0 }
 0x500   :  { %4914 = vadd.xlane.f32.xlu0 %v4913_v38  ;;  %v3436_v38 = vpop.permute.xlu0 %3435 }
 0x501   :  { %v1275_v48 = vpop.f32.mrf.mxu0  ;;  %v12050_v40 = vsub.f32 %v1271_v51, %v3436_v38  ;;  %v12052_v36 = vsub.f32 %v1269_v24, %v3436_v38 }
 0x502   :  { %v12060_v0 = vsub.f32 %v1275_v48, %v3441_v15 }
 0x503   :  { %18600 = vst [vmem:[#allocation105_spill] sm:$0xff] %v12050_v40  ;;  %v1277_v37 = vpop.f32.mrf.mxu0  ;;  %18601 = vst [vmem:[#allocation106_spill] sm:$0xff] %v12052_v36  ;;  %v4523_v19 = vmul.f32 %v12050_v40, %v12050_v40 }
 0x504   :  { %18603 = vst [vmem:[#allocation108_spill] sm:$0xff] %v12060_v0  ;;  %v4524_v24 = vmul.f32 %v12060_v0, %v12060_v0 }
 0x505   :  { %v12056_v11 = vpop.f32.mrf.mxu1  ;;  %v4916_v25 = vsel %vm2102_vm0, %v4523_v19, 0.0  ;;  %v3183_v19 = vmul.f32 0.0051020407, %v11990_v63 }
 0x507   :  { %v2613_v41 = vpop.f32.mrf.mxu1 }
 0x509   :  { %v12070_v29 = vpop.f32.mrf.mxu1 }
 0x50b   :  { %v2618_v48 = vpop.f32.mrf.mxu1 }
 0x50e   :  { %3590 = vperm.xlu1 %9510, %v3180_v3   ;;  %v12054_v3 = vsub.f32 %v1277_v37, %v3441_v15  ;;  %v337_v15 = vld [vmem:[%s18063_s2 + $0x4a8] sm:$0xff] }
 0x50f   :  { %9414 = vmatprep.mubr.msk.f32.mxu1 %vm524_vm1, %v337_v15  ;;  %9246 = vmatprep.mubr.msk.f32.mxu0 %vm524_vm1, %v337_v15 }
 0x510   :  { %18602 = vst [vmem:[#allocation107_spill] sm:$0xff] %v12054_v3  ;;  %v4525_v51 = vmul.f32 %v12054_v3, %v12054_v3  ;;  %v3182_v3 = vmul.f32 0.0051020407, %v11976_v16  ;;  %v338_v16 = vld [vmem:[%s18063_s2 + $0x4b0] sm:$0xff] }
 0x512   :  { %v4920_v37 = vsel %vm2102_vm0, %v4525_v51, 0.0  ;;  %v1281_v51 = vpop.f32.mrf.mxu0 }
 0x513   :  { %v4921_v41 = vadd.f32 %v4920_v37, %v4524_v24  ;;  %v3451_v37 = vpop.permute.xlu1 %3450 }
 0x514   :  { %v1283_v24 = vpop.f32.mrf.mxu0 }
 0x516   :  { %3595 = vperm.xlu0 %9511, %v3181_v49   ;;  %v4522_v49 = vmul.f32 %v12052_v36, %v12052_v36 }
 0x518   :  { %v4917_v38 = vadd.f32 %v4916_v25, %v4522_v49  ;;  %v336_v25 = vld [vmem:[%s18063_s2 + $0x4a0] sm:$0xff]  ;;  %v339_v49 = vld [vmem:[%s18063_s2 + $0x4b8] sm:$0xff] }
 0x519   :  { %2650 = vmatmul.mubr.f32.gmra.mxu1 %v336_v25  ;;  %1538 = vmatmul.mubr.f32.gmra.mxu0 %v336_v25 }
 0x51a   :  { %9415 = vmatprep.mubr.msk.f32.mxu1 %vm524_vm1, %v339_v49  ;;  %9247 = vmatprep.mubr.msk.f32.mxu0 %vm524_vm1, %v339_v49 }
 0x51d   :  { %2655 = vmatmul.mubr.f32.gmra.mxu1 %v338_v16  ;;  %1544 = vmatmul.mubr.f32.gmra.mxu0 %v338_v16 }
 0x532   :  { %4918 = vadd.xlane.f32.xlu1 %v4917_v38  ;;  %v3446_v38 = vpop.permute.xlu0 %3445 }
 0x533   :  { %v12090_v63 = vsub.f32 %v1283_v24, %v3446_v38  ;;  %v12092_v48 = vsub.f32 %v1281_v51, %v3446_v38 }
 0x535   :  { %4922 = vadd.xlane.f32.xlu0 %v4921_v41  ;;  %18604 = vst [vmem:[#allocation109_spill] sm:$0xff] %v12090_v63  ;;  %18605 = vst [vmem:[#allocation110_spill] sm:$0xff] %v12092_v48  ;;  %v4527_v49 = vmul.f32 %v12090_v63, %v12090_v63 }
 0x537   :  { %v4924_v40 = vsel %vm2102_vm0, %v4527_v49, 0.0  ;;  %v3185_v49 = vmul.f32 0.0051020407, %v12030_v6 }
 0x53a   :  { %v12096_v25 = vpop.f32.mrf.mxu1 }
 0x53c   :  { %v2623_v0 = vpop.f32.mrf.mxu1 }
 0x53e   :  { %v12110_v36 = vpop.f32.mrf.mxu1 }
 0x543   :  { %3600 = vperm.xlu1 %9510, %v3182_v3   ;;  %v1287_v3 = vpop.f32.mrf.mxu0 }
 0x544   :  { %v12100_v16 = vsub.f32 %v1287_v3, %v3451_v37  ;;  %v2628_v3 = vpop.f32.mrf.mxu1 }
 0x545   :  { %v1289_v41 = vpop.f32.mrf.mxu0 }
 0x546   :  { %v12094_v15 = vsub.f32 %v1289_v41, %v3451_v37  ;;  %18607 = vst [vmem:[#allocation112_spill] sm:$0xff] %v12100_v16  ;;  %v4528_v51 = vmul.f32 %v12100_v16, %v12100_v16  ;;  %v3184_v37 = vmul.f32 0.0051020407, %v12016_v59  ;;  %v343_v59 = vld [vmem:[%s18063_s2 + $0x4d8] sm:$0xff] }
 0x548   :  { %18606 = vst [vmem:[#allocation111_spill] sm:$0xff] %v12094_v15  ;;  %v4529_v24 = vmul.f32 %v12094_v15, %v12094_v15  ;;  %v341_v15 = vld [vmem:[%s18063_s2 + $0x4c8] sm:$0xff] }
 0x549   :  { %9416 = vmatprep.mubr.msk.f32.mxu1 %vm524_vm1, %v341_v15  ;;  %9248 = vmatprep.mubr.msk.f32.mxu0 %vm524_vm1, %v341_v15 }
 0x54a   :  { %v4928_v41 = vsel %vm2102_vm0, %v4529_v24, 0.0  ;;  %v1293_v24 = vpop.f32.mrf.mxu0 }
 0x54b   :  { %3605 = vperm.xlu0 %9511, %v3183_v19   ;;  %v4526_v19 = vmul.f32 %v12092_v48, %v12092_v48  ;;  %v4929_v0 = vadd.f32 %v4928_v41, %v4528_v51  ;;  %v12130_v51 = vpop.xlane.xlu1 %4802 }
 0x54c   :  { %v1295_v15 = vpop.f32.mrf.mxu0 }
 0x54d   :  { %v4925_v38 = vadd.f32 %v4924_v40, %v4526_v19  ;;  %v340_v40 = vld [vmem:[%s18063_s2 + $0x4c0] sm:$0xff]  ;;  %v342_v19 = vld [vmem:[%s18063_s2 + $0x4d0] sm:$0xff] }
 0x54e   :  { %2660 = vmatmul.mubr.f32.gmra.mxu1 %v340_v40  ;;  %1550 = vmatmul.mubr.f32.gmra.mxu0 %v340_v40  ;;  %v1299_v6 = vpop.f32.mrf.mxu0 }
 0x54f   :  { %9417 = vmatprep.mubr.msk.f32.mxu1 %vm524_vm1, %v343_v59  ;;  %9249 = vmatprep.mubr.msk.f32.mxu0 %vm524_vm1, %v343_v59 }
 0x550   :  { %v1301_v3 = vpop.f32.mrf.mxu0 }
 0x552   :  { %2665 = vmatmul.mubr.f32.gmra.mxu1 %v342_v19  ;;  %1556 = vmatmul.mubr.f32.gmra.mxu0 %v342_v19 }
 0x567   :  { %4926 = vadd.xlane.f32.xlu1 %v4925_v38  ;;  %v3456_v38 = vpop.permute.xlu0 %3455 }
 0x568   :  { %v12132_v41 = vsub.f32 %v1295_v15, %v3456_v38 }
 0x56a   :  { %4930 = vadd.xlane.f32.xlu0 %v4929_v0  ;;  %18608 = vst [vmem:[#allocation113_spill] sm:$0xff] %v12132_v41  ;;  %v3461_v0 = vpop.permute.xlu1 %3460 }
 0x56b   :  { %v12136_v40 = vsub.f32 %v1301_v3, %v3461_v0  ;;  %v12142_v19 = vsub.f32 %v1299_v6, %v3461_v0  ;;  %v3186_v0 = vmul.f32 0.0051020407, %v12056_v11  ;;  %v347_v11 = vld [vmem:[%s18063_s2 + $0x4f8] sm:$0xff] }
 0x56d   :  { %18610 = vst [vmem:[#allocation115_spill] sm:$0xff] %v12136_v40  ;;  %18611 = vst [vmem:[#allocation116_spill] sm:$0xff] %v12142_v19  ;;  %v4533_v15 = vmul.f32 %v12136_v40, %v12136_v40  ;;  %v345_v40 = vld [vmem:[%s18063_s2 + $0x4e8] sm:$0xff] }
 0x56e   :  { %9418 = vmatprep.mubr.msk.f32.mxu1 %vm524_vm1, %v345_v40  ;;  %9250 = vmatprep.mubr.msk.f32.mxu0 %vm524_vm1, %v345_v40 }
 0x56f   :  { %v12138_v16 = vpop.f32.mrf.mxu1  ;;  %v4936_v3 = vsel %vm2102_vm0, %v4533_v15, 0.0  ;;  %v346_v15 = vld [vmem:[%s18063_s2 + $0x4f0] sm:$0xff] }
 0x570   :  { %v3190_v32 = vmul.f32 0.0051020407, %v12138_v16  ;;  %v353_v16 = vld [vmem:[%s18063_s2 + $0x528] sm:$0xff] }
 0x571   :  { %v2633_v59 = vpop.f32.mrf.mxu1 }
 0x573   :  { %v12152_v9 = vpop.f32.mrf.mxu1 }
 0x575   :  { %v2638_v6 = vpop.f32.mrf.mxu1 }
 0x578   :  { %3610 = vperm.xlu1 %9510, %v3184_v37   ;;  %v12134_v37 = vsub.f32 %v1293_v24, %v3456_v38  ;;  %v4532_v24 = vmul.f32 %v12142_v19, %v12142_v19 }
 0x57a   :  { %18609 = vst [vmem:[#allocation114_spill] sm:$0xff] %v12134_v37  ;;  %v4530_v63 = vmul.f32 %v12134_v37, %v12134_v37  ;;  %v4937_v59 = vadd.f32 %v4936_v3, %v4532_v24 }
 0x580   :  { %3615 = vperm.xlu0 %9511, %v3185_v49   ;;  %v4531_v49 = vmul.f32 %v12132_v41, %v12132_v41 }
 0x582   :  { %v4932_v48 = vsel %vm2102_vm0, %v4531_v49, 0.0  ;;  %v3187_v49 = vmul.f32 0.0051020407, %v12070_v29  ;;  %v12169_v29 = vpop.xlane.xlu0 %4806 }
 0x583   :  { %v4933_v38 = vadd.f32 %v4932_v48, %v4530_v63  ;;  %v344_v63 = vld [vmem:[%s18063_s2 + $0x4e0] sm:$0xff]  ;;  %v1305_v48 = vpop.f32.mrf.mxu0  ;;  %v5473_v43 = vmul.f32 0.0051020407, %v12169_v29 }
 0x584   :  { %2670 = vmatmul.mubr.f32.gmra.mxu1 %v344_v63  ;;  %1562 = vmatmul.mubr.f32.gmra.mxu0 %v344_v63 }
 0x585   :  { %9419 = vmatprep.mubr.msk.f32.mxu1 %vm524_vm1, %v347_v11  ;;  %9251 = vmatprep.mubr.msk.f32.mxu0 %vm524_vm1, %v347_v11  ;;  %v1307_v24 = vpop.f32.mrf.mxu0  ;;  %v5809_v53 = vadd.f32 0.001, %v5473_v43 }
 0x586   :  { %v12174_v40 = vpop.xlane.xlu0 %4810 }
 0x587   :  { %v1311_v3 = vpop.f32.mrf.mxu0 }
 0x588   :  { %2675 = vmatmul.mubr.f32.gmra.mxu1 %v346_v15  ;;  %1568 = vmatmul.mubr.f32.gmra.mxu0 %v346_v15 }
 0x59c   :  { %4934 = vadd.xlane.f32.xlu1 %v4933_v38  ;;  %v12176_v38 = vpop.xlane.xlu1 %4814 }
 0x59f   :  { %4938 = vadd.xlane.f32.xlu0 %v4937_v59  ;;  %v3466_v59 = vpop.permute.xlu0 %3465 }
 0x5a0   :  { %v12178_v6 = vsub.f32 %v1307_v24, %v3466_v59  ;;  %v12180_v63 = vsub.f32 %v1305_v48, %v3466_v59 }
 0x5a2   :  { %18612 = vst [vmem:[#allocation117_spill] sm:$0xff] %v12178_v6  ;;  %18613 = vst [vmem:[#allocation118_spill] sm:$0xff] %v12180_v63  ;;  %v4535_v15 = vmul.f32 %v12178_v6, %v12178_v6  ;;  %v4534_v26 = vmul.f32 %v12180_v63, %v12180_v63  ;;  %v3189_v6 = vmul.f32 0.0051020407, %v12110_v36 }
 0x5a3   :  { %v12215_v36 = vpop.xlane.xlu0 %4818 }
 0x5a4   :  { %v12184_v19 = vpop.f32.mrf.mxu1  ;;  %v4940_v61 = vsel %vm2102_vm0, %v4535_v15, 0.0  ;;  %v349_v15 = vld [vmem:[%s18063_s2 + $0x508] sm:$0xff] }
 0x5a5   :  { %v4941_v59 = vadd.f32 %v4940_v61, %v4534_v26  ;;  %v348_v61 = vld [vmem:[%s18063_s2 + $0x500] sm:$0xff]  ;;  %9420 = vmatprep.mubr.msk.f32.mxu1 %vm524_vm1, %v349_v15  ;;  %9252 = vmatprep.mubr.msk.f32.mxu0 %vm524_vm1, %v349_v15 }
 0x5a6   :  { %v2643_v41 = vpop.f32.mrf.mxu1  ;;  %2680 = vmatmul.mubr.f32.gmra.mxu1 %v348_v61  ;;  %1574 = vmatmul.mubr.f32.gmra.mxu0 %v348_v61 }
 0x5a8   :  { %v12198_v41 = vpop.f32.mrf.mxu1 }
 0x5ad   :  { %3620 = vperm.xlu1 %9510, %v3186_v0   ;;  %v3471_v0 = vpop.permute.xlu1 %3470 }
 0x5ae   :  { %v12188_v37 = vsub.f32 %v1311_v3, %v3471_v0  ;;  %v2648_v3 = vpop.f32.mrf.mxu1 }
 0x5b0   :  { %18615 = vst [vmem:[#allocation120_spill] sm:$0xff] %v12188_v37  ;;  %v4536_v48 = vmul.f32 %v12188_v37, %v12188_v37 }
 0x5b5   :  { %3625 = vperm.xlu0 %9511, %v3187_v49   ;;  %v1313_v49 = vpop.f32.mrf.mxu0 }
 0x5b6   :  { %v12182_v11 = vsub.f32 %v1313_v49, %v3471_v0  ;;  %v3188_v0 = vmul.f32 0.0051020407, %v12096_v25 }
 0x5b7   :  { %v1317_v26 = vpop.f32.mrf.mxu0 }
 0x5b8   :  { %18614 = vst [vmem:[#allocation119_spill] sm:$0xff] %v12182_v11  ;;  %v4537_v24 = vmul.f32 %v12182_v11, %v12182_v11 }
 0x5b9   :  { %v1319_v25 = vpop.f32.mrf.mxu0 }
 0x5ba   :  { %v4944_v49 = vsel %vm2102_vm0, %v4537_v24, 0.0  ;;  %v12217_v24 = vpop.xlane.xlu1 %4822 }
 0x5bb   :  { %v4945_v18 = vadd.f32 %v4944_v49, %v4536_v48  ;;  %v350_v48 = vld [vmem:[%s18063_s2 + $0x510] sm:$0xff] }
 0x5be   :  { %v3481_v3 = vpop.permute.xlu1 %3480 }
 0x5d1   :  { %4942 = vadd.xlane.f32.xlu1 %v4941_v59  ;;  %v1323_v59 = vpop.f32.mrf.mxu0 }
 0x5d2   :  { %v12230_v11 = vsub.f32 %v1323_v59, %v3481_v3 }
 0x5d4   :  { %4946 = vadd.xlane.f32.xlu0 %v4945_v18  ;;  %v351_v18 = vld [vmem:[%s18063_s2 + $0x518] sm:$0xff]  ;;  %18619 = vst [vmem:[#allocation124_spill] sm:$0xff] %v12230_v11 }
 0x5d5   :  { %9421 = vmatprep.mubr.msk.f32.mxu1 %vm524_vm1, %v351_v18  ;;  %9253 = vmatprep.mubr.msk.f32.mxu0 %vm524_vm1, %v351_v18 }
 0x5d6   :  { %2685 = vmatmul.mubr.f32.gmra.mxu1 %v350_v48  ;;  %1580 = vmatmul.mubr.f32.gmra.mxu0 %v350_v48 }
 0x5d7   :  { %9422 = vmatprep.mubr.msk.f32.mxu1 %vm524_vm1, %v353_v16  ;;  %9254 = vmatprep.mubr.msk.f32.mxu0 %vm524_vm1, %v353_v16 }
 0x5d9   :  { %v12236_v63 = vpop.f32.mrf.mxu1 }
 0x5db   :  { %v2653_v33 = vpop.f32.mrf.mxu1 }
 0x5e2   :  { %3630 = vperm.xlu1 %9510, %v3188_v0   ;;  %v1325_v0 = vpop.f32.mrf.mxu0 }
 0x5e3   :  { %v12226_v61 = vsub.f32 %v1325_v0, %v3481_v3  ;;  %v5472_v3 = vmul.f32 0.0051020407, %v12130_v51  ;;  %v5640_v51 = vld [vmem:[%s18064_s3] sm:$0xff] }
 0x5e5   :  { %18618 = vst [vmem:[#allocation123_spill] sm:$0xff] %v12226_v61  ;;  %v4541_v48 = vmul.f32 %v12226_v61, %v12226_v61  ;;  %v5808_v61 = vadd.f32 0.001, %v5472_v3 }
 0x5e7   :  { %v4952_v0 = vsel %vm2102_vm0, %v4541_v48, 0.0  ;;  %9512 = vrsqrt.f32 %v5808_v61  ;;  %v12259_v61 = vpop.xlane.xlu1 %4830 }
 0x5e8   :  { %9514 = vrsqrt.f32 %v5809_v53 }
 0x5ea   :  { %3635 = vperm.xlu0 %9511, %v3189_v6   ;;  %v3476_v6 = vpop.permute.xlu0 %3475 }
 0x5eb   :  { %v12222_v49 = vsub.f32 %v1319_v25, %v3476_v6  ;;  %v12224_v15 = vsub.f32 %v1317_v26, %v3476_v6  ;;  %v4540_v26 = vmul.f32 %v12230_v11, %v12230_v11 }
 0x5ed   :  { %18616 = vst [vmem:[#allocation121_spill] sm:$0xff] %v12222_v49  ;;  %18617 = vst [vmem:[#allocation122_spill] sm:$0xff] %v12224_v15  ;;  %v4539_v18 = vmul.f32 %v12222_v49, %v12222_v49  ;;  %v4538_v37 = vmul.f32 %v12224_v15, %v12224_v15  ;;  %v4953_v59 = vadd.f32 %v4952_v0, %v4540_v26  ;;  %v12243_v49 = vpop.f32.mrf.mxu1  ;;  %v1329_v0 = vpop.f32.mrf.mxu0 }
 0x5ef   :  { %v4948_v25 = vsel %vm2102_vm0, %v4539_v18, 0.0  ;;  %v2658_v15 = vpop.f32.mrf.mxu1  ;;  %v12246_v18 = vpop.xlane.xlu0 %4826 }
 0x5f0   :  { %v4949_v6 = vadd.f32 %v4948_v25, %v4538_v37  ;;  %v3191_v37 = vmul.f32 0.0051020407, %v12152_v9  ;;  %v355_v9 = vld [vmem:[%s18063_s2 + $0x538] sm:$0xff] }
 0x5f3   :  { %v3486_v33 = vpop.permute.xlu0 %3485 }
 0x5f4   :  { %v9513_v25 = vpop.eup %9512 }
 0x5f5   :  { %v6144_v26 = vmul.f32 %v9513_v25, %v5640_v51  ;;  %v354_v51 = vld [vmem:[%s18063_s2 + $0x530] sm:$0xff]  ;;  %v9515_v53 = vpop.eup %9514 }
 0x5f7   :  { %v12249_v48 = vpop.xlane.xlu0 %4834 }
 0x5fb   :  { %v12254_v15 = vpop.permute.xlu0 %3495 }
 0x606   :  { %4950 = vadd.xlane.f32.xlu1 %v4949_v6  ;;  %v12270_v6 = vpop.xlane.xlu0 %4842 }
 0x609   :  { %4954 = vadd.xlane.f32.xlu0 %v4953_v59  ;;  %v3491_v59 = vpop.permute.xlu1 %3490 }
 0x60a   :  { %v12273_v3 = vpop.permute.xlu0 %3505 }
 0x60d   :  { %v12275_v25 = vpop.xlane.xlu1 %4838 }
 0x60e   :  { %v12282_v11 = vpop.xlane.xlu0 %4850  ;;  %v12306_v57 = vpop.f32.mrf.mxu1 }
 0x60f   :  { %18621 = vst [vmem:[#allocation126_spill] sm:$0xff] %v12282_v11 }
 0x611   :  { %v12290_v46 = vpop.permute.xlu1 %3500 }
 0x612   :  { %v12288_v14 = vpop.permute.xlu0 %3515 }
 0x616   :  { %v12297_v60 = vpop.xlane.xlu0 %4858 }
 0x617   :  { %3640 = vperm.xlu1 %9510, %v3190_v32   ;;  %v352_v32 = vld [vmem:[%s18063_s2 + $0x520] sm:$0xff]  ;;  %18624 = vst [vmem:[#allocation129_spill] sm:$0xff] %v12297_v60 }
 0x618   :  { %2690 = vmatmul.mubr.f32.gmra.mxu1 %v352_v32  ;;  %1586 = vmatmul.mubr.f32.gmra.mxu0 %v352_v32  ;;  %v12284_v32 = vsub.f32 %v1329_v0, %v3486_v33  ;;  %v12300_v0 = vpop.xlane.xlu1 %4846 }
 0x619   :  { %9423 = vmatprep.mubr.msk.f32.mxu1 %vm524_vm1, %v355_v9  ;;  %9255 = vmatprep.mubr.msk.f32.mxu0 %vm524_vm1, %v355_v9 }
 0x61a   :  { %18622 = vst [vmem:[#allocation127_spill] sm:$0xff] %v12284_v32  ;;  %v4542_v21 = vmul.f32 %v12284_v32, %v12284_v32  ;;  %v12308_v32 = vpop.permute.xlu0 %3525 }
 0x61c   :  { %2695 = vmatmul.mubr.f32.gmra.mxu1 %v354_v51  ;;  %1592 = vmatmul.mubr.f32.gmra.mxu0 %v354_v51  ;;  %v12312_v60 = vpop.permute.xlu1 %3510 }
 0x61f   :  { %3645 = vperm.xlu0 %9511, %v3191_v37   ;;  %v1331_v37 = vpop.f32.mrf.mxu0 }
 0x621   :  { %v1335_v16 = vpop.f32.mrf.mxu0 }
 0x622   :  { %v12302_v51 = vsub.f32 %v1335_v16, %v3491_v59 }
 0x623   :  { %6314 = vperm.xlu0 %9511, %v6144_v26   ;;  %v12280_v26 = vsub.f32 %v1331_v37, %v3486_v33  ;;  %v1337_v39 = vpop.f32.mrf.mxu0 }
 0x624   :  { %v12294_v37 = vsub.f32 %v1337_v39, %v3491_v59  ;;  %18625 = vst [vmem:[#allocation130_spill] sm:$0xff] %v12302_v51  ;;  %v2663_v39 = vpop.f32.mrf.mxu1  ;;  %v4544_v29 = vmul.f32 %v12302_v51, %v12302_v51  ;;  %v12315_v59 = vpop.xlane.xlu0 %4866  ;;  %v3192_v51 = vmul.f32 0.0051020407, %v12184_v19  ;;  %v3193_v19 = vmul.f32 0.0051020407, %v12198_v41 }
 0x625   :  { %18620 = vst [vmem:[#allocation125_spill] sm:$0xff] %v12280_v26  ;;  %v4543_v9 = vmul.f32 %v12280_v26, %v12280_v26  ;;  %18626 = vst [vmem:[#allocation131_spill] sm:$0xff] %v12315_v59 }
 0x626   :  { %18623 = vst [vmem:[#allocation128_spill] sm:$0xff] %v12294_v37  ;;  %v4545_v26 = vmul.f32 %v12294_v37, %v12294_v37  ;;  %v12317_v37 = vpop.xlane.xlu1 %4854  ;;  %v12321_v43 = vpop.f32.mrf.mxu1 }
 0x627   :  { %v4956_v33 = vsel %vm2102_vm0, %v4543_v9, 0.0  ;;  %18627 = vst [vmem:[#allocation132_spill] sm:$0xff] %v12317_v37 }
 0x628   :  { %v4957_v31 = vadd.f32 %v4956_v33, %v4542_v21  ;;  %v4960_v9 = vsel %vm2102_vm0, %v4545_v26, 0.0  ;;  %v12319_v21 = vpop.permute.xlu0 %3535 }
 0x629   :  { %v4961_v16 = vadd.f32 %v4960_v9, %v4544_v29  ;;  %v5641_v29 = vld [vmem:[%s18064_s3 + $0x8] sm:$0xff] }
 0x62a   :  { %v12325_v39 = vpop.permute.xlu1 %3520 }
 0x62c   :  { %v12323_v33 = vpop.xlane.xlu0 %4874 }
 0x62d   :  { %18628 = vst [vmem:[#allocation133_spill] sm:$0xff] %v12323_v33 }
 0x62e   :  { %v12330_v26 = vpop.xlane.xlu1 %4862 }
 0x62f   :  { %18629 = vst [vmem:[#allocation134_spill] sm:$0xff] %v12330_v26  ;;  %v357_v26 = vld [vmem:[%s18063_s2 + $0x548] sm:$0xff] }
 0x630   :  { %v12328_v47 = vpop.permute.xlu0 %3545  ;;  %9424 = vmatprep.mubr.msk.f32.mxu1 %vm524_vm1, %v357_v26  ;;  %9256 = vmatprep.mubr.msk.f32.mxu0 %vm524_vm1, %v357_v26 }
 0x634   :  { %v12335_v9 = vpop.xlane.xlu0 %4882 }
 0x635   :  { %18630 = vst [vmem:[#allocation135_spill] sm:$0xff] %v12335_v9 }
 0x638   :  { %v12339_v33 = vpop.permute.xlu0 %3555 }
 0x639   :  { %18631 = vst [vmem:[#allocation136_spill] sm:$0xff] %v12339_v33 }
 0x63b   :  { %4958 = vadd.xlane.f32.xlu1 %v4957_v31  ;;  %v2668_v31 = vpop.f32.mrf.mxu1 }
 0x63c   :  { %v12337_v31 = vpop.permute.xlu1 %3530  ;;  %v12344_v28 = vpop.xlane.xlu0 %4890 }
 0x63d   :  { %18633 = vst [vmem:[#allocation138_spill] sm:$0xff] %v12344_v28 }
 0x640   :  { %v12342_v59 = vpop.xlane.xlu1 %4870  ;;  %v12358_v41 = vpop.permute.xlu0 %3565 }
 0x641   :  { %18632 = vst [vmem:[#allocation137_spill] sm:$0xff] %v12342_v59  ;;  %18634 = vst [vmem:[#allocation139_spill] sm:$0xff] %v12358_v41 }
 0x642   :  { %4962 = vadd.xlane.f32.xlu0 %v4961_v16  ;;  %v6145_v16 = vmul.f32 %v9515_v53, %v5641_v29  ;;  %v359_v53 = vld [vmem:[%s18063_s2 + $0x558] sm:$0xff] }
 0x644   :  { %v12361_v29 = vpop.permute.xlu1 %3540  ;;  %v12363_v28 = vpop.xlane.xlu0 %4898 }
 0x645   :  { %18635 = vst [vmem:[#allocation140_spill] sm:$0xff] %v12363_v28 }
 0x648   :  { %v12365_v9 = vpop.xlane.xlu1 %4878  ;;  %v12367_v33 = vpop.permute.xlu0 %3575 }
 0x649   :  { %18636 = vst [vmem:[#allocation141_spill] sm:$0xff] %v12365_v9  ;;  %18637 = vst [vmem:[#allocation142_spill] sm:$0xff] %v12367_v33 }
 0x64c   :  { %3650 = vperm.xlu1 %9510, %v3192_v51   ;;  %v356_v51 = vld [vmem:[%s18063_s2 + $0x540] sm:$0xff]  ;;  %v12371_v10 = vpop.xlane.xlu0 %4906 }
 0x64d   :  { %2700 = vmatmul.mubr.f32.gmra.mxu1 %v356_v51  ;;  %1598 = vmatmul.mubr.f32.gmra.mxu0 %v356_v51  ;;  %18638 = vst [vmem:[#allocation143_spill] sm:$0xff] %v12371_v10  ;;  %v358_v51 = vld [vmem:[%s18063_s2 + $0x550] sm:$0xff] }
 0x64e   :  { %9425 = vmatprep.mubr.msk.f32.mxu1 %vm524_vm1, %v359_v53  ;;  %9257 = vmatprep.mubr.msk.f32.mxu0 %vm524_vm1, %v359_v53 }
 0x650   :  { %6319 = vperm.xlu1 %9510, %v6145_v16   ;;  %v1341_v16 = vpop.f32.mrf.mxu0  ;;  %v12387_v52 = vpop.permute.xlu0 %3585 }
 0x651   :  { %2705 = vmatmul.mubr.f32.gmra.mxu1 %v358_v51  ;;  %1604 = vmatmul.mubr.f32.gmra.mxu0 %v358_v51  ;;  %v12382_v9 = vsub.f32 %v1341_v16, %v12254_v15  ;;  %18643 = vst [vmem:[#allocation148_spill] sm:$0xff] %v12387_v52 }
 0x652   :  { %v1343_v59 = vpop.f32.mrf.mxu0 }
 0x653   :  { %v12377_v53 = vsub.f32 %v1343_v59, %v12254_v15  ;;  %18641 = vst [vmem:[#allocation146_spill] sm:$0xff] %v12382_v9  ;;  %v4546_v59 = vmul.f32 %v12382_v9, %v12382_v9  ;;  %v5474_v15 = vmul.f32 0.0051020407, %v12174_v40  ;;  %v12409_v9 = vpop.f32.mrf.mxu1 }
 0x654   :  { %v1347_v26 = vpop.f32.mrf.mxu0 }
 0x655   :  { %18639 = vst [vmem:[#allocation144_spill] sm:$0xff] %v12377_v53  ;;  %v4547_v10 = vmul.f32 %v12377_v53, %v12377_v53  ;;  %v12392_v55 = vsub.f32 %v1347_v26, %v12290_v46  ;;  %v5810_v37 = vadd.f32 0.001, %v5474_v15 }
 0x656   :  { %v1349_v41 = vpop.f32.mrf.mxu0 }
 0x657   :  { %v12385_v33 = vsub.f32 %v1349_v41, %v12290_v46  ;;  %18644 = vst [vmem:[#allocation149_spill] sm:$0xff] %v12392_v55  ;;  %v4964_v16 = vsel %vm2102_vm0, %v4547_v10, 0.0  ;;  %v4548_v53 = vmul.f32 %v12392_v55, %v12392_v55  ;;  %9516 = vrsqrt.f32 %v5810_v37 }
 0x658   :  { %3655 = vperm.xlu0 %9511, %v3193_v19   ;;  %v12369_v19 = vpop.permute.xlu1 %3550  ;;  %v4965_v46 = vadd.f32 %v4964_v16, %v4546_v59  ;;  %v5475_v10 = vmul.f32 0.0051020407, %v12176_v38 }
 0x659   :  { %18642 = vst [vmem:[#allocation147_spill] sm:$0xff] %v12385_v33  ;;  %v4549_v51 = vmul.f32 %v12385_v33, %v12385_v33 }
 0x65a   :  { %v5811_v59 = vadd.f32 0.001, %v5475_v10 }
 0x65b   :  { %v4968_v26 = vsel %vm2102_vm0, %v4549_v51, 0.0 }
 0x65c   :  { %v12379_v28 = vpop.xlane.xlu1 %4886  ;;  %v4969_v40 = vadd.f32 %v4968_v26, %v4548_v53  ;;  %9518 = vrsqrt.f32 %v5811_v59  ;;  %v5642_v26 = vld [vmem:[%s18064_s3 + $0x10] sm:$0xff]  ;;  %v3195_v59 = vmul.f32 0.0051020407, %v12243_v49  ;;  %v360_v49 = vld [vmem:[%s18063_s2 + $0x560] sm:$0xff] }
 0x65d   :  { %18640 = vst [vmem:[#allocation145_spill] sm:$0xff] %v12379_v28  ;;  %v12398_v28 = vpop.xlane.xlu0 %4914 }
 0x65e   :  { %18645 = vst [vmem:[#allocation150_spill] sm:$0xff] %v12398_v28  ;;  %v2673_v28 = vpop.f32.mrf.mxu1 }
 0x65f   :  { %v3194_v28 = vmul.f32 0.0051020407, %v12236_v63 }
 0x660   :  { %v12401_v41 = vpop.permute.xlu1 %3560  ;;  %v12420_v51 = vpop.f32.mrf.mxu1 }
 0x661   :  { %v12406_v52 = vpop.permute.xlu0 %3595 }
 0x662   :  { %18646 = vst [vmem:[#allocation151_spill] sm:$0xff] %v12406_v52 }
 0x664   :  { %v12411_v33 = vpop.xlane.xlu1 %4894  ;;  %v9517_v37 = vpop.eup %9516 }
 0x665   :  { %v12413_v11 = vpop.xlane.xlu0 %4922  ;;  %v6146_v10 = vmul.f32 %v9517_v37, %v5642_v26  ;;  %v361_v37 = vld [vmem:[%s18063_s2 + $0x568] sm:$0xff]  ;;  %v363_v26 = vld [vmem:[%s18063_s2 + $0x578] sm:$0xff] }
 0x666   :  { %18647 = vst [vmem:[#allocation152_spill] sm:$0xff] %v12413_v11  ;;  %9426 = vmatprep.mubr.msk.f32.mxu1 %vm524_vm1, %v361_v37  ;;  %9258 = vmatprep.mubr.msk.f32.mxu0 %vm524_vm1, %v361_v37 }
 0x667   :  { %2710 = vmatmul.mubr.f32.gmra.mxu1 %v360_v49  ;;  %1610 = vmatmul.mubr.f32.gmra.mxu0 %v360_v49 }
 0x668   :  { %v12416_v55 = vpop.permute.xlu1 %3570  ;;  %9427 = vmatprep.mubr.msk.f32.mxu1 %vm524_vm1, %v363_v26  ;;  %9259 = vmatprep.mubr.msk.f32.mxu0 %vm524_vm1, %v363_v26  ;;  %v362_v26 = vld [vmem:[%s18063_s2 + $0x570] sm:$0xff] }
 0x669   :  { %v12418_v52 = vpop.permute.xlu0 %3605  ;;  %v9519_v63 = vpop.eup %9518 }
 0x66a   :  { %18648 = vst [vmem:[#allocation153_spill] sm:$0xff] %v12418_v52 }
 0x66b   :  { %2715 = vmatmul.mubr.f32.gmra.mxu1 %v362_v26  ;;  %1616 = vmatmul.mubr.f32.gmra.mxu0 %v362_v26 }
 0x66c   :  { %v12422_v16 = vpop.xlane.xlu1 %4902 }
 0x66d   :  { %18649 = vst [vmem:[#allocation154_spill] sm:$0xff] %v12422_v16  ;;  %v12424_v15 = vpop.xlane.xlu0 %4930 }
 0x66e   :  { %18650 = vst [vmem:[#allocation155_spill] sm:$0xff] %v12424_v15  ;;  %v5643_v15 = vld [vmem:[%s18064_s3 + $0x18] sm:$0xff] }
 0x670   :  { %v12429_v38 = vpop.permute.xlu1 %3580 }
 0x671   :  { %v12427_v53 = vpop.permute.xlu0 %3615 }
 0x672   :  { %18651 = vst [vmem:[#allocation156_spill] sm:$0xff] %v12427_v53 }
 0x674   :  { %4966 = vadd.xlane.f32.xlu1 %v4965_v46  ;;  %v2678_v46 = vpop.f32.mrf.mxu1  ;;  %v12436_v11 = vpop.xlane.xlu1 %4910 }
 0x675   :  { %18653 = vst [vmem:[#allocation158_spill] sm:$0xff] %v12436_v11 }
 0x677   :  { %4970 = vadd.xlane.f32.xlu0 %v4969_v40  ;;  %v12434_v40 = vpop.xlane.xlu0 %4938 }
 0x678   :  { %18652 = vst [vmem:[#allocation157_spill] sm:$0xff] %v12434_v40  ;;  %v12444_v53 = vpop.permute.xlu1 %3590 }
 0x67b   :  { %v12439_v46 = vpop.permute.xlu0 %3625 }
 0x67c   :  { %18654 = vst [vmem:[#allocation159_spill] sm:$0xff] %v12439_v46 }
 0x67f   :  { %v12446_v16 = vpop.xlane.xlu0 %4946 }
 0x680   :  { %18655 = vst [vmem:[#allocation160_spill] sm:$0xff] %v12446_v16 }
 0x685   :  { %3660 = vperm.xlu1 %9510, %v3194_v28   ;;  %v6147_v28 = vmul.f32 %v9519_v63, %v5643_v15  ;;  %v1353_v15 = vpop.f32.mrf.mxu0 }
 0x687   :  { %v1355_v16 = vpop.f32.mrf.mxu0 }
 0x688   :  { %v12479_v11 = vsub.f32 %v1355_v16, %v12273_v3 }
 0x689   :  { %6324 = vperm.xlu1 %9510, %v6146_v10   ;;  %v12457_v10 = vpop.xlane.xlu1 %4918 }
 0x68a   :  { %18656 = vst [vmem:[#allocation161_spill] sm:$0xff] %v12457_v10  ;;  %v1359_v10 = vpop.f32.mrf.mxu0  ;;  %18661 = vst [vmem:[#allocation166_spill] sm:$0xff] %v12479_v11 }
 0x68b   :  { %v12501_v16 = vsub.f32 %v1359_v10, %v12312_v60 }
 0x68d   :  { %3665 = vperm.xlu0 %9511, %v3195_v59   ;;  %v12459_v59 = vpop.permute.xlu0 %3635  ;;  %18664 = vst [vmem:[#allocation169_spill] sm:$0xff] %v12501_v16 }
 0x68e   :  { %18657 = vst [vmem:[#allocation162_spill] sm:$0xff] %v12459_v59 }
 0x691   :  { %6329 = vperm.xlu0 %9511, %v6147_v28   ;;  %v12467_v28 = vpop.permute.xlu1 %3600 }
 0x692   :  { %v12465_v63 = vpop.xlane.xlu0 %4954 }
 0x693   :  { %18658 = vst [vmem:[#allocation163_spill] sm:$0xff] %v12465_v63  ;;  %v1361_v63 = vpop.f32.mrf.mxu0 }
 0x695   :  { %v12471_v59 = vpop.xlane.xlu1 %4926 }
 0x696   :  { %18660 = vst [vmem:[#allocation165_spill] sm:$0xff] %v12471_v59 }
 0x699   :  { %v12483_v59 = vpop.permute.xlu1 %3610 }
 0x69a   :  { %v12469_v40 = vpop.permute.xlu0 %3645 }
 0x69b   :  { %18659 = vst [vmem:[#allocation164_spill] sm:$0xff] %v12469_v40 }
 0x69e   :  { %v6315_v46 = vpop.permute.xlu0 %6314 }
 0x69f   :  { %v7152_v37 = vmul.f32 %v6315_v46, %v11489_v54  ;;  %v7153_v49 = vmul.f32 %v6315_v46, %v11485_v58  ;;  %v12486_v54 = vsub.f32 %v1353_v15, %v12273_v3  ;;  %v12489_v58 = vsub.f32 %v1361_v63, %v12312_v60  ;;  %v12503_v3 = vpop.xlane.xlu1 %4934 }
 0x6a0   :  { %18665 = vst [vmem:[#allocation170_spill] sm:$0xff] %v12503_v3 }
 0x6a1   :  { %v8496_v40 = vadd.f32 %v11268_v2, %v7152_v37  ;;  %v8497_v52 = vadd.f32 %v11268_v2, %v7153_v49  ;;  %18662 = vst [vmem:[#allocation167_spill] sm:$0xff] %v12486_v54  ;;  %18663 = vst [vmem:[#allocation168_spill] sm:$0xff] %v12489_v58  ;;  %v4551_v2 = vmul.f32 %v12479_v11, %v12479_v11  ;;  %v12513_v37 = vpop.f32.mrf.mxu1 }
 0x6a2   :  { %v4550_v46 = vmul.f32 %v12486_v54, %v12486_v54  ;;  %v4553_v15 = vmul.f32 %v12489_v58, %v12489_v58  ;;  %v5477_v58 = vmul.f32 0.0051020407, %v12217_v24 }
 0x6a3   :  { %8832 = vst [vmem:[%s18065_s5] sm:$0xff] %v8496_v40  ;;  %8833 = vst.msk [vmem:[%s18065_s5 + $0x8] sm:$0xff] %vm2102_vm0, %v8497_v52  ;;  %v5476_v40 = vmul.f32 0.0051020407, %v12215_v36  ;;  %v4972_v63 = vsel %vm2102_vm0, %v4551_v2, 0.0  ;;  %v4552_v52 = vmul.f32 %v12501_v16, %v12501_v16  ;;  %v12516_v26 = vpop.permute.xlu1 %3620  ;;  %v2683_v11 = vpop.f32.mrf.mxu1 }
 0x6a4   :  { %v4973_v49 = vadd.f32 %v4972_v63, %v4550_v46  ;;  %v4976_v60 = vsel %vm2102_vm0, %v4553_v15, 0.0  ;;  %v5813_v2 = vadd.f32 0.001, %v5477_v58  ;;  %v5644_v63 = vld [vmem:[%s18064_s3 + $0x20] sm:$0xff]  ;;  %v3197_v58 = vmul.f32 0.0051020407, %v12321_v43 }
 0x6a5   :  { %v5812_v10 = vadd.f32 0.001, %v5476_v40  ;;  %v4977_v54 = vadd.f32 %v4976_v60, %v4552_v52  ;;  %v12521_v3 = vpop.f32.mrf.mxu1  ;;  %v3196_v40 = vmul.f32 0.0051020407, %v12306_v57  ;;  %v5645_v60 = vld [vmem:[%s18064_s3 + $0x28] sm:$0xff]  ;;  %v364_v43 = vld [vmem:[%s18063_s2 + $0x580] sm:$0xff] }
 0x6a7   :  { %9520 = vrsqrt.f32 %v5812_v10  ;;  %v12519_v36 = vpop.xlane.xlu1 %4942  ;;  %v2688_v46 = vpop.f32.mrf.mxu1 }
 0x6a8   :  { %9522 = vrsqrt.f32 %v5813_v2  ;;  %v365_v2 = vld [vmem:[%s18063_s2 + $0x588] sm:$0xff]  ;;  %v367_v46 = vld [vmem:[%s18063_s2 + $0x598] sm:$0xff] }
 0x6a9   :  { %9428 = vmatprep.mubr.msk.f32.mxu1 %vm524_vm1, %v365_v2  ;;  %9260 = vmatprep.mubr.msk.f32.mxu0 %vm524_vm1, %v365_v2 }
 0x6aa   :  { %2720 = vmatmul.mubr.f32.gmra.mxu1 %v364_v43  ;;  %1622 = vmatmul.mubr.f32.gmra.mxu0 %v364_v43 }
 0x6ab   :  { %v12523_v16 = vpop.permute.xlu1 %3630  ;;  %9429 = vmatprep.mubr.msk.f32.mxu1 %vm524_vm1, %v367_v46  ;;  %9261 = vmatprep.mubr.msk.f32.mxu0 %vm524_vm1, %v367_v46 }
 0x6ad   :  { %4974 = vadd.xlane.f32.xlu1 %v4973_v49 }
 0x6af   :  { %v12525_v15 = vpop.xlane.xlu1 %4950 }
 0x6b0   :  { %4978 = vadd.xlane.f32.xlu0 %v4977_v54 }
 0x6b3   :  { %v12531_v24 = vpop.permute.xlu1 %3640 }
 0x6b4   :  { %v9521_v11 = vpop.eup %9520 }
 0x6b5   :  { %v6148_v54 = vmul.f32 %v9521_v11, %v5644_v63  ;;  %v9523_v49 = vpop.eup %9522 }
 0x6b6   :  { %v6149_v10 = vmul.f32 %v9523_v49, %v5645_v60  ;;  %v366_v60 = vld [vmem:[%s18063_s2 + $0x590] sm:$0xff] }
 0x6b7   :  { %2725 = vmatmul.mubr.f32.gmra.mxu1 %v366_v60  ;;  %1628 = vmatmul.mubr.f32.gmra.mxu0 %v366_v60 }
 0x6be   :  { %3670 = vperm.xlu1 %9510, %v3196_v40  }
 0x6c2   :  { %6334 = vperm.xlu1 %9510, %v6148_v54   ;;  %v1365_v54 = vpop.f32.mrf.mxu0 }
 0x6c4   :  { %v12534_v52 = vpop.xlane.xlu1 %4958 }
 0x6c6   :  { %3675 = vperm.xlu0 %9511, %v3197_v58  }
 0x6c8   :  { %v12539_v57 = vpop.permute.xlu1 %3650 }
 0x6ca   :  { %6339 = vperm.xlu0 %9511, %v6149_v10  }
 0x6cc   :  { %v6320_v40 = vpop.permute.xlu1 %6319 }
 0x6cd   :  { %v7154_v11 = vmul.f32 %v6320_v40, %v11487_v30  ;;  %v7155_v63 = vmul.f32 %v6320_v40, %v11483_v56  ;;  %v1367_v30 = vpop.f32.mrf.mxu0 }
 0x6ce   :  { %v12569_v10 = vsub.f32 %v1367_v30, %v12288_v14 }
 0x6cf   :  { %v8498_v58 = vadd.f32 %v11279_v8, %v7154_v11  ;;  %v8499_v49 = vadd.f32 %v11279_v8, %v7155_v63  ;;  %v1371_v56 = vpop.f32.mrf.mxu0  ;;  %v12572_v8 = vsub.f32 %v1365_v54, %v12288_v14 }
 0x6d0   :  { %18666 = vst [vmem:[#allocation171_spill] sm:$0xff] %v12569_v10  ;;  %v4555_v46 = vmul.f32 %v12569_v10, %v12569_v10  ;;  %v12580_v40 = vsub.f32 %v1371_v56, %v12325_v39  ;;  %v5479_v10 = vmul.f32 0.0051020407, %v12259_v61 }
 0x6d1   :  { %8834 = vst [vmem:[%s18065_s5 + $0x10] sm:$0xff] %v8498_v58  ;;  %8835 = vst.msk [vmem:[%s18065_s5 + $0x18] sm:$0xff] %vm2102_vm0, %v8499_v49  ;;  %v1373_v2 = vpop.f32.mrf.mxu0  ;;  %v4554_v11 = vmul.f32 %v12572_v8, %v12572_v8  ;;  %v5478_v58 = vmul.f32 0.0051020407, %v12246_v18 }
 0x6d2   :  { %v12575_v43 = vsub.f32 %v1373_v2, %v12325_v39  ;;  %18668 = vst [vmem:[#allocation173_spill] sm:$0xff] %v12580_v40  ;;  %v4980_v14 = vsel %vm2102_vm0, %v4555_v46, 0.0  ;;  %v4556_v54 = vmul.f32 %v12580_v40, %v12580_v40  ;;  %v3198_v40 = vmul.f32 0.0051020407, %v12409_v9 }
 0x6d3   :  { %v4981_v49 = vadd.f32 %v4980_v14, %v4554_v11  ;;  %v5814_v39 = vadd.f32 0.001, %v5478_v58  ;;  %v3199_v14 = vmul.f32 0.0051020407, %v12420_v51  ;;  %v369_v51 = vld [vmem:[%s18063_s2 + $0x5a8] sm:$0xff] }
 0x6d4   :  { %18667 = vst [vmem:[#allocation172_spill] sm:$0xff] %v12575_v43  ;;  %v4557_v63 = vmul.f32 %v12575_v43, %v12575_v43  ;;  %v5815_v43 = vadd.f32 0.001, %v5479_v10  ;;  %9430 = vmatprep.mubr.msk.f32.mxu1 %vm524_vm1, %v369_v51  ;;  %9262 = vmatprep.mubr.msk.f32.mxu0 %vm524_vm1, %v369_v51 }
 0x6d5   :  { %9524 = vrsqrt.f32 %v5814_v39  ;;  %v371_v39 = vld [vmem:[%s18063_s2 + $0x5b8] sm:$0xff] }
 0x6d6   :  { %v4984_v30 = vsel %vm2102_vm0, %v4557_v63, 0.0  ;;  %9526 = vrsqrt.f32 %v5815_v43  ;;  %v5646_v63 = vld [vmem:[%s18064_s3 + $0x30] sm:$0xff]  ;;  %v5647_v43 = vld [vmem:[%s18064_s3 + $0x38] sm:$0xff] }
 0x6d7   :  { %v4985_v2 = vadd.f32 %v4984_v30, %v4556_v54  ;;  %v12601_v54 = vpop.xlane.xlu0 %4962 }
 0x6d8   :  { %v12591_v60 = vpop.f32.mrf.mxu1 }
 0x6da   :  { %v2693_v56 = vpop.f32.mrf.mxu1 }
 0x6db   :  { %v12608_v9 = vpop.permute.xlu0 %3655 }
 0x6dc   :  { %v12594_v18 = vpop.f32.mrf.mxu1 }
 0x6de   :  { %v2698_v46 = vpop.f32.mrf.mxu1 }
 0x6e2   :  { %v9525_v11 = vpop.eup %9524 }
 0x6e3   :  { %v6150_v58 = vmul.f32 %v9525_v11, %v5646_v63  ;;  %v9527_v10 = vpop.eup %9526  ;;  %v1377_v63 = vpop.f32.mrf.mxu0 }
 0x6e4   :  { %v6151_v30 = vmul.f32 %v9527_v10, %v5647_v43 }
 0x6e6   :  { %4982 = vadd.xlane.f32.xlu1 %v4981_v49 }
 0x6e9   :  { %4986 = vadd.xlane.f32.xlu0 %v4985_v2 }
 0x6f7   :  { %3680 = vperm.xlu1 %9510, %v3198_v40   ;;  %v368_v40 = vld [vmem:[%s18063_s2 + $0x5a0] sm:$0xff] }
 0x6f8   :  { %2730 = vmatmul.mubr.f32.gmra.mxu1 %v368_v40  ;;  %1634 = vmatmul.mubr.f32.gmra.mxu0 %v368_v40 }
 0x6f9   :  { %9431 = vmatprep.mubr.msk.f32.mxu1 %vm524_vm1, %v371_v39  ;;  %9263 = vmatprep.mubr.msk.f32.mxu0 %vm524_vm1, %v371_v39 }
 0x6fb   :  { %6344 = vperm.xlu1 %9510, %v6150_v58  }
 0x6fd   :  { %v12603_v61 = vpop.xlane.xlu1 %4966 }
 0x6ff   :  { %3685 = vperm.xlu0 %9511, %v3199_v14  }
 0x700   :  { %v12621_v56 = vpop.xlane.xlu0 %4970 }
 0x701   :  { %v12610_v49 = vpop.permute.xlu1 %3660 }
 0x703   :  { %6349 = vperm.xlu0 %9511, %v6151_v30  }
 0x705   :  { %v6325_v2 = vpop.permute.xlu1 %6324 }
 0x706   :  { %v7156_v46 = vmul.f32 %v6325_v2, %v11501_v4  ;;  %v7157_v11 = vmul.f32 %v6325_v2, %v11493_v22  ;;  %v1379_v4 = vpop.f32.mrf.mxu0 }
 0x708   :  { %v8500_v58 = vadd.f32 %v11274_v45, %v7156_v46  ;;  %v8501_v14 = vadd.f32 %v11274_v45, %v7157_v11  ;;  %v12631_v10 = vpop.permute.xlu0 %3665  ;;  %v1383_v51 = vpop.f32.mrf.mxu0 }
 0x709   :  { %v12666_v11 = vsub.f32 %v1383_v51, %v12337_v31 }
 0x70a   :  { %8836 = vst [vmem:[%s18065_s5 + $0x20] sm:$0xff] %v8500_v58  ;;  %8837 = vst.msk [vmem:[%s18065_s5 + $0x28] sm:$0xff] %vm2102_vm0, %v8501_v14  ;;  %v1385_v39 = vpop.f32.mrf.mxu0 }
 0x70b   :  { %v12661_v2 = vsub.f32 %v1385_v39, %v12337_v31  ;;  %18670 = vst [vmem:[#allocation175_spill] sm:$0xff] %v12666_v11 }
 0x70c   :  { %v6330_v22 = vpop.permute.xlu0 %6329 }
 0x70d   :  { %v7158_v43 = vmul.f32 %v6330_v22, %v11532_v7  ;;  %v7159_v30 = vmul.f32 %v6330_v22, %v11530_v23  ;;  %v370_v7 = vld [vmem:[%s18063_s2 + $0x5b0] sm:$0xff]  ;;  %v12655_v23 = vsub.f32 %v1379_v4, %v12308_v32  ;;  %18669 = vst [vmem:[#allocation174_spill] sm:$0xff] %v12661_v2  ;;  %v12668_v58 = vpop.f32.mrf.mxu1  ;;  %v4561_v4 = vmul.f32 %v12661_v2, %v12661_v2 }
 0x70e   :  { %2735 = vmatmul.mubr.f32.gmra.mxu1 %v370_v7  ;;  %1640 = vmatmul.mubr.f32.gmra.mxu0 %v370_v7 }
 0x70f   :  { %v8502_v45 = vadd.f32 %v11285_v13, %v7158_v43  ;;  %v8503_v40 = vadd.f32 %v11285_v13, %v7159_v30  ;;  %v12658_v13 = vsub.f32 %v1377_v63, %v12308_v32  ;;  %v4559_v46 = vmul.f32 %v12655_v23, %v12655_v23  ;;  %v2703_v22 = vpop.f32.mrf.mxu1 }
 0x710   :  { %v5480_v32 = vmul.f32 0.0051020407, %v12249_v48  ;;  %v4560_v43 = vmul.f32 %v12666_v11, %v12666_v11  ;;  %v4992_v31 = vsel %vm2102_vm0, %v4561_v4, 0.0 }
 0x711   :  { %8838 = vst [vmem:[%s18065_s5 + $0x30] sm:$0xff] %v8502_v45  ;;  %8839 = vst.msk [vmem:[%s18065_s5 + $0x38] sm:$0xff] %vm2102_vm0, %v8503_v40  ;;  %v4558_v14 = vmul.f32 %v12658_v13, %v12658_v13  ;;  %v4988_v63 = vsel %vm2102_vm0, %v4559_v46, 0.0  ;;  %v5481_v40 = vmul.f32 0.0051020407, %v12275_v25  ;;  %v12680_v39 = vpop.f32.mrf.mxu1 }
 0x712   :  { %v5816_v51 = vadd.f32 0.001, %v5480_v32  ;;  %v4993_v45 = vadd.f32 %v4992_v31, %v4560_v43  ;;  %v3200_v46 = vmul.f32 0.0051020407, %v12513_v37  ;;  %v3201_v32 = vmul.f32 0.0051020407, %v12521_v3 }
 0x713   :  { %v4989_v30 = vadd.f32 %v4988_v63, %v4558_v14  ;;  %v5817_v7 = vadd.f32 0.001, %v5481_v40  ;;  %v2708_v48 = vpop.f32.mrf.mxu1  ;;  %v5648_v14 = vld [vmem:[%s18064_s3 + $0x40] sm:$0xff]  ;;  %v5649_v43 = vld [vmem:[%s18064_s3 + $0x48] sm:$0xff] }
 0x714   :  { %9528 = vrsqrt.f32 %v5816_v51  ;;  %v373_v31 = vld [vmem:[%s18063_s2 + $0x5c8] sm:$0xff]  ;;  %v372_v3 = vld [vmem:[%s18063_s2 + $0x5c0] sm:$0xff]  ;;  %v375_v51 = vld [vmem:[%s18063_s2 + $0x5d8] sm:$0xff] }
 0x715   :  { %9530 = vrsqrt.f32 %v5817_v7  ;;  %9432 = vmatprep.mubr.msk.f32.mxu1 %vm524_vm1, %v373_v31  ;;  %9264 = vmatprep.mubr.msk.f32.mxu0 %vm524_vm1, %v373_v31 }
 0x716   :  { %2740 = vmatmul.mubr.f32.gmra.mxu1 %v372_v3  ;;  %1646 = vmatmul.mubr.f32.gmra.mxu0 %v372_v3 }
 0x717   :  { %9433 = vmatprep.mubr.msk.f32.mxu1 %vm524_vm1, %v375_v51  ;;  %9265 = vmatprep.mubr.msk.f32.mxu0 %vm524_vm1, %v375_v51 }
 0x71f   :  { %4990 = vadd.xlane.f32.xlu1 %v4989_v30 }
 0x721   :  { %v9529_v22 = vpop.eup %9528 }
 0x722   :  { %4994 = vadd.xlane.f32.xlu0 %v4993_v45  ;;  %v6152_v4 = vmul.f32 %v9529_v22, %v5648_v14  ;;  %v9531_v25 = vpop.eup %9530 }
 0x723   :  { %v6153_v37 = vmul.f32 %v9531_v25, %v5649_v43 }
 0x730   :  { %3690 = vperm.xlu1 %9510, %v3200_v46   ;;  %v1389_v46 = vpop.f32.mrf.mxu0 }
 0x734   :  { %6354 = vperm.xlu1 %9510, %v6152_v4  }
 0x736   :  { %v12687_v63 = vpop.xlane.xlu1 %4974 }
 0x738   :  { %3695 = vperm.xlu0 %9511, %v3201_v32  }
 0x739   :  { %v12703_v45 = vpop.xlane.xlu0 %4978 }
 0x73a   :  { %v12692_v30 = vpop.permute.xlu1 %3670 }
 0x73c   :  { %6359 = vperm.xlu0 %9511, %v6153_v37  }
 0x73e   :  { %v6335_v40 = vpop.permute.xlu1 %6334 }
 0x73f   :  { %v7160_v7 = vmul.f32 %v6335_v40, %v11540_v42  ;;  %v7161_v48 = vmul.f32 %v6335_v40, %v11534_v44  ;;  %v1391_v44 = vpop.f32.mrf.mxu0 }
 0x741   :  { %v8504_v22 = vadd.f32 %v11282_v1, %v7160_v7  ;;  %v8505_v14 = vadd.f32 %v11282_v1, %v7161_v48  ;;  %v12713_v4 = vpop.permute.xlu0 %3675  ;;  %v1395_v43 = vpop.f32.mrf.mxu0 }
 0x742   :  { %v12748_v40 = vsub.f32 %v1395_v43, %v12361_v29  ;;  %v5483_v43 = vmul.f32 0.0051020407, %v12300_v0 }
 0x743   :  { %8840 = vst [vmem:[%s18065_s5 + $0x40] sm:$0xff] %v8504_v22  ;;  %8841 = vst.msk [vmem:[%s18065_s5 + $0x48] sm:$0xff] %vm2102_vm0, %v8505_v14  ;;  %v1397_v31 = vpop.f32.mrf.mxu0  ;;  %v5482_v22 = vmul.f32 0.0051020407, %v12270_v6 }
 0x744   :  { %v12743_v3 = vsub.f32 %v1397_v31, %v12361_v29  ;;  %18674 = vst [vmem:[#allocation179_spill] sm:$0xff] %v12748_v40  ;;  %v4564_v14 = vmul.f32 %v12748_v40, %v12748_v40 }
 0x745   :  { %v6340_v42 = vpop.permute.xlu0 %6339 }
 0x746   :  { %v7162_v32 = vmul.f32 %v6340_v42, %v11572_v62  ;;  %v7163_v25 = vmul.f32 %v6340_v42, %v11570_v5  ;;  %v374_v62 = vld [vmem:[%s18063_s2 + $0x5d0] sm:$0xff]  ;;  %v12737_v5 = vsub.f32 %v1391_v44, %v12319_v21  ;;  %18673 = vst [vmem:[#allocation178_spill] sm:$0xff] %v12743_v3  ;;  %v4565_v48 = vmul.f32 %v12743_v3, %v12743_v3 }
 0x747   :  { %2745 = vmatmul.mubr.f32.gmra.mxu1 %v374_v62  ;;  %1652 = vmatmul.mubr.f32.gmra.mxu0 %v374_v62  ;;  %v3202_v62 = vmul.f32 0.0051020407, %v12591_v60 }
 0x748   :  { %v8506_v1 = vadd.f32 %v11289_v20, %v7162_v32  ;;  %v8507_v37 = vadd.f32 %v11289_v20, %v7163_v25  ;;  %18671 = vst [vmem:[#allocation176_spill] sm:$0xff] %v12737_v5  ;;  %v12740_v20 = vsub.f32 %v1389_v46, %v12319_v21  ;;  %v4563_v51 = vmul.f32 %v12737_v5, %v12737_v5  ;;  %v12756_v46 = vpop.f32.mrf.mxu1 }
 0x749   :  { %v5000_v29 = vsel %vm2102_vm0, %v4565_v48, 0.0  ;;  %v5818_v32 = vadd.f32 0.001, %v5482_v22  ;;  %v3203_v48 = vmul.f32 0.0051020407, %v12594_v18  ;;  %v376_v18 = vld [vmem:[%s18063_s2 + $0x5e0] sm:$0xff] }
 0x74a   :  { %8842 = vst [vmem:[%s18065_s5 + $0x50] sm:$0xff] %v8506_v1  ;;  %8843 = vst.msk [vmem:[%s18065_s5 + $0x58] sm:$0xff] %vm2102_vm0, %v8507_v37  ;;  %v4562_v7 = vmul.f32 %v12740_v20, %v12740_v20  ;;  %v4996_v21 = vsel %vm2102_vm0, %v4563_v51, 0.0  ;;  %v2713_v44 = vpop.f32.mrf.mxu1  ;;  %v5001_v25 = vadd.f32 %v5000_v29, %v4564_v14  ;;  %v5819_v1 = vadd.f32 0.001, %v5483_v43  ;;  %v5650_v51 = vld [vmem:[%s18064_s3 + $0x50] sm:$0xff] }
 0x74b   :  { %18672 = vst [vmem:[#allocation177_spill] sm:$0xff] %v12740_v20  ;;  %9532 = vrsqrt.f32 %v5818_v32  ;;  %v377_v44 = vld [vmem:[%s18063_s2 + $0x5e8] sm:$0xff] }
 0x74c   :  { %v4997_v42 = vadd.f32 %v4996_v21, %v4562_v7  ;;  %v12762_v6 = vpop.f32.mrf.mxu1  ;;  %9534 = vrsqrt.f32 %v5819_v1  ;;  %v5651_v21 = vld [vmem:[%s18064_s3 + $0x58] sm:$0xff]  ;;  %9434 = vmatprep.mubr.msk.f32.mxu1 %vm524_vm1, %v377_v44  ;;  %9266 = vmatprep.mubr.msk.f32.mxu0 %vm524_vm1, %v377_v44  ;;  %v1401_v1 = vpop.f32.mrf.mxu0 }
 0x74d   :  { %2750 = vmatmul.mubr.f32.gmra.mxu1 %v376_v18  ;;  %1658 = vmatmul.mubr.f32.gmra.mxu0 %v376_v18 }
 0x74e   :  { %v2718_v37 = vpop.f32.mrf.mxu1 }
 0x758   :  { %4998 = vadd.xlane.f32.xlu1 %v4997_v42  ;;  %v9533_v31 = vpop.eup %9532  ;;  %v379_v42 = vld [vmem:[%s18063_s2 + $0x5f8] sm:$0xff] }
 0x759   :  { %v6154_v7 = vmul.f32 %v9533_v31, %v5650_v51  ;;  %v9535_v0 = vpop.eup %9534  ;;  %9435 = vmatprep.mubr.msk.f32.mxu1 %vm524_vm1, %v379_v42  ;;  %9267 = vmatprep.mubr.msk.f32.mxu0 %vm524_vm1, %v379_v42 }
 0x75a   :  { %v6155_v60 = vmul.f32 %v9535_v0, %v5651_v21 }
 0x75b   :  { %5002 = vadd.xlane.f32.xlu0 %v5001_v25 }
 0x769   :  { %3700 = vperm.xlu1 %9510, %v3202_v62  }
 0x76d   :  { %6364 = vperm.xlu1 %9510, %v6154_v7  }
 0x76f   :  { %v12769_v22 = vpop.xlane.xlu1 %4982 }
 0x771   :  { %3705 = vperm.xlu0 %9511, %v3203_v48  }
 0x772   :  { %v12785_v29 = vpop.xlane.xlu0 %4986 }
 0x773   :  { %v12774_v14 = vpop.permute.xlu1 %3680 }
 0x775   :  { %6369 = vperm.xlu0 %9511, %v6155_v60  }
 0x777   :  { %v6345_v32 = vpop.permute.xlu1 %6344 }
 0x778   :  { %v7164_v25 = vmul.f32 %v6345_v32, %v11580_v35  ;;  %v7165_v43 = vmul.f32 %v6345_v32, %v11574_v34  ;;  %v1403_v34 = vpop.f32.mrf.mxu0 }
 0x77a   :  { %v8508_v37 = vadd.f32 %v11287_v17, %v7164_v25  ;;  %v8509_v62 = vadd.f32 %v11287_v17, %v7165_v43  ;;  %v12795_v31 = vpop.permute.xlu0 %3685  ;;  %v1407_v48 = vpop.f32.mrf.mxu0  ;;  %v18679_v25 = vld [vmem:[#allocation126_spill] sm:$0xff] }
 0x77b   :  { %v12830_v18 = vsub.f32 %v1407_v48, %v12369_v19  ;;  %v5484_v43 = vmul.f32 0.0051020407, %v18679_v25  ;;  %v3205_v25 = vmul.f32 0.0051020407, %v12680_v39  ;;  %v380_v39 = vld [vmem:[%s18063_s2 + $0x600] sm:$0xff] }
 0x77c   :  { %8844 = vst [vmem:[%s18065_s5 + $0x60] sm:$0xff] %v8508_v37  ;;  %8845 = vst.msk [vmem:[%s18065_s5 + $0x68] sm:$0xff] %vm2102_vm0, %v8509_v62  ;;  %v1409_v21 = vpop.f32.mrf.mxu0 }
 0x77d   :  { %v12825_v60 = vsub.f32 %v1409_v21, %v12369_v19  ;;  %18678 = vst [vmem:[#allocation183_spill] sm:$0xff] %v12830_v18  ;;  %v4568_v37 = vmul.f32 %v12830_v18, %v12830_v18  ;;  %v3204_v21 = vmul.f32 0.0051020407, %v12668_v58  ;;  %v3206_v18 = vmul.f32 0.0051020407, %v12756_v46 }
 0x77e   :  { %v6350_v35 = vpop.permute.xlu0 %6349 }
 0x77f   :  { %v7166_v51 = vmul.f32 %v6350_v35, %v11612_v27  ;;  %v7167_v7 = vmul.f32 %v6350_v35, %v11610_v50  ;;  %v378_v27 = vld [vmem:[%s18063_s2 + $0x5f0] sm:$0xff]  ;;  %v12819_v50 = vsub.f32 %v1403_v34, %v12328_v47  ;;  %18677 = vst [vmem:[#allocation182_spill] sm:$0xff] %v12825_v60  ;;  %v4569_v32 = vmul.f32 %v12825_v60, %v12825_v60 }
 0x780   :  { %2755 = vmatmul.mubr.f32.gmra.mxu1 %v378_v27  ;;  %1664 = vmatmul.mubr.f32.gmra.mxu0 %v378_v27  ;;  %v5820_v35 = vadd.f32 0.001, %v5484_v43 }
 0x781   :  { %v8510_v17 = vadd.f32 %v11301_v12, %v7166_v51  ;;  %v8511_v0 = vadd.f32 %v11301_v12, %v7167_v7  ;;  %18675 = vst [vmem:[#allocation180_spill] sm:$0xff] %v12819_v50  ;;  %v12822_v12 = vsub.f32 %v1401_v1, %v12328_v47  ;;  %v4567_v44 = vmul.f32 %v12819_v50, %v12819_v50  ;;  %v12838_v1 = vpop.f32.mrf.mxu1  ;;  %v18680_v7 = vld [vmem:[#allocation132_spill] sm:$0xff] }
 0x782   :  { %v5008_v19 = vsel %vm2102_vm0, %v4569_v32, 0.0  ;;  %9536 = vrsqrt.f32 %v5820_v35  ;;  %v5485_v48 = vmul.f32 0.0051020407, %v18680_v7  ;;  %v18681_v7 = vld [vmem:[#allocation64_spill] sm:$0xff]  ;;  %v3208_v3 = vmul.f32 0.0051020407, %v12838_v1 }
 0x783   :  { %8846 = vst [vmem:[%s18065_s5 + $0x70] sm:$0xff] %v8510_v17  ;;  %8847 = vst.msk [vmem:[%s18065_s5 + $0x78] sm:$0xff] %vm2102_vm0, %v8511_v0  ;;  %v4566_v42 = vmul.f32 %v12822_v12, %v12822_v12  ;;  %v5004_v47 = vsel %vm2102_vm0, %v4567_v44, 0.0  ;;  %v2723_v62 = vpop.f32.mrf.mxu1  ;;  %v5009_v51 = vadd.f32 %v5008_v19, %v4568_v37  ;;  %v5653_v37 = vld [vmem:[%s18064_s3 + $0x68] sm:$0xff]  ;;  %v383_v19 = vld [vmem:[%s18063_s2 + $0x618] sm:$0xff] }
 0x784   :  { %18676 = vst [vmem:[#allocation181_spill] sm:$0xff] %v12822_v12  ;;  %v5821_v17 = vadd.f32 0.001, %v5485_v48 }
 0x785   :  { %v5005_v34 = vadd.f32 %v5004_v47, %v4566_v42  ;;  %v12844_v0 = vpop.f32.mrf.mxu1  ;;  %v5652_v42 = vld [vmem:[%s18064_s3 + $0x60] sm:$0xff] }
 0x786   :  { %9538 = vrsqrt.f32 %v5821_v17  ;;  %v18682_v17 = vld [vmem:[#allocation63_spill] sm:$0xff] }
 0x787   :  { %v2728_v27 = vpop.f32.mrf.mxu1 }
 0x78f   :  { %v9537_v44 = vpop.eup %9536 }
 0x790   :  { %v6156_v32 = vmul.f32 %v9537_v44, %v5652_v42  ;;  %v18683_v44 = vld [vmem:[#allocation2_spill] sm:$0xff] }
 0x791   :  { %5006 = vadd.xlane.f32.xlu1 %v5005_v34  ;;  %v381_v34 = vld [vmem:[%s18063_s2 + $0x608] sm:$0xff] }
 0x792   :  { %9436 = vmatprep.mubr.msk.f32.mxu1 %vm524_vm1, %v381_v34  ;;  %9268 = vmatprep.mubr.msk.f32.mxu0 %vm524_vm1, %v381_v34 }
 0x793   :  { %v9539_v47 = vpop.eup %9538  ;;  %2760 = vmatmul.mubr.f32.gmra.mxu1 %v380_v39  ;;  %1670 = vmatmul.mubr.f32.gmra.mxu0 %v380_v39  ;;  %v18685_v39 = vld [vmem:[#allocation65_spill] sm:$0xff] }
 0x794   :  { %5010 = vadd.xlane.f32.xlu0 %v5009_v51  ;;  %v6157_v58 = vmul.f32 %v9539_v47, %v5653_v37  ;;  %9437 = vmatprep.mubr.msk.f32.mxu1 %vm524_vm1, %v383_v19 }
 0x795   :  { %9269 = vmatprep.mubr.msk.f32.mxu0 %vm524_vm1, %v383_v19 }
 0x7a2   :  { %3710 = vperm.xlu1 %9510, %v3204_v21   ;;  %v1413_v21 = vpop.f32.mrf.mxu0 }
 0x7a4   :  { %v1415_v47 = vpop.f32.mrf.mxu0 }
 0x7a6   :  { %6374 = vperm.xlu1 %9510, %v6156_v32  }
 0x7a8   :  { %v12851_v43 = vpop.xlane.xlu1 %4990 }
 0x7aa   :  { %3715 = vperm.xlu0 %9511, %v3205_v25  }
 0x7ab   :  { %v12867_v35 = vpop.xlane.xlu0 %4994 }
 0x7ac   :  { %v12856_v62 = vpop.permute.xlu1 %3690 }
 0x7ae   :  { %6379 = vperm.xlu0 %9511, %v6157_v58   ;;  %v18684_v58 = vld [vmem:[#allocation66_spill] sm:$0xff] }
 0x7b0   :  { %v6355_v51 = vpop.permute.xlu1 %6354 }
 0x7b1   :  { %v7168_v48 = vmul.f32 %v6355_v51, %v18681_v7  ;;  %v7169_v27 = vmul.f32 %v6355_v51, %v18682_v17  ;;  %v1419_v51 = vpop.f32.mrf.mxu0  ;;  %v18686_v7 = vld [vmem:[#allocation4_spill] sm:$0xff] }
 0x7b3   :  { %v8512_v42 = vadd.f32 %v18683_v44, %v7168_v48  ;;  %v8513_v32 = vadd.f32 %v18683_v44, %v7169_v27  ;;  %v12877_v25 = vpop.permute.xlu0 %3695  ;;  %v382_v27 = vld [vmem:[%s18063_s2 + $0x610] sm:$0xff] }
 0x7b4   :  { %v18687_v44 = vld [vmem:[#allocation136_spill] sm:$0xff]  ;;  %2765 = vmatmul.mubr.f32.gmra.mxu1 %v382_v27  ;;  %1676 = vmatmul.mubr.f32.gmra.mxu0 %v382_v27 }
 0x7b5   :  { %8848 = vst [vmem:[%s18065_s5 + $0x80] sm:$0xff] %v8512_v42  ;;  %8849 = vst.msk [vmem:[%s18065_s5 + $0x88] sm:$0xff] %vm2102_vm0, %v8513_v32  ;;  %v12901_v42 = vsub.f32 %v1415_v47, %v18687_v44  ;;  %v1421_v32 = vpop.f32.mrf.mxu0 }
 0x7b7   :  { %v6360_v37 = vpop.permute.xlu0 %6359  ;;  %18688 = vst [vmem:[#allocation126_spill] sm:$0xff] %v12901_v42 }
 0x7b8   :  { %v7170_v34 = vmul.f32 %v6360_v37, %v18684_v58  ;;  %v7171_v19 = vmul.f32 %v6360_v37, %v18685_v39  ;;  %v12904_v37 = vsub.f32 %v1413_v21, %v18687_v44  ;;  %v12907_v58 = vsub.f32 %v1421_v32, %v12401_v41 }
 0x7b9   :  { %v12912_v39 = vsub.f32 %v1419_v51, %v12401_v41 }
 0x7ba   :  { %v8514_v48 = vadd.f32 %v18686_v7, %v7170_v34  ;;  %v8515_v17 = vadd.f32 %v18686_v7, %v7171_v19  ;;  %18689 = vst [vmem:[#allocation132_spill] sm:$0xff] %v12904_v37  ;;  %18690 = vst [vmem:[#allocation64_spill] sm:$0xff] %v12907_v58  ;;  %v4571_v34 = vmul.f32 %v12901_v42, %v12901_v42  ;;  %v18692_v7 = vld [vmem:[#allocation129_spill] sm:$0xff] }
 0x7bb   :  { %18691 = vst [vmem:[#allocation63_spill] sm:$0xff] %v12912_v39  ;;  %v4570_v19 = vmul.f32 %v12904_v37, %v12904_v37  ;;  %v4573_v47 = vmul.f32 %v12907_v58, %v12907_v58  ;;  %v4572_v27 = vmul.f32 %v12912_v39, %v12912_v39  ;;  %v18693_v37 = vld [vmem:[#allocation134_spill] sm:$0xff] }
 0x7bc   :  { %8850 = vst [vmem:[%s18065_s5 + $0x90] sm:$0xff] %v8514_v48  ;;  %8851 = vst.msk [vmem:[%s18065_s5 + $0x98] sm:$0xff] %vm2102_vm0, %v8515_v17  ;;  %v5486_v48 = vmul.f32 0.0051020407, %v18692_v7  ;;  %v5012_v21 = vsel %vm2102_vm0, %v4571_v34, 0.0  ;;  %v12920_v17 = vpop.f32.mrf.mxu1 }
 0x7bd   :  { %v5013_v32 = vadd.f32 %v5012_v21, %v4570_v19  ;;  %v5016_v41 = vsel %vm2102_vm0, %v4573_v47, 0.0  ;;  %v5487_v60 = vmul.f32 0.0051020407, %v18693_v37  ;;  %v5654_v19 = vld [vmem:[%s18064_s3 + $0x70] sm:$0xff]  ;;  %v3210_v20 = vmul.f32 0.0051020407, %v12920_v17 }
 0x7be   :  { %v2733_v44 = vpop.f32.mrf.mxu1  ;;  %v5822_v51 = vadd.f32 0.001, %v5486_v48  ;;  %v5017_v42 = vadd.f32 %v5016_v41, %v4572_v27  ;;  %v3207_v48 = vmul.f32 0.0051020407, %v12762_v6  ;;  %v384_v6 = vld [vmem:[%s18063_s2 + $0x620] sm:$0xff]  ;;  %v18695_v41 = vld [vmem:[#allocation67_spill] sm:$0xff] }
 0x7bf   :  { %v5823_v58 = vadd.f32 0.001, %v5487_v60  ;;  %v5655_v60 = vld [vmem:[%s18064_s3 + $0x78] sm:$0xff]  ;;  %v18694_v44 = vld [vmem:[#allocation68_spill] sm:$0xff] }
 0x7c0   :  { %9540 = vrsqrt.f32 %v5822_v51 }
 0x7c1   :  { %9542 = vrsqrt.f32 %v5823_v58 }
 0x7ca   :  { %5014 = vadd.xlane.f32.xlu1 %v5013_v32 }
 0x7cd   :  { %5018 = vadd.xlane.f32.xlu0 %v5017_v42  ;;  %v9541_v50 = vpop.eup %9540 }
 0x7ce   :  { %v12926_v7 = vpop.f32.mrf.mxu1  ;;  %v6158_v47 = vmul.f32 %v9541_v50, %v5654_v19  ;;  %v9543_v42 = vpop.eup %9542  ;;  %v387_v50 = vld [vmem:[%s18063_s2 + $0x638] sm:$0xff]  ;;  %v18696_v19 = vld [vmem:[#allocation3_spill] sm:$0xff] }
 0x7cf   :  { %v6159_v46 = vmul.f32 %v9543_v42, %v5655_v60 }
 0x7d0   :  { %v2738_v34 = vpop.f32.mrf.mxu1 }
 0x7d1   :  { %v1425_v34 = vpop.f32.mrf.mxu0 }
 0x7d3   :  { %v1427_v60 = vpop.f32.mrf.mxu0 }
 0x7db   :  { %3720 = vperm.xlu1 %9510, %v3206_v18   ;;  %v385_v18 = vld [vmem:[%s18063_s2 + $0x628] sm:$0xff] }
 0x7dc   :  { %9438 = vmatprep.mubr.msk.f32.mxu1 %vm524_vm1, %v385_v18  ;;  %9270 = vmatprep.mubr.msk.f32.mxu0 %vm524_vm1, %v385_v18  ;;  %v18697_v18 = vld [vmem:[#allocation70_spill] sm:$0xff] }
 0x7dd   :  { %2770 = vmatmul.mubr.f32.gmra.mxu1 %v384_v6  ;;  %1682 = vmatmul.mubr.f32.gmra.mxu0 %v384_v6 }
 0x7de   :  { %9439 = vmatprep.mubr.msk.f32.mxu1 %vm524_vm1, %v387_v50  ;;  %9271 = vmatprep.mubr.msk.f32.mxu0 %vm524_vm1, %v387_v50  ;;  %v18698_v50 = vld [vmem:[#allocation69_spill] sm:$0xff] }
 0x7df   :  { %6384 = vperm.xlu1 %9510, %v6158_v47  }
 0x7e1   :  { %v12933_v21 = vpop.xlane.xlu1 %4998 }
 0x7e3   :  { %3725 = vperm.xlu0 %9511, %v3207_v48  }
 0x7e4   :  { %v12949_v58 = vpop.xlane.xlu0 %5002 }
 0x7e5   :  { %v12938_v37 = vpop.permute.xlu1 %3700 }
 0x7e7   :  { %6389 = vperm.xlu0 %9511, %v6159_v46  }
 0x7e9   :  { %v6365_v27 = vpop.permute.xlu1 %6364 }
 0x7ea   :  { %v7172_v32 = vmul.f32 %v6365_v27, %v18694_v44  ;;  %v7173_v51 = vmul.f32 %v6365_v27, %v18695_v41  ;;  %v1431_v44 = vpop.f32.mrf.mxu0 }
 0x7ec   :  { %v8516_v47 = vadd.f32 %v18696_v19, %v7172_v32  ;;  %v8517_v48 = vadd.f32 %v18696_v19, %v7173_v51  ;;  %v12959_v42 = vpop.permute.xlu0 %3705  ;;  %v18699_v32 = vld [vmem:[#allocation6_spill] sm:$0xff]  ;;  %v386_v19 = vld [vmem:[%s18063_s2 + $0x630] sm:$0xff] }
 0x7ed   :  { %2775 = vmatmul.mubr.f32.gmra.mxu1 %v386_v19  ;;  %1688 = vmatmul.mubr.f32.gmra.mxu0 %v386_v19  ;;  %v13002_v19 = vpop.f32.mrf.mxu1 }
 0x7ee   :  { %8852 = vst [vmem:[%s18065_s5 + $0xa0] sm:$0xff] %v8516_v47  ;;  %8853 = vst.msk [vmem:[%s18065_s5 + $0xa8] sm:$0xff] %vm2102_vm0, %v8517_v48  ;;  %v18700_v47 = vld [vmem:[#allocation139_spill] sm:$0xff]  ;;  %v3212_v11 = vmul.f32 0.0051020407, %v13002_v19 }
 0x7ef   :  { %v12983_v48 = vsub.f32 %v1427_v60, %v18700_v47 }
 0x7f0   :  { %v6370_v46 = vpop.permute.xlu0 %6369 }
 0x7f1   :  { %v7174_v6 = vmul.f32 %v6370_v46, %v18697_v18  ;;  %v7175_v27 = vmul.f32 %v6370_v46, %v18698_v50  ;;  %18701 = vst [vmem:[#allocation2_spill] sm:$0xff] %v12983_v48  ;;  %v1433_v46 = vpop.f32.mrf.mxu0  ;;  %v12986_v18 = vsub.f32 %v1425_v34, %v18700_v47  ;;  %v4575_v50 = vmul.f32 %v12983_v48, %v12983_v48 }
 0x7f3   :  { %v8518_v41 = vadd.f32 %v18699_v32, %v7174_v6  ;;  %v8519_v51 = vadd.f32 %v18699_v32, %v7175_v27  ;;  %18702 = vst [vmem:[#allocation66_spill] sm:$0xff] %v12986_v18  ;;  %v12989_v6 = vsub.f32 %v1433_v46, %v12416_v55  ;;  %v12994_v27 = vsub.f32 %v1431_v44, %v12416_v55  ;;  %v2743_v46 = vpop.f32.mrf.mxu1 }
 0x7f4   :  { %v4574_v32 = vmul.f32 %v12986_v18, %v12986_v18  ;;  %v5020_v34 = vsel %vm2102_vm0, %v4575_v50, 0.0  ;;  %v18706_v18 = vld [vmem:[#allocation137_spill] sm:$0xff] }
 0x7f5   :  { %8854 = vst [vmem:[%s18065_s5 + $0xb0] sm:$0xff] %v8518_v41  ;;  %8855 = vst.msk [vmem:[%s18065_s5 + $0xb8] sm:$0xff] %vm2102_vm0, %v8519_v51  ;;  %v4577_v60 = vmul.f32 %v12989_v6, %v12989_v6  ;;  %v18705_v41 = vld [vmem:[#allocation131_spill] sm:$0xff]  ;;  %v4576_v47 = vmul.f32 %v12994_v27, %v12994_v27  ;;  %v5489_v12 = vmul.f32 0.0051020407, %v18706_v18 }
 0x7f6   :  { %18703 = vst [vmem:[#allocation65_spill] sm:$0xff] %v12989_v6  ;;  %18704 = vst [vmem:[#allocation4_spill] sm:$0xff] %v12994_v27  ;;  %v5488_v51 = vmul.f32 0.0051020407, %v18705_v41  ;;  %v5021_v48 = vadd.f32 %v5020_v34, %v4574_v32  ;;  %v5656_v32 = vld [vmem:[%s18064_s3 + $0x80] sm:$0xff] }
 0x7f7   :  { %v5024_v55 = vsel %vm2102_vm0, %v4577_v60, 0.0  ;;  %v5825_v6 = vadd.f32 0.001, %v5489_v12  ;;  %v5657_v12 = vld [vmem:[%s18064_s3 + $0x88] sm:$0xff] }
 0x7f8   :  { %v5824_v44 = vadd.f32 0.001, %v5488_v51  ;;  %v5025_v39 = vadd.f32 %v5024_v55, %v4576_v47  ;;  %v18708_v47 = vld [vmem:[#allocation72_spill] sm:$0xff]  ;;  %v18709_v55 = vld [vmem:[#allocation71_spill] sm:$0xff] }
 0x7fa   :  { %9544 = vrsqrt.f32 %v5824_v44 }
 0x7fb   :  { %9546 = vrsqrt.f32 %v5825_v6 }
 0x803   :  { %5022 = vadd.xlane.f32.xlu1 %v5021_v48  ;;  %v3209_v48 = vmul.f32 0.0051020407, %v12844_v0  ;;  %v391_v0 = vld [vmem:[%s18063_s2 + $0x658] sm:$0xff] }
 0x806   :  { %5026 = vadd.xlane.f32.xlu0 %v5025_v39 }
 0x807   :  { %v13008_v41 = vpop.f32.mrf.mxu1  ;;  %v9545_v40 = vpop.eup %9544 }
 0x808   :  { %v6160_v60 = vmul.f32 %v9545_v40, %v5656_v32  ;;  %v9547_v39 = vpop.eup %9546  ;;  %v388_v40 = vld [vmem:[%s18063_s2 + $0x640] sm:$0xff]  ;;  %v18710_v32 = vld [vmem:[#allocation5_spill] sm:$0xff] }
 0x809   :  { %v2748_v50 = vpop.f32.mrf.mxu1  ;;  %v6161_v1 = vmul.f32 %v9547_v39, %v5657_v12 }
 0x80a   :  { %v1437_v50 = vpop.f32.mrf.mxu0 }
 0x80c   :  { %v1439_v12 = vpop.f32.mrf.mxu0 }
 0x814   :  { %3730 = vperm.xlu1 %9510, %v3208_v3   ;;  %v389_v3 = vld [vmem:[%s18063_s2 + $0x648] sm:$0xff] }
 0x815   :  { %9440 = vmatprep.mubr.msk.f32.mxu1 %vm524_vm1, %v389_v3  ;;  %9272 = vmatprep.mubr.msk.f32.mxu0 %vm524_vm1, %v389_v3  ;;  %v18711_v3 = vld [vmem:[#allocation74_spill] sm:$0xff] }
 0x816   :  { %2780 = vmatmul.mubr.f32.gmra.mxu1 %v388_v40  ;;  %1694 = vmatmul.mubr.f32.gmra.mxu0 %v388_v40 }
 0x817   :  { %9441 = vmatprep.mubr.msk.f32.mxu1 %vm524_vm1, %v391_v0  ;;  %9273 = vmatprep.mubr.msk.f32.mxu0 %vm524_vm1, %v391_v0  ;;  %v18712_v0 = vld [vmem:[#allocation73_spill] sm:$0xff] }
 0x818   :  { %6394 = vperm.xlu1 %9510, %v6160_v60  }
 0x81a   :  { %v13015_v51 = vpop.xlane.xlu1 %5006 }
 0x81c   :  { %3735 = vperm.xlu0 %9511, %v3209_v48  }
 0x81d   :  { %v13031_v6 = vpop.xlane.xlu0 %5010 }
 0x81e   :  { %v13020_v18 = vpop.permute.xlu1 %3710  ;;  %18707 = vst [vmem:[#allocation136_spill] sm:$0xff] %v13031_v6 }
 0x820   :  { %6399 = vperm.xlu0 %9511, %v6161_v1  }
 0x822   :  { %v6375_v34 = vpop.permute.xlu1 %6374 }
 0x823   :  { %v7176_v46 = vmul.f32 %v6375_v34, %v18708_v47  ;;  %v7177_v44 = vmul.f32 %v6375_v34, %v18709_v55  ;;  %v1443_v47 = vpop.f32.mrf.mxu0 }
 0x825   :  { %v8520_v60 = vadd.f32 %v18710_v32, %v7176_v46  ;;  %v8521_v48 = vadd.f32 %v18710_v32, %v7177_v44  ;;  %v13041_v39 = vpop.permute.xlu0 %3715  ;;  %v18713_v46 = vld [vmem:[#allocation8_spill] sm:$0xff] }
 0x826   :  { %v390_v32 = vld [vmem:[%s18063_s2 + $0x650] sm:$0xff] }
 0x827   :  { %8856 = vst [vmem:[%s18065_s5 + $0xc0] sm:$0xff] %v8520_v60  ;;  %8857 = vst.msk [vmem:[%s18065_s5 + $0xc8] sm:$0xff] %vm2102_vm0, %v8521_v48  ;;  %v18714_v60 = vld [vmem:[#allocation142_spill] sm:$0xff]  ;;  %2785 = vmatmul.mubr.f32.gmra.mxu1 %v390_v32  ;;  %1700 = vmatmul.mubr.f32.gmra.mxu0 %v390_v32  ;;  %v13084_v32 = vpop.f32.mrf.mxu1 }
 0x828   :  { %v13065_v48 = vsub.f32 %v1439_v12, %v18714_v60 }
 0x829   :  { %v6380_v1 = vpop.permute.xlu0 %6379 }
 0x82a   :  { %v7178_v40 = vmul.f32 %v6380_v1, %v18711_v3  ;;  %v7179_v34 = vmul.f32 %v6380_v1, %v18712_v0  ;;  %18715 = vst [vmem:[#allocation129_spill] sm:$0xff] %v13065_v48  ;;  %v1445_v1 = vpop.f32.mrf.mxu0  ;;  %v13068_v3 = vsub.f32 %v1437_v50, %v18714_v60  ;;  %v4579_v0 = vmul.f32 %v13065_v48, %v13065_v48 }
 0x82c   :  { %v8522_v55 = vadd.f32 %v18713_v46, %v7178_v40  ;;  %v8523_v44 = vadd.f32 %v18713_v46, %v7179_v34  ;;  %18716 = vst [vmem:[#allocation134_spill] sm:$0xff] %v13068_v3  ;;  %v13071_v40 = vsub.f32 %v1445_v1, %v12429_v38  ;;  %v13076_v34 = vsub.f32 %v1443_v47, %v12429_v38  ;;  %v2753_v1 = vpop.f32.mrf.mxu1 }
 0x82d   :  { %v4578_v46 = vmul.f32 %v13068_v3, %v13068_v3  ;;  %v5028_v50 = vsel %vm2102_vm0, %v4579_v0, 0.0  ;;  %v18720_v3 = vld [vmem:[#allocation141_spill] sm:$0xff] }
 0x82e   :  { %8858 = vst [vmem:[%s18065_s5 + $0xd0] sm:$0xff] %v8522_v55  ;;  %8859 = vst.msk [vmem:[%s18065_s5 + $0xd8] sm:$0xff] %vm2102_vm0, %v8523_v44  ;;  %v4581_v12 = vmul.f32 %v13071_v40, %v13071_v40  ;;  %v18719_v55 = vld [vmem:[#allocation133_spill] sm:$0xff]  ;;  %v4580_v60 = vmul.f32 %v13076_v34, %v13076_v34  ;;  %v5491_v5 = vmul.f32 0.0051020407, %v18720_v3 }
 0x82f   :  { %18717 = vst [vmem:[#allocation68_spill] sm:$0xff] %v13071_v40  ;;  %18718 = vst [vmem:[#allocation67_spill] sm:$0xff] %v13076_v34  ;;  %v5490_v44 = vmul.f32 0.0051020407, %v18719_v55  ;;  %v5029_v48 = vadd.f32 %v5028_v50, %v4578_v46  ;;  %v5658_v46 = vld [vmem:[%s18064_s3 + $0x90] sm:$0xff] }
 0x830   :  { %v5032_v38 = vsel %vm2102_vm0, %v4581_v12, 0.0  ;;  %v5827_v40 = vadd.f32 0.001, %v5491_v5  ;;  %v5659_v5 = vld [vmem:[%s18064_s3 + $0x98] sm:$0xff] }
 0x831   :  { %v5826_v47 = vadd.f32 0.001, %v5490_v44  ;;  %v5033_v27 = vadd.f32 %v5032_v38, %v4580_v60  ;;  %v18723_v60 = vld [vmem:[#allocation76_spill] sm:$0xff]  ;;  %v18724_v38 = vld [vmem:[#allocation75_spill] sm:$0xff] }
 0x833   :  { %9548 = vrsqrt.f32 %v5826_v47 }
 0x834   :  { %9550 = vrsqrt.f32 %v5827_v40 }
 0x83c   :  { %5030 = vadd.xlane.f32.xlu1 %v5029_v48  ;;  %v3211_v48 = vmul.f32 0.0051020407, %v12926_v7  ;;  %v395_v7 = vld [vmem:[%s18063_s2 + $0x678] sm:$0xff] }
 0x83f   :  { %5034 = vadd.xlane.f32.xlu0 %v5033_v27 }
 0x840   :  { %v13090_v55 = vpop.f32.mrf.mxu1  ;;  %v9549_v2 = vpop.eup %9548 }
 0x841   :  { %v6162_v12 = vmul.f32 %v9549_v2, %v5658_v46  ;;  %v9551_v27 = vpop.eup %9550  ;;  %v392_v2 = vld [vmem:[%s18063_s2 + $0x660] sm:$0xff]  ;;  %v18725_v46 = vld [vmem:[#allocation7_spill] sm:$0xff] }
 0x842   :  { %v2758_v0 = vpop.f32.mrf.mxu1  ;;  %v6163_v17 = vmul.f32 %v9551_v27, %v5659_v5 }
 0x843   :  { %v1449_v0 = vpop.f32.mrf.mxu0 }
 0x845   :  { %v1451_v5 = vpop.f32.mrf.mxu0 }
 0x84d   :  { %3740 = vperm.xlu1 %9510, %v3210_v20   ;;  %v393_v20 = vld [vmem:[%s18063_s2 + $0x668] sm:$0xff] }
 0x84e   :  { %9442 = vmatprep.mubr.msk.f32.mxu1 %vm524_vm1, %v393_v20  ;;  %9274 = vmatprep.mubr.msk.f32.mxu0 %vm524_vm1, %v393_v20  ;;  %v18726_v20 = vld [vmem:[#allocation78_spill] sm:$0xff] }
 0x84f   :  { %2790 = vmatmul.mubr.f32.gmra.mxu1 %v392_v2  ;;  %1706 = vmatmul.mubr.f32.gmra.mxu0 %v392_v2 }
 0x850   :  { %9443 = vmatprep.mubr.msk.f32.mxu1 %vm524_vm1, %v395_v7  ;;  %9275 = vmatprep.mubr.msk.f32.mxu0 %vm524_vm1, %v395_v7  ;;  %v18727_v7 = vld [vmem:[#allocation77_spill] sm:$0xff] }
 0x851   :  { %6404 = vperm.xlu1 %9510, %v6162_v12  }
 0x853   :  { %v13097_v44 = vpop.xlane.xlu1 %5014 }
 0x854   :  { %18721 = vst [vmem:[#allocation3_spill] sm:$0xff] %v13097_v44 }
 0x855   :  { %3745 = vperm.xlu0 %9511, %v3211_v48  }
 0x856   :  { %v13113_v40 = vpop.xlane.xlu0 %5018 }
 0x857   :  { %v13102_v3 = vpop.permute.xlu1 %3720  ;;  %18722 = vst [vmem:[#allocation70_spill] sm:$0xff] %v13113_v40 }
 0x859   :  { %6409 = vperm.xlu0 %9511, %v6163_v17  }
 0x85b   :  { %v6385_v50 = vpop.permute.xlu1 %6384 }
 0x85c   :  { %v7180_v1 = vmul.f32 %v6385_v50, %v18723_v60  ;;  %v7181_v47 = vmul.f32 %v6385_v50, %v18724_v38  ;;  %v1455_v60 = vpop.f32.mrf.mxu0 }
 0x85e   :  { %v8524_v12 = vadd.f32 %v18725_v46, %v7180_v1  ;;  %v8525_v48 = vadd.f32 %v18725_v46, %v7181_v47  ;;  %v13123_v27 = vpop.permute.xlu0 %3725  ;;  %v18728_v1 = vld [vmem:[#allocation10_spill] sm:$0xff]  ;;  %v394_v46 = vld [vmem:[%s18063_s2 + $0x670] sm:$0xff] }
 0x85f   :  { %2795 = vmatmul.mubr.f32.gmra.mxu1 %v394_v46  ;;  %1712 = vmatmul.mubr.f32.gmra.mxu0 %v394_v46  ;;  %v13166_v46 = vpop.f32.mrf.mxu1 }
 0x860   :  { %8860 = vst [vmem:[%s18065_s5 + $0xe0] sm:$0xff] %v8524_v12  ;;  %8861 = vst.msk [vmem:[%s18065_s5 + $0xe8] sm:$0xff] %vm2102_vm0, %v8525_v48  ;;  %v18729_v12 = vld [vmem:[#allocation148_spill] sm:$0xff] }
 0x861   :  { %v13147_v48 = vsub.f32 %v1451_v5, %v18729_v12 }
 0x862   :  { %v6390_v17 = vpop.permute.xlu0 %6389 }
 0x863   :  { %v7182_v2 = vmul.f32 %v6390_v17, %v18726_v20  ;;  %v7183_v50 = vmul.f32 %v6390_v17, %v18727_v7  ;;  %18730 = vst [vmem:[#allocation69_spill] sm:$0xff] %v13147_v48  ;;  %v1457_v17 = vpop.f32.mrf.mxu0  ;;  %v13150_v20 = vsub.f32 %v1449_v0, %v18729_v12  ;;  %v4583_v7 = vmul.f32 %v13147_v48, %v13147_v48 }
 0x865   :  { %v8526_v38 = vadd.f32 %v18728_v1, %v7182_v2  ;;  %v8527_v47 = vadd.f32 %v18728_v1, %v7183_v50  ;;  %18731 = vst [vmem:[#allocation6_spill] sm:$0xff] %v13150_v20  ;;  %v13153_v2 = vsub.f32 %v1457_v17, %v12444_v53  ;;  %v13158_v50 = vsub.f32 %v1455_v60, %v12444_v53  ;;  %v2763_v17 = vpop.f32.mrf.mxu1 }
 0x866   :  { %v4582_v1 = vmul.f32 %v13150_v20, %v13150_v20  ;;  %v5036_v0 = vsel %vm2102_vm0, %v4583_v7, 0.0  ;;  %v18735_v20 = vld [vmem:[#allocation145_spill] sm:$0xff] }
 0x867   :  { %8862 = vst [vmem:[%s18065_s5 + $0xf0] sm:$0xff] %v8526_v38  ;;  %8863 = vst.msk [vmem:[%s18065_s5 + $0xf8] sm:$0xff] %vm2102_vm0, %v8527_v47  ;;  %v4585_v5 = vmul.f32 %v13153_v2, %v13153_v2  ;;  %v18734_v38 = vld [vmem:[#allocation135_spill] sm:$0xff]  ;;  %v4584_v12 = vmul.f32 %v13158_v50, %v13158_v50  ;;  %v5493_v40 = vmul.f32 0.0051020407, %v18735_v20 }
 0x868   :  { %18732 = vst [vmem:[#allocation139_spill] sm:$0xff] %v13153_v2  ;;  %18733 = vst [vmem:[#allocation131_spill] sm:$0xff] %v13158_v50  ;;  %v5492_v47 = vmul.f32 0.0051020407, %v18734_v38  ;;  %v5037_v48 = vadd.f32 %v5036_v0, %v4582_v1  ;;  %v5660_v1 = vld [vmem:[%s18064_s3 + $0xa0] sm:$0xff] }
 0x869   :  { %v5040_v53 = vsel %vm2102_vm0, %v4585_v5, 0.0  ;;  %v5829_v2 = vadd.f32 0.001, %v5493_v40  ;;  %v5661_v40 = vld [vmem:[%s18064_s3 + $0xa8] sm:$0xff] }
 0x86a   :  { %v5828_v60 = vadd.f32 0.001, %v5492_v47  ;;  %v5041_v34 = vadd.f32 %v5040_v53, %v4584_v12  ;;  %v18738_v12 = vld [vmem:[#allocation80_spill] sm:$0xff]  ;;  %v18739_v53 = vld [vmem:[#allocation79_spill] sm:$0xff] }
 0x86c   :  { %9552 = vrsqrt.f32 %v5828_v60 }
 0x86d   :  { %9554 = vrsqrt.f32 %v5829_v2 }
 0x874   :  { %v13172_v38 = vpop.f32.mrf.mxu1 }
 0x875   :  { %5038 = vadd.xlane.f32.xlu1 %v5037_v48  ;;  %v3213_v48 = vmul.f32 0.0051020407, %v13008_v41  ;;  %v396_v41 = vld [vmem:[%s18063_s2 + $0x680] sm:$0xff] }
 0x876   :  { %v2768_v7 = vpop.f32.mrf.mxu1 }
 0x877   :  { %v1461_v7 = vpop.f32.mrf.mxu0 }
 0x878   :  { %5042 = vadd.xlane.f32.xlu0 %v5041_v34 }
 0x879   :  { %v9553_v44 = vpop.eup %9552 }
 0x87a   :  { %v6164_v5 = vmul.f32 %v9553_v44, %v5660_v1  ;;  %v9555_v34 = vpop.eup %9554  ;;  %v399_v44 = vld [vmem:[%s18063_s2 + $0x698] sm:$0xff] }
 0x87b   :  { %v6165_v19 = vmul.f32 %v9555_v34, %v5661_v40  ;;  %v18740_v1 = vld [vmem:[#allocation9_spill] sm:$0xff]  ;;  %v1463_v40 = vpop.f32.mrf.mxu0 }
 0x886   :  { %3750 = vperm.xlu1 %9510, %v3212_v11   ;;  %v397_v11 = vld [vmem:[%s18063_s2 + $0x688] sm:$0xff] }
 0x887   :  { %9444 = vmatprep.mubr.msk.f32.mxu1 %vm524_vm1, %v397_v11  ;;  %9276 = vmatprep.mubr.msk.f32.mxu0 %vm524_vm1, %v397_v11  ;;  %v18741_v11 = vld [vmem:[#allocation82_spill] sm:$0xff] }
 0x888   :  { %2800 = vmatmul.mubr.f32.gmra.mxu1 %v396_v41  ;;  %1718 = vmatmul.mubr.f32.gmra.mxu0 %v396_v41 }
 0x889   :  { %9445 = vmatprep.mubr.msk.f32.mxu1 %vm524_vm1, %v399_v44  ;;  %9277 = vmatprep.mubr.msk.f32.mxu0 %vm524_vm1, %v399_v44  ;;  %v18742_v44 = vld [vmem:[#allocation81_spill] sm:$0xff] }
 0x88a   :  { %6414 = vperm.xlu1 %9510, %v6164_v5  }
 0x88c   :  { %v13179_v47 = vpop.xlane.xlu1 %5022 }
 0x88d   :  { %18736 = vst [vmem:[#allocation137_spill] sm:$0xff] %v13179_v47 }
 0x88e   :  { %3755 = vperm.xlu0 %9511, %v3213_v48  }
 0x88f   :  { %v13195_v2 = vpop.xlane.xlu0 %5026 }
 0x890   :  { %v13184_v20 = vpop.permute.xlu1 %3730  ;;  %18737 = vst [vmem:[#allocation72_spill] sm:$0xff] %v13195_v2  ;;  %v3214_v2 = vmul.f32 0.0051020407, %v13084_v32 }
 0x892   :  { %6419 = vperm.xlu0 %9511, %v6165_v19  }
 0x894   :  { %v6395_v0 = vpop.permute.xlu1 %6394 }
 0x895   :  { %v7184_v17 = vmul.f32 %v6395_v0, %v18738_v12  ;;  %v7185_v60 = vmul.f32 %v6395_v0, %v18739_v53  ;;  %v1467_v12 = vpop.f32.mrf.mxu0 }
 0x897   :  { %v8528_v5 = vadd.f32 %v18740_v1, %v7184_v17  ;;  %v8529_v48 = vadd.f32 %v18740_v1, %v7185_v60  ;;  %v13205_v34 = vpop.permute.xlu0 %3735  ;;  %v18743_v17 = vld [vmem:[#allocation12_spill] sm:$0xff] }
 0x898   :  { %v398_v1 = vld [vmem:[%s18063_s2 + $0x690] sm:$0xff] }
 0x899   :  { %8864 = vst [vmem:[%s18065_s5 + $0x100] sm:$0xff] %v8528_v5  ;;  %8865 = vst.msk [vmem:[%s18065_s5 + $0x108] sm:$0xff] %vm2102_vm0, %v8529_v48  ;;  %v18744_v5 = vld [vmem:[#allocation151_spill] sm:$0xff]  ;;  %2805 = vmatmul.mubr.f32.gmra.mxu1 %v398_v1  ;;  %1724 = vmatmul.mubr.f32.gmra.mxu0 %v398_v1 }
 0x89a   :  { %v13229_v48 = vsub.f32 %v1463_v40, %v18744_v5 }
 0x89b   :  { %v6400_v19 = vpop.permute.xlu0 %6399 }
 0x89c   :  { %v7186_v41 = vmul.f32 %v6400_v19, %v18741_v11  ;;  %v7187_v0 = vmul.f32 %v6400_v19, %v18742_v44  ;;  %18745 = vst [vmem:[#allocation71_spill] sm:$0xff] %v13229_v48  ;;  %v1469_v19 = vpop.f32.mrf.mxu0  ;;  %v13232_v11 = vsub.f32 %v1461_v7, %v18744_v5  ;;  %v4587_v44 = vmul.f32 %v13229_v48, %v13229_v48 }
 0x89d   :  { %v13248_v1 = vpop.f32.mrf.mxu1 }
 0x89e   :  { %v8530_v53 = vadd.f32 %v18743_v17, %v7186_v41  ;;  %v8531_v60 = vadd.f32 %v18743_v17, %v7187_v0  ;;  %18746 = vst [vmem:[#allocation5_spill] sm:$0xff] %v13232_v11  ;;  %v13235_v41 = vsub.f32 %v1469_v19, %v12467_v28  ;;  %v13240_v0 = vsub.f32 %v1467_v12, %v12467_v28 }
 0x89f   :  { %v4586_v17 = vmul.f32 %v13232_v11, %v13232_v11  ;;  %v5044_v7 = vsel %vm2102_vm0, %v4587_v44, 0.0  ;;  %v2773_v19 = vpop.f32.mrf.mxu1  ;;  %v5495_v11 = vmul.f32 0.0051020407, %v12411_v33 }
 0x8a0   :  { %8866 = vst [vmem:[%s18065_s5 + $0x110] sm:$0xff] %v8530_v53  ;;  %8867 = vst.msk [vmem:[%s18065_s5 + $0x118] sm:$0xff] %vm2102_vm0, %v8531_v60  ;;  %v4589_v40 = vmul.f32 %v13235_v41, %v13235_v41  ;;  %v18749_v53 = vld [vmem:[#allocation138_spill] sm:$0xff]  ;;  %v4588_v5 = vmul.f32 %v13240_v0, %v13240_v0 }
 0x8a1   :  { %18747 = vst [vmem:[#allocation74_spill] sm:$0xff] %v13235_v41  ;;  %18748 = vst [vmem:[#allocation73_spill] sm:$0xff] %v13240_v0  ;;  %v5494_v60 = vmul.f32 0.0051020407, %v18749_v53  ;;  %v5045_v48 = vadd.f32 %v5044_v7, %v4586_v17  ;;  %v5831_v41 = vadd.f32 0.001, %v5495_v11 }
 0x8a2   :  { %v5048_v28 = vsel %vm2102_vm0, %v4589_v40, 0.0  ;;  %v5662_v17 = vld [vmem:[%s18064_s3 + $0xb0] sm:$0xff] }
 0x8a3   :  { %v5830_v12 = vadd.f32 0.001, %v5494_v60  ;;  %v5049_v50 = vadd.f32 %v5048_v28, %v4588_v5  ;;  %v18752_v5 = vld [vmem:[#allocation84_spill] sm:$0xff]  ;;  %v18753_v28 = vld [vmem:[#allocation83_spill] sm:$0xff] }
 0x8a5   :  { %9556 = vrsqrt.f32 %v5830_v12 }
 0x8a6   :  { %9558 = vrsqrt.f32 %v5831_v41 }
 0x8ad   :  { %v13254_v53 = vpop.f32.mrf.mxu1 }
 0x8ae   :  { %5046 = vadd.xlane.f32.xlu1 %v5045_v48  ;;  %v3215_v48 = vmul.f32 0.0051020407, %v13090_v55  ;;  %v400_v55 = vld [vmem:[%s18063_s2 + $0x6a0] sm:$0xff] }
 0x8af   :  { %v2778_v44 = vpop.f32.mrf.mxu1 }
 0x8b0   :  { %v1473_v44 = vpop.f32.mrf.mxu0 }
 0x8b1   :  { %5050 = vadd.xlane.f32.xlu0 %v5049_v50  ;;  %v5663_v50 = vld [vmem:[%s18064_s3 + $0xb8] sm:$0xff] }
 0x8b2   :  { %v9557_v47 = vpop.eup %9556 }
 0x8b3   :  { %v6166_v40 = vmul.f32 %v9557_v47, %v5662_v17  ;;  %v9559_v33 = vpop.eup %9558  ;;  %v403_v47 = vld [vmem:[%s18063_s2 + $0x6b8] sm:$0xff]  ;;  %v18754_v17 = vld [vmem:[#allocation11_spill] sm:$0xff] }
 0x8b4   :  { %v6167_v32 = vmul.f32 %v9559_v33, %v5663_v50  ;;  %v1475_v50 = vpop.f32.mrf.mxu0 }
 0x8bf   :  { %3760 = vperm.xlu1 %9510, %v3214_v2   ;;  %v401_v2 = vld [vmem:[%s18063_s2 + $0x6a8] sm:$0xff] }
 0x8c0   :  { %9446 = vmatprep.mubr.msk.f32.mxu1 %vm524_vm1, %v401_v2  ;;  %9278 = vmatprep.mubr.msk.f32.mxu0 %vm524_vm1, %v401_v2  ;;  %v18755_v2 = vld [vmem:[#allocation86_spill] sm:$0xff] }
 0x8c1   :  { %2810 = vmatmul.mubr.f32.gmra.mxu1 %v400_v55  ;;  %1730 = vmatmul.mubr.f32.gmra.mxu0 %v400_v55 }
 0x8c2   :  { %9447 = vmatprep.mubr.msk.f32.mxu1 %vm524_vm1, %v403_v47  ;;  %9279 = vmatprep.mubr.msk.f32.mxu0 %vm524_vm1, %v403_v47  ;;  %v18756_v47 = vld [vmem:[#allocation85_spill] sm:$0xff] }
 0x8c3   :  { %6424 = vperm.xlu1 %9510, %v6166_v40  }
 0x8c5   :  { %v13261_v60 = vpop.xlane.xlu1 %5030 }
 0x8c6   :  { %18750 = vst [vmem:[#allocation8_spill] sm:$0xff] %v13261_v60  ;;  %v3216_v60 = vmul.f32 0.0051020407, %v13166_v46 }
 0x8c7   :  { %3765 = vperm.xlu0 %9511, %v3215_v48  }
 0x8c8   :  { %v13277_v41 = vpop.xlane.xlu0 %5034 }
 0x8c9   :  { %v13266_v11 = vpop.permute.xlu1 %3740  ;;  %18751 = vst [vmem:[#allocation142_spill] sm:$0xff] %v13277_v41 }
 0x8cb   :  { %6429 = vperm.xlu0 %9511, %v6167_v32  }
 0x8cd   :  { %v6405_v7 = vpop.permute.xlu1 %6404 }
 0x8ce   :  { %v7188_v19 = vmul.f32 %v6405_v7, %v18752_v5  ;;  %v7189_v12 = vmul.f32 %v6405_v7, %v18753_v28  ;;  %v1479_v5 = vpop.f32.mrf.mxu0 }
 0x8d0   :  { %v8532_v40 = vadd.f32 %v18754_v17, %v7188_v19  ;;  %v8533_v48 = vadd.f32 %v18754_v17, %v7189_v12  ;;  %v13287_v33 = vpop.permute.xlu0 %3745  ;;  %v18757_v19 = vld [vmem:[#allocation14_spill] sm:$0xff]  ;;  %v402_v17 = vld [vmem:[%s18063_s2 + $0x6b0] sm:$0xff] }
 0x8d1   :  { %2815 = vmatmul.mubr.f32.gmra.mxu1 %v402_v17  ;;  %1736 = vmatmul.mubr.f32.gmra.mxu0 %v402_v17 }
 0x8d2   :  { %8868 = vst [vmem:[%s18065_s5 + $0x120] sm:$0xff] %v8532_v40  ;;  %8869 = vst.msk [vmem:[%s18065_s5 + $0x128] sm:$0xff] %vm2102_vm0, %v8533_v48  ;;  %v18758_v40 = vld [vmem:[#allocation153_spill] sm:$0xff] }
 0x8d3   :  { %v13311_v48 = vsub.f32 %v1475_v50, %v18758_v40 }
 0x8d4   :  { %v6410_v32 = vpop.permute.xlu0 %6409 }
 0x8d5   :  { %v7190_v55 = vmul.f32 %v6410_v32, %v18755_v2  ;;  %v7191_v7 = vmul.f32 %v6410_v32, %v18756_v47  ;;  %18759 = vst [vmem:[#allocation133_spill] sm:$0xff] %v13311_v48  ;;  %v1481_v32 = vpop.f32.mrf.mxu0  ;;  %v13314_v2 = vsub.f32 %v1473_v44, %v18758_v40  ;;  %v4591_v47 = vmul.f32 %v13311_v48, %v13311_v48 }
 0x8d6   :  { %v13330_v17 = vpop.f32.mrf.mxu1 }
 0x8d7   :  { %v8534_v28 = vadd.f32 %v18757_v19, %v7190_v55  ;;  %v8535_v12 = vadd.f32 %v18757_v19, %v7191_v7  ;;  %18760 = vst [vmem:[#allocation141_spill] sm:$0xff] %v13314_v2  ;;  %v13317_v55 = vsub.f32 %v1481_v32, %v12483_v59  ;;  %v13322_v7 = vsub.f32 %v1479_v5, %v12483_v59 }
 0x8d8   :  { %v4590_v19 = vmul.f32 %v13314_v2, %v13314_v2  ;;  %v5052_v44 = vsel %vm2102_vm0, %v4591_v47, 0.0  ;;  %v2783_v32 = vpop.f32.mrf.mxu1  ;;  %v18764_v2 = vld [vmem:[#allocation154_spill] sm:$0xff] }
 0x8d9   :  { %8870 = vst [vmem:[%s18065_s5 + $0x130] sm:$0xff] %v8534_v28  ;;  %8871 = vst.msk [vmem:[%s18065_s5 + $0x138] sm:$0xff] %vm2102_vm0, %v8535_v12  ;;  %v4593_v50 = vmul.f32 %v13317_v55, %v13317_v55  ;;  %v18763_v28 = vld [vmem:[#allocation140_spill] sm:$0xff]  ;;  %v4592_v40 = vmul.f32 %v13322_v7, %v13322_v7  ;;  %v5497_v41 = vmul.f32 0.0051020407, %v18764_v2 }
 0x8da   :  { %18761 = vst [vmem:[#allocation76_spill] sm:$0xff] %v13317_v55  ;;  %18762 = vst [vmem:[#allocation75_spill] sm:$0xff] %v13322_v7  ;;  %v5496_v12 = vmul.f32 0.0051020407, %v18763_v28  ;;  %v5053_v48 = vadd.f32 %v5052_v44, %v4590_v19  ;;  %v5664_v19 = vld [vmem:[%s18064_s3 + $0xc0] sm:$0xff] }
 0x8db   :  { %v5056_v59 = vsel %vm2102_vm0, %v4593_v50, 0.0  ;;  %v5833_v55 = vadd.f32 0.001, %v5497_v41  ;;  %v5665_v41 = vld [vmem:[%s18064_s3 + $0xc8] sm:$0xff] }
 0x8dc   :  { %v5832_v5 = vadd.f32 0.001, %v5496_v12  ;;  %v5057_v0 = vadd.f32 %v5056_v59, %v4592_v40  ;;  %v18767_v40 = vld [vmem:[#allocation88_spill] sm:$0xff]  ;;  %v18768_v59 = vld [vmem:[#allocation87_spill] sm:$0xff] }
 0x8de   :  { %9560 = vrsqrt.f32 %v5832_v5 }
 0x8df   :  { %9562 = vrsqrt.f32 %v5833_v55 }
 0x8e7   :  { %5054 = vadd.xlane.f32.xlu1 %v5053_v48  ;;  %v13336_v28 = vpop.f32.mrf.mxu1  ;;  %v3217_v48 = vmul.f32 0.0051020407, %v13172_v38  ;;  %v407_v38 = vld [vmem:[%s18063_s2 + $0x6d8] sm:$0xff] }
 0x8e9   :  { %v2788_v47 = vpop.f32.mrf.mxu1 }
 0x8ea   :  { %5058 = vadd.xlane.f32.xlu0 %v5057_v0  ;;  %v1485_v47 = vpop.f32.mrf.mxu0 }
 0x8eb   :  { %v9561_v6 = vpop.eup %9560 }
 0x8ec   :  { %v6168_v50 = vmul.f32 %v9561_v6, %v5664_v19  ;;  %v9563_v0 = vpop.eup %9562  ;;  %v404_v6 = vld [vmem:[%s18063_s2 + $0x6c0] sm:$0xff]  ;;  %v18769_v19 = vld [vmem:[#allocation13_spill] sm:$0xff] }
 0x8ed   :  { %v6169_v46 = vmul.f32 %v9563_v0, %v5665_v41  ;;  %v1487_v41 = vpop.f32.mrf.mxu0 }
 0x8f8   :  { %3770 = vperm.xlu1 %9510, %v3216_v60   ;;  %v405_v60 = vld [vmem:[%s18063_s2 + $0x6c8] sm:$0xff] }
 0x8f9   :  { %9448 = vmatprep.mubr.msk.f32.mxu1 %vm524_vm1, %v405_v60  ;;  %9280 = vmatprep.mubr.msk.f32.mxu0 %vm524_vm1, %v405_v60  ;;  %v18771_v60 = vld [vmem:[#allocation90_spill] sm:$0xff] }
 0x8fa   :  { %2820 = vmatmul.mubr.f32.gmra.mxu1 %v404_v6  ;;  %1742 = vmatmul.mubr.f32.gmra.mxu0 %v404_v6 }
 0x8fb   :  { %9449 = vmatprep.mubr.msk.f32.mxu1 %vm524_vm1, %v407_v38  ;;  %9281 = vmatprep.mubr.msk.f32.mxu0 %vm524_vm1, %v407_v38  ;;  %v18772_v38 = vld [vmem:[#allocation89_spill] sm:$0xff] }
 0x8fc   :  { %6434 = vperm.xlu1 %9510, %v6168_v50  }
 0x8fe   :  { %v13343_v12 = vpop.xlane.xlu1 %5038 }
 0x8ff   :  { %18765 = vst [vmem:[#allocation7_spill] sm:$0xff] %v13343_v12  ;;  %v3218_v12 = vmul.f32 0.0051020407, %v13248_v1 }
 0x900   :  { %3775 = vperm.xlu0 %9511, %v3217_v48  }
 0x901   :  { %v13359_v55 = vpop.xlane.xlu0 %5042 }
 0x902   :  { %v13348_v2 = vpop.permute.xlu1 %3750  ;;  %18766 = vst [vmem:[#allocation78_spill] sm:$0xff] %v13359_v55 }
 0x904   :  { %6439 = vperm.xlu0 %9511, %v6169_v46  }
 0x906   :  { %v6415_v44 = vpop.permute.xlu1 %6414 }
 0x907   :  { %v7192_v32 = vmul.f32 %v6415_v44, %v18767_v40  ;;  %v7193_v5 = vmul.f32 %v6415_v44, %v18768_v59  ;;  %v1491_v40 = vpop.f32.mrf.mxu0 }
 0x909   :  { %v8536_v50 = vadd.f32 %v18769_v19, %v7192_v32  ;;  %v8537_v48 = vadd.f32 %v18769_v19, %v7193_v5  ;;  %v13369_v0 = vpop.permute.xlu0 %3755  ;;  %v18773_v32 = vld [vmem:[#allocation16_spill] sm:$0xff] }
 0x90a   :  { %18770 = vst [vmem:[#allocation77_spill] sm:$0xff] %v13369_v0  ;;  %v406_v19 = vld [vmem:[%s18063_s2 + $0x6d0] sm:$0xff] }
 0x90b   :  { %8872 = vst [vmem:[%s18065_s5 + $0x140] sm:$0xff] %v8536_v50  ;;  %8873 = vst.msk [vmem:[%s18065_s5 + $0x148] sm:$0xff] %vm2102_vm0, %v8537_v48  ;;  %v18774_v50 = vld [vmem:[#allocation156_spill] sm:$0xff]  ;;  %2825 = vmatmul.mubr.f32.gmra.mxu1 %v406_v19  ;;  %1748 = vmatmul.mubr.f32.gmra.mxu0 %v406_v19 }
 0x90c   :  { %v13393_v48 = vsub.f32 %v1487_v41, %v18774_v50 }
 0x90d   :  { %v6420_v46 = vpop.permute.xlu0 %6419 }
 0x90e   :  { %v7194_v6 = vmul.f32 %v6420_v46, %v18771_v60  ;;  %v7195_v44 = vmul.f32 %v6420_v46, %v18772_v38  ;;  %18775 = vst [vmem:[#allocation10_spill] sm:$0xff] %v13393_v48  ;;  %v1493_v46 = vpop.f32.mrf.mxu0  ;;  %v13396_v60 = vsub.f32 %v1485_v47, %v18774_v50  ;;  %v4595_v38 = vmul.f32 %v13393_v48, %v13393_v48 }
 0x90f   :  { %v13412_v19 = vpop.f32.mrf.mxu1 }
 0x910   :  { %v8538_v59 = vadd.f32 %v18773_v32, %v7194_v6  ;;  %v8539_v5 = vadd.f32 %v18773_v32, %v7195_v44  ;;  %18776 = vst [vmem:[#allocation148_spill] sm:$0xff] %v13396_v60  ;;  %v13399_v6 = vsub.f32 %v1493_v46, %v12516_v26  ;;  %v13404_v44 = vsub.f32 %v1491_v40, %v12516_v26 }
 0x911   :  { %v4594_v32 = vmul.f32 %v13396_v60, %v13396_v60  ;;  %v5060_v47 = vsel %vm2102_vm0, %v4595_v38, 0.0  ;;  %v2793_v46 = vpop.f32.mrf.mxu1  ;;  %v18780_v60 = vld [vmem:[#allocation158_spill] sm:$0xff] }
 0x912   :  { %8874 = vst [vmem:[%s18065_s5 + $0x150] sm:$0xff] %v8538_v59  ;;  %8875 = vst.msk [vmem:[%s18065_s5 + $0x158] sm:$0xff] %vm2102_vm0, %v8539_v5  ;;  %v4597_v41 = vmul.f32 %v13399_v6, %v13399_v6  ;;  %v18779_v59 = vld [vmem:[#allocation143_spill] sm:$0xff]  ;;  %v4596_v50 = vmul.f32 %v13404_v44, %v13404_v44  ;;  %v5499_v55 = vmul.f32 0.0051020407, %v18780_v60 }
 0x913   :  { %18777 = vst [vmem:[#allocation135_spill] sm:$0xff] %v13399_v6  ;;  %18778 = vst [vmem:[#allocation145_spill] sm:$0xff] %v13404_v44  ;;  %v5498_v5 = vmul.f32 0.0051020407, %v18779_v59  ;;  %v5061_v48 = vadd.f32 %v5060_v47, %v4594_v32  ;;  %v5666_v32 = vld [vmem:[%s18064_s3 + $0xd0] sm:$0xff] }
 0x914   :  { %v5064_v26 = vsel %vm2102_vm0, %v4597_v41, 0.0  ;;  %v5835_v6 = vadd.f32 0.001, %v5499_v55  ;;  %v5667_v55 = vld [vmem:[%s18064_s3 + $0xd8] sm:$0xff] }
 0x915   :  { %v5834_v40 = vadd.f32 0.001, %v5498_v5  ;;  %v5065_v7 = vadd.f32 %v5064_v26, %v4596_v50  ;;  %v18783_v50 = vld [vmem:[#allocation92_spill] sm:$0xff]  ;;  %v18784_v26 = vld [vmem:[#allocation91_spill] sm:$0xff] }
 0x917   :  { %9564 = vrsqrt.f32 %v5834_v40 }
 0x918   :  { %9566 = vrsqrt.f32 %v5835_v6 }
 0x91f   :  { %v13418_v59 = vpop.f32.mrf.mxu1 }
 0x920   :  { %5062 = vadd.xlane.f32.xlu1 %v5061_v48  ;;  %v3219_v48 = vmul.f32 0.0051020407, %v13254_v53  ;;  %v408_v53 = vld [vmem:[%s18063_s2 + $0x6e0] sm:$0xff] }
 0x921   :  { %v2798_v38 = vpop.f32.mrf.mxu1 }
 0x922   :  { %v1497_v38 = vpop.f32.mrf.mxu0 }
 0x923   :  { %5066 = vadd.xlane.f32.xlu0 %v5065_v7 }
 0x924   :  { %v9565_v0 = vpop.eup %9564 }
 0x925   :  { %v6170_v41 = vmul.f32 %v9565_v0, %v5666_v32  ;;  %v9567_v7 = vpop.eup %9566  ;;  %v411_v0 = vld [vmem:[%s18063_s2 + $0x6f8] sm:$0xff]  ;;  %v18785_v32 = vld [vmem:[#allocation15_spill] sm:$0xff] }
 0x926   :  { %v6171_v1 = vmul.f32 %v9567_v7, %v5667_v55  ;;  %v1499_v55 = vpop.f32.mrf.mxu0 }
 0x931   :  { %3780 = vperm.xlu1 %9510, %v3218_v12   ;;  %v409_v12 = vld [vmem:[%s18063_s2 + $0x6e8] sm:$0xff] }
 0x932   :  { %9450 = vmatprep.mubr.msk.f32.mxu1 %vm524_vm1, %v409_v12  ;;  %9282 = vmatprep.mubr.msk.f32.mxu0 %vm524_vm1, %v409_v12  ;;  %v18787_v12 = vld [vmem:[#allocation94_spill] sm:$0xff] }
 0x933   :  { %2830 = vmatmul.mubr.f32.gmra.mxu1 %v408_v53  ;;  %1754 = vmatmul.mubr.f32.gmra.mxu0 %v408_v53 }
 0x934   :  { %9451 = vmatprep.mubr.msk.f32.mxu1 %vm524_vm1, %v411_v0  ;;  %9283 = vmatprep.mubr.msk.f32.mxu0 %vm524_vm1, %v411_v0  ;;  %v18788_v0 = vld [vmem:[#allocation93_spill] sm:$0xff] }
 0x935   :  { %6444 = vperm.xlu1 %9510, %v6170_v41  }
 0x937   :  { %v13425_v5 = vpop.xlane.xlu1 %5046 }
 0x938   :  { %18781 = vst [vmem:[#allocation80_spill] sm:$0xff] %v13425_v5  ;;  %v3220_v5 = vmul.f32 0.0051020407, %v13330_v17 }
 0x939   :  { %3785 = vperm.xlu0 %9511, %v3219_v48  }
 0x93a   :  { %v13441_v6 = vpop.xlane.xlu0 %5050 }
 0x93b   :  { %v13430_v60 = vpop.permute.xlu1 %3760  ;;  %18782 = vst [vmem:[#allocation79_spill] sm:$0xff] %v13441_v6 }
 0x93d   :  { %6449 = vperm.xlu0 %9511, %v6171_v1  }
 0x93f   :  { %v6425_v47 = vpop.permute.xlu1 %6424 }
 0x940   :  { %v7196_v46 = vmul.f32 %v6425_v47, %v18783_v50  ;;  %v7197_v40 = vmul.f32 %v6425_v47, %v18784_v26  ;;  %v1503_v50 = vpop.f32.mrf.mxu0 }
 0x942   :  { %v8540_v41 = vadd.f32 %v18785_v32, %v7196_v46  ;;  %v8541_v48 = vadd.f32 %v18785_v32, %v7197_v40  ;;  %v13451_v7 = vpop.permute.xlu0 %3765  ;;  %v18789_v46 = vld [vmem:[#allocation18_spill] sm:$0xff]  ;;  %v410_v32 = vld [vmem:[%s18063_s2 + $0x6f0] sm:$0xff] }
 0x943   :  { %18786 = vst [vmem:[#allocation9_spill] sm:$0xff] %v13451_v7  ;;  %2835 = vmatmul.mubr.f32.gmra.mxu1 %v410_v32  ;;  %1760 = vmatmul.mubr.f32.gmra.mxu0 %v410_v32 }
 0x944   :  { %8876 = vst [vmem:[%s18065_s5 + $0x160] sm:$0xff] %v8540_v41  ;;  %8877 = vst.msk [vmem:[%s18065_s5 + $0x168] sm:$0xff] %vm2102_vm0, %v8541_v48  ;;  %v18790_v41 = vld [vmem:[#allocation159_spill] sm:$0xff] }
 0x945   :  { %v13475_v48 = vsub.f32 %v1499_v55, %v18790_v41 }
 0x946   :  { %v6430_v1 = vpop.permute.xlu0 %6429 }
 0x947   :  { %v7198_v53 = vmul.f32 %v6430_v1, %v18787_v12  ;;  %v7199_v47 = vmul.f32 %v6430_v1, %v18788_v0  ;;  %18791 = vst [vmem:[#allocation82_spill] sm:$0xff] %v13475_v48  ;;  %v1505_v1 = vpop.f32.mrf.mxu0  ;;  %v13478_v12 = vsub.f32 %v1497_v38, %v18790_v41  ;;  %v4599_v0 = vmul.f32 %v13475_v48, %v13475_v48 }
 0x948   :  { %v13494_v32 = vpop.f32.mrf.mxu1 }
 0x949   :  { %v8542_v26 = vadd.f32 %v18789_v46, %v7198_v53  ;;  %v8543_v40 = vadd.f32 %v18789_v46, %v7199_v47  ;;  %18792 = vst [vmem:[#allocation81_spill] sm:$0xff] %v13478_v12  ;;  %v13481_v53 = vsub.f32 %v1505_v1, %v12523_v16  ;;  %v13486_v47 = vsub.f32 %v1503_v50, %v12523_v16 }
 0x94a   :  { %v4598_v46 = vmul.f32 %v13478_v12, %v13478_v12  ;;  %v5068_v38 = vsel %vm2102_vm0, %v4599_v0, 0.0  ;;  %v2803_v1 = vpop.f32.mrf.mxu1  ;;  %v18796_v12 = vld [vmem:[#allocation161_spill] sm:$0xff] }
 0x94b   :  { %8878 = vst [vmem:[%s18065_s5 + $0x170] sm:$0xff] %v8542_v26  ;;  %8879 = vst.msk [vmem:[%s18065_s5 + $0x178] sm:$0xff] %vm2102_vm0, %v8543_v40  ;;  %v4601_v55 = vmul.f32 %v13481_v53, %v13481_v53  ;;  %v18795_v26 = vld [vmem:[#allocation150_spill] sm:$0xff]  ;;  %v4600_v41 = vmul.f32 %v13486_v47, %v13486_v47  ;;  %v5501_v6 = vmul.f32 0.0051020407, %v18796_v12 }
 0x94c   :  { %18793 = vst [vmem:[#allocation12_spill] sm:$0xff] %v13481_v53  ;;  %18794 = vst [vmem:[#allocation151_spill] sm:$0xff] %v13486_v47  ;;  %v5500_v40 = vmul.f32 0.0051020407, %v18795_v26  ;;  %v5069_v48 = vadd.f32 %v5068_v38, %v4598_v46  ;;  %v5668_v46 = vld [vmem:[%s18064_s3 + $0xe0] sm:$0xff] }
 0x94d   :  { %v5072_v16 = vsel %vm2102_vm0, %v4601_v55, 0.0  ;;  %v5837_v53 = vadd.f32 0.001, %v5501_v6  ;;  %v5669_v6 = vld [vmem:[%s18064_s3 + $0xe8] sm:$0xff] }
 0x94e   :  { %v5836_v50 = vadd.f32 0.001, %v5500_v40  ;;  %v5073_v44 = vadd.f32 %v5072_v16, %v4600_v41  ;;  %v18799_v41 = vld [vmem:[#allocation96_spill] sm:$0xff]  ;;  %v18800_v16 = vld [vmem:[#allocation95_spill] sm:$0xff] }
 0x950   :  { %9568 = vrsqrt.f32 %v5836_v50 }
 0x951   :  { %9570 = vrsqrt.f32 %v5837_v53 }
 0x959   :  { %5070 = vadd.xlane.f32.xlu1 %v5069_v48  ;;  %v13500_v26 = vpop.f32.mrf.mxu1  ;;  %v3221_v48 = vmul.f32 0.0051020407, %v13336_v28  ;;  %v412_v28 = vld [vmem:[%s18063_s2 + $0x700] sm:$0xff] }
 0x95b   :  { %v2808_v0 = vpop.f32.mrf.mxu1 }
 0x95c   :  { %5074 = vadd.xlane.f32.xlu0 %v5073_v44  ;;  %v1509_v0 = vpop.f32.mrf.mxu0 }
 0x95d   :  { %v9569_v7 = vpop.eup %9568 }
 0x95e   :  { %v6172_v55 = vmul.f32 %v9569_v7, %v5668_v46  ;;  %v9571_v44 = vpop.eup %9570  ;;  %v415_v7 = vld [vmem:[%s18063_s2 + $0x718] sm:$0xff] }
 0x95f   :  { %v6173_v17 = vmul.f32 %v9571_v44, %v5669_v6  ;;  %v18801_v46 = vld [vmem:[#allocation17_spill] sm:$0xff]  ;;  %v1511_v6 = vpop.f32.mrf.mxu0 }
 0x96a   :  { %3790 = vperm.xlu1 %9510, %v3220_v5   ;;  %v413_v5 = vld [vmem:[%s18063_s2 + $0x708] sm:$0xff] }
 0x96b   :  { %9452 = vmatprep.mubr.msk.f32.mxu1 %vm524_vm1, %v413_v5  ;;  %9284 = vmatprep.mubr.msk.f32.mxu0 %vm524_vm1, %v413_v5  ;;  %v18803_v5 = vld [vmem:[#allocation98_spill] sm:$0xff] }
 0x96c   :  { %2840 = vmatmul.mubr.f32.gmra.mxu1 %v412_v28  ;;  %1766 = vmatmul.mubr.f32.gmra.mxu0 %v412_v28 }
 0x96d   :  { %9453 = vmatprep.mubr.msk.f32.mxu1 %vm524_vm1, %v415_v7  ;;  %9285 = vmatprep.mubr.msk.f32.mxu0 %vm524_vm1, %v415_v7  ;;  %v18804_v7 = vld [vmem:[#allocation97_spill] sm:$0xff] }
 0x96e   :  { %6454 = vperm.xlu1 %9510, %v6172_v55  }
 0x970   :  { %v13507_v40 = vpop.xlane.xlu1 %5054 }
 0x971   :  { %18797 = vst [vmem:[#allocation138_spill] sm:$0xff] %v13507_v40  ;;  %v3222_v40 = vmul.f32 0.0051020407, %v13412_v19 }
 0x972   :  { %3795 = vperm.xlu0 %9511, %v3221_v48  }
 0x973   :  { %v13523_v53 = vpop.xlane.xlu0 %5058 }
 0x974   :  { %v13512_v12 = vpop.permute.xlu1 %3770  ;;  %18798 = vst [vmem:[#allocation84_spill] sm:$0xff] %v13523_v53 }
 0x976   :  { %6459 = vperm.xlu0 %9511, %v6173_v17  }
 0x978   :  { %v6435_v38 = vpop.permute.xlu1 %6434 }
 0x979   :  { %v7200_v1 = vmul.f32 %v6435_v38, %v18799_v41  ;;  %v7201_v50 = vmul.f32 %v6435_v38, %v18800_v16  ;;  %v1515_v41 = vpop.f32.mrf.mxu0 }
 0x97b   :  { %v8544_v55 = vadd.f32 %v18801_v46, %v7200_v1  ;;  %v8545_v48 = vadd.f32 %v18801_v46, %v7201_v50  ;;  %v13533_v44 = vpop.permute.xlu0 %3775  ;;  %v18805_v1 = vld [vmem:[#allocation20_spill] sm:$0xff] }
 0x97c   :  { %18802 = vst [vmem:[#allocation83_spill] sm:$0xff] %v13533_v44  ;;  %v414_v46 = vld [vmem:[%s18063_s2 + $0x710] sm:$0xff] }
 0x97d   :  { %8880 = vst [vmem:[%s18065_s5 + $0x180] sm:$0xff] %v8544_v55  ;;  %8881 = vst.msk [vmem:[%s18065_s5 + $0x188] sm:$0xff] %vm2102_vm0, %v8545_v48  ;;  %v18806_v55 = vld [vmem:[#allocation162_spill] sm:$0xff]  ;;  %2845 = vmatmul.mubr.f32.gmra.mxu1 %v414_v46  ;;  %1772 = vmatmul.mubr.f32.gmra.mxu0 %v414_v46 }
 0x97e   :  { %v13557_v48 = vsub.f32 %v1511_v6, %v18806_v55 }
 0x97f   :  { %v6440_v17 = vpop.permute.xlu0 %6439 }
 0x980   :  { %v7202_v28 = vmul.f32 %v6440_v17, %v18803_v5  ;;  %v7203_v38 = vmul.f32 %v6440_v17, %v18804_v7  ;;  %18807 = vst [vmem:[#allocation11_spill] sm:$0xff] %v13557_v48  ;;  %v1517_v17 = vpop.f32.mrf.mxu0  ;;  %v13560_v5 = vsub.f32 %v1509_v0, %v18806_v55  ;;  %v4603_v7 = vmul.f32 %v13557_v48, %v13557_v48 }
 0x981   :  { %v13576_v46 = vpop.f32.mrf.mxu1 }
 0x982   :  { %v8546_v16 = vadd.f32 %v18805_v1, %v7202_v28  ;;  %v8547_v50 = vadd.f32 %v18805_v1, %v7203_v38  ;;  %18808 = vst [vmem:[#allocation86_spill] sm:$0xff] %v13560_v5  ;;  %v13563_v28 = vsub.f32 %v1517_v17, %v12531_v24  ;;  %v13568_v38 = vsub.f32 %v1515_v41, %v12531_v24 }
 0x983   :  { %v4602_v1 = vmul.f32 %v13560_v5, %v13560_v5  ;;  %v5076_v0 = vsel %vm2102_vm0, %v4603_v7, 0.0  ;;  %v2813_v17 = vpop.f32.mrf.mxu1  ;;  %v18812_v5 = vld [vmem:[#allocation165_spill] sm:$0xff] }
 0x984   :  { %8882 = vst [vmem:[%s18065_s5 + $0x190] sm:$0xff] %v8546_v16  ;;  %8883 = vst.msk [vmem:[%s18065_s5 + $0x198] sm:$0xff] %vm2102_vm0, %v8547_v50  ;;  %v4605_v6 = vmul.f32 %v13563_v28, %v13563_v28  ;;  %v18811_v16 = vld [vmem:[#allocation152_spill] sm:$0xff]  ;;  %v4604_v55 = vmul.f32 %v13568_v38, %v13568_v38  ;;  %v5503_v53 = vmul.f32 0.0051020407, %v18812_v5 }
 0x985   :  { %18809 = vst [vmem:[#allocation85_spill] sm:$0xff] %v13563_v28  ;;  %18810 = vst [vmem:[#allocation14_spill] sm:$0xff] %v13568_v38  ;;  %v5502_v50 = vmul.f32 0.0051020407, %v18811_v16  ;;  %v5077_v48 = vadd.f32 %v5076_v0, %v4602_v1  ;;  %v5670_v1 = vld [vmem:[%s18064_s3 + $0xf0] sm:$0xff] }
 0x986   :  { %v5080_v24 = vsel %vm2102_vm0, %v4605_v6, 0.0  ;;  %v5839_v28 = vadd.f32 0.001, %v5503_v53  ;;  %v5671_v53 = vld [vmem:[%s18064_s3 + $0xf8] sm:$0xff] }
 0x987   :  { %v5838_v41 = vadd.f32 0.001, %v5502_v50  ;;  %v5081_v47 = vadd.f32 %v5080_v24, %v4604_v55  ;;  %v18815_v55 = vld [vmem:[#allocation100_spill] sm:$0xff]  ;;  %v18816_v24 = vld [vmem:[#allocation99_spill] sm:$0xff] }
 0x989   :  { %9572 = vrsqrt.f32 %v5838_v41 }
 0x98a   :  { %9574 = vrsqrt.f32 %v5839_v28 }
 0x991   :  { %v13582_v16 = vpop.f32.mrf.mxu1 }
 0x992   :  { %5078 = vadd.xlane.f32.xlu1 %v5077_v48  ;;  %v3223_v48 = vmul.f32 0.0051020407, %v13418_v59  ;;  %v416_v59 = vld [vmem:[%s18063_s2 + $0x720] sm:$0xff] }
 0x993   :  { %v2818_v7 = vpop.f32.mrf.mxu1 }
 0x994   :  { %v1521_v7 = vpop.f32.mrf.mxu0 }
 0x995   :  { %5082 = vadd.xlane.f32.xlu0 %v5081_v47 }
 0x996   :  { %v9573_v44 = vpop.eup %9572 }
 0x997   :  { %v6174_v6 = vmul.f32 %v9573_v44, %v5670_v1  ;;  %v9575_v47 = vpop.eup %9574  ;;  %v419_v44 = vld [vmem:[%s18063_s2 + $0x738] sm:$0xff]  ;;  %v18817_v1 = vld [vmem:[#allocation19_spill] sm:$0xff] }
 0x998   :  { %v6175_v19 = vmul.f32 %v9575_v47, %v5671_v53  ;;  %v1523_v53 = vpop.f32.mrf.mxu0 }
 0x9a3   :  { %3800 = vperm.xlu1 %9510, %v3222_v40   ;;  %v417_v40 = vld [vmem:[%s18063_s2 + $0x728] sm:$0xff] }
 0x9a4   :  { %9454 = vmatprep.mubr.msk.f32.mxu1 %vm524_vm1, %v417_v40  ;;  %9286 = vmatprep.mubr.msk.f32.mxu0 %vm524_vm1, %v417_v40  ;;  %v18819_v40 = vld [vmem:[#allocation102_spill] sm:$0xff] }
 0x9a5   :  { %2850 = vmatmul.mubr.f32.gmra.mxu1 %v416_v59  ;;  %1778 = vmatmul.mubr.f32.gmra.mxu0 %v416_v59 }
 0x9a6   :  { %9455 = vmatprep.mubr.msk.f32.mxu1 %vm524_vm1, %v419_v44  ;;  %9287 = vmatprep.mubr.msk.f32.mxu0 %vm524_vm1, %v419_v44  ;;  %v18820_v44 = vld [vmem:[#allocation101_spill] sm:$0xff] }
 0x9a7   :  { %6464 = vperm.xlu1 %9510, %v6174_v6  }
 0x9a9   :  { %v13589_v50 = vpop.xlane.xlu1 %5062 }
 0x9aa   :  { %18813 = vst [vmem:[#allocation153_spill] sm:$0xff] %v13589_v50  ;;  %v3224_v50 = vmul.f32 0.0051020407, %v13494_v32 }
 0x9ab   :  { %3805 = vperm.xlu0 %9511, %v3223_v48  }
 0x9ac   :  { %v13605_v28 = vpop.xlane.xlu0 %5066 }
 0x9ad   :  { %v13594_v5 = vpop.permute.xlu1 %3780  ;;  %18814 = vst [vmem:[#allocation140_spill] sm:$0xff] %v13605_v28 }
 0x9af   :  { %6469 = vperm.xlu0 %9511, %v6175_v19  }
 0x9b1   :  { %v6445_v0 = vpop.permute.xlu1 %6444 }
 0x9b2   :  { %v7204_v17 = vmul.f32 %v6445_v0, %v18815_v55  ;;  %v7205_v41 = vmul.f32 %v6445_v0, %v18816_v24  ;;  %v1527_v55 = vpop.f32.mrf.mxu0 }
 0x9b4   :  { %v8548_v6 = vadd.f32 %v18817_v1, %v7204_v17  ;;  %v8549_v48 = vadd.f32 %v18817_v1, %v7205_v41  ;;  %v13615_v47 = vpop.permute.xlu0 %3785  ;;  %v18821_v17 = vld [vmem:[#allocation22_spill] sm:$0xff]  ;;  %v418_v1 = vld [vmem:[%s18063_s2 + $0x730] sm:$0xff] }
 0x9b5   :  { %18818 = vst [vmem:[#allocation154_spill] sm:$0xff] %v13615_v47  ;;  %2855 = vmatmul.mubr.f32.gmra.mxu1 %v418_v1  ;;  %1784 = vmatmul.mubr.f32.gmra.mxu0 %v418_v1 }
 0x9b6   :  { %8884 = vst [vmem:[%s18065_s5 + $0x1a0] sm:$0xff] %v8548_v6  ;;  %8885 = vst.msk [vmem:[%s18065_s5 + $0x1a8] sm:$0xff] %vm2102_vm0, %v8549_v48  ;;  %v18822_v6 = vld [vmem:[#allocation164_spill] sm:$0xff] }
 0x9b7   :  { %v13639_v48 = vsub.f32 %v1523_v53, %v18822_v6 }
 0x9b8   :  { %v6450_v19 = vpop.permute.xlu0 %6449 }
 0x9b9   :  { %v7206_v59 = vmul.f32 %v6450_v19, %v18819_v40  ;;  %v7207_v0 = vmul.f32 %v6450_v19, %v18820_v44  ;;  %18823 = vst [vmem:[#allocation88_spill] sm:$0xff] %v13639_v48  ;;  %v1529_v19 = vpop.f32.mrf.mxu0  ;;  %v13642_v40 = vsub.f32 %v1521_v7, %v18822_v6  ;;  %v4607_v44 = vmul.f32 %v13639_v48, %v13639_v48 }
 0x9ba   :  { %v13658_v1 = vpop.f32.mrf.mxu1 }
 0x9bb   :  { %v8550_v24 = vadd.f32 %v18821_v17, %v7206_v59  ;;  %v8551_v41 = vadd.f32 %v18821_v17, %v7207_v0  ;;  %18824 = vst [vmem:[#allocation87_spill] sm:$0xff] %v13642_v40  ;;  %v13645_v59 = vsub.f32 %v1529_v19, %v12539_v57  ;;  %v13650_v0 = vsub.f32 %v1527_v55, %v12539_v57 }
 0x9bc   :  { %v4606_v17 = vmul.f32 %v13642_v40, %v13642_v40  ;;  %v5084_v7 = vsel %vm2102_vm0, %v4607_v44, 0.0  ;;  %v2823_v19 = vpop.f32.mrf.mxu1  ;;  %v18828_v40 = vld [vmem:[#allocation170_spill] sm:$0xff] }
 0x9bd   :  { %8886 = vst [vmem:[%s18065_s5 + $0x1b0] sm:$0xff] %v8550_v24  ;;  %8887 = vst.msk [vmem:[%s18065_s5 + $0x1b8] sm:$0xff] %vm2102_vm0, %v8551_v41  ;;  %v4609_v53 = vmul.f32 %v13645_v59, %v13645_v59  ;;  %v18827_v24 = vld [vmem:[#allocation155_spill] sm:$0xff]  ;;  %v4608_v6 = vmul.f32 %v13650_v0, %v13650_v0  ;;  %v5505_v28 = vmul.f32 0.0051020407, %v18828_v40 }
 0x9be   :  { %18825 = vst [vmem:[#allocation13_spill] sm:$0xff] %v13645_v59  ;;  %18826 = vst [vmem:[#allocation90_spill] sm:$0xff] %v13650_v0  ;;  %v5504_v41 = vmul.f32 0.0051020407, %v18827_v24  ;;  %v5085_v38 = vadd.f32 %v5084_v7, %v4606_v17  ;;  %v5672_v17 = vld [vmem:[%s18064_s3 + $0x100] sm:$0xff] }
 0x9bf   :  { %v5088_v57 = vsel %vm2102_vm0, %v4609_v53, 0.0  ;;  %v5841_v59 = vadd.f32 0.001, %v5505_v28  ;;  %v5673_v28 = vld [vmem:[%s18064_s3 + $0x108] sm:$0xff] }
 0x9c0   :  { %v5840_v55 = vadd.f32 0.001, %v5504_v41  ;;  %v5089_v48 = vadd.f32 %v5088_v57, %v4608_v6  ;;  %v18830_v6 = vld [vmem:[#allocation104_spill] sm:$0xff]  ;;  %v18831_v57 = vld [vmem:[#allocation103_spill] sm:$0xff] }
 0x9c2   :  { %9576 = vrsqrt.f32 %v5840_v55 }
 0x9c3   :  { %9578 = vrsqrt.f32 %v5841_v59 }
 0x9cb   :  { %5086 = vadd.xlane.f32.xlu1 %v5085_v38  ;;  %v13664_v24 = vpop.f32.mrf.mxu1  ;;  %v3225_v38 = vmul.f32 0.0051020407, %v13500_v26  ;;  %v420_v26 = vld [vmem:[%s18063_s2 + $0x740] sm:$0xff] }
 0x9cd   :  { %v2828_v44 = vpop.f32.mrf.mxu1 }
 0x9ce   :  { %5090 = vadd.xlane.f32.xlu0 %v5089_v48  ;;  %v1533_v44 = vpop.f32.mrf.mxu0 }
 0x9cf   :  { %v9577_v47 = vpop.eup %9576 }
 0x9d0   :  { %v6176_v53 = vmul.f32 %v9577_v47, %v5672_v17  ;;  %v9579_v48 = vpop.eup %9578  ;;  %v423_v47 = vld [vmem:[%s18063_s2 + $0x758] sm:$0xff] }
 0x9d1   :  { %v6177_v32 = vmul.f32 %v9579_v48, %v5673_v28  ;;  %v18832_v17 = vld [vmem:[#allocation21_spill] sm:$0xff]  ;;  %v1535_v28 = vpop.f32.mrf.mxu0 }
 0x9dc   :  { %3810 = vperm.xlu1 %9510, %v3224_v50   ;;  %v421_v50 = vld [vmem:[%s18063_s2 + $0x748] sm:$0xff] }
 0x9dd   :  { %9456 = vmatprep.mubr.msk.f32.mxu1 %vm524_vm1, %v421_v50  ;;  %9288 = vmatprep.mubr.msk.f32.mxu0 %vm524_vm1, %v421_v50  ;;  %v18833_v50 = vld [vmem:[#allocation106_spill] sm:$0xff] }
 0x9de   :  { %2860 = vmatmul.mubr.f32.gmra.mxu1 %v420_v26  ;;  %1790 = vmatmul.mubr.f32.gmra.mxu0 %v420_v26 }
 0x9df   :  { %9457 = vmatprep.mubr.msk.f32.mxu1 %vm524_vm1, %v423_v47  ;;  %9289 = vmatprep.mubr.msk.f32.mxu0 %vm524_vm1, %v423_v47  ;;  %v18834_v47 = vld [vmem:[#allocation105_spill] sm:$0xff] }
 0x9e0   :  { %6474 = vperm.xlu1 %9510, %v6176_v53  }
 0x9e2   :  { %v13671_v41 = vpop.xlane.xlu1 %5070 }
 0x9e4   :  { %3815 = vperm.xlu0 %9511, %v3225_v38  }
 0x9e5   :  { %v13687_v59 = vpop.xlane.xlu0 %5074 }
 0x9e6   :  { %v13676_v40 = vpop.permute.xlu1 %3790  ;;  %18829 = vst [vmem:[#allocation89_spill] sm:$0xff] %v13687_v59 }
 0x9e8   :  { %6479 = vperm.xlu0 %9511, %v6177_v32  }
 0x9ea   :  { %v6455_v7 = vpop.permute.xlu1 %6454 }
 0x9eb   :  { %v7208_v19 = vmul.f32 %v6455_v7, %v18830_v6  ;;  %v7209_v55 = vmul.f32 %v6455_v7, %v18831_v57  ;;  %v1539_v6 = vpop.f32.mrf.mxu0 }
 0x9ed   :  { %v8552_v53 = vadd.f32 %v18832_v17, %v7208_v19  ;;  %v8553_v38 = vadd.f32 %v18832_v17, %v7209_v55  ;;  %v13697_v48 = vpop.permute.xlu0 %3795  ;;  %v18835_v19 = vld [vmem:[#allocation24_spill] sm:$0xff] }
 0x9ee   :  { %v422_v17 = vld [vmem:[%s18063_s2 + $0x750] sm:$0xff] }
 0x9ef   :  { %8888 = vst [vmem:[%s18065_s5 + $0x1c0] sm:$0xff] %v8552_v53  ;;  %8889 = vst.msk [vmem:[%s18065_s5 + $0x1c8] sm:$0xff] %vm2102_vm0, %v8553_v38  ;;  %v13721_v53 = vsub.f32 %v1535_v28, %v12608_v9  ;;  %v1541_v38 = vpop.f32.mrf.mxu0  ;;  %2865 = vmatmul.mubr.f32.gmra.mxu1 %v422_v17  ;;  %1796 = vmatmul.mubr.f32.gmra.mxu0 %v422_v17 }
 0x9f1   :  { %v6460_v32 = vpop.permute.xlu0 %6459  ;;  %18836 = vst [vmem:[#allocation16_spill] sm:$0xff] %v13721_v53 }
 0x9f2   :  { %v7210_v26 = vmul.f32 %v6460_v32, %v18833_v50  ;;  %v7211_v7 = vmul.f32 %v6460_v32, %v18834_v47  ;;  %v13724_v32 = vsub.f32 %v1533_v44, %v12608_v9  ;;  %v13727_v50 = vsub.f32 %v1541_v38, %v12610_v49 }
 0x9f3   :  { %v13732_v47 = vsub.f32 %v1539_v6, %v12610_v49  ;;  %v13740_v44 = vpop.f32.mrf.mxu1 }
 0x9f4   :  { %v8554_v57 = vadd.f32 %v18835_v19, %v7210_v26  ;;  %v8555_v55 = vadd.f32 %v18835_v19, %v7211_v7  ;;  %18837 = vst [vmem:[#allocation156_spill] sm:$0xff] %v13724_v32  ;;  %18838 = vst [vmem:[#allocation143_spill] sm:$0xff] %v13727_v50  ;;  %v4611_v26 = vmul.f32 %v13721_v53, %v13721_v53  ;;  %v18840_v19 = vld [vmem:[#allocation157_spill] sm:$0xff]  ;;  %v5507_v53 = vmul.f32 0.0051020407, %v12519_v36 }
 0x9f5   :  { %18839 = vst [vmem:[#allocation158_spill] sm:$0xff] %v13732_v47  ;;  %v4610_v7 = vmul.f32 %v13724_v32, %v13724_v32  ;;  %v4613_v28 = vmul.f32 %v13727_v50, %v13727_v50  ;;  %v2833_v17 = vpop.f32.mrf.mxu1  ;;  %v3226_v32 = vmul.f32 0.0051020407, %v13576_v46 }
 0x9f6   :  { %8890 = vst [vmem:[%s18065_s5 + $0x1d0] sm:$0xff] %v8554_v57  ;;  %8891 = vst.msk [vmem:[%s18065_s5 + $0x1d8] sm:$0xff] %vm2102_vm0, %v8555_v55  ;;  %v5506_v57 = vmul.f32 0.0051020407, %v18840_v19  ;;  %v5092_v9 = vsel %vm2102_vm0, %v4611_v26, 0.0  ;;  %v4612_v55 = vmul.f32 %v13732_v47, %v13732_v47  ;;  %v18842_v17 = vld [vmem:[#allocation108_spill] sm:$0xff] }
 0x9f7   :  { %v5093_v38 = vadd.f32 %v5092_v9, %v4610_v7  ;;  %v5096_v49 = vsel %vm2102_vm0, %v4613_v28, 0.0  ;;  %v5843_v50 = vadd.f32 0.001, %v5507_v53  ;;  %v5674_v7 = vld [vmem:[%s18064_s3 + $0x110] sm:$0xff] }
 0x9f8   :  { %v5842_v6 = vadd.f32 0.001, %v5506_v57  ;;  %v5097_v0 = vadd.f32 %v5096_v49, %v4612_v55  ;;  %v3227_v57 = vmul.f32 0.0051020407, %v13582_v16  ;;  %v424_v16 = vld [vmem:[%s18063_s2 + $0x760] sm:$0xff]  ;;  %v18843_v49 = vld [vmem:[#allocation107_spill] sm:$0xff] }
 0x9fa   :  { %9580 = vrsqrt.f32 %v5842_v6 }
 0x9fb   :  { %9582 = vrsqrt.f32 %v5843_v50 }
 0xa03   :  { %v13746_v19 = vpop.f32.mrf.mxu1 }
 0xa04   :  { %5094 = vadd.xlane.f32.xlu1 %v5093_v38 }
 0xa05   :  { %v2838_v26 = vpop.f32.mrf.mxu1 }
 0xa06   :  { %v1545_v26 = vpop.f32.mrf.mxu0 }
 0xa07   :  { %5098 = vadd.xlane.f32.xlu0 %v5097_v0  ;;  %v9581_v59 = vpop.eup %9580  ;;  %v5675_v0 = vld [vmem:[%s18064_s3 + $0x118] sm:$0xff] }
 0xa08   :  { %v6178_v28 = vmul.f32 %v9581_v59, %v5674_v7  ;;  %v9583_v36 = vpop.eup %9582  ;;  %v427_v59 = vld [vmem:[%s18063_s2 + $0x778] sm:$0xff]  ;;  %v18844_v7 = vld [vmem:[#allocation23_spill] sm:$0xff] }
 0xa09   :  { %v6179_v46 = vmul.f32 %v9583_v36, %v5675_v0  ;;  %v1547_v0 = vpop.f32.mrf.mxu0 }
 0xa15   :  { %3820 = vperm.xlu1 %9510, %v3226_v32   ;;  %v425_v32 = vld [vmem:[%s18063_s2 + $0x768] sm:$0xff] }
 0xa16   :  { %9458 = vmatprep.mubr.msk.f32.mxu1 %vm524_vm1, %v425_v32  ;;  %9290 = vmatprep.mubr.msk.f32.mxu0 %vm524_vm1, %v425_v32  ;;  %v18845_v32 = vld [vmem:[#allocation110_spill] sm:$0xff] }
 0xa17   :  { %2870 = vmatmul.mubr.f32.gmra.mxu1 %v424_v16  ;;  %1802 = vmatmul.mubr.f32.gmra.mxu0 %v424_v16 }
 0xa18   :  { %9459 = vmatprep.mubr.msk.f32.mxu1 %vm524_vm1, %v427_v59  ;;  %9291 = vmatprep.mubr.msk.f32.mxu0 %vm524_vm1, %v427_v59  ;;  %v18846_v59 = vld [vmem:[#allocation109_spill] sm:$0xff] }
 0xa19   :  { %6484 = vperm.xlu1 %9510, %v6178_v28  }
 0xa1b   :  { %v13753_v9 = vpop.xlane.xlu1 %5078 }
 0xa1d   :  { %3825 = vperm.xlu0 %9511, %v3227_v57  }
 0xa1e   :  { %v13769_v50 = vpop.xlane.xlu0 %5082 }
 0xa1f   :  { %v13758_v53 = vpop.permute.xlu1 %3800  ;;  %18841 = vst [vmem:[#allocation92_spill] sm:$0xff] %v13769_v50 }
 0xa21   :  { %6489 = vperm.xlu0 %9511, %v6179_v46  }
 0xa23   :  { %v6465_v55 = vpop.permute.xlu1 %6464 }
 0xa24   :  { %v7212_v38 = vmul.f32 %v6465_v55, %v18842_v17  ;;  %v7213_v6 = vmul.f32 %v6465_v55, %v18843_v49  ;;  %v1551_v17 = vpop.f32.mrf.mxu0 }
 0xa26   :  { %v8556_v28 = vadd.f32 %v18844_v7, %v7212_v38  ;;  %v8557_v57 = vadd.f32 %v18844_v7, %v7213_v6  ;;  %v13779_v36 = vpop.permute.xlu0 %3805  ;;  %v18847_v38 = vld [vmem:[#allocation26_spill] sm:$0xff]  ;;  %v426_v7 = vld [vmem:[%s18063_s2 + $0x770] sm:$0xff] }
 0xa27   :  { %2875 = vmatmul.mubr.f32.gmra.mxu1 %v426_v7  ;;  %1808 = vmatmul.mubr.f32.gmra.mxu0 %v426_v7 }
 0xa28   :  { %8892 = vst [vmem:[%s18065_s5 + $0x1e0] sm:$0xff] %v8556_v28  ;;  %8893 = vst.msk [vmem:[%s18065_s5 + $0x1e8] sm:$0xff] %vm2102_vm0, %v8557_v57  ;;  %v13803_v28 = vsub.f32 %v1547_v0, %v12631_v10  ;;  %v1553_v57 = vpop.f32.mrf.mxu0 }
 0xa2a   :  { %v6470_v46 = vpop.permute.xlu0 %6469  ;;  %18848 = vst [vmem:[#allocation91_spill] sm:$0xff] %v13803_v28 }
 0xa2b   :  { %v7214_v16 = vmul.f32 %v6470_v46, %v18845_v32  ;;  %v7215_v55 = vmul.f32 %v6470_v46, %v18846_v59  ;;  %v13806_v46 = vsub.f32 %v1545_v26, %v12631_v10  ;;  %v13809_v32 = vsub.f32 %v1553_v57, %v12692_v30 }
 0xa2c   :  { %v13814_v59 = vsub.f32 %v1551_v17, %v12692_v30  ;;  %v13822_v26 = vpop.f32.mrf.mxu1 }
 0xa2d   :  { %v8558_v49 = vadd.f32 %v18847_v38, %v7214_v16  ;;  %v8559_v6 = vadd.f32 %v18847_v38, %v7215_v55  ;;  %18849 = vst [vmem:[#allocation15_spill] sm:$0xff] %v13806_v46  ;;  %18850 = vst [vmem:[#allocation94_spill] sm:$0xff] %v13809_v32  ;;  %v4615_v16 = vmul.f32 %v13803_v28, %v13803_v28  ;;  %v18852_v38 = vld [vmem:[#allocation160_spill] sm:$0xff]  ;;  %v5509_v28 = vmul.f32 0.0051020407, %v12525_v15 }
 0xa2e   :  { %18851 = vst [vmem:[#allocation93_spill] sm:$0xff] %v13814_v59  ;;  %v4614_v55 = vmul.f32 %v13806_v46, %v13806_v46  ;;  %v4617_v0 = vmul.f32 %v13809_v32, %v13809_v32  ;;  %v2843_v7 = vpop.f32.mrf.mxu1  ;;  %v3228_v46 = vmul.f32 0.0051020407, %v13658_v1 }
 0xa2f   :  { %8894 = vst [vmem:[%s18065_s5 + $0x1f0] sm:$0xff] %v8558_v49  ;;  %8895 = vst.msk [vmem:[%s18065_s5 + $0x1f8] sm:$0xff] %vm2102_vm0, %v8559_v6  ;;  %v5508_v49 = vmul.f32 0.0051020407, %v18852_v38  ;;  %v5100_v10 = vsel %vm2102_vm0, %v4615_v16, 0.0  ;;  %v4616_v6 = vmul.f32 %v13814_v59, %v13814_v59  ;;  %v18854_v7 = vld [vmem:[#allocation112_spill] sm:$0xff] }
 0xa30   :  { %v5101_v57 = vadd.f32 %v5100_v10, %v4614_v55  ;;  %v5104_v30 = vsel %vm2102_vm0, %v4617_v0, 0.0  ;;  %v5845_v32 = vadd.f32 0.001, %v5509_v28  ;;  %v5676_v55 = vld [vmem:[%s18064_s3 + $0x120] sm:$0xff] }
 0xa31   :  { %v5844_v17 = vadd.f32 0.001, %v5508_v49  ;;  %v5105_v47 = vadd.f32 %v5104_v30, %v4616_v6  ;;  %v3229_v49 = vmul.f32 0.0051020407, %v13664_v24  ;;  %v428_v24 = vld [vmem:[%s18063_s2 + $0x780] sm:$0xff]  ;;  %v18855_v30 = vld [vmem:[#allocation111_spill] sm:$0xff] }
 0xa33   :  { %9584 = vrsqrt.f32 %v5844_v17 }
 0xa34   :  { %9586 = vrsqrt.f32 %v5845_v32 }
 0xa3d   :  { %5102 = vadd.xlane.f32.xlu1 %v5101_v57  ;;  %v13828_v38 = vpop.f32.mrf.mxu1 }
 0xa3f   :  { %v2848_v16 = vpop.f32.mrf.mxu1 }
 0xa40   :  { %5106 = vadd.xlane.f32.xlu0 %v5105_v47  ;;  %v9585_v50 = vpop.eup %9584  ;;  %v5677_v47 = vld [vmem:[%s18064_s3 + $0x128] sm:$0xff]  ;;  %v1557_v16 = vpop.f32.mrf.mxu0 }
 0xa41   :  { %v6180_v0 = vmul.f32 %v9585_v50, %v5676_v55  ;;  %v9587_v15 = vpop.eup %9586  ;;  %v431_v50 = vld [vmem:[%s18063_s2 + $0x798] sm:$0xff] }
 0xa42   :  { %v6181_v1 = vmul.f32 %v9587_v15, %v5677_v47  ;;  %v18856_v55 = vld [vmem:[#allocation25_spill] sm:$0xff]  ;;  %v1559_v47 = vpop.f32.mrf.mxu0 }
 0xa4e   :  { %3830 = vperm.xlu1 %9510, %v3228_v46   ;;  %v429_v46 = vld [vmem:[%s18063_s2 + $0x788] sm:$0xff] }
 0xa4f   :  { %9460 = vmatprep.mubr.msk.f32.mxu1 %vm524_vm1, %v429_v46  ;;  %9292 = vmatprep.mubr.msk.f32.mxu0 %vm524_vm1, %v429_v46  ;;  %v18857_v46 = vld [vmem:[#allocation114_spill] sm:$0xff] }
 0xa50   :  { %2880 = vmatmul.mubr.f32.gmra.mxu1 %v428_v24  ;;  %1814 = vmatmul.mubr.f32.gmra.mxu0 %v428_v24 }
 0xa51   :  { %9461 = vmatprep.mubr.msk.f32.mxu1 %vm524_vm1, %v431_v50  ;;  %9293 = vmatprep.mubr.msk.f32.mxu0 %vm524_vm1, %v431_v50  ;;  %v18858_v50 = vld [vmem:[#allocation113_spill] sm:$0xff] }
 0xa52   :  { %6494 = vperm.xlu1 %9510, %v6180_v0  }
 0xa54   :  { %v13835_v10 = vpop.xlane.xlu1 %5086 }
 0xa56   :  { %3835 = vperm.xlu0 %9511, %v3229_v49  }
 0xa57   :  { %v13851_v32 = vpop.xlane.xlu0 %5090 }
 0xa58   :  { %v13840_v28 = vpop.permute.xlu1 %3810  ;;  %18853 = vst [vmem:[#allocation18_spill] sm:$0xff] %v13851_v32 }
 0xa5a   :  { %6499 = vperm.xlu0 %9511, %v6181_v1  }
 0xa5c   :  { %v6475_v6 = vpop.permute.xlu1 %6474 }
 0xa5d   :  { %v7216_v57 = vmul.f32 %v6475_v6, %v18854_v7  ;;  %v7217_v17 = vmul.f32 %v6475_v6, %v18855_v30  ;;  %v1563_v7 = vpop.f32.mrf.mxu0 }
 0xa5f   :  { %v8560_v0 = vadd.f32 %v18856_v55, %v7216_v57  ;;  %v8561_v49 = vadd.f32 %v18856_v55, %v7217_v17  ;;  %v13861_v15 = vpop.permute.xlu0 %3815  ;;  %v18859_v57 = vld [vmem:[#allocation28_spill] sm:$0xff] }
 0xa60   :  { %v430_v55 = vld [vmem:[%s18063_s2 + $0x790] sm:$0xff] }
 0xa61   :  { %8896 = vst [vmem:[%s18065_s5 + $0x200] sm:$0xff] %v8560_v0  ;;  %8897 = vst.msk [vmem:[%s18065_s5 + $0x208] sm:$0xff] %vm2102_vm0, %v8561_v49  ;;  %v13885_v0 = vsub.f32 %v1559_v47, %v12713_v4  ;;  %v1565_v49 = vpop.f32.mrf.mxu0  ;;  %2885 = vmatmul.mubr.f32.gmra.mxu1 %v430_v55  ;;  %1820 = vmatmul.mubr.f32.gmra.mxu0 %v430_v55 }
 0xa63   :  { %v6480_v1 = vpop.permute.xlu0 %6479  ;;  %18860 = vst [vmem:[#allocation159_spill] sm:$0xff] %v13885_v0 }
 0xa64   :  { %v7218_v24 = vmul.f32 %v6480_v1, %v18857_v46  ;;  %v7219_v6 = vmul.f32 %v6480_v1, %v18858_v50  ;;  %v13888_v1 = vsub.f32 %v1557_v16, %v12713_v4  ;;  %v13891_v46 = vsub.f32 %v1565_v49, %v12774_v14 }
 0xa65   :  { %v13896_v50 = vsub.f32 %v1563_v7, %v12774_v14  ;;  %v13904_v16 = vpop.f32.mrf.mxu1 }
 0xa66   :  { %v8562_v30 = vadd.f32 %v18859_v57, %v7218_v24  ;;  %v8563_v17 = vadd.f32 %v18859_v57, %v7219_v6  ;;  %18861 = vst [vmem:[#allocation150_spill] sm:$0xff] %v13888_v1  ;;  %18862 = vst [vmem:[#allocation161_spill] sm:$0xff] %v13891_v46  ;;  %v4619_v24 = vmul.f32 %v13885_v0, %v13885_v0  ;;  %v18864_v57 = vld [vmem:[#allocation163_spill] sm:$0xff]  ;;  %v5511_v0 = vmul.f32 0.0051020407, %v12534_v52 }
 0xa67   :  { %18863 = vst [vmem:[#allocation96_spill] sm:$0xff] %v13896_v50  ;;  %v4618_v6 = vmul.f32 %v13888_v1, %v13888_v1  ;;  %v4621_v47 = vmul.f32 %v13891_v46, %v13891_v46  ;;  %v2853_v55 = vpop.f32.mrf.mxu1  ;;  %v3230_v1 = vmul.f32 0.0051020407, %v13740_v44 }
 0xa68   :  { %8898 = vst [vmem:[%s18065_s5 + $0x210] sm:$0xff] %v8562_v30  ;;  %8899 = vst.msk [vmem:[%s18065_s5 + $0x218] sm:$0xff] %vm2102_vm0, %v8563_v17  ;;  %v5510_v30 = vmul.f32 0.0051020407, %v18864_v57  ;;  %v5108_v4 = vsel %vm2102_vm0, %v4619_v24, 0.0  ;;  %v4620_v17 = vmul.f32 %v13896_v50, %v13896_v50  ;;  %v18865_v55 = vld [vmem:[#allocation116_spill] sm:$0xff] }
 0xa69   :  { %v5109_v49 = vadd.f32 %v5108_v4, %v4618_v6  ;;  %v5112_v14 = vsel %vm2102_vm0, %v4621_v47, 0.0  ;;  %v5847_v46 = vadd.f32 0.001, %v5511_v0  ;;  %v5678_v6 = vld [vmem:[%s18064_s3 + $0x130] sm:$0xff]  ;;  %v5513_v50 = vmul.f32 0.0051020407, %v12603_v61 }
 0xa6a   :  { %v5846_v7 = vadd.f32 0.001, %v5510_v30  ;;  %v5113_v59 = vadd.f32 %v5112_v14, %v4620_v17  ;;  %v3231_v30 = vmul.f32 0.0051020407, %v13746_v19  ;;  %v432_v19 = vld [vmem:[%s18063_s2 + $0x7a0] sm:$0xff]  ;;  %v18866_v14 = vld [vmem:[#allocation115_spill] sm:$0xff] }
 0xa6c   :  { %9588 = vrsqrt.f32 %v5846_v7 }
 0xa6d   :  { %9590 = vrsqrt.f32 %v5847_v46 }
 0xa75   :  { %v13910_v57 = vpop.f32.mrf.mxu1 }
 0xa76   :  { %5110 = vadd.xlane.f32.xlu1 %v5109_v49 }
 0xa77   :  { %v2858_v24 = vpop.f32.mrf.mxu1 }
 0xa78   :  { %v1569_v24 = vpop.f32.mrf.mxu0 }
 0xa79   :  { %5114 = vadd.xlane.f32.xlu0 %v5113_v59  ;;  %v9589_v32 = vpop.eup %9588  ;;  %v5679_v59 = vld [vmem:[%s18064_s3 + $0x138] sm:$0xff] }
 0xa7a   :  { %v6182_v47 = vmul.f32 %v9589_v32, %v5678_v6  ;;  %v9591_v52 = vpop.eup %9590  ;;  %v435_v32 = vld [vmem:[%s18063_s2 + $0x7b8] sm:$0xff]  ;;  %v18867_v6 = vld [vmem:[#allocation27_spill] sm:$0xff] }
 0xa7b   :  { %v6183_v44 = vmul.f32 %v9591_v52, %v5679_v59  ;;  %v1571_v59 = vpop.f32.mrf.mxu0 }
 0xa87   :  { %3840 = vperm.xlu1 %9510, %v3230_v1   ;;  %v433_v1 = vld [vmem:[%s18063_s2 + $0x7a8] sm:$0xff] }
 0xa88   :  { %9462 = vmatprep.mubr.msk.f32.mxu1 %vm524_vm1, %v433_v1  ;;  %9294 = vmatprep.mubr.msk.f32.mxu0 %vm524_vm1, %v433_v1  ;;  %v18868_v1 = vld [vmem:[#allocation118_spill] sm:$0xff] }
 0xa89   :  { %2890 = vmatmul.mubr.f32.gmra.mxu1 %v432_v19  ;;  %1826 = vmatmul.mubr.f32.gmra.mxu0 %v432_v19 }
 0xa8a   :  { %9463 = vmatprep.mubr.msk.f32.mxu1 %vm524_vm1, %v435_v32  ;;  %9295 = vmatprep.mubr.msk.f32.mxu0 %vm524_vm1, %v435_v32  ;;  %v18869_v32 = vld [vmem:[#allocation117_spill] sm:$0xff] }
 0xa8b   :  { %6504 = vperm.xlu1 %9510, %v6182_v47  }
 0xa8d   :  { %v13917_v4 = vpop.xlane.xlu1 %5094 }
 0xa8f   :  { %3845 = vperm.xlu0 %9511, %v3231_v30  }
 0xa90   :  { %v13933_v46 = vpop.xlane.xlu0 %5098 }
 0xa91   :  { %v13922_v0 = vpop.permute.xlu1 %3820 }
 0xa93   :  { %6509 = vperm.xlu0 %9511, %v6183_v44  }
 0xa95   :  { %v6485_v17 = vpop.permute.xlu1 %6484 }
 0xa96   :  { %v7220_v49 = vmul.f32 %v6485_v17, %v18865_v55  ;;  %v7221_v7 = vmul.f32 %v6485_v17, %v18866_v14  ;;  %v1575_v55 = vpop.f32.mrf.mxu0 }
 0xa98   :  { %v8564_v47 = vadd.f32 %v18867_v6, %v7220_v49  ;;  %v8565_v30 = vadd.f32 %v18867_v6, %v7221_v7  ;;  %v13943_v52 = vpop.permute.xlu0 %3825  ;;  %v18870_v49 = vld [vmem:[#allocation30_spill] sm:$0xff]  ;;  %v434_v6 = vld [vmem:[%s18063_s2 + $0x7b0] sm:$0xff] }
 0xa99   :  { %2895 = vmatmul.mubr.f32.gmra.mxu1 %v434_v6  ;;  %1832 = vmatmul.mubr.f32.gmra.mxu0 %v434_v6 }
 0xa9a   :  { %8900 = vst [vmem:[%s18065_s5 + $0x220] sm:$0xff] %v8564_v47  ;;  %8901 = vst.msk [vmem:[%s18065_s5 + $0x228] sm:$0xff] %vm2102_vm0, %v8565_v30  ;;  %v13967_v47 = vsub.f32 %v1571_v59, %v12795_v31  ;;  %v1577_v30 = vpop.f32.mrf.mxu0 }
 0xa9c   :  { %v6490_v44 = vpop.permute.xlu0 %6489  ;;  %18871 = vst [vmem:[#allocation95_spill] sm:$0xff] %v13967_v47 }
 0xa9d   :  { %v7222_v19 = vmul.f32 %v6490_v44, %v18868_v1  ;;  %v7223_v17 = vmul.f32 %v6490_v44, %v18869_v32  ;;  %v13970_v44 = vsub.f32 %v1569_v24, %v12795_v31  ;;  %v13973_v1 = vsub.f32 %v1577_v30, %v12856_v62 }
 0xa9e   :  { %v13978_v32 = vsub.f32 %v1575_v55, %v12856_v62  ;;  %v13986_v24 = vpop.f32.mrf.mxu1 }
 0xa9f   :  { %v8566_v14 = vadd.f32 %v18870_v49, %v7222_v19  ;;  %v8567_v7 = vadd.f32 %v18870_v49, %v7223_v17  ;;  %18872 = vst [vmem:[#allocation17_spill] sm:$0xff] %v13970_v44  ;;  %18873 = vst [vmem:[#allocation98_spill] sm:$0xff] %v13973_v1  ;;  %v4623_v19 = vmul.f32 %v13967_v47, %v13967_v47  ;;  %v5512_v49 = vmul.f32 0.0051020407, %v12601_v54 }
 0xaa0   :  { %18874 = vst [vmem:[#allocation97_spill] sm:$0xff] %v13978_v32  ;;  %v4622_v17 = vmul.f32 %v13970_v44, %v13970_v44  ;;  %v4625_v59 = vmul.f32 %v13973_v1, %v13973_v1  ;;  %v5849_v1 = vadd.f32 0.001, %v5513_v50  ;;  %v3232_v47 = vmul.f32 0.0051020407, %v13822_v26  ;;  %v5681_v50 = vld [vmem:[%s18064_s3 + $0x148] sm:$0xff] }
 0xaa1   :  { %8902 = vst [vmem:[%s18065_s5 + $0x230] sm:$0xff] %v8566_v14  ;;  %8903 = vst.msk [vmem:[%s18065_s5 + $0x238] sm:$0xff] %vm2102_vm0, %v8567_v7  ;;  %v5116_v31 = vsel %vm2102_vm0, %v4623_v19, 0.0  ;;  %v4624_v14 = vmul.f32 %v13978_v32, %v13978_v32  ;;  %v2863_v7 = vpop.f32.mrf.mxu1  ;;  %v5848_v55 = vadd.f32 0.001, %v5512_v49 }
 0xaa2   :  { %v5117_v6 = vadd.f32 %v5116_v31, %v4622_v17  ;;  %v5120_v62 = vsel %vm2102_vm0, %v4625_v59, 0.0  ;;  %v5680_v17 = vld [vmem:[%s18064_s3 + $0x140] sm:$0xff]  ;;  %v3233_v49 = vmul.f32 0.0051020407, %v13828_v38  ;;  %v5515_v32 = vmul.f32 0.0051020407, %v12687_v63 }
 0xaa3   :  { %v5121_v30 = vadd.f32 %v5120_v62, %v4624_v14  ;;  %9592 = vrsqrt.f32 %v5848_v55  ;;  %v436_v38 = vld [vmem:[%s18063_s2 + $0x7c0] sm:$0xff]  ;;  %v18876_v55 = vld [vmem:[#allocation119_spill] sm:$0xff] }
 0xaa4   :  { %9594 = vrsqrt.f32 %v5849_v1 }
 0xaaf   :  { %5118 = vadd.xlane.f32.xlu1 %v5117_v6  ;;  %v13992_v54 = vpop.f32.mrf.mxu1  ;;  %v18875_v6 = vld [vmem:[#allocation120_spill] sm:$0xff] }
 0xab0   :  { %v9593_v44 = vpop.eup %9592 }
 0xab1   :  { %v2868_v19 = vpop.f32.mrf.mxu1  ;;  %v6184_v59 = vmul.f32 %v9593_v44, %v5680_v17  ;;  %v9595_v61 = vpop.eup %9594  ;;  %v439_v44 = vld [vmem:[%s18063_s2 + $0x7d8] sm:$0xff] }
 0xab2   :  { %5122 = vadd.xlane.f32.xlu0 %v5121_v30  ;;  %v6185_v26 = vmul.f32 %v9595_v61, %v5681_v50  ;;  %v1581_v19 = vpop.f32.mrf.mxu0  ;;  %v18877_v17 = vld [vmem:[#allocation29_spill] sm:$0xff] }
 0xab4   :  { %v1583_v50 = vpop.f32.mrf.mxu0 }
 0xac0   :  { %3850 = vperm.xlu1 %9510, %v3232_v47   ;;  %v437_v47 = vld [vmem:[%s18063_s2 + $0x7c8] sm:$0xff] }
 0xac1   :  { %9464 = vmatprep.mubr.msk.f32.mxu1 %vm524_vm1, %v437_v47  ;;  %9296 = vmatprep.mubr.msk.f32.mxu0 %vm524_vm1, %v437_v47  ;;  %v18878_v47 = vld [vmem:[#allocation122_spill] sm:$0xff] }
 0xac2   :  { %2900 = vmatmul.mubr.f32.gmra.mxu1 %v436_v38  ;;  %1838 = vmatmul.mubr.f32.gmra.mxu0 %v436_v38 }
 0xac3   :  { %9465 = vmatprep.mubr.msk.f32.mxu1 %vm524_vm1, %v439_v44  ;;  %9297 = vmatprep.mubr.msk.f32.mxu0 %vm524_vm1, %v439_v44  ;;  %v18879_v44 = vld [vmem:[#allocation121_spill] sm:$0xff] }
 0xac4   :  { %6514 = vperm.xlu1 %9510, %v6184_v59  }
 0xac6   :  { %v13999_v31 = vpop.xlane.xlu1 %5102 }
 0xac8   :  { %3855 = vperm.xlu0 %9511, %v3233_v49  }
 0xac9   :  { %v14015_v14 = vpop.xlane.xlu0 %5106 }
 0xaca   :  { %v14004_v1 = vpop.permute.xlu1 %3830 }
 0xacc   :  { %6519 = vperm.xlu0 %9511, %v6185_v26  }
 0xace   :  { %v6495_v7 = vpop.permute.xlu1 %6494 }
 0xacf   :  { %v7224_v62 = vmul.f32 %v6495_v7, %v18875_v6  ;;  %v7225_v30 = vmul.f32 %v6495_v7, %v18876_v55  ;;  %v1587_v6 = vpop.f32.mrf.mxu0 }
 0xad1   :  { %v8568_v59 = vadd.f32 %v18877_v17, %v7224_v62  ;;  %v8569_v49 = vadd.f32 %v18877_v17, %v7225_v30  ;;  %v14025_v61 = vpop.permute.xlu0 %3835  ;;  %v18880_v62 = vld [vmem:[#allocation32_spill] sm:$0xff] }
 0xad2   :  { %v438_v17 = vld [vmem:[%s18063_s2 + $0x7d0] sm:$0xff] }
 0xad3   :  { %8904 = vst [vmem:[%s18065_s5 + $0x240] sm:$0xff] %v8568_v59  ;;  %8905 = vst.msk [vmem:[%s18065_s5 + $0x248] sm:$0xff] %vm2102_vm0, %v8569_v49  ;;  %v14049_v59 = vsub.f32 %v1583_v50, %v12877_v25  ;;  %v1589_v49 = vpop.f32.mrf.mxu0  ;;  %2905 = vmatmul.mubr.f32.gmra.mxu1 %v438_v17  ;;  %1844 = vmatmul.mubr.f32.gmra.mxu0 %v438_v17 }
 0xad5   :  { %v6500_v26 = vpop.permute.xlu0 %6499  ;;  %18881 = vst [vmem:[#allocation20_spill] sm:$0xff] %v14049_v59 }
 0xad6   :  { %v7226_v38 = vmul.f32 %v6500_v26, %v18878_v47  ;;  %v7227_v7 = vmul.f32 %v6500_v26, %v18879_v44  ;;  %v14052_v26 = vsub.f32 %v1581_v19, %v12877_v25  ;;  %v14055_v47 = vsub.f32 %v1589_v49, %v12938_v37 }
 0xad7   :  { %v14060_v44 = vsub.f32 %v1587_v6, %v12938_v37  ;;  %v14068_v19 = vpop.f32.mrf.mxu1 }
 0xad8   :  { %v8570_v55 = vadd.f32 %v18880_v62, %v7226_v38  ;;  %v8571_v30 = vadd.f32 %v18880_v62, %v7227_v7  ;;  %18882 = vst [vmem:[#allocation162_spill] sm:$0xff] %v14052_v26  ;;  %18883 = vst [vmem:[#allocation152_spill] sm:$0xff] %v14055_v47  ;;  %v4627_v38 = vmul.f32 %v14049_v59, %v14049_v59  ;;  %v5514_v62 = vmul.f32 0.0051020407, %v12621_v56 }
 0xad9   :  { %18884 = vst [vmem:[#allocation165_spill] sm:$0xff] %v14060_v44  ;;  %v4626_v7 = vmul.f32 %v14052_v26, %v14052_v26  ;;  %v4629_v50 = vmul.f32 %v14055_v47, %v14055_v47  ;;  %v5851_v47 = vadd.f32 0.001, %v5515_v32  ;;  %v3234_v59 = vmul.f32 0.0051020407, %v13904_v16  ;;  %v5683_v32 = vld [vmem:[%s18064_s3 + $0x158] sm:$0xff] }
 0xada   :  { %8906 = vst [vmem:[%s18065_s5 + $0x250] sm:$0xff] %v8570_v55  ;;  %8907 = vst.msk [vmem:[%s18065_s5 + $0x258] sm:$0xff] %vm2102_vm0, %v8571_v30  ;;  %v5124_v25 = vsel %vm2102_vm0, %v4627_v38, 0.0  ;;  %v4628_v55 = vmul.f32 %v14060_v44, %v14060_v44  ;;  %v2873_v30 = vpop.f32.mrf.mxu1  ;;  %v5850_v6 = vadd.f32 0.001, %v5514_v62 }
 0xadb   :  { %v5125_v17 = vadd.f32 %v5124_v25, %v4626_v7  ;;  %v5128_v37 = vsel %vm2102_vm0, %v4629_v50, 0.0  ;;  %v5682_v7 = vld [vmem:[%s18064_s3 + $0x150] sm:$0xff]  ;;  %v3235_v62 = vmul.f32 0.0051020407, %v13910_v57  ;;  %v440_v57 = vld [vmem:[%s18063_s2 + $0x7e0] sm:$0xff] }
 0xadc   :  { %v5129_v49 = vadd.f32 %v5128_v37, %v4628_v55  ;;  %9596 = vrsqrt.f32 %v5850_v6  ;;  %v18886_v6 = vld [vmem:[#allocation123_spill] sm:$0xff]  ;;  %v5517_v44 = vmul.f32 0.0051020407, %v12769_v22 }
 0xadd   :  { %9598 = vrsqrt.f32 %v5851_v47 }
 0xae7   :  { %v14074_v56 = vpop.f32.mrf.mxu1 }
 0xae8   :  { %5126 = vadd.xlane.f32.xlu1 %v5125_v17  ;;  %v18885_v17 = vld [vmem:[#allocation124_spill] sm:$0xff] }
 0xae9   :  { %v2878_v38 = vpop.f32.mrf.mxu1  ;;  %v9597_v26 = vpop.eup %9596 }
 0xaea   :  { %v6186_v50 = vmul.f32 %v9597_v26, %v5682_v7  ;;  %v9599_v63 = vpop.eup %9598  ;;  %v443_v26 = vld [vmem:[%s18063_s2 + $0x7f8] sm:$0xff]  ;;  %v1593_v38 = vpop.f32.mrf.mxu0  ;;  %v18887_v7 = vld [vmem:[#allocation31_spill] sm:$0xff] }
 0xaeb   :  { %5130 = vadd.xlane.f32.xlu0 %v5129_v49  ;;  %v6187_v16 = vmul.f32 %v9599_v63, %v5683_v32 }
 0xaec   :  { %v1595_v32 = vpop.f32.mrf.mxu0 }
 0xaf9   :  { %3860 = vperm.xlu1 %9510, %v3234_v59   ;;  %v441_v59 = vld [vmem:[%s18063_s2 + $0x7e8] sm:$0xff] }
 0xafa   :  { %9466 = vmatprep.mubr.msk.f32.mxu1 %vm524_vm1, %v441_v59  ;;  %9298 = vmatprep.mubr.msk.f32.mxu0 %vm524_vm1, %v441_v59  ;;  %v18888_v59 = vld [vmem:[#allocation127_spill] sm:$0xff] }
 0xafb   :  { %2910 = vmatmul.mubr.f32.gmra.mxu1 %v440_v57  ;;  %1850 = vmatmul.mubr.f32.gmra.mxu0 %v440_v57 }
 0xafc   :  { %9467 = vmatprep.mubr.msk.f32.mxu1 %vm524_vm1, %v443_v26  ;;  %9299 = vmatprep.mubr.msk.f32.mxu0 %vm524_vm1, %v443_v26  ;;  %v18889_v26 = vld [vmem:[#allocation125_spill] sm:$0xff] }
 0xafd   :  { %6524 = vperm.xlu1 %9510, %v6186_v50  }
 0xaff   :  { %v14081_v25 = vpop.xlane.xlu1 %5110 }
 0xb01   :  { %3865 = vperm.xlu0 %9511, %v3235_v62  }
 0xb02   :  { %v14097_v55 = vpop.xlane.xlu0 %5114 }
 0xb03   :  { %v14086_v47 = vpop.permute.xlu1 %3840 }
 0xb05   :  { %6529 = vperm.xlu0 %9511, %v6187_v16  }
 0xb07   :  { %v6505_v30 = vpop.permute.xlu1 %6504 }
 0xb08   :  { %v7228_v37 = vmul.f32 %v6505_v30, %v18885_v17  ;;  %v7229_v49 = vmul.f32 %v6505_v30, %v18886_v6  ;;  %v1599_v17 = vpop.f32.mrf.mxu0 }
 0xb0a   :  { %v8572_v50 = vadd.f32 %v18887_v7, %v7228_v37  ;;  %v8573_v62 = vadd.f32 %v18887_v7, %v7229_v49  ;;  %v14107_v63 = vpop.permute.xlu0 %3845  ;;  %v18890_v37 = vld [vmem:[#allocation34_spill] sm:$0xff]  ;;  %v442_v7 = vld [vmem:[%s18063_s2 + $0x7f0] sm:$0xff] }
 0xb0b   :  { %2915 = vmatmul.mubr.f32.gmra.mxu1 %v442_v7  ;;  %1856 = vmatmul.mubr.f32.gmra.mxu0 %v442_v7 }
 0xb0c   :  { %8908 = vst [vmem:[%s18065_s5 + $0x260] sm:$0xff] %v8572_v50  ;;  %8909 = vst.msk [vmem:[%s18065_s5 + $0x268] sm:$0xff] %vm2102_vm0, %v8573_v62  ;;  %v14131_v50 = vsub.f32 %v1595_v32, %v12959_v42  ;;  %v1601_v62 = vpop.f32.mrf.mxu0 }
 0xb0e   :  { %v6510_v16 = vpop.permute.xlu0 %6509  ;;  %18891 = vst [vmem:[#allocation100_spill] sm:$0xff] %v14131_v50 }
 0xb0f   :  { %v7230_v57 = vmul.f32 %v6510_v16, %v18888_v59  ;;  %v7231_v30 = vmul.f32 %v6510_v16, %v18889_v26  ;;  %v14134_v16 = vsub.f32 %v1593_v38, %v12959_v42  ;;  %v14137_v59 = vsub.f32 %v1601_v62, %v13020_v18 }
 0xb10   :  { %v14142_v26 = vsub.f32 %v1599_v17, %v13020_v18  ;;  %v14150_v38 = vpop.f32.mrf.mxu1 }
 0xb11   :  { %v8574_v6 = vadd.f32 %v18890_v37, %v7230_v57  ;;  %v8575_v49 = vadd.f32 %v18890_v37, %v7231_v30  ;;  %18892 = vst [vmem:[#allocation99_spill] sm:$0xff] %v14134_v16  ;;  %18893 = vst [vmem:[#allocation19_spill] sm:$0xff] %v14137_v59  ;;  %v4631_v57 = vmul.f32 %v14131_v50, %v14131_v50  ;;  %v5516_v37 = vmul.f32 0.0051020407, %v12703_v45 }
 0xb12   :  { %18894 = vst [vmem:[#allocation102_spill] sm:$0xff] %v14142_v26  ;;  %v4630_v30 = vmul.f32 %v14134_v16, %v14134_v16  ;;  %v4633_v32 = vmul.f32 %v14137_v59, %v14137_v59  ;;  %v5853_v59 = vadd.f32 0.001, %v5517_v44  ;;  %v3236_v50 = vmul.f32 0.0051020407, %v13986_v24  ;;  %v5685_v44 = vld [vmem:[%s18064_s3 + $0x168] sm:$0xff] }
 0xb13   :  { %8910 = vst [vmem:[%s18065_s5 + $0x270] sm:$0xff] %v8574_v6  ;;  %8911 = vst.msk [vmem:[%s18065_s5 + $0x278] sm:$0xff] %vm2102_vm0, %v8575_v49  ;;  %v5132_v42 = vsel %vm2102_vm0, %v4631_v57, 0.0  ;;  %v4632_v6 = vmul.f32 %v14142_v26, %v14142_v26  ;;  %v2883_v49 = vpop.f32.mrf.mxu1  ;;  %v5852_v17 = vadd.f32 0.001, %v5516_v37 }
 0xb14   :  { %v5133_v7 = vadd.f32 %v5132_v42, %v4630_v30  ;;  %v5136_v18 = vsel %vm2102_vm0, %v4633_v32, 0.0  ;;  %v5684_v30 = vld [vmem:[%s18064_s3 + $0x160] sm:$0xff]  ;;  %v3237_v37 = vmul.f32 0.0051020407, %v13992_v54  ;;  %v5519_v26 = vmul.f32 0.0051020407, %v12851_v43 }
 0xb15   :  { %v5137_v62 = vadd.f32 %v5136_v18, %v4632_v6  ;;  %9600 = vrsqrt.f32 %v5852_v17  ;;  %v444_v54 = vld [vmem:[%s18063_s2 + $0x800] sm:$0xff]  ;;  %v18896_v17 = vld [vmem:[#allocation128_spill] sm:$0xff] }
 0xb16   :  { %9602 = vrsqrt.f32 %v5853_v59 }
 0xb21   :  { %5134 = vadd.xlane.f32.xlu1 %v5133_v7  ;;  %v14156_v45 = vpop.f32.mrf.mxu1  ;;  %v18895_v7 = vld [vmem:[#allocation130_spill] sm:$0xff] }
 0xb22   :  { %v9601_v16 = vpop.eup %9600 }
 0xb23   :  { %v2888_v57 = vpop.f32.mrf.mxu1  ;;  %v6188_v32 = vmul.f32 %v9601_v16, %v5684_v30  ;;  %v9603_v22 = vpop.eup %9602  ;;  %v447_v16 = vld [vmem:[%s18063_s2 + $0x818] sm:$0xff] }
 0xb24   :  { %5138 = vadd.xlane.f32.xlu0 %v5137_v62  ;;  %v6189_v24 = vmul.f32 %v9603_v22, %v5685_v44  ;;  %v1605_v57 = vpop.f32.mrf.mxu0  ;;  %v18897_v30 = vld [vmem:[#allocation33_spill] sm:$0xff] }
 0xb26   :  { %v1607_v44 = vpop.f32.mrf.mxu0 }
 0xb32   :  { %3870 = vperm.xlu1 %9510, %v3236_v50   ;;  %v445_v50 = vld [vmem:[%s18063_s2 + $0x808] sm:$0xff] }
 0xb33   :  { %9468 = vmatprep.mubr.msk.f32.mxu1 %vm524_vm1, %v445_v50  ;;  %9300 = vmatprep.mubr.msk.f32.mxu0 %vm524_vm1, %v445_v50  ;;  %v18898_v50 = vld [vmem:[#allocation146_spill] sm:$0xff] }
 0xb34   :  { %2920 = vmatmul.mubr.f32.gmra.mxu1 %v444_v54  ;;  %1862 = vmatmul.mubr.f32.gmra.mxu0 %v444_v54 }
 0xb35   :  { %9469 = vmatprep.mubr.msk.f32.mxu1 %vm524_vm1, %v447_v16  ;;  %9301 = vmatprep.mubr.msk.f32.mxu0 %vm524_vm1, %v447_v16  ;;  %v18899_v16 = vld [vmem:[#allocation144_spill] sm:$0xff] }
 0xb36   :  { %6534 = vperm.xlu1 %9510, %v6188_v32  }
 0xb38   :  { %v14163_v42 = vpop.xlane.xlu1 %5118 }
 0xb3a   :  { %3875 = vperm.xlu0 %9511, %v3237_v37  }
 0xb3b   :  { %v14179_v6 = vpop.xlane.xlu0 %5122 }
 0xb3c   :  { %v14168_v59 = vpop.permute.xlu1 %3850 }
 0xb3e   :  { %6539 = vperm.xlu0 %9511, %v6189_v24  }
 0xb40   :  { %v6515_v49 = vpop.permute.xlu1 %6514 }
 0xb41   :  { %v7232_v18 = vmul.f32 %v6515_v49, %v18895_v7  ;;  %v7233_v62 = vmul.f32 %v6515_v49, %v18896_v17  ;;  %v1611_v7 = vpop.f32.mrf.mxu0 }
 0xb43   :  { %v8576_v32 = vadd.f32 %v18897_v30, %v7232_v18  ;;  %v8577_v37 = vadd.f32 %v18897_v30, %v7233_v62  ;;  %v14189_v22 = vpop.permute.xlu0 %3855  ;;  %v18900_v18 = vld [vmem:[#allocation36_spill] sm:$0xff] }
 0xb44   :  { %v446_v30 = vld [vmem:[%s18063_s2 + $0x810] sm:$0xff] }
 0xb45   :  { %8912 = vst [vmem:[%s18065_s5 + $0x280] sm:$0xff] %v8576_v32  ;;  %8913 = vst.msk [vmem:[%s18065_s5 + $0x288] sm:$0xff] %vm2102_vm0, %v8577_v37  ;;  %v14213_v32 = vsub.f32 %v1607_v44, %v13041_v39  ;;  %v1613_v37 = vpop.f32.mrf.mxu0  ;;  %2925 = vmatmul.mubr.f32.gmra.mxu1 %v446_v30  ;;  %1868 = vmatmul.mubr.f32.gmra.mxu0 %v446_v30 }
 0xb47   :  { %v6520_v24 = vpop.permute.xlu0 %6519  ;;  %18901 = vst [vmem:[#allocation101_spill] sm:$0xff] %v14213_v32 }
 0xb48   :  { %v7234_v54 = vmul.f32 %v6520_v24, %v18898_v50  ;;  %v7235_v49 = vmul.f32 %v6520_v24, %v18899_v16  ;;  %v14216_v24 = vsub.f32 %v1605_v57, %v13041_v39  ;;  %v14219_v50 = vsub.f32 %v1613_v37, %v13102_v3 }
 0xb49   :  { %v14224_v16 = vsub.f32 %v1611_v7, %v13102_v3  ;;  %v14232_v57 = vpop.f32.mrf.mxu1 }
 0xb4a   :  { %v8578_v17 = vadd.f32 %v18900_v18, %v7234_v54  ;;  %v8579_v62 = vadd.f32 %v18900_v18, %v7235_v49  ;;  %18902 = vst [vmem:[#allocation22_spill] sm:$0xff] %v14216_v24  ;;  %18903 = vst [vmem:[#allocation164_spill] sm:$0xff] %v14219_v50  ;;  %v4635_v54 = vmul.f32 %v14213_v32, %v14213_v32  ;;  %v5518_v18 = vmul.f32 0.0051020407, %v12785_v29 }
 0xb4b   :  { %18904 = vst [vmem:[#allocation155_spill] sm:$0xff] %v14224_v16  ;;  %v4634_v49 = vmul.f32 %v14216_v24, %v14216_v24  ;;  %v4637_v44 = vmul.f32 %v14219_v50, %v14219_v50  ;;  %v5855_v50 = vadd.f32 0.001, %v5519_v26  ;;  %v3238_v32 = vmul.f32 0.0051020407, %v14068_v19  ;;  %v5687_v26 = vld [vmem:[%s18064_s3 + $0x178] sm:$0xff] }
 0xb4c   :  { %8914 = vst [vmem:[%s18065_s5 + $0x290] sm:$0xff] %v8578_v17  ;;  %8915 = vst.msk [vmem:[%s18065_s5 + $0x298] sm:$0xff] %vm2102_vm0, %v8579_v62  ;;  %v5140_v39 = vsel %vm2102_vm0, %v4635_v54, 0.0  ;;  %v4636_v17 = vmul.f32 %v14224_v16, %v14224_v16  ;;  %v2893_v62 = vpop.f32.mrf.mxu1  ;;  %v5854_v7 = vadd.f32 0.001, %v5518_v18 }
 0xb4d   :  { %v5141_v30 = vadd.f32 %v5140_v39, %v4634_v49  ;;  %v5144_v3 = vsel %vm2102_vm0, %v4637_v44, 0.0  ;;  %v5686_v49 = vld [vmem:[%s18064_s3 + $0x170] sm:$0xff]  ;;  %v3239_v18 = vmul.f32 0.0051020407, %v14074_v56  ;;  %v448_v56 = vld [vmem:[%s18063_s2 + $0x820] sm:$0xff] }
 0xb4e   :  { %v5145_v37 = vadd.f32 %v5144_v3, %v4636_v17  ;;  %9604 = vrsqrt.f32 %v5854_v7  ;;  %v18906_v7 = vld [vmem:[#allocation147_spill] sm:$0xff]  ;;  %v5521_v16 = vmul.f32 0.0051020407, %v12933_v21 }
 0xb4f   :  { %9606 = vrsqrt.f32 %v5855_v50 }
 0xb59   :  { %v14238_v29 = vpop.f32.mrf.mxu1 }
 0xb5a   :  { %5142 = vadd.xlane.f32.xlu1 %v5141_v30  ;;  %v18905_v30 = vld [vmem:[#allocation149_spill] sm:$0xff] }
 0xb5b   :  { %v2898_v54 = vpop.f32.mrf.mxu1  ;;  %v9605_v24 = vpop.eup %9604 }
 0xb5c   :  { %v6190_v44 = vmul.f32 %v9605_v24, %v5686_v49  ;;  %v9607_v43 = vpop.eup %9606  ;;  %v451_v24 = vld [vmem:[%s18063_s2 + $0x838] sm:$0xff]  ;;  %v1617_v54 = vpop.f32.mrf.mxu0  ;;  %v18907_v49 = vld [vmem:[#allocation35_spill] sm:$0xff] }
 0xb5d   :  { %5146 = vadd.xlane.f32.xlu0 %v5145_v37  ;;  %v6191_v19 = vmul.f32 %v9607_v43, %v5687_v26 }
 0xb5e   :  { %v1619_v26 = vpop.f32.mrf.mxu0 }
 0xb6b   :  { %3880 = vperm.xlu1 %9510, %v3238_v32   ;;  %v449_v32 = vld [vmem:[%s18063_s2 + $0x828] sm:$0xff] }
 0xb6c   :  { %9470 = vmatprep.mubr.msk.f32.mxu1 %vm524_vm1, %v449_v32  ;;  %9302 = vmatprep.mubr.msk.f32.mxu0 %vm524_vm1, %v449_v32  ;;  %v18908_v32 = vld [vmem:[#allocation167_spill] sm:$0xff] }
 0xb6d   :  { %2930 = vmatmul.mubr.f32.gmra.mxu1 %v448_v56  ;;  %1874 = vmatmul.mubr.f32.gmra.mxu0 %v448_v56 }
 0xb6e   :  { %9471 = vmatprep.mubr.msk.f32.mxu1 %vm524_vm1, %v451_v24  ;;  %9303 = vmatprep.mubr.msk.f32.mxu0 %vm524_vm1, %v451_v24  ;;  %v18909_v24 = vld [vmem:[#allocation166_spill] sm:$0xff] }
 0xb6f   :  { %6544 = vperm.xlu1 %9510, %v6190_v44  }
 0xb71   :  { %v14245_v39 = vpop.xlane.xlu1 %5126 }
 0xb73   :  { %3885 = vperm.xlu0 %9511, %v3239_v18  }
 0xb74   :  { %v14261_v17 = vpop.xlane.xlu0 %5130 }
 0xb75   :  { %v14250_v50 = vpop.permute.xlu1 %3860 }
 0xb77   :  { %6549 = vperm.xlu0 %9511, %v6191_v19  }
 0xb79   :  { %v6525_v62 = vpop.permute.xlu1 %6524 }
 0xb7a   :  { %v7236_v3 = vmul.f32 %v6525_v62, %v18905_v30  ;;  %v7237_v37 = vmul.f32 %v6525_v62, %v18906_v7  ;;  %v1623_v30 = vpop.f32.mrf.mxu0 }
 0xb7c   :  { %v8580_v44 = vadd.f32 %v18907_v49, %v7236_v3  ;;  %v8581_v18 = vadd.f32 %v18907_v49, %v7237_v37  ;;  %v14271_v43 = vpop.permute.xlu0 %3865  ;;  %v18910_v3 = vld [vmem:[#allocation38_spill] sm:$0xff]  ;;  %v450_v49 = vld [vmem:[%s18063_s2 + $0x830] sm:$0xff] }
 0xb7d   :  { %2935 = vmatmul.mubr.f32.gmra.mxu1 %v450_v49  ;;  %1880 = vmatmul.mubr.f32.gmra.mxu0 %v450_v49 }
 0xb7e   :  { %8916 = vst [vmem:[%s18065_s5 + $0x2a0] sm:$0xff] %v8580_v44  ;;  %8917 = vst.msk [vmem:[%s18065_s5 + $0x2a8] sm:$0xff] %vm2102_vm0, %v8581_v18  ;;  %v14295_v44 = vsub.f32 %v1619_v26, %v13123_v27  ;;  %v1625_v18 = vpop.f32.mrf.mxu0 }
 0xb80   :  { %v6530_v19 = vpop.permute.xlu0 %6529  ;;  %18911 = vst [vmem:[#allocation170_spill] sm:$0xff] %v14295_v44 }
 0xb81   :  { %v7238_v56 = vmul.f32 %v6530_v19, %v18908_v32  ;;  %v7239_v62 = vmul.f32 %v6530_v19, %v18909_v24  ;;  %v14298_v19 = vsub.f32 %v1617_v54, %v13123_v27  ;;  %v14301_v32 = vsub.f32 %v1625_v18, %v13184_v20 }
 0xb82   :  { %v14306_v24 = vsub.f32 %v1623_v30, %v13184_v20  ;;  %v14314_v54 = vpop.f32.mrf.mxu1 }
 0xb83   :  { %v8582_v7 = vadd.f32 %v18910_v3, %v7238_v56  ;;  %v8583_v37 = vadd.f32 %v18910_v3, %v7239_v62  ;;  %18912 = vst [vmem:[#allocation104_spill] sm:$0xff] %v14298_v19  ;;  %18913 = vst [vmem:[#allocation103_spill] sm:$0xff] %v14301_v32  ;;  %v4639_v56 = vmul.f32 %v14295_v44, %v14295_v44  ;;  %v5520_v3 = vmul.f32 0.0051020407, %v12867_v35 }
 0xb84   :  { %18914 = vst [vmem:[#allocation21_spill] sm:$0xff] %v14306_v24  ;;  %v4638_v62 = vmul.f32 %v14298_v19, %v14298_v19  ;;  %v4641_v26 = vmul.f32 %v14301_v32, %v14301_v32  ;;  %v5857_v32 = vadd.f32 0.001, %v5521_v16  ;;  %v3240_v44 = vmul.f32 0.0051020407, %v14150_v38  ;;  %v5689_v16 = vld [vmem:[%s18064_s3 + $0x188] sm:$0xff] }
 0xb85   :  { %8918 = vst [vmem:[%s18065_s5 + $0x2b0] sm:$0xff] %v8582_v7  ;;  %8919 = vst.msk [vmem:[%s18065_s5 + $0x2b8] sm:$0xff] %vm2102_vm0, %v8583_v37  ;;  %v5148_v27 = vsel %vm2102_vm0, %v4639_v56, 0.0  ;;  %v4640_v7 = vmul.f32 %v14306_v24, %v14306_v24  ;;  %v2903_v37 = vpop.f32.mrf.mxu1  ;;  %v5856_v30 = vadd.f32 0.001, %v5520_v3 }
 0xb86   :  { %v5149_v49 = vadd.f32 %v5148_v27, %v4638_v62  ;;  %v5152_v20 = vsel %vm2102_vm0, %v4641_v26, 0.0  ;;  %v5688_v62 = vld [vmem:[%s18064_s3 + $0x180] sm:$0xff]  ;;  %v3241_v3 = vmul.f32 0.0051020407, %v14156_v45  ;;  %v3242_v24 = vmul.f32 0.0051020407, %v14232_v57 }
 0xb87   :  { %v5153_v18 = vadd.f32 %v5152_v20, %v4640_v7  ;;  %9608 = vrsqrt.f32 %v5856_v30  ;;  %v452_v45 = vld [vmem:[%s18063_s2 + $0x840] sm:$0xff]  ;;  %v18916_v30 = vld [vmem:[#allocation168_spill] sm:$0xff] }
 0xb88   :  { %9610 = vrsqrt.f32 %v5857_v32 }
 0xb93   :  { %5150 = vadd.xlane.f32.xlu1 %v5149_v49  ;;  %v14320_v35 = vpop.f32.mrf.mxu1  ;;  %v18915_v49 = vld [vmem:[#allocation169_spill] sm:$0xff] }
 0xb94   :  { %v9609_v19 = vpop.eup %9608 }
 0xb95   :  { %v2908_v56 = vpop.f32.mrf.mxu1  ;;  %v6192_v26 = vmul.f32 %v9609_v19, %v5688_v62  ;;  %v9611_v21 = vpop.eup %9610  ;;  %v455_v19 = vld [vmem:[%s18063_s2 + $0x858] sm:$0xff] }
 0xb96   :  { %5154 = vadd.xlane.f32.xlu0 %v5153_v18  ;;  %v6193_v38 = vmul.f32 %v9611_v21, %v5689_v16  ;;  %v1629_v56 = vpop.f32.mrf.mxu0  ;;  %v18917_v62 = vld [vmem:[#allocation37_spill] sm:$0xff] }
 0xb98   :  { %v1631_v16 = vpop.f32.mrf.mxu0 }
 0xba4   :  { %3890 = vperm.xlu1 %9510, %v3240_v44   ;;  %v453_v44 = vld [vmem:[%s18063_s2 + $0x848] sm:$0xff] }
 0xba5   :  { %9472 = vmatprep.mubr.msk.f32.mxu1 %vm524_vm1, %v453_v44  ;;  %9304 = vmatprep.mubr.msk.f32.mxu0 %vm524_vm1, %v453_v44 }
 0xba6   :  { %2940 = vmatmul.mubr.f32.gmra.mxu1 %v452_v45  ;;  %1886 = vmatmul.mubr.f32.gmra.mxu0 %v452_v45  ;;  %v18918_v45 = vld [vmem:[#allocation171_spill] sm:$0xff] }
 0xba7   :  { %9473 = vmatprep.mubr.msk.f32.mxu1 %vm524_vm1, %v455_v19  ;;  %9305 = vmatprep.mubr.msk.f32.mxu0 %vm524_vm1, %v455_v19 }
 0xba8   :  { %6554 = vperm.xlu1 %9510, %v6192_v26  }
 0xbaa   :  { %v14327_v27 = vpop.xlane.xlu1 %5134 }
 0xbac   :  { %3895 = vperm.xlu0 %9511, %v3241_v3  }
 0xbad   :  { %v14343_v7 = vpop.xlane.xlu0 %5138 }
 0xbae   :  { %v14332_v32 = vpop.permute.xlu1 %3870 }
 0xbb0   :  { %6559 = vperm.xlu0 %9511, %v6193_v38  }
 0xbb2   :  { %v6535_v37 = vpop.permute.xlu1 %6534 }
 0xbb3   :  { %v7240_v20 = vmul.f32 %v6535_v37, %v18915_v49  ;;  %v7241_v18 = vmul.f32 %v6535_v37, %v18916_v30  ;;  %v1635_v37 = vpop.f32.mrf.mxu0  ;;  %v18919_v49 = vld [vmem:[#allocation40_spill] sm:$0xff] }
 0xbb5   :  { %v8584_v26 = vadd.f32 %v18917_v62, %v7240_v20  ;;  %v8585_v3 = vadd.f32 %v18917_v62, %v7241_v18  ;;  %v14353_v21 = vpop.permute.xlu0 %3875  ;;  %v14377_v18 = vsub.f32 %v1631_v16, %v13205_v34  ;;  %v1637_v62 = vpop.f32.mrf.mxu0 }
 0xbb7   :  { %8920 = vst [vmem:[%s18065_s5 + $0x2c0] sm:$0xff] %v8584_v26  ;;  %8921 = vst.msk [vmem:[%s18065_s5 + $0x2c8] sm:$0xff] %vm2102_vm0, %v8585_v3  ;;  %v14380_v26 = vsub.f32 %v1629_v56, %v13205_v34  ;;  %v14383_v3 = vsub.f32 %v1637_v62, %v13266_v11  ;;  %v5523_v62 = vmul.f32 0.0051020407, %v13015_v51 }
 0xbb8   :  { %18920 = vst [vmem:[#allocation106_spill] sm:$0xff] %v14377_v18 }
 0xbb9   :  { %v6540_v38 = vpop.permute.xlu0 %6539  ;;  %18921 = vst [vmem:[#allocation105_spill] sm:$0xff] %v14380_v26  ;;  %18922 = vst [vmem:[#allocation24_spill] sm:$0xff] %v14383_v3  ;;  %v4645_v16 = vmul.f32 %v14383_v3, %v14383_v3  ;;  %v5859_v3 = vadd.f32 0.001, %v5523_v62 }
 0xbba   :  { %v7242_v44 = vmul.f32 %v6540_v38, %v12572_v8  ;;  %v7243_v19 = vmul.f32 %v6540_v38, %v18918_v45  ;;  %v454_v8 = vld [vmem:[%s18063_s2 + $0x850] sm:$0xff]  ;;  %v4643_v38 = vmul.f32 %v14377_v18, %v14377_v18  ;;  %v4642_v45 = vmul.f32 %v14380_v26, %v14380_v26 }
 0xbbb   :  { %2945 = vmatmul.mubr.f32.gmra.mxu1 %v454_v8  ;;  %1892 = vmatmul.mubr.f32.gmra.mxu0 %v454_v8  ;;  %v14396_v56 = vpop.f32.mrf.mxu1 }
 0xbbc   :  { %v8586_v20 = vadd.f32 %v18919_v49, %v7242_v44  ;;  %v8587_v30 = vadd.f32 %v18919_v49, %v7243_v19  ;;  %v14388_v44 = vsub.f32 %v1635_v37, %v13266_v11  ;;  %v5522_v19 = vmul.f32 0.0051020407, %v12949_v58 }
 0xbbd   :  { %v5156_v34 = vsel %vm2102_vm0, %v4643_v38, 0.0  ;;  %v5160_v11 = vsel %vm2102_vm0, %v4645_v16, 0.0 }
 0xbbe   :  { %8922 = vst [vmem:[%s18065_s5 + $0x2d0] sm:$0xff] %v8586_v20  ;;  %8923 = vst.msk [vmem:[%s18065_s5 + $0x2d8] sm:$0xff] %vm2102_vm0, %v8587_v30  ;;  %v4644_v49 = vmul.f32 %v14388_v44, %v14388_v44  ;;  %v2913_v20 = vpop.f32.mrf.mxu1  ;;  %v5157_v30 = vadd.f32 %v5156_v34, %v4642_v45  ;;  %v5858_v37 = vadd.f32 0.001, %v5522_v19  ;;  %v5690_v45 = vld [vmem:[%s18064_s3 + $0x190] sm:$0xff] }
 0xbbf   :  { %18923 = vst [vmem:[#allocation157_spill] sm:$0xff] %v14388_v44  ;;  %v3243_v19 = vmul.f32 0.0051020407, %v14238_v29  ;;  %v456_v29 = vld [vmem:[%s18063_s2 + $0x860] sm:$0xff] }
 0xbc0   :  { %v5161_v8 = vadd.f32 %v5160_v11, %v4644_v49  ;;  %9612 = vrsqrt.f32 %v5858_v37  ;;  %v5691_v49 = vld [vmem:[%s18064_s3 + $0x198] sm:$0xff] }
 0xbc1   :  { %9614 = vrsqrt.f32 %v5859_v3  ;;  %v18925_v11 = vld [vmem:[#allocation173_spill] sm:$0xff] }
 0xbcb   :  { %v14402_v58 = vpop.f32.mrf.mxu1 }
 0xbcc   :  { %5158 = vadd.xlane.f32.xlu1 %v5157_v30 }
 0xbcd   :  { %v2918_v38 = vpop.f32.mrf.mxu1  ;;  %v9613_v18 = vpop.eup %9612 }
 0xbce   :  { %v6194_v16 = vmul.f32 %v9613_v18, %v5690_v45  ;;  %v9615_v51 = vpop.eup %9614  ;;  %v459_v18 = vld [vmem:[%s18063_s2 + $0x878] sm:$0xff]  ;;  %v1641_v38 = vpop.f32.mrf.mxu0  ;;  %v18927_v45 = vld [vmem:[#allocation39_spill] sm:$0xff] }
 0xbcf   :  { %5162 = vadd.xlane.f32.xlu0 %v5161_v8  ;;  %v6195_v57 = vmul.f32 %v9615_v51, %v5691_v49  ;;  %v18926_v8 = vld [vmem:[#allocation172_spill] sm:$0xff] }
 0xbd0   :  { %v1643_v49 = vpop.f32.mrf.mxu0 }
 0xbdd   :  { %3900 = vperm.xlu1 %9510, %v3242_v24   ;;  %v457_v24 = vld [vmem:[%s18063_s2 + $0x868] sm:$0xff] }
 0xbde   :  { %9474 = vmatprep.mubr.msk.f32.mxu1 %vm524_vm1, %v457_v24  ;;  %9306 = vmatprep.mubr.msk.f32.mxu0 %vm524_vm1, %v457_v24 }
 0xbdf   :  { %2950 = vmatmul.mubr.f32.gmra.mxu1 %v456_v29  ;;  %1898 = vmatmul.mubr.f32.gmra.mxu0 %v456_v29 }
 0xbe0   :  { %9475 = vmatprep.mubr.msk.f32.mxu1 %vm524_vm1, %v459_v18  ;;  %9307 = vmatprep.mubr.msk.f32.mxu0 %vm524_vm1, %v459_v18  ;;  %v1647_v18 = vpop.f32.mrf.mxu0 }
 0xbe1   :  { %6564 = vperm.xlu1 %9510, %v6194_v16  }
 0xbe3   :  { %v14409_v34 = vpop.xlane.xlu1 %5142 }
 0xbe5   :  { %3905 = vperm.xlu0 %9511, %v3243_v19  }
 0xbe6   :  { %v14425_v20 = vpop.xlane.xlu0 %5146 }
 0xbe7   :  { %v14414_v3 = vpop.permute.xlu1 %3880  ;;  %18924 = vst [vmem:[#allocation108_spill] sm:$0xff] %v14425_v20 }
 0xbe9   :  { %6569 = vperm.xlu0 %9511, %v6195_v57  }
 0xbeb   :  { %v6545_v30 = vpop.permute.xlu1 %6544 }
 0xbec   :  { %v7244_v37 = vmul.f32 %v6545_v30, %v18925_v11  ;;  %v7245_v62 = vmul.f32 %v6545_v30, %v18926_v8  ;;  %v18928_v30 = vld [vmem:[#allocation42_spill] sm:$0xff]  ;;  %v1649_v8 = vpop.f32.mrf.mxu0 }
 0xbee   :  { %v8588_v16 = vadd.f32 %v18927_v45, %v7244_v37  ;;  %v8589_v19 = vadd.f32 %v18927_v45, %v7245_v62  ;;  %v14435_v51 = vpop.permute.xlu0 %3885  ;;  %v14462_v62 = vsub.f32 %v1641_v38, %v13287_v33  ;;  %v14465_v45 = vsub.f32 %v1649_v8, %v13348_v2  ;;  %v18934_v8 = vld [vmem:[#allocation3_spill] sm:$0xff] }
 0xbef   :  { %v5525_v44 = vmul.f32 0.0051020407, %v18934_v8 }
 0xbf0   :  { %8924 = vst [vmem:[%s18065_s5 + $0x2e0] sm:$0xff] %v8588_v16  ;;  %8925 = vst.msk [vmem:[%s18065_s5 + $0x2e8] sm:$0xff] %vm2102_vm0, %v8589_v19  ;;  %v14470_v19 = vsub.f32 %v1647_v18, %v13348_v2 }
 0xbf1   :  { %18930 = vst [vmem:[#allocation23_spill] sm:$0xff] %v14462_v62  ;;  %18931 = vst [vmem:[#allocation110_spill] sm:$0xff] %v14465_v45 }
 0xbf2   :  { %v6550_v57 = vpop.permute.xlu0 %6549  ;;  %18932 = vst [vmem:[#allocation109_spill] sm:$0xff] %v14470_v19 }
 0xbf3   :  { %v7246_v24 = vmul.f32 %v6550_v57, %v12658_v13  ;;  %v7247_v29 = vmul.f32 %v6550_v57, %v12655_v23  ;;  %v458_v13 = vld [vmem:[%s18063_s2 + $0x870] sm:$0xff]  ;;  %v14459_v23 = vsub.f32 %v1643_v49, %v13287_v33  ;;  %v4646_v57 = vmul.f32 %v14462_v62, %v14462_v62 }
 0xbf4   :  { %2955 = vmatmul.mubr.f32.gmra.mxu1 %v458_v13  ;;  %1904 = vmatmul.mubr.f32.gmra.mxu0 %v458_v13  ;;  %v4649_v49 = vmul.f32 %v14465_v45, %v14465_v45  ;;  %v14478_v38 = vpop.f32.mrf.mxu1  ;;  %v5861_v45 = vadd.f32 0.001, %v5525_v44  ;;  %v5693_v44 = vld [vmem:[%s18064_s3 + $0x1a8] sm:$0xff] }
 0xbf5   :  { %v8590_v11 = vadd.f32 %v18928_v30, %v7246_v24  ;;  %v8591_v37 = vadd.f32 %v18928_v30, %v7247_v29  ;;  %18929 = vst [vmem:[#allocation107_spill] sm:$0xff] %v14459_v23  ;;  %v4647_v16 = vmul.f32 %v14459_v23, %v14459_v23  ;;  %v18933_v24 = vld [vmem:[#allocation136_spill] sm:$0xff]  ;;  %v4648_v30 = vmul.f32 %v14470_v19, %v14470_v19 }
 0xbf6   :  { %v5524_v29 = vmul.f32 0.0051020407, %v18933_v24  ;;  %v5168_v2 = vsel %vm2102_vm0, %v4649_v49, 0.0  ;;  %v3244_v23 = vmul.f32 0.0051020407, %v14314_v54 }
 0xbf7   :  { %8926 = vst [vmem:[%s18065_s5 + $0x2f0] sm:$0xff] %v8590_v11  ;;  %8927 = vst.msk [vmem:[%s18065_s5 + $0x2f8] sm:$0xff] %vm2102_vm0, %v8591_v37  ;;  %v5164_v33 = vsel %vm2102_vm0, %v4647_v16, 0.0  ;;  %v2923_v11 = vpop.f32.mrf.mxu1  ;;  %v5169_v13 = vadd.f32 %v5168_v2, %v4648_v30  ;;  %v18937_v2 = vld [vmem:[#allocation175_spill] sm:$0xff] }
 0xbf8   :  { %v5165_v37 = vadd.f32 %v5164_v33, %v4646_v57  ;;  %v5860_v18 = vadd.f32 0.001, %v5524_v29  ;;  %v5692_v57 = vld [vmem:[%s18064_s3 + $0x1a0] sm:$0xff]  ;;  %v3245_v29 = vmul.f32 0.0051020407, %v14320_v35 }
 0xbf9   :  { %v460_v35 = vld [vmem:[%s18063_s2 + $0x880] sm:$0xff] }
 0xbfa   :  { %9616 = vrsqrt.f32 %v5860_v18 }
 0xbfb   :  { %9618 = vrsqrt.f32 %v5861_v45 }
 0xc05   :  { %5166 = vadd.xlane.f32.xlu1 %v5165_v37  ;;  %v14484_v24 = vpop.f32.mrf.mxu1 }
 0xc07   :  { %v2928_v16 = vpop.f32.mrf.mxu1  ;;  %v9617_v62 = vpop.eup %9616 }
 0xc08   :  { %5170 = vadd.xlane.f32.xlu0 %v5169_v13  ;;  %v6196_v49 = vmul.f32 %v9617_v62, %v5692_v57  ;;  %v9619_v30 = vpop.eup %9618  ;;  %v463_v62 = vld [vmem:[%s18063_s2 + $0x898] sm:$0xff]  ;;  %v18938_v13 = vld [vmem:[#allocation174_spill] sm:$0xff]  ;;  %v1653_v16 = vpop.f32.mrf.mxu0 }
 0xc09   :  { %v6197_v54 = vmul.f32 %v9619_v30, %v5693_v44  ;;  %v18939_v57 = vld [vmem:[#allocation41_spill] sm:$0xff] }
 0xc0a   :  { %v1655_v44 = vpop.f32.mrf.mxu0 }
 0xc16   :  { %3910 = vperm.xlu1 %9510, %v3244_v23   ;;  %v461_v23 = vld [vmem:[%s18063_s2 + $0x888] sm:$0xff] }
 0xc17   :  { %9476 = vmatprep.mubr.msk.f32.mxu1 %vm524_vm1, %v461_v23  ;;  %9308 = vmatprep.mubr.msk.f32.mxu0 %vm524_vm1, %v461_v23  ;;  %v18940_v23 = vld [vmem:[#allocation177_spill] sm:$0xff] }
 0xc18   :  { %2960 = vmatmul.mubr.f32.gmra.mxu1 %v460_v35  ;;  %1910 = vmatmul.mubr.f32.gmra.mxu0 %v460_v35 }
 0xc19   :  { %9477 = vmatprep.mubr.msk.f32.mxu1 %vm524_vm1, %v463_v62  ;;  %9309 = vmatprep.mubr.msk.f32.mxu0 %vm524_vm1, %v463_v62  ;;  %v18941_v62 = vld [vmem:[#allocation176_spill] sm:$0xff] }
 0xc1a   :  { %6574 = vperm.xlu1 %9510, %v6196_v49  }
 0xc1c   :  { %v14491_v33 = vpop.xlane.xlu1 %5150 }
 0xc1d   :  { %18935 = vst [vmem:[#allocation26_spill] sm:$0xff] %v14491_v33 }
 0xc1e   :  { %3915 = vperm.xlu0 %9511, %v3245_v29  }
 0xc1f   :  { %v14507_v11 = vpop.xlane.xlu0 %5154 }
 0xc20   :  { %v14496_v45 = vpop.permute.xlu1 %3890  ;;  %18936 = vst [vmem:[#allocation160_spill] sm:$0xff] %v14507_v11  ;;  %v3246_v11 = vmul.f32 0.0051020407, %v14396_v56 }
 0xc22   :  { %6579 = vperm.xlu0 %9511, %v6197_v54  }
 0xc24   :  { %v6555_v37 = vpop.permute.xlu1 %6554 }
 0xc25   :  { %v7248_v18 = vmul.f32 %v6555_v37, %v18937_v2  ;;  %v7249_v8 = vmul.f32 %v6555_v37, %v18938_v13  ;;  %v1659_v2 = vpop.f32.mrf.mxu0 }
 0xc27   :  { %v8592_v49 = vadd.f32 %v18939_v57, %v7248_v18  ;;  %v8593_v29 = vadd.f32 %v18939_v57, %v7249_v8  ;;  %v14517_v30 = vpop.permute.xlu0 %3895  ;;  %v18942_v18 = vld [vmem:[#allocation44_spill] sm:$0xff] }
 0xc28   :  { %v462_v57 = vld [vmem:[%s18063_s2 + $0x890] sm:$0xff] }
 0xc29   :  { %8928 = vst [vmem:[%s18065_s5 + $0x300] sm:$0xff] %v8592_v49  ;;  %8929 = vst.msk [vmem:[%s18065_s5 + $0x308] sm:$0xff] %vm2102_vm0, %v8593_v29  ;;  %v18943_v49 = vld [vmem:[#allocation77_spill] sm:$0xff]  ;;  %2965 = vmatmul.mubr.f32.gmra.mxu1 %v462_v57  ;;  %1916 = vmatmul.mubr.f32.gmra.mxu0 %v462_v57 }
 0xc2a   :  { %v14541_v29 = vsub.f32 %v1655_v44, %v18943_v49 }
 0xc2b   :  { %v6560_v54 = vpop.permute.xlu0 %6559 }
 0xc2c   :  { %v7250_v35 = vmul.f32 %v6560_v54, %v18940_v23  ;;  %v7251_v37 = vmul.f32 %v6560_v54, %v18941_v62  ;;  %18944 = vst [vmem:[#allocation112_spill] sm:$0xff] %v14541_v29  ;;  %v1661_v54 = vpop.f32.mrf.mxu0  ;;  %v14544_v23 = vsub.f32 %v1653_v16, %v18943_v49  ;;  %v4651_v62 = vmul.f32 %v14541_v29, %v14541_v29 }
 0xc2d   :  { %v14560_v57 = vpop.f32.mrf.mxu1 }
 0xc2e   :  { %v8594_v13 = vadd.f32 %v18942_v18, %v7250_v35  ;;  %v8595_v8 = vadd.f32 %v18942_v18, %v7251_v37  ;;  %18945 = vst [vmem:[#allocation111_spill] sm:$0xff] %v14544_v23  ;;  %v14547_v35 = vsub.f32 %v1661_v54, %v13430_v60  ;;  %v14552_v37 = vsub.f32 %v1659_v2, %v13430_v60 }
 0xc2f   :  { %v4650_v18 = vmul.f32 %v14544_v23, %v14544_v23  ;;  %v5172_v16 = vsel %vm2102_vm0, %v4651_v62, 0.0  ;;  %v2933_v54 = vpop.f32.mrf.mxu1  ;;  %v18949_v23 = vld [vmem:[#allocation137_spill] sm:$0xff] }
 0xc30   :  { %8930 = vst [vmem:[%s18065_s5 + $0x310] sm:$0xff] %v8594_v13  ;;  %8931 = vst.msk [vmem:[%s18065_s5 + $0x318] sm:$0xff] %vm2102_vm0, %v8595_v8  ;;  %v4653_v44 = vmul.f32 %v14547_v35, %v14547_v35  ;;  %v18948_v13 = vld [vmem:[#allocation70_spill] sm:$0xff]  ;;  %v4652_v49 = vmul.f32 %v14552_v37, %v14552_v37  ;;  %v5527_v26 = vmul.f32 0.0051020407, %v18949_v23 }
 0xc31   :  { %18946 = vst [vmem:[#allocation25_spill] sm:$0xff] %v14547_v35  ;;  %18947 = vst [vmem:[#allocation114_spill] sm:$0xff] %v14552_v37  ;;  %v5526_v8 = vmul.f32 0.0051020407, %v18948_v13  ;;  %v5173_v19 = vadd.f32 %v5172_v16, %v4650_v18  ;;  %v5694_v18 = vld [vmem:[%s18064_s3 + $0x1b0] sm:$0xff] }
 0xc32   :  { %v5176_v60 = vsel %vm2102_vm0, %v4653_v44, 0.0  ;;  %v5863_v35 = vadd.f32 0.001, %v5527_v26  ;;  %v5695_v26 = vld [vmem:[%s18064_s3 + $0x1b8] sm:$0xff] }
 0xc33   :  { %v5862_v2 = vadd.f32 0.001, %v5526_v8  ;;  %v5177_v29 = vadd.f32 %v5176_v60, %v4652_v49  ;;  %v18952_v49 = vld [vmem:[#allocation179_spill] sm:$0xff]  ;;  %v18953_v60 = vld [vmem:[#allocation178_spill] sm:$0xff] }
 0xc35   :  { %9620 = vrsqrt.f32 %v5862_v2 }
 0xc36   :  { %9622 = vrsqrt.f32 %v5863_v35 }
 0xc3d   :  { %v14566_v13 = vpop.f32.mrf.mxu1 }
 0xc3e   :  { %5174 = vadd.xlane.f32.xlu1 %v5173_v19  ;;  %v3247_v19 = vmul.f32 0.0051020407, %v14402_v58  ;;  %v464_v58 = vld [vmem:[%s18063_s2 + $0x8a0] sm:$0xff] }
 0xc3f   :  { %v2938_v62 = vpop.f32.mrf.mxu1 }
 0xc40   :  { %v1665_v62 = vpop.f32.mrf.mxu0 }
 0xc41   :  { %5178 = vadd.xlane.f32.xlu0 %v5177_v29 }
 0xc42   :  { %v9621_v33 = vpop.eup %9620 }
 0xc43   :  { %v6198_v44 = vmul.f32 %v9621_v33, %v5694_v18  ;;  %v9623_v29 = vpop.eup %9622  ;;  %v467_v33 = vld [vmem:[%s18063_s2 + $0x8b8] sm:$0xff]  ;;  %v18954_v18 = vld [vmem:[#allocation43_spill] sm:$0xff] }
 0xc44   :  { %v6199_v56 = vmul.f32 %v9623_v29, %v5695_v26  ;;  %v1667_v26 = vpop.f32.mrf.mxu0 }
 0xc4f   :  { %3920 = vperm.xlu1 %9510, %v3246_v11   ;;  %v465_v11 = vld [vmem:[%s18063_s2 + $0x8a8] sm:$0xff] }
 0xc50   :  { %9478 = vmatprep.mubr.msk.f32.mxu1 %vm524_vm1, %v465_v11  ;;  %9310 = vmatprep.mubr.msk.f32.mxu0 %vm524_vm1, %v465_v11  ;;  %v18955_v11 = vld [vmem:[#allocation181_spill] sm:$0xff] }
 0xc51   :  { %2970 = vmatmul.mubr.f32.gmra.mxu1 %v464_v58  ;;  %1922 = vmatmul.mubr.f32.gmra.mxu0 %v464_v58 }
 0xc52   :  { %9479 = vmatprep.mubr.msk.f32.mxu1 %vm524_vm1, %v467_v33  ;;  %9311 = vmatprep.mubr.msk.f32.mxu0 %vm524_vm1, %v467_v33  ;;  %v18956_v33 = vld [vmem:[#allocation180_spill] sm:$0xff] }
 0xc53   :  { %6584 = vperm.xlu1 %9510, %v6198_v44  }
 0xc55   :  { %v14573_v8 = vpop.xlane.xlu1 %5158 }
 0xc56   :  { %18950 = vst [vmem:[#allocation113_spill] sm:$0xff] %v14573_v8  ;;  %v3248_v8 = vmul.f32 0.0051020407, %v14478_v38 }
 0xc57   :  { %3925 = vperm.xlu0 %9511, %v3247_v19  }
 0xc58   :  { %v14589_v35 = vpop.xlane.xlu0 %5162 }
 0xc59   :  { %v14578_v23 = vpop.permute.xlu1 %3900  ;;  %18951 = vst [vmem:[#allocation28_spill] sm:$0xff] %v14589_v35 }
 0xc5b   :  { %6589 = vperm.xlu0 %9511, %v6199_v56  }
 0xc5d   :  { %v6565_v16 = vpop.permute.xlu1 %6564 }
 0xc5e   :  { %v7252_v54 = vmul.f32 %v6565_v16, %v18952_v49  ;;  %v7253_v2 = vmul.f32 %v6565_v16, %v18953_v60  ;;  %v1671_v49 = vpop.f32.mrf.mxu0 }
 0xc60   :  { %v8596_v44 = vadd.f32 %v18954_v18, %v7252_v54  ;;  %v8597_v19 = vadd.f32 %v18954_v18, %v7253_v2  ;;  %v14599_v29 = vpop.permute.xlu0 %3905  ;;  %v18957_v54 = vld [vmem:[#allocation46_spill] sm:$0xff]  ;;  %v466_v18 = vld [vmem:[%s18063_s2 + $0x8b0] sm:$0xff] }
 0xc61   :  { %2975 = vmatmul.mubr.f32.gmra.mxu1 %v466_v18  ;;  %1928 = vmatmul.mubr.f32.gmra.mxu0 %v466_v18 }
 0xc62   :  { %8932 = vst [vmem:[%s18065_s5 + $0x320] sm:$0xff] %v8596_v44  ;;  %8933 = vst.msk [vmem:[%s18065_s5 + $0x328] sm:$0xff] %vm2102_vm0, %v8597_v19  ;;  %v18958_v44 = vld [vmem:[#allocation9_spill] sm:$0xff] }
 0xc63   :  { %v14623_v19 = vsub.f32 %v1667_v26, %v18958_v44 }
 0xc64   :  { %v6570_v56 = vpop.permute.xlu0 %6569 }
 0xc65   :  { %v7254_v58 = vmul.f32 %v6570_v56, %v18955_v11  ;;  %v7255_v16 = vmul.f32 %v6570_v56, %v18956_v33  ;;  %18959 = vst [vmem:[#allocation163_spill] sm:$0xff] %v14623_v19  ;;  %v1673_v56 = vpop.f32.mrf.mxu0  ;;  %v14626_v11 = vsub.f32 %v1665_v62, %v18958_v44  ;;  %v4655_v33 = vmul.f32 %v14623_v19, %v14623_v19 }
 0xc66   :  { %v14642_v18 = vpop.f32.mrf.mxu1 }
 0xc67   :  { %v8598_v60 = vadd.f32 %v18957_v54, %v7254_v58  ;;  %v8599_v2 = vadd.f32 %v18957_v54, %v7255_v16  ;;  %18960 = vst [vmem:[#allocation116_spill] sm:$0xff] %v14626_v11  ;;  %v14629_v58 = vsub.f32 %v1673_v56, %v13512_v12  ;;  %v14634_v16 = vsub.f32 %v1671_v49, %v13512_v12 }
 0xc68   :  { %v4654_v54 = vmul.f32 %v14626_v11, %v14626_v11  ;;  %v5180_v62 = vsel %vm2102_vm0, %v4655_v33, 0.0  ;;  %v2943_v56 = vpop.f32.mrf.mxu1  ;;  %v18964_v11 = vld [vmem:[#allocation8_spill] sm:$0xff] }
 0xc69   :  { %8934 = vst [vmem:[%s18065_s5 + $0x330] sm:$0xff] %v8598_v60  ;;  %8935 = vst.msk [vmem:[%s18065_s5 + $0x338] sm:$0xff] %vm2102_vm0, %v8599_v2  ;;  %v4657_v26 = vmul.f32 %v14629_v58, %v14629_v58  ;;  %v18963_v60 = vld [vmem:[#allocation72_spill] sm:$0xff]  ;;  %v4656_v44 = vmul.f32 %v14634_v16, %v14634_v16  ;;  %v5529_v35 = vmul.f32 0.0051020407, %v18964_v11 }
 0xc6a   :  { %18961 = vst [vmem:[#allocation115_spill] sm:$0xff] %v14629_v58  ;;  %18962 = vst [vmem:[#allocation27_spill] sm:$0xff] %v14634_v16  ;;  %v5528_v2 = vmul.f32 0.0051020407, %v18963_v60  ;;  %v5181_v37 = vadd.f32 %v5180_v62, %v4654_v54  ;;  %v5696_v54 = vld [vmem:[%s18064_s3 + $0x1c0] sm:$0xff] }
 0xc6b   :  { %v5184_v12 = vsel %vm2102_vm0, %v4657_v26, 0.0  ;;  %v5865_v58 = vadd.f32 0.001, %v5529_v35  ;;  %v5697_v35 = vld [vmem:[%s18064_s3 + $0x1c8] sm:$0xff] }
 0xc6c   :  { %v5864_v49 = vadd.f32 0.001, %v5528_v2  ;;  %v5185_v19 = vadd.f32 %v5184_v12, %v4656_v44  ;;  %v18967_v44 = vld [vmem:[#allocation183_spill] sm:$0xff]  ;;  %v18968_v12 = vld [vmem:[#allocation182_spill] sm:$0xff] }
 0xc6e   :  { %9624 = vrsqrt.f32 %v5864_v49 }
 0xc6f   :  { %9626 = vrsqrt.f32 %v5865_v58 }
 0xc77   :  { %5182 = vadd.xlane.f32.xlu1 %v5181_v37  ;;  %v3249_v37 = vmul.f32 0.0051020407, %v14484_v24  ;;  %v471_v24 = vld [vmem:[%s18063_s2 + $0x8d8] sm:$0xff] }
 0xc7a   :  { %5186 = vadd.xlane.f32.xlu0 %v5185_v19 }
 0xc7b   :  { %v14648_v60 = vpop.f32.mrf.mxu1  ;;  %v9625_v20 = vpop.eup %9624 }
 0xc7c   :  { %v6200_v26 = vmul.f32 %v9625_v20, %v5696_v54  ;;  %v9627_v19 = vpop.eup %9626  ;;  %v468_v20 = vld [vmem:[%s18063_s2 + $0x8c0] sm:$0xff]  ;;  %v18969_v54 = vld [vmem:[#allocation45_spill] sm:$0xff] }
 0xc7d   :  { %v2948_v33 = vpop.f32.mrf.mxu1  ;;  %v6201_v38 = vmul.f32 %v9627_v19, %v5697_v35 }
 0xc7e   :  { %v1677_v33 = vpop.f32.mrf.mxu0 }
 0xc80   :  { %v1679_v35 = vpop.f32.mrf.mxu0 }
 0xc88   :  { %3930 = vperm.xlu1 %9510, %v3248_v8   ;;  %v469_v8 = vld [vmem:[%s18063_s2 + $0x8c8] sm:$0xff] }
 0xc89   :  { %9480 = vmatprep.mubr.msk.f32.mxu1 %vm524_vm1, %v469_v8  ;;  %9312 = vmatprep.mubr.msk.f32.mxu0 %vm524_vm1, %v469_v8  ;;  %v18971_v8 = vld [vmem:[#allocation132_spill] sm:$0xff] }
 0xc8a   :  { %2980 = vmatmul.mubr.f32.gmra.mxu1 %v468_v20  ;;  %1934 = vmatmul.mubr.f32.gmra.mxu0 %v468_v20 }
 0xc8b   :  { %9481 = vmatprep.mubr.msk.f32.mxu1 %vm524_vm1, %v471_v24  ;;  %9313 = vmatprep.mubr.msk.f32.mxu0 %vm524_vm1, %v471_v24  ;;  %v18972_v24 = vld [vmem:[#allocation126_spill] sm:$0xff] }
 0xc8c   :  { %6594 = vperm.xlu1 %9510, %v6200_v26  }
 0xc8e   :  { %v14655_v2 = vpop.xlane.xlu1 %5166 }
 0xc8f   :  { %18965 = vst [vmem:[#allocation118_spill] sm:$0xff] %v14655_v2  ;;  %v3250_v2 = vmul.f32 0.0051020407, %v14560_v57 }
 0xc90   :  { %3935 = vperm.xlu0 %9511, %v3249_v37  }
 0xc91   :  { %v14671_v58 = vpop.xlane.xlu0 %5170 }
 0xc92   :  { %v14660_v11 = vpop.permute.xlu1 %3910  ;;  %18966 = vst [vmem:[#allocation117_spill] sm:$0xff] %v14671_v58 }
 0xc94   :  { %6599 = vperm.xlu0 %9511, %v6201_v38  }
 0xc96   :  { %v6575_v62 = vpop.permute.xlu1 %6574 }
 0xc97   :  { %v7256_v56 = vmul.f32 %v6575_v62, %v18967_v44  ;;  %v7257_v49 = vmul.f32 %v6575_v62, %v18968_v12  ;;  %v1683_v44 = vpop.f32.mrf.mxu0 }
 0xc99   :  { %v8600_v26 = vadd.f32 %v18969_v54, %v7256_v56  ;;  %v8601_v37 = vadd.f32 %v18969_v54, %v7257_v49  ;;  %v14681_v19 = vpop.permute.xlu0 %3915  ;;  %v18973_v56 = vld [vmem:[#allocation48_spill] sm:$0xff] }
 0xc9a   :  { %18970 = vst [vmem:[#allocation30_spill] sm:$0xff] %v14681_v19  ;;  %v470_v54 = vld [vmem:[%s18063_s2 + $0x8d0] sm:$0xff] }
 0xc9b   :  { %8936 = vst [vmem:[%s18065_s5 + $0x340] sm:$0xff] %v8600_v26  ;;  %8937 = vst.msk [vmem:[%s18065_s5 + $0x348] sm:$0xff] %vm2102_vm0, %v8601_v37  ;;  %v18974_v26 = vld [vmem:[#allocation83_spill] sm:$0xff]  ;;  %2985 = vmatmul.mubr.f32.gmra.mxu1 %v470_v54  ;;  %1940 = vmatmul.mubr.f32.gmra.mxu0 %v470_v54 }
 0xc9c   :  { %v14705_v37 = vsub.f32 %v1679_v35, %v18974_v26 }
 0xc9d   :  { %v6580_v38 = vpop.permute.xlu0 %6579 }
 0xc9e   :  { %v7258_v20 = vmul.f32 %v6580_v38, %v18971_v8  ;;  %v7259_v62 = vmul.f32 %v6580_v38, %v18972_v24  ;;  %18975 = vst [vmem:[#allocation120_spill] sm:$0xff] %v14705_v37  ;;  %v1685_v38 = vpop.f32.mrf.mxu0  ;;  %v14708_v8 = vsub.f32 %v1677_v33, %v18974_v26  ;;  %v4659_v24 = vmul.f32 %v14705_v37, %v14705_v37 }
 0xc9f   :  { %v14724_v54 = vpop.f32.mrf.mxu1 }
 0xca0   :  { %v8602_v12 = vadd.f32 %v18973_v56, %v7258_v20  ;;  %v8603_v49 = vadd.f32 %v18973_v56, %v7259_v62  ;;  %18976 = vst [vmem:[#allocation119_spill] sm:$0xff] %v14708_v8  ;;  %v14711_v20 = vsub.f32 %v1685_v38, %v13594_v5  ;;  %v14716_v62 = vsub.f32 %v1683_v44, %v13594_v5 }
 0xca1   :  { %v4658_v56 = vmul.f32 %v14708_v8, %v14708_v8  ;;  %v5188_v33 = vsel %vm2102_vm0, %v4659_v24, 0.0  ;;  %v2953_v38 = vpop.f32.mrf.mxu1  ;;  %v18980_v8 = vld [vmem:[#allocation7_spill] sm:$0xff] }
 0xca2   :  { %8938 = vst [vmem:[%s18065_s5 + $0x350] sm:$0xff] %v8602_v12  ;;  %8939 = vst.msk [vmem:[%s18065_s5 + $0x358] sm:$0xff] %vm2102_vm0, %v8603_v49  ;;  %v4661_v35 = vmul.f32 %v14711_v20, %v14711_v20  ;;  %v18979_v12 = vld [vmem:[#allocation142_spill] sm:$0xff]  ;;  %v4660_v26 = vmul.f32 %v14716_v62, %v14716_v62  ;;  %v5531_v58 = vmul.f32 0.0051020407, %v18980_v8 }
 0xca3   :  { %18977 = vst [vmem:[#allocation29_spill] sm:$0xff] %v14711_v20  ;;  %18978 = vst [vmem:[#allocation122_spill] sm:$0xff] %v14716_v62  ;;  %v5530_v49 = vmul.f32 0.0051020407, %v18979_v12  ;;  %v5189_v16 = vadd.f32 %v5188_v33, %v4658_v56  ;;  %v5698_v56 = vld [vmem:[%s18064_s3 + $0x1d0] sm:$0xff] }
 0xca4   :  { %v5192_v5 = vsel %vm2102_vm0, %v4661_v35, 0.0  ;;  %v5867_v20 = vadd.f32 0.001, %v5531_v58  ;;  %v5699_v58 = vld [vmem:[%s18064_s3 + $0x1d8] sm:$0xff] }
 0xca5   :  { %v5866_v44 = vadd.f32 0.001, %v5530_v49  ;;  %v5193_v37 = vadd.f32 %v5192_v5, %v4660_v26  ;;  %v18983_v26 = vld [vmem:[#allocation63_spill] sm:$0xff]  ;;  %v18984_v5 = vld [vmem:[#allocation64_spill] sm:$0xff] }
 0xca7   :  { %9628 = vrsqrt.f32 %v5866_v44 }
 0xca8   :  { %9630 = vrsqrt.f32 %v5867_v20 }
 0xcb0   :  { %5190 = vadd.xlane.f32.xlu1 %v5189_v16  ;;  %v3251_v16 = vmul.f32 0.0051020407, %v14566_v13  ;;  %v472_v13 = vld [vmem:[%s18063_s2 + $0x8e0] sm:$0xff] }
 0xcb3   :  { %5194 = vadd.xlane.f32.xlu0 %v5193_v37 }
 0xcb4   :  { %v14730_v12 = vpop.f32.mrf.mxu1  ;;  %v9629_v19 = vpop.eup %9628 }
 0xcb5   :  { %v6202_v35 = vmul.f32 %v9629_v19, %v5698_v56  ;;  %v9631_v37 = vpop.eup %9630  ;;  %v475_v19 = vld [vmem:[%s18063_s2 + $0x8f8] sm:$0xff]  ;;  %v18985_v56 = vld [vmem:[#allocation47_spill] sm:$0xff] }
 0xcb6   :  { %v2958_v24 = vpop.f32.mrf.mxu1  ;;  %v6203_v57 = vmul.f32 %v9631_v37, %v5699_v58 }
 0xcb7   :  { %v1689_v24 = vpop.f32.mrf.mxu0 }
 0xcb9   :  { %v1691_v58 = vpop.f32.mrf.mxu0 }
 0xcc1   :  { %3940 = vperm.xlu1 %9510, %v3250_v2   ;;  %v473_v2 = vld [vmem:[%s18063_s2 + $0x8e8] sm:$0xff] }
 0xcc2   :  { %9482 = vmatprep.mubr.msk.f32.mxu1 %vm524_vm1, %v473_v2  ;;  %9314 = vmatprep.mubr.msk.f32.mxu0 %vm524_vm1, %v473_v2  ;;  %v18987_v2 = vld [vmem:[#allocation66_spill] sm:$0xff] }
 0xcc3   :  { %2990 = vmatmul.mubr.f32.gmra.mxu1 %v472_v13  ;;  %1946 = vmatmul.mubr.f32.gmra.mxu0 %v472_v13 }
 0xcc4   :  { %9483 = vmatprep.mubr.msk.f32.mxu1 %vm524_vm1, %v475_v19  ;;  %9315 = vmatprep.mubr.msk.f32.mxu0 %vm524_vm1, %v475_v19  ;;  %v18988_v19 = vld [vmem:[#allocation2_spill] sm:$0xff] }
 0xcc5   :  { %6604 = vperm.xlu1 %9510, %v6202_v35  }
 0xcc7   :  { %v14737_v49 = vpop.xlane.xlu1 %5174 }
 0xcc8   :  { %18981 = vst [vmem:[#allocation121_spill] sm:$0xff] %v14737_v49  ;;  %v3252_v49 = vmul.f32 0.0051020407, %v14642_v18 }
 0xcc9   :  { %3945 = vperm.xlu0 %9511, %v3251_v16  }
 0xcca   :  { %v14753_v20 = vpop.xlane.xlu0 %5178 }
 0xccb   :  { %v14742_v8 = vpop.permute.xlu1 %3920  ;;  %18982 = vst [vmem:[#allocation32_spill] sm:$0xff] %v14753_v20 }
 0xccd   :  { %6609 = vperm.xlu0 %9511, %v6203_v57  }
 0xccf   :  { %v6585_v33 = vpop.permute.xlu1 %6584 }
 0xcd0   :  { %v7260_v38 = vmul.f32 %v6585_v33, %v18983_v26  ;;  %v7261_v44 = vmul.f32 %v6585_v33, %v18984_v5  ;;  %v1695_v26 = vpop.f32.mrf.mxu0 }
 0xcd2   :  { %v8604_v35 = vadd.f32 %v18985_v56, %v7260_v38  ;;  %v8605_v16 = vadd.f32 %v18985_v56, %v7261_v44  ;;  %v14763_v37 = vpop.permute.xlu0 %3925  ;;  %v18989_v38 = vld [vmem:[#allocation50_spill] sm:$0xff]  ;;  %v474_v56 = vld [vmem:[%s18063_s2 + $0x8f0] sm:$0xff] }
 0xcd3   :  { %18986 = vst [vmem:[#allocation124_spill] sm:$0xff] %v14763_v37  ;;  %2995 = vmatmul.mubr.f32.gmra.mxu1 %v474_v56  ;;  %1952 = vmatmul.mubr.f32.gmra.mxu0 %v474_v56 }
 0xcd4   :  { %8940 = vst [vmem:[%s18065_s5 + $0x360] sm:$0xff] %v8604_v35  ;;  %8941 = vst.msk [vmem:[%s18065_s5 + $0x368] sm:$0xff] %vm2102_vm0, %v8605_v16  ;;  %v18990_v35 = vld [vmem:[#allocation154_spill] sm:$0xff] }
 0xcd5   :  { %v14787_v16 = vsub.f32 %v1691_v58, %v18990_v35 }
 0xcd6   :  { %v6590_v57 = vpop.permute.xlu0 %6589 }
 0xcd7   :  { %v7262_v13 = vmul.f32 %v6590_v57, %v18987_v2  ;;  %v7263_v33 = vmul.f32 %v6590_v57, %v18988_v19  ;;  %18991 = vst [vmem:[#allocation123_spill] sm:$0xff] %v14787_v16  ;;  %v1697_v57 = vpop.f32.mrf.mxu0  ;;  %v14790_v2 = vsub.f32 %v1689_v24, %v18990_v35  ;;  %v4663_v19 = vmul.f32 %v14787_v16, %v14787_v16 }
 0xcd8   :  { %v14806_v56 = vpop.f32.mrf.mxu1 }
 0xcd9   :  { %v8606_v5 = vadd.f32 %v18989_v38, %v7262_v13  ;;  %v8607_v44 = vadd.f32 %v18989_v38, %v7263_v33  ;;  %18992 = vst [vmem:[#allocation31_spill] sm:$0xff] %v14790_v2  ;;  %v14793_v13 = vsub.f32 %v1697_v57, %v13676_v40  ;;  %v14798_v33 = vsub.f32 %v1695_v26, %v13676_v40 }
 0xcda   :  { %v4662_v38 = vmul.f32 %v14790_v2, %v14790_v2  ;;  %v5196_v24 = vsel %vm2102_vm0, %v4663_v19, 0.0  ;;  %v2963_v57 = vpop.f32.mrf.mxu1  ;;  %v18996_v2 = vld [vmem:[#allocation80_spill] sm:$0xff] }
 0xcdb   :  { %8942 = vst [vmem:[%s18065_s5 + $0x370] sm:$0xff] %v8606_v5  ;;  %8943 = vst.msk [vmem:[%s18065_s5 + $0x378] sm:$0xff] %vm2102_vm0, %v8607_v44  ;;  %v4665_v58 = vmul.f32 %v14793_v13, %v14793_v13  ;;  %v18995_v5 = vld [vmem:[#allocation78_spill] sm:$0xff]  ;;  %v4664_v35 = vmul.f32 %v14798_v33, %v14798_v33  ;;  %v5533_v20 = vmul.f32 0.0051020407, %v18996_v2 }
 0xcdc   :  { %18993 = vst [vmem:[#allocation127_spill] sm:$0xff] %v14793_v13  ;;  %18994 = vst [vmem:[#allocation125_spill] sm:$0xff] %v14798_v33  ;;  %v5532_v44 = vmul.f32 0.0051020407, %v18995_v5  ;;  %v5197_v62 = vadd.f32 %v5196_v24, %v4662_v38  ;;  %v5700_v38 = vld [vmem:[%s18064_s3 + $0x1e0] sm:$0xff] }
 0xcdd   :  { %v5200_v40 = vsel %vm2102_vm0, %v4665_v58, 0.0  ;;  %v5869_v13 = vadd.f32 0.001, %v5533_v20  ;;  %v5701_v20 = vld [vmem:[%s18064_s3 + $0x1e8] sm:$0xff] }
 0xcde   :  { %v5868_v26 = vadd.f32 0.001, %v5532_v44  ;;  %v5201_v16 = vadd.f32 %v5200_v40, %v4664_v35  ;;  %v18999_v35 = vld [vmem:[#allocation4_spill] sm:$0xff]  ;;  %v19000_v40 = vld [vmem:[#allocation65_spill] sm:$0xff] }
 0xce0   :  { %9632 = vrsqrt.f32 %v5868_v26 }
 0xce1   :  { %9634 = vrsqrt.f32 %v5869_v13 }
 0xce9   :  { %5198 = vadd.xlane.f32.xlu1 %v5197_v62  ;;  %v14812_v5 = vpop.f32.mrf.mxu1  ;;  %v3253_v62 = vmul.f32 0.0051020407, %v14648_v60  ;;  %v476_v60 = vld [vmem:[%s18063_s2 + $0x900] sm:$0xff] }
 0xceb   :  { %v2968_v19 = vpop.f32.mrf.mxu1 }
 0xcec   :  { %5202 = vadd.xlane.f32.xlu0 %v5201_v16  ;;  %v1701_v19 = vpop.f32.mrf.mxu0 }
 0xced   :  { %v9633_v37 = vpop.eup %9632 }
 0xcee   :  { %v6204_v58 = vmul.f32 %v9633_v37, %v5700_v38  ;;  %v9635_v16 = vpop.eup %9634  ;;  %v479_v37 = vld [vmem:[%s18063_s2 + $0x918] sm:$0xff] }
 0xcef   :  { %v6205_v18 = vmul.f32 %v9635_v16, %v5701_v20  ;;  %v19001_v38 = vld [vmem:[#allocation49_spill] sm:$0xff]  ;;  %v1703_v20 = vpop.f32.mrf.mxu0 }
 0xcfa   :  { %3950 = vperm.xlu1 %9510, %v3252_v49   ;;  %v477_v49 = vld [vmem:[%s18063_s2 + $0x908] sm:$0xff] }
 0xcfb   :  { %9484 = vmatprep.mubr.msk.f32.mxu1 %vm524_vm1, %v477_v49  ;;  %9316 = vmatprep.mubr.msk.f32.mxu0 %vm524_vm1, %v477_v49  ;;  %v19002_v49 = vld [vmem:[#allocation134_spill] sm:$0xff] }
 0xcfc   :  { %3000 = vmatmul.mubr.f32.gmra.mxu1 %v476_v60  ;;  %1958 = vmatmul.mubr.f32.gmra.mxu0 %v476_v60 }
 0xcfd   :  { %9485 = vmatprep.mubr.msk.f32.mxu1 %vm524_vm1, %v479_v37  ;;  %9317 = vmatprep.mubr.msk.f32.mxu0 %vm524_vm1, %v479_v37  ;;  %v19003_v37 = vld [vmem:[#allocation129_spill] sm:$0xff] }
 0xcfe   :  { %6614 = vperm.xlu1 %9510, %v6204_v58  }
 0xd00   :  { %v14819_v44 = vpop.xlane.xlu1 %5182 }
 0xd01   :  { %18997 = vst [vmem:[#allocation34_spill] sm:$0xff] %v14819_v44 }
 0xd02   :  { %3955 = vperm.xlu0 %9511, %v3253_v62  }
 0xd03   :  { %v14835_v13 = vpop.xlane.xlu0 %5186 }
 0xd04   :  { %v14824_v2 = vpop.permute.xlu1 %3930  ;;  %18998 = vst [vmem:[#allocation130_spill] sm:$0xff] %v14835_v13  ;;  %v3254_v13 = vmul.f32 0.0051020407, %v14724_v54 }
 0xd06   :  { %6619 = vperm.xlu0 %9511, %v6205_v18  }
 0xd08   :  { %v6595_v24 = vpop.permute.xlu1 %6594 }
 0xd09   :  { %v7264_v57 = vmul.f32 %v6595_v24, %v18999_v35  ;;  %v7265_v26 = vmul.f32 %v6595_v24, %v19000_v40  ;;  %v1707_v35 = vpop.f32.mrf.mxu0 }
 0xd0b   :  { %v8608_v58 = vadd.f32 %v19001_v38, %v7264_v57  ;;  %v8609_v62 = vadd.f32 %v19001_v38, %v7265_v26  ;;  %v14845_v16 = vpop.permute.xlu0 %3935  ;;  %v19004_v57 = vld [vmem:[#allocation52_spill] sm:$0xff] }
 0xd0c   :  { %v478_v38 = vld [vmem:[%s18063_s2 + $0x910] sm:$0xff] }
 0xd0d   :  { %8944 = vst [vmem:[%s18065_s5 + $0x380] sm:$0xff] %v8608_v58  ;;  %8945 = vst.msk [vmem:[%s18065_s5 + $0x388] sm:$0xff] %vm2102_vm0, %v8609_v62  ;;  %v14869_v58 = vsub.f32 %v1703_v20, %v13697_v48  ;;  %v1709_v62 = vpop.f32.mrf.mxu0  ;;  %3005 = vmatmul.mubr.f32.gmra.mxu1 %v478_v38  ;;  %1964 = vmatmul.mubr.f32.gmra.mxu0 %v478_v38 }
 0xd0f   :  { %v6600_v18 = vpop.permute.xlu0 %6599  ;;  %19005 = vst [vmem:[#allocation128_spill] sm:$0xff] %v14869_v58 }
 0xd10   :  { %v7266_v60 = vmul.f32 %v6600_v18, %v19002_v49  ;;  %v7267_v24 = vmul.f32 %v6600_v18, %v19003_v37  ;;  %v14872_v18 = vsub.f32 %v1701_v19, %v13697_v48  ;;  %v14875_v49 = vsub.f32 %v1709_v62, %v13758_v53 }
 0xd11   :  { %v14880_v37 = vsub.f32 %v1707_v35, %v13758_v53  ;;  %v14888_v19 = vpop.f32.mrf.mxu1 }
 0xd12   :  { %v8610_v40 = vadd.f32 %v19004_v57, %v7266_v60  ;;  %v8611_v26 = vadd.f32 %v19004_v57, %v7267_v24  ;;  %19006 = vst [vmem:[#allocation33_spill] sm:$0xff] %v14872_v18  ;;  %19007 = vst [vmem:[#allocation146_spill] sm:$0xff] %v14875_v49  ;;  %v4667_v60 = vmul.f32 %v14869_v58, %v14869_v58  ;;  %v19009_v57 = vld [vmem:[#allocation79_spill] sm:$0xff]  ;;  %v19010_v58 = vld [vmem:[#allocation138_spill] sm:$0xff] }
 0xd13   :  { %19008 = vst [vmem:[#allocation144_spill] sm:$0xff] %v14880_v37  ;;  %v4666_v24 = vmul.f32 %v14872_v18, %v14872_v18  ;;  %v4669_v20 = vmul.f32 %v14875_v49, %v14875_v49  ;;  %v2973_v38 = vpop.f32.mrf.mxu1  ;;  %v5535_v18 = vmul.f32 0.0051020407, %v19010_v58  ;;  %v5703_v58 = vld [vmem:[%s18064_s3 + $0x1f8] sm:$0xff] }
 0xd14   :  { %8946 = vst [vmem:[%s18065_s5 + $0x390] sm:$0xff] %v8610_v40  ;;  %8947 = vst.msk [vmem:[%s18065_s5 + $0x398] sm:$0xff] %vm2102_vm0, %v8611_v26  ;;  %v5534_v40 = vmul.f32 0.0051020407, %v19009_v57  ;;  %v5204_v48 = vsel %vm2102_vm0, %v4667_v60, 0.0  ;;  %v4668_v26 = vmul.f32 %v14880_v37, %v14880_v37  ;;  %v19013_v38 = vld [vmem:[#allocation67_spill] sm:$0xff] }
 0xd15   :  { %v5205_v62 = vadd.f32 %v5204_v48, %v4666_v24  ;;  %v5208_v53 = vsel %vm2102_vm0, %v4669_v20, 0.0  ;;  %v5871_v49 = vadd.f32 0.001, %v5535_v18  ;;  %v5702_v24 = vld [vmem:[%s18064_s3 + $0x1f0] sm:$0xff] }
 0xd16   :  { %v5870_v35 = vadd.f32 0.001, %v5534_v40  ;;  %v5209_v33 = vadd.f32 %v5208_v53, %v4668_v26  ;;  %v3255_v40 = vmul.f32 0.0051020407, %v14730_v12  ;;  %v480_v12 = vld [vmem:[%s18063_s2 + $0x920] sm:$0xff]  ;;  %v19014_v53 = vld [vmem:[#allocation68_spill] sm:$0xff] }
 0xd18   :  { %9636 = vrsqrt.f32 %v5870_v35 }
 0xd19   :  { %9638 = vrsqrt.f32 %v5871_v49 }
 0xd21   :  { %v14894_v57 = vpop.f32.mrf.mxu1 }
 0xd22   :  { %5206 = vadd.xlane.f32.xlu1 %v5205_v62 }
 0xd23   :  { %v2978_v60 = vpop.f32.mrf.mxu1 }
 0xd24   :  { %v1713_v60 = vpop.f32.mrf.mxu0 }
 0xd25   :  { %5210 = vadd.xlane.f32.xlu0 %v5209_v33  ;;  %v9637_v44 = vpop.eup %9636 }
 0xd26   :  { %v6206_v20 = vmul.f32 %v9637_v44, %v5702_v24  ;;  %v9639_v33 = vpop.eup %9638  ;;  %v483_v44 = vld [vmem:[%s18063_s2 + $0x938] sm:$0xff]  ;;  %v19015_v24 = vld [vmem:[#allocation51_spill] sm:$0xff] }
 0xd27   :  { %v6207_v54 = vmul.f32 %v9639_v33, %v5703_v58  ;;  %v1715_v58 = vpop.f32.mrf.mxu0 }
 0xd33   :  { %3960 = vperm.xlu1 %9510, %v3254_v13   ;;  %v481_v13 = vld [vmem:[%s18063_s2 + $0x928] sm:$0xff] }
 0xd34   :  { %9486 = vmatprep.mubr.msk.f32.mxu1 %vm524_vm1, %v481_v13  ;;  %9318 = vmatprep.mubr.msk.f32.mxu0 %vm524_vm1, %v481_v13  ;;  %v19016_v13 = vld [vmem:[#allocation6_spill] sm:$0xff] }
 0xd35   :  { %3010 = vmatmul.mubr.f32.gmra.mxu1 %v480_v12  ;;  %1970 = vmatmul.mubr.f32.gmra.mxu0 %v480_v12 }
 0xd36   :  { %9487 = vmatprep.mubr.msk.f32.mxu1 %vm524_vm1, %v483_v44  ;;  %9319 = vmatprep.mubr.msk.f32.mxu0 %vm524_vm1, %v483_v44  ;;  %v19017_v44 = vld [vmem:[#allocation69_spill] sm:$0xff] }
 0xd37   :  { %6624 = vperm.xlu1 %9510, %v6206_v20  }
 0xd39   :  { %v14901_v48 = vpop.xlane.xlu1 %5190 }
 0xd3a   :  { %19011 = vst [vmem:[#allocation36_spill] sm:$0xff] %v14901_v48 }
 0xd3b   :  { %3965 = vperm.xlu0 %9511, %v3255_v40  }
 0xd3c   :  { %v14917_v49 = vpop.xlane.xlu0 %5194 }
 0xd3d   :  { %v14906_v18 = vpop.permute.xlu1 %3940  ;;  %19012 = vst [vmem:[#allocation149_spill] sm:$0xff] %v14917_v49  ;;  %v3256_v49 = vmul.f32 0.0051020407, %v14806_v56 }
 0xd3f   :  { %6629 = vperm.xlu0 %9511, %v6207_v54  }
 0xd41   :  { %v6605_v26 = vpop.permute.xlu1 %6604 }
 0xd42   :  { %v7268_v62 = vmul.f32 %v6605_v26, %v19013_v38  ;;  %v7269_v35 = vmul.f32 %v6605_v26, %v19014_v53  ;;  %v1719_v38 = vpop.f32.mrf.mxu0 }
 0xd44   :  { %v8612_v20 = vadd.f32 %v19015_v24, %v7268_v62  ;;  %v8613_v40 = vadd.f32 %v19015_v24, %v7269_v35  ;;  %v14927_v33 = vpop.permute.xlu0 %3945  ;;  %v19018_v62 = vld [vmem:[#allocation54_spill] sm:$0xff]  ;;  %v482_v24 = vld [vmem:[%s18063_s2 + $0x930] sm:$0xff] }
 0xd45   :  { %3015 = vmatmul.mubr.f32.gmra.mxu1 %v482_v24  ;;  %1976 = vmatmul.mubr.f32.gmra.mxu0 %v482_v24 }
 0xd46   :  { %8948 = vst [vmem:[%s18065_s5 + $0x3a0] sm:$0xff] %v8612_v20  ;;  %8949 = vst.msk [vmem:[%s18065_s5 + $0x3a8] sm:$0xff] %vm2102_vm0, %v8613_v40  ;;  %v14951_v20 = vsub.f32 %v1715_v58, %v13779_v36  ;;  %v1721_v40 = vpop.f32.mrf.mxu0 }
 0xd48   :  { %v6610_v54 = vpop.permute.xlu0 %6609  ;;  %19019 = vst [vmem:[#allocation147_spill] sm:$0xff] %v14951_v20 }
 0xd49   :  { %v7270_v12 = vmul.f32 %v6610_v54, %v19016_v13  ;;  %v7271_v26 = vmul.f32 %v6610_v54, %v19017_v44  ;;  %v14954_v54 = vsub.f32 %v1713_v60, %v13779_v36  ;;  %v14957_v13 = vsub.f32 %v1721_v40, %v13840_v28 }
 0xd4a   :  { %v14962_v44 = vsub.f32 %v1719_v38, %v13840_v28  ;;  %v14970_v60 = vpop.f32.mrf.mxu1 }
 0xd4b   :  { %v8614_v53 = vadd.f32 %v19018_v62, %v7270_v12  ;;  %v8615_v35 = vadd.f32 %v19018_v62, %v7271_v26  ;;  %19020 = vst [vmem:[#allocation35_spill] sm:$0xff] %v14954_v54  ;;  %19021 = vst [vmem:[#allocation167_spill] sm:$0xff] %v14957_v13  ;;  %v4671_v12 = vmul.f32 %v14951_v20, %v14951_v20  ;;  %v19023_v62 = vld [vmem:[#allocation84_spill] sm:$0xff]  ;;  %v19024_v20 = vld [vmem:[#allocation153_spill] sm:$0xff] }
 0xd4c   :  { %19022 = vst [vmem:[#allocation166_spill] sm:$0xff] %v14962_v44  ;;  %v4670_v26 = vmul.f32 %v14954_v54, %v14954_v54  ;;  %v4673_v58 = vmul.f32 %v14957_v13, %v14957_v13  ;;  %v2983_v24 = vpop.f32.mrf.mxu1  ;;  %v5537_v54 = vmul.f32 0.0051020407, %v19024_v20  ;;  %v5705_v20 = vld [vmem:[%s18064_s3 + $0x208] sm:$0xff] }
 0xd4d   :  { %8950 = vst [vmem:[%s18065_s5 + $0x3b0] sm:$0xff] %v8614_v53  ;;  %8951 = vst.msk [vmem:[%s18065_s5 + $0x3b8] sm:$0xff] %vm2102_vm0, %v8615_v35  ;;  %v5536_v53 = vmul.f32 0.0051020407, %v19023_v62  ;;  %v5212_v36 = vsel %vm2102_vm0, %v4671_v12, 0.0  ;;  %v4672_v35 = vmul.f32 %v14962_v44, %v14962_v44  ;;  %v19026_v24 = vld [vmem:[#allocation131_spill] sm:$0xff] }
 0xd4e   :  { %v5213_v40 = vadd.f32 %v5212_v36, %v4670_v26  ;;  %v5216_v28 = vsel %vm2102_vm0, %v4673_v58, 0.0  ;;  %v5873_v13 = vadd.f32 0.001, %v5537_v54  ;;  %v5704_v26 = vld [vmem:[%s18064_s3 + $0x200] sm:$0xff] }
 0xd4f   :  { %v5872_v38 = vadd.f32 0.001, %v5536_v53  ;;  %v5217_v37 = vadd.f32 %v5216_v28, %v4672_v35  ;;  %v3257_v53 = vmul.f32 0.0051020407, %v14812_v5  ;;  %v484_v5 = vld [vmem:[%s18063_s2 + $0x940] sm:$0xff]  ;;  %v19027_v28 = vld [vmem:[#allocation139_spill] sm:$0xff] }
 0xd51   :  { %9640 = vrsqrt.f32 %v5872_v38 }
 0xd52   :  { %9642 = vrsqrt.f32 %v5873_v13 }
 0xd5b   :  { %5214 = vadd.xlane.f32.xlu1 %v5213_v40  ;;  %v14976_v62 = vpop.f32.mrf.mxu1 }
 0xd5d   :  { %v2988_v12 = vpop.f32.mrf.mxu1 }
 0xd5e   :  { %5218 = vadd.xlane.f32.xlu0 %v5217_v37  ;;  %v9641_v48 = vpop.eup %9640  ;;  %v1725_v12 = vpop.f32.mrf.mxu0 }
 0xd5f   :  { %v6208_v58 = vmul.f32 %v9641_v48, %v5704_v26  ;;  %v9643_v37 = vpop.eup %9642  ;;  %v487_v48 = vld [vmem:[%s18063_s2 + $0x958] sm:$0xff] }
 0xd60   :  { %v6209_v56 = vmul.f32 %v9643_v37, %v5705_v20  ;;  %v19028_v26 = vld [vmem:[#allocation53_spill] sm:$0xff]  ;;  %v1727_v20 = vpop.f32.mrf.mxu0 }
 0xd6c   :  { %3970 = vperm.xlu1 %9510, %v3256_v49   ;;  %v485_v49 = vld [vmem:[%s18063_s2 + $0x948] sm:$0xff] }
 0xd6d   :  { %9488 = vmatprep.mubr.msk.f32.mxu1 %vm524_vm1, %v485_v49  ;;  %9320 = vmatprep.mubr.msk.f32.mxu0 %vm524_vm1, %v485_v49  ;;  %v19029_v49 = vld [vmem:[#allocation5_spill] sm:$0xff] }
 0xd6e   :  { %3020 = vmatmul.mubr.f32.gmra.mxu1 %v484_v5  ;;  %1982 = vmatmul.mubr.f32.gmra.mxu0 %v484_v5 }
 0xd6f   :  { %9489 = vmatprep.mubr.msk.f32.mxu1 %vm524_vm1, %v487_v48  ;;  %9321 = vmatprep.mubr.msk.f32.mxu0 %vm524_vm1, %v487_v48  ;;  %v19030_v48 = vld [vmem:[#allocation71_spill] sm:$0xff] }
 0xd70   :  { %6634 = vperm.xlu1 %9510, %v6208_v58  }
 0xd72   :  { %v14983_v36 = vpop.xlane.xlu1 %5198 }
 0xd74   :  { %3975 = vperm.xlu0 %9511, %v3257_v53  }
 0xd75   :  { %v14999_v13 = vpop.xlane.xlu0 %5202 }
 0xd76   :  { %v14988_v54 = vpop.permute.xlu1 %3950  ;;  %19025 = vst [vmem:[#allocation38_spill] sm:$0xff] %v14999_v13 }
 0xd78   :  { %6639 = vperm.xlu0 %9511, %v6209_v56  }
 0xd7a   :  { %v6615_v35 = vpop.permute.xlu1 %6614 }
 0xd7b   :  { %v7272_v40 = vmul.f32 %v6615_v35, %v19026_v24  ;;  %v7273_v38 = vmul.f32 %v6615_v35, %v19027_v28  ;;  %v1731_v24 = vpop.f32.mrf.mxu0 }
 0xd7d   :  { %v8616_v58 = vadd.f32 %v19028_v26, %v7272_v40  ;;  %v8617_v53 = vadd.f32 %v19028_v26, %v7273_v38  ;;  %v15009_v37 = vpop.permute.xlu0 %3955  ;;  %v19031_v40 = vld [vmem:[#allocation56_spill] sm:$0xff] }
 0xd7e   :  { %v486_v26 = vld [vmem:[%s18063_s2 + $0x950] sm:$0xff] }
 0xd7f   :  { %8952 = vst [vmem:[%s18065_s5 + $0x3c0] sm:$0xff] %v8616_v58  ;;  %8953 = vst.msk [vmem:[%s18065_s5 + $0x3c8] sm:$0xff] %vm2102_vm0, %v8617_v53  ;;  %v15033_v58 = vsub.f32 %v1727_v20, %v13861_v15  ;;  %v1733_v53 = vpop.f32.mrf.mxu0  ;;  %3025 = vmatmul.mubr.f32.gmra.mxu1 %v486_v26  ;;  %1988 = vmatmul.mubr.f32.gmra.mxu0 %v486_v26 }
 0xd81   :  { %v6620_v56 = vpop.permute.xlu0 %6619  ;;  %19032 = vst [vmem:[#allocation169_spill] sm:$0xff] %v15033_v58 }
 0xd82   :  { %v7274_v5 = vmul.f32 %v6620_v56, %v19029_v49  ;;  %v7275_v35 = vmul.f32 %v6620_v56, %v19030_v48  ;;  %v15036_v56 = vsub.f32 %v1725_v12, %v13861_v15  ;;  %v15039_v49 = vsub.f32 %v1733_v53, %v13922_v0 }
 0xd83   :  { %v15044_v48 = vsub.f32 %v1731_v24, %v13922_v0  ;;  %v15052_v12 = vpop.f32.mrf.mxu1 }
 0xd84   :  { %v8618_v28 = vadd.f32 %v19031_v40, %v7274_v5  ;;  %v8619_v38 = vadd.f32 %v19031_v40, %v7275_v35  ;;  %19033 = vst [vmem:[#allocation168_spill] sm:$0xff] %v15036_v56  ;;  %19034 = vst [vmem:[#allocation37_spill] sm:$0xff] %v15039_v49  ;;  %v4675_v5 = vmul.f32 %v15033_v58, %v15033_v58  ;;  %v19036_v40 = vld [vmem:[#allocation140_spill] sm:$0xff]  ;;  %v5539_v58 = vmul.f32 0.0051020407, %v13671_v41 }
 0xd85   :  { %19035 = vst [vmem:[#allocation171_spill] sm:$0xff] %v15044_v48  ;;  %v4674_v35 = vmul.f32 %v15036_v56, %v15036_v56  ;;  %v4677_v20 = vmul.f32 %v15039_v49, %v15039_v49  ;;  %v2993_v26 = vpop.f32.mrf.mxu1  ;;  %v3258_v56 = vmul.f32 0.0051020407, %v14888_v19 }
 0xd86   :  { %8954 = vst [vmem:[%s18065_s5 + $0x3d0] sm:$0xff] %v8618_v28  ;;  %8955 = vst.msk [vmem:[%s18065_s5 + $0x3d8] sm:$0xff] %vm2102_vm0, %v8619_v38  ;;  %v5538_v28 = vmul.f32 0.0051020407, %v19036_v40  ;;  %v5220_v15 = vsel %vm2102_vm0, %v4675_v5, 0.0  ;;  %v4676_v38 = vmul.f32 %v15044_v48, %v15044_v48  ;;  %v19038_v26 = vld [vmem:[#allocation73_spill] sm:$0xff] }
 0xd87   :  { %v5221_v53 = vadd.f32 %v5220_v15, %v4674_v35  ;;  %v5224_v0 = vsel %vm2102_vm0, %v4677_v20, 0.0  ;;  %v5875_v49 = vadd.f32 0.001, %v5539_v58  ;;  %v5706_v35 = vld [vmem:[%s18064_s3 + $0x210] sm:$0xff] }
 0xd88   :  { %v5874_v24 = vadd.f32 0.001, %v5538_v28  ;;  %v5225_v44 = vadd.f32 %v5224_v0, %v4676_v38  ;;  %v3259_v28 = vmul.f32 0.0051020407, %v14894_v57  ;;  %v488_v57 = vld [vmem:[%s18063_s2 + $0x960] sm:$0xff] }
 0xd89   :  { %v19039_v0 = vld [vmem:[#allocation74_spill] sm:$0xff] }
 0xd8a   :  { %9644 = vrsqrt.f32 %v5874_v24 }
 0xd8b   :  { %9646 = vrsqrt.f32 %v5875_v49 }
 0xd93   :  { %v15058_v40 = vpop.f32.mrf.mxu1 }
 0xd94   :  { %5222 = vadd.xlane.f32.xlu1 %v5221_v53 }
 0xd95   :  { %v2998_v5 = vpop.f32.mrf.mxu1 }
 0xd96   :  { %v1737_v5 = vpop.f32.mrf.mxu0 }
 0xd97   :  { %5226 = vadd.xlane.f32.xlu0 %v5225_v44  ;;  %v9645_v13 = vpop.eup %9644  ;;  %v5707_v44 = vld [vmem:[%s18064_s3 + $0x218] sm:$0xff] }
 0xd98   :  { %v6210_v20 = vmul.f32 %v9645_v13, %v5706_v35  ;;  %v9647_v41 = vpop.eup %9646  ;;  %v491_v13 = vld [vmem:[%s18063_s2 + $0x978] sm:$0xff]  ;;  %v19040_v35 = vld [vmem:[#allocation55_spill] sm:$0xff] }
 0xd99   :  { %v6211_v19 = vmul.f32 %v9647_v41, %v5707_v44  ;;  %v1739_v44 = vpop.f32.mrf.mxu0 }
 0xda5   :  { %3980 = vperm.xlu1 %9510, %v3258_v56   ;;  %v489_v56 = vld [vmem:[%s18063_s2 + $0x968] sm:$0xff] }
 0xda6   :  { %9490 = vmatprep.mubr.msk.f32.mxu1 %vm524_vm1, %v489_v56  ;;  %9322 = vmatprep.mubr.msk.f32.mxu0 %vm524_vm1, %v489_v56  ;;  %v19041_v56 = vld [vmem:[#allocation141_spill] sm:$0xff] }
 0xda7   :  { %3030 = vmatmul.mubr.f32.gmra.mxu1 %v488_v57  ;;  %1994 = vmatmul.mubr.f32.gmra.mxu0 %v488_v57 }
 0xda8   :  { %9491 = vmatprep.mubr.msk.f32.mxu1 %vm524_vm1, %v491_v13  ;;  %9323 = vmatprep.mubr.msk.f32.mxu0 %vm524_vm1, %v491_v13  ;;  %v19042_v13 = vld [vmem:[#allocation133_spill] sm:$0xff] }
 0xda9   :  { %6644 = vperm.xlu1 %9510, %v6210_v20  }
 0xdab   :  { %v15065_v15 = vpop.xlane.xlu1 %5206 }
 0xdad   :  { %3985 = vperm.xlu0 %9511, %v3259_v28  }
 0xdae   :  { %v15081_v49 = vpop.xlane.xlu0 %5210 }
 0xdaf   :  { %v15070_v58 = vpop.permute.xlu1 %3960  ;;  %19037 = vst [vmem:[#allocation40_spill] sm:$0xff] %v15081_v49 }
 0xdb1   :  { %6649 = vperm.xlu0 %9511, %v6211_v19  }
 0xdb3   :  { %v6625_v38 = vpop.permute.xlu1 %6624 }
 0xdb4   :  { %v7276_v53 = vmul.f32 %v6625_v38, %v19038_v26  ;;  %v7277_v24 = vmul.f32 %v6625_v38, %v19039_v0  ;;  %v1743_v26 = vpop.f32.mrf.mxu0 }
 0xdb6   :  { %v8620_v20 = vadd.f32 %v19040_v35, %v7276_v53  ;;  %v8621_v28 = vadd.f32 %v19040_v35, %v7277_v24  ;;  %v15091_v41 = vpop.permute.xlu0 %3965  ;;  %v19043_v53 = vld [vmem:[#allocation58_spill] sm:$0xff]  ;;  %v490_v35 = vld [vmem:[%s18063_s2 + $0x970] sm:$0xff] }
 0xdb7   :  { %3035 = vmatmul.mubr.f32.gmra.mxu1 %v490_v35  ;;  %2000 = vmatmul.mubr.f32.gmra.mxu0 %v490_v35 }
 0xdb8   :  { %8956 = vst [vmem:[%s18065_s5 + $0x3e0] sm:$0xff] %v8620_v20  ;;  %8957 = vst.msk [vmem:[%s18065_s5 + $0x3e8] sm:$0xff] %vm2102_vm0, %v8621_v28  ;;  %v15115_v20 = vsub.f32 %v1739_v44, %v13943_v52  ;;  %v1745_v28 = vpop.f32.mrf.mxu0 }
 0xdba   :  { %v6630_v19 = vpop.permute.xlu0 %6629  ;;  %19044 = vst [vmem:[#allocation173_spill] sm:$0xff] %v15115_v20 }
 0xdbb   :  { %v7278_v57 = vmul.f32 %v6630_v19, %v19041_v56  ;;  %v7279_v38 = vmul.f32 %v6630_v19, %v19042_v13  ;;  %v15118_v19 = vsub.f32 %v1737_v5, %v13943_v52  ;;  %v15121_v56 = vsub.f32 %v1745_v28, %v14004_v1 }
 0xdbc   :  { %v15126_v13 = vsub.f32 %v1743_v26, %v14004_v1  ;;  %v15134_v5 = vpop.f32.mrf.mxu1 }
 0xdbd   :  { %v8622_v0 = vadd.f32 %v19043_v53, %v7278_v57  ;;  %v8623_v24 = vadd.f32 %v19043_v53, %v7279_v38  ;;  %19045 = vst [vmem:[#allocation172_spill] sm:$0xff] %v15118_v19  ;;  %19046 = vst [vmem:[#allocation39_spill] sm:$0xff] %v15121_v56  ;;  %v4679_v57 = vmul.f32 %v15115_v20, %v15115_v20  ;;  %v19048_v53 = vld [vmem:[#allocation89_spill] sm:$0xff]  ;;  %v5541_v20 = vmul.f32 0.0051020407, %v13753_v9 }
 0xdbe   :  { %19047 = vst [vmem:[#allocation42_spill] sm:$0xff] %v15126_v13  ;;  %v4678_v38 = vmul.f32 %v15118_v19, %v15118_v19  ;;  %v4681_v44 = vmul.f32 %v15121_v56, %v15121_v56  ;;  %v3003_v35 = vpop.f32.mrf.mxu1  ;;  %v3260_v19 = vmul.f32 0.0051020407, %v14970_v60  ;;  %v493_v60 = vld [vmem:[%s18063_s2 + $0x988] sm:$0xff] }
 0xdbf   :  { %8958 = vst [vmem:[%s18065_s5 + $0x3f0] sm:$0xff] %v8622_v0  ;;  %8959 = vst.msk [vmem:[%s18065_s5 + $0x3f8] sm:$0xff] %vm2102_vm0, %v8623_v24  ;;  %v5540_v0 = vmul.f32 0.0051020407, %v19048_v53  ;;  %v5228_v52 = vsel %vm2102_vm0, %v4679_v57, 0.0  ;;  %v4680_v24 = vmul.f32 %v15126_v13, %v15126_v13  ;;  %9492 = vmatprep.mubr.msk.f32.mxu1 %vm524_vm1, %v493_v60  ;;  %9324 = vmatprep.mubr.msk.f32.mxu0 %vm524_vm1, %v493_v60  ;;  %v19050_v35 = vld [vmem:[#allocation75_spill] sm:$0xff] }
 0xdc0   :  { %v5229_v28 = vadd.f32 %v5228_v52, %v4678_v38  ;;  %v5232_v1 = vsel %vm2102_vm0, %v4681_v44, 0.0  ;;  %v5877_v56 = vadd.f32 0.001, %v5541_v20  ;;  %v5708_v38 = vld [vmem:[%s18064_s3 + $0x220] sm:$0xff] }
 0xdc1   :  { %v5876_v26 = vadd.f32 0.001, %v5540_v0  ;;  %v5233_v48 = vadd.f32 %v5232_v1, %v4680_v24  ;;  %v3261_v0 = vmul.f32 0.0051020407, %v14976_v62  ;;  %v492_v20 = vld [vmem:[%s18063_s2 + $0x980] sm:$0xff]  ;;  %v495_v62 = vld [vmem:[%s18063_s2 + $0x998] sm:$0xff] }
 0xdc2   :  { %3040 = vmatmul.mubr.f32.gmra.mxu1 %v492_v20  ;;  %2006 = vmatmul.mubr.f32.gmra.mxu0 %v492_v20  ;;  %v19051_v1 = vld [vmem:[#allocation76_spill] sm:$0xff] }
 0xdc3   :  { %9648 = vrsqrt.f32 %v5876_v26  ;;  %9493 = vmatprep.mubr.msk.f32.mxu1 %vm524_vm1, %v495_v62  ;;  %9325 = vmatprep.mubr.msk.f32.mxu0 %vm524_vm1, %v495_v62  ;;  %v19053_v20 = vld [vmem:[#allocation148_spill] sm:$0xff] }
 0xdc4   :  { %9650 = vrsqrt.f32 %v5877_v56 }
 0xdcd   :  { %5230 = vadd.xlane.f32.xlu1 %v5229_v28  ;;  %v15140_v53 = vpop.f32.mrf.mxu1 }
 0xdcf   :  { %v3008_v57 = vpop.f32.mrf.mxu1 }
 0xdd0   :  { %5234 = vadd.xlane.f32.xlu0 %v5233_v48  ;;  %v9649_v49 = vpop.eup %9648  ;;  %v5709_v48 = vld [vmem:[%s18064_s3 + $0x228] sm:$0xff]  ;;  %v1749_v57 = vpop.f32.mrf.mxu0 }
 0xdd1   :  { %v6212_v44 = vmul.f32 %v9649_v49, %v5708_v38  ;;  %v9651_v9 = vpop.eup %9650  ;;  %v19052_v38 = vld [vmem:[#allocation57_spill] sm:$0xff] }
 0xdde   :  { %3990 = vperm.xlu1 %9510, %v3260_v19   ;;  %v6213_v19 = vmul.f32 %v9651_v9, %v5709_v48  ;;  %v1751_v48 = vpop.f32.mrf.mxu0 }
 0xde2   :  { %6654 = vperm.xlu1 %9510, %v6212_v44  }
 0xde4   :  { %v15147_v52 = vpop.xlane.xlu1 %5214 }
 0xde6   :  { %3995 = vperm.xlu0 %9511, %v3261_v0  }
 0xde7   :  { %v15167_v56 = vpop.xlane.xlu0 %5218 }
 0xde8   :  { %v15163_v49 = vpop.permute.xlu1 %3970  ;;  %19049 = vst [vmem:[#allocation136_spill] sm:$0xff] %v15167_v56 }
 0xdea   :  { %6659 = vperm.xlu0 %9511, %v6213_v19   ;;  %v19054_v19 = vld [vmem:[#allocation10_spill] sm:$0xff] }
 0xdec   :  { %v6635_v24 = vpop.permute.xlu1 %6634 }
 0xded   :  { %v7280_v28 = vmul.f32 %v6635_v24, %v19050_v35  ;;  %v7281_v26 = vmul.f32 %v6635_v24, %v19051_v1  ;;  %v1755_v35 = vpop.f32.mrf.mxu0 }
 0xdef   :  { %v8624_v44 = vadd.f32 %v19052_v38, %v7280_v28  ;;  %v8625_v0 = vadd.f32 %v19052_v38, %v7281_v26  ;;  %v15173_v9 = vpop.permute.xlu0 %3975  ;;  %v19055_v28 = vld [vmem:[#allocation60_spill] sm:$0xff] }
 0xdf0   :  { %v494_v38 = vld [vmem:[%s18063_s2 + $0x990] sm:$0xff] }
 0xdf1   :  { %8960 = vst [vmem:[%s18065_s5 + $0x400] sm:$0xff] %v8624_v44  ;;  %8961 = vst.msk [vmem:[%s18065_s5 + $0x408] sm:$0xff] %vm2102_vm0, %v8625_v0  ;;  %v15197_v44 = vsub.f32 %v1751_v48, %v14025_v61  ;;  %v1757_v0 = vpop.f32.mrf.mxu0  ;;  %3045 = vmatmul.mubr.f32.gmra.mxu1 %v494_v38  ;;  %2012 = vmatmul.mubr.f32.gmra.mxu0 %v494_v38 }
 0xdf3   :  { %v6640_v60 = vpop.permute.xlu0 %6639  ;;  %19056 = vst [vmem:[#allocation3_spill] sm:$0xff] %v15197_v44 }
 0xdf4   :  { %v7282_v62 = vmul.f32 %v6640_v60, %v19053_v20  ;;  %v7283_v24 = vmul.f32 %v6640_v60, %v19054_v19  ;;  %v15200_v60 = vsub.f32 %v1749_v57, %v14025_v61  ;;  %v15203_v20 = vsub.f32 %v1757_v0, %v14086_v47 }
 0xdf5   :  { %v15208_v19 = vsub.f32 %v1755_v35, %v14086_v47  ;;  %v15216_v57 = vpop.f32.mrf.mxu1 }
 0xdf6   :  { %v8626_v1 = vadd.f32 %v19055_v28, %v7282_v62  ;;  %v8627_v26 = vadd.f32 %v19055_v28, %v7283_v24  ;;  %19057 = vst [vmem:[#allocation175_spill] sm:$0xff] %v15200_v60  ;;  %19058 = vst [vmem:[#allocation174_spill] sm:$0xff] %v15203_v20  ;;  %v4683_v62 = vmul.f32 %v15197_v44, %v15197_v44  ;;  %v19060_v28 = vld [vmem:[#allocation92_spill] sm:$0xff]  ;;  %v5543_v44 = vmul.f32 0.0051020407, %v13835_v10 }
 0xdf7   :  { %19059 = vst [vmem:[#allocation41_spill] sm:$0xff] %v15208_v19  ;;  %v4682_v24 = vmul.f32 %v15200_v60, %v15200_v60  ;;  %v4685_v48 = vmul.f32 %v15203_v20, %v15203_v20  ;;  %v3013_v38 = vpop.f32.mrf.mxu1  ;;  %v3262_v60 = vmul.f32 0.0051020407, %v15052_v12  ;;  %v497_v12 = vld [vmem:[%s18063_s2 + $0x9a8] sm:$0xff] }
 0xdf8   :  { %8962 = vst [vmem:[%s18065_s5 + $0x410] sm:$0xff] %v8626_v1  ;;  %8963 = vst.msk [vmem:[%s18065_s5 + $0x418] sm:$0xff] %vm2102_vm0, %v8627_v26  ;;  %v5542_v1 = vmul.f32 0.0051020407, %v19060_v28  ;;  %v5236_v61 = vsel %vm2102_vm0, %v4683_v62, 0.0  ;;  %v4684_v26 = vmul.f32 %v15208_v19, %v15208_v19  ;;  %9494 = vmatprep.mubr.msk.f32.mxu1 %vm524_vm1, %v497_v12  ;;  %9326 = vmatprep.mubr.msk.f32.mxu0 %vm524_vm1, %v497_v12  ;;  %v19062_v38 = vld [vmem:[#allocation145_spill] sm:$0xff] }
 0xdf9   :  { %v5237_v0 = vadd.f32 %v5236_v61, %v4682_v24  ;;  %v5240_v47 = vsel %vm2102_vm0, %v4685_v48, 0.0  ;;  %v5879_v20 = vadd.f32 0.001, %v5543_v44  ;;  %v5710_v24 = vld [vmem:[%s18064_s3 + $0x230] sm:$0xff]  ;;  %v496_v44 = vld [vmem:[%s18063_s2 + $0x9a0] sm:$0xff] }
 0xdfa   :  { %v5878_v35 = vadd.f32 0.001, %v5542_v1  ;;  %v5241_v13 = vadd.f32 %v5240_v47, %v4684_v26  ;;  %v3263_v1 = vmul.f32 0.0051020407, %v15058_v40  ;;  %v499_v40 = vld [vmem:[%s18063_s2 + $0x9b8] sm:$0xff]  ;;  %3050 = vmatmul.mubr.f32.gmra.mxu1 %v496_v44  ;;  %2018 = vmatmul.mubr.f32.gmra.mxu0 %v496_v44  ;;  %v19063_v47 = vld [vmem:[#allocation135_spill] sm:$0xff] }
 0xdfb   :  { %9495 = vmatprep.mubr.msk.f32.mxu1 %vm524_vm1, %v499_v40  ;;  %9327 = vmatprep.mubr.msk.f32.mxu0 %vm524_vm1, %v499_v40  ;;  %v19065_v44 = vld [vmem:[#allocation81_spill] sm:$0xff] }
 0xdfc   :  { %9652 = vrsqrt.f32 %v5878_v35 }
 0xdfd   :  { %9654 = vrsqrt.f32 %v5879_v20 }
 0xe05   :  { %v15222_v28 = vpop.f32.mrf.mxu1 }
 0xe06   :  { %5238 = vadd.xlane.f32.xlu1 %v5237_v0 }
 0xe07   :  { %v3018_v62 = vpop.f32.mrf.mxu1 }
 0xe08   :  { %v1761_v62 = vpop.f32.mrf.mxu0 }
 0xe09   :  { %5242 = vadd.xlane.f32.xlu0 %v5241_v13  ;;  %v9653_v56 = vpop.eup %9652  ;;  %v5711_v13 = vld [vmem:[%s18064_s3 + $0x238] sm:$0xff] }
 0xe0a   :  { %v6214_v48 = vmul.f32 %v9653_v56, %v5710_v24  ;;  %v9655_v10 = vpop.eup %9654  ;;  %v19064_v24 = vld [vmem:[#allocation59_spill] sm:$0xff] }
 0xe17   :  { %4000 = vperm.xlu1 %9510, %v3262_v60   ;;  %v6215_v60 = vmul.f32 %v9655_v10, %v5711_v13  ;;  %v1763_v13 = vpop.f32.mrf.mxu0 }
 0xe1b   :  { %6664 = vperm.xlu1 %9510, %v6214_v48  }
 0xe1d   :  { %v15229_v61 = vpop.xlane.xlu1 %5222 }
 0xe1f   :  { %4005 = vperm.xlu0 %9511, %v3263_v1  }
 0xe20   :  { %v15249_v20 = vpop.xlane.xlu0 %5226 }
 0xe21   :  { %v15245_v56 = vpop.permute.xlu1 %3980  ;;  %19061 = vst [vmem:[#allocation177_spill] sm:$0xff] %v15249_v20 }
 0xe23   :  { %6669 = vperm.xlu0 %9511, %v6215_v60   ;;  %v19066_v60 = vld [vmem:[#allocation82_spill] sm:$0xff] }
 0xe25   :  { %v6645_v26 = vpop.permute.xlu1 %6644 }
 0xe26   :  { %v7284_v0 = vmul.f32 %v6645_v26, %v19062_v38  ;;  %v7285_v35 = vmul.f32 %v6645_v26, %v19063_v47  ;;  %v1767_v38 = vpop.f32.mrf.mxu0 }
 0xe28   :  { %v8628_v48 = vadd.f32 %v19064_v24, %v7284_v0  ;;  %v8629_v1 = vadd.f32 %v19064_v24, %v7285_v35  ;;  %v15255_v10 = vpop.permute.xlu0 %3985  ;;  %v19067_v0 = vld [vmem:[#allocation62_spill] sm:$0xff]  ;;  %v498_v24 = vld [vmem:[%s18063_s2 + $0x9b0] sm:$0xff] }
 0xe29   :  { %3055 = vmatmul.mubr.f32.gmra.mxu1 %v498_v24  ;;  %2024 = vmatmul.mubr.f32.gmra.mxu0 %v498_v24 }
 0xe2a   :  { %8964 = vst [vmem:[%s18065_s5 + $0x420] sm:$0xff] %v8628_v48  ;;  %8965 = vst.msk [vmem:[%s18065_s5 + $0x428] sm:$0xff] %vm2102_vm0, %v8629_v1  ;;  %v15279_v48 = vsub.f32 %v1763_v13, %v14107_v63  ;;  %v1769_v1 = vpop.f32.mrf.mxu0 }
 0xe2c   :  { %v6650_v12 = vpop.permute.xlu0 %6649  ;;  %19068 = vst [vmem:[#allocation176_spill] sm:$0xff] %v15279_v48 }
 0xe2d   :  { %v7286_v40 = vmul.f32 %v6650_v12, %v19065_v44  ;;  %v7287_v26 = vmul.f32 %v6650_v12, %v19066_v60  ;;  %v15282_v12 = vsub.f32 %v1761_v62, %v14107_v63  ;;  %v15285_v44 = vsub.f32 %v1769_v1, %v14168_v59 }
 0xe2e   :  { %v15290_v60 = vsub.f32 %v1767_v38, %v14168_v59  ;;  %v15298_v62 = vpop.f32.mrf.mxu1 }
 0xe2f   :  { %v8630_v47 = vadd.f32 %v19067_v0, %v7286_v40  ;;  %v8631_v35 = vadd.f32 %v19067_v0, %v7287_v26  ;;  %19069 = vst [vmem:[#allocation44_spill] sm:$0xff] %v15282_v12  ;;  %19070 = vst [vmem:[#allocation77_spill] sm:$0xff] %v15285_v44  ;;  %v4687_v40 = vmul.f32 %v15279_v48, %v15279_v48  ;;  %v19072_v0 = vld [vmem:[#allocation18_spill] sm:$0xff]  ;;  %v5545_v48 = vmul.f32 0.0051020407, %v13917_v4 }
 0xe30   :  { %19071 = vst [vmem:[#allocation70_spill] sm:$0xff] %v15290_v60  ;;  %v4686_v26 = vmul.f32 %v15282_v12, %v15282_v12  ;;  %v4689_v13 = vmul.f32 %v15285_v44, %v15285_v44  ;;  %v3023_v24 = vpop.f32.mrf.mxu1  ;;  %v3264_v12 = vmul.f32 0.0051020407, %v15134_v5  ;;  %v501_v5 = vld [vmem:[%s18063_s2 + $0x9c8] sm:$0xff] }
 0xe31   :  { %8966 = vst [vmem:[%s18065_s5 + $0x430] sm:$0xff] %v8630_v47  ;;  %8967 = vst.msk [vmem:[%s18065_s5 + $0x438] sm:$0xff] %vm2102_vm0, %v8631_v35  ;;  %v5544_v47 = vmul.f32 0.0051020407, %v19072_v0  ;;  %v5244_v63 = vsel %vm2102_vm0, %v4687_v40, 0.0  ;;  %v4688_v35 = vmul.f32 %v15290_v60, %v15290_v60  ;;  %9496 = vmatprep.mubr.msk.f32.mxu1 %vm524_vm1, %v501_v5  ;;  %9328 = vmatprep.mubr.msk.f32.mxu0 %vm524_vm1, %v501_v5 }
 0xe32   :  { %v5248_v1 = vsel %vm2102_vm0, %v4689_v13, 0.0  ;;  %v5245_v59 = vadd.f32 %v5244_v63, %v4686_v26  ;;  %v5881_v44 = vadd.f32 0.001, %v5545_v48  ;;  %v5712_v13 = vld [vmem:[%s18064_s3 + $0x240] sm:$0xff] }
 0xe33   :  { %v5880_v38 = vadd.f32 0.001, %v5544_v47  ;;  %v5249_v19 = vadd.f32 %v5248_v1, %v4688_v35  ;;  %v3265_v47 = vmul.f32 0.0051020407, %v15140_v53  ;;  %v500_v48 = vld [vmem:[%s18063_s2 + $0x9c0] sm:$0xff]  ;;  %v503_v53 = vld [vmem:[%s18063_s2 + $0x9d8] sm:$0xff] }
 0xe34   :  { %3060 = vmatmul.mubr.f32.gmra.mxu1 %v500_v48  ;;  %2030 = vmatmul.mubr.f32.gmra.mxu0 %v500_v48  ;;  %v19073_v35 = vld [vmem:[#allocation151_spill] sm:$0xff]  ;;  %v19074_v1 = vld [vmem:[#allocation12_spill] sm:$0xff] }
 0xe35   :  { %9656 = vrsqrt.f32 %v5880_v38  ;;  %9497 = vmatprep.mubr.msk.f32.mxu1 %vm524_vm1, %v503_v53  ;;  %9329 = vmatprep.mubr.msk.f32.mxu0 %vm524_vm1, %v503_v53  ;;  %v1773_v38 = vpop.f32.mrf.mxu0 }
 0xe36   :  { %9658 = vrsqrt.f32 %v5881_v44  ;;  %v15349_v53 = vsub.f32 %v1773_v38, %v14189_v22 }
 0xe38   :  { %19077 = vst [vmem:[#allocation179_spill] sm:$0xff] %v15349_v53 }
 0xe3f   :  { %5246 = vadd.xlane.f32.xlu1 %v5245_v59  ;;  %v15304_v0 = vpop.f32.mrf.mxu1 }
 0xe41   :  { %v3028_v40 = vpop.f32.mrf.mxu1 }
 0xe42   :  { %5250 = vadd.xlane.f32.xlu0 %v5249_v19  ;;  %v9657_v20 = vpop.eup %9656  ;;  %v5713_v19 = vld [vmem:[%s18064_s3 + $0x248] sm:$0xff]  ;;  %v19075_v40 = vld [vmem:[#allocation61_spill] sm:$0xff] }
 0xe43   :  { %v6216_v26 = vmul.f32 %v9657_v20, %v5712_v13  ;;  %v9659_v4 = vpop.eup %9658 }
 0xe50   :  { %4010 = vperm.xlu1 %9510, %v3264_v12   ;;  %v6217_v12 = vmul.f32 %v9659_v4, %v5713_v19  ;;  %v502_v19 = vld [vmem:[%s18063_s2 + $0x9d0] sm:$0xff] }
 0xe51   :  { %3065 = vmatmul.mubr.f32.gmra.mxu1 %v502_v19  ;;  %2036 = vmatmul.mubr.f32.gmra.mxu0 %v502_v19  ;;  %v5547_v19 = vmul.f32 0.0051020407, %v13999_v31  ;;  %v5715_v31 = vld [vmem:[%s18064_s3 + $0x258] sm:$0xff] }
 0xe54   :  { %6674 = vperm.xlu1 %9510, %v6216_v26  }
 0xe56   :  { %v15311_v63 = vpop.xlane.xlu1 %5230 }
 0xe58   :  { %4015 = vperm.xlu0 %9511, %v3265_v47   ;;  %v1775_v47 = vpop.f32.mrf.mxu0 }
 0xe59   :  { %v15346_v5 = vsub.f32 %v1775_v47, %v14189_v22 }
 0xe5a   :  { %v15327_v20 = vpop.permute.xlu1 %3990  ;;  %v1779_v4 = vpop.f32.mrf.mxu0 }
 0xe5b   :  { %19076 = vst [vmem:[#allocation137_spill] sm:$0xff] %v15346_v5 }
 0xe5c   :  { %6679 = vperm.xlu0 %9511, %v6217_v12   ;;  %v1781_v48 = vpop.f32.mrf.mxu0 }
 0xe5d   :  { %v15352_v12 = vsub.f32 %v1781_v48, %v14250_v50  ;;  %v5883_v48 = vadd.f32 0.001, %v5547_v19 }
 0xe5e   :  { %v6655_v44 = vpop.permute.xlu1 %6654 }
 0xe5f   :  { %v7288_v24 = vmul.f32 %v6655_v44, %v19073_v35  ;;  %v7289_v59 = vmul.f32 %v6655_v44, %v19074_v1  ;;  %19078 = vst [vmem:[#allocation178_spill] sm:$0xff] %v15352_v12  ;;  %v4691_v44 = vmul.f32 %v15346_v5, %v15346_v5  ;;  %v15357_v35 = vsub.f32 %v1779_v4, %v14250_v50 }
 0xe60   :  { %v4693_v1 = vmul.f32 %v15352_v12, %v15352_v12  ;;  %v3266_v12 = vmul.f32 0.0051020407, %v15216_v57  ;;  %v505_v57 = vld [vmem:[%s18063_s2 + $0x9e8] sm:$0xff] }
 0xe61   :  { %v8632_v13 = vadd.f32 %v19075_v40, %v7288_v24  ;;  %v8633_v26 = vadd.f32 %v19075_v40, %v7289_v59  ;;  %19079 = vst [vmem:[#allocation43_spill] sm:$0xff] %v15357_v35  ;;  %v4690_v24 = vmul.f32 %v15349_v53, %v15349_v53  ;;  %v5546_v59 = vmul.f32 0.0051020407, %v13933_v46  ;;  %9498 = vmatprep.mubr.msk.f32.mxu1 %vm524_vm1, %v505_v57 }
 0xe62   :  { %v5252_v22 = vsel %vm2102_vm0, %v4691_v44, 0.0  ;;  %v4692_v40 = vmul.f32 %v15357_v35, %v15357_v35  ;;  %9330 = vmatprep.mubr.msk.f32.mxu0 %vm524_vm1, %v505_v57 }
 0xe63   :  { %8968 = vst [vmem:[%s18065_s5 + $0x440] sm:$0xff] %v8632_v13  ;;  %8969 = vst.msk [vmem:[%s18065_s5 + $0x448] sm:$0xff] %vm2102_vm0, %v8633_v26  ;;  %v5256_v26 = vsel %vm2102_vm0, %v4693_v1, 0.0  ;;  %v5253_v50 = vadd.f32 %v5252_v22, %v4690_v24  ;;  %v5882_v47 = vadd.f32 0.001, %v5546_v59  ;;  %v5714_v1 = vld [vmem:[%s18064_s3 + $0x250] sm:$0xff] }
 0xe64   :  { %v5257_v4 = vadd.f32 %v5256_v26, %v4692_v40  ;;  %v3267_v59 = vmul.f32 0.0051020407, %v15222_v28  ;;  %v504_v40 = vld [vmem:[%s18063_s2 + $0x9e0] sm:$0xff] }
 0xe65   :  { %9660 = vrsqrt.f32 %v5882_v47  ;;  %3070 = vmatmul.mubr.f32.gmra.mxu1 %v504_v40  ;;  %2042 = vmatmul.mubr.f32.gmra.mxu0 %v504_v40 }
 0xe66   :  { %9662 = vrsqrt.f32 %v5883_v48 }
 0xe67   :  { %v15365_v38 = vpop.f32.mrf.mxu1 }
 0xe69   :  { %v3033_v13 = vpop.f32.mrf.mxu1 }
 0xe72   :  { %v9661_v60 = vpop.eup %9660 }
 0xe73   :  { %v6218_v24 = vmul.f32 %v9661_v60, %v5714_v1  ;;  %v9663_v22 = vpop.eup %9662  ;;  %v507_v60 = vld [vmem:[%s18063_s2 + $0x9f8] sm:$0xff] }
 0xe74   :  { %v6219_v28 = vmul.f32 %v9663_v22, %v5715_v31  ;;  %9499 = vmatprep.mubr.msk.f32.mxu1 %vm524_vm1, %v507_v60  ;;  %9331 = vmatprep.mubr.msk.f32.mxu0 %vm524_vm1, %v507_v60 }
 0xe77   :  { %v15371_v46 = vpop.f32.mrf.mxu1 }
 0xe78   :  { %5254 = vadd.xlane.f32.xlu1 %v5253_v50  ;;  %v506_v50 = vld [vmem:[%s18063_s2 + $0x9f0] sm:$0xff] }
 0xe79   :  { %v3038_v44 = vpop.f32.mrf.mxu1  ;;  %3075 = vmatmul.mubr.f32.gmra.mxu1 %v506_v50  ;;  %2048 = vmatmul.mubr.f32.gmra.mxu0 %v506_v50 }
 0xe7b   :  { %5258 = vadd.xlane.f32.xlu0 %v5257_v4 }
 0xe82   :  { %v15408_v1 = vpop.f32.mrf.mxu1 }
 0xe89   :  { %4020 = vperm.xlu1 %9510, %v3266_v12   ;;  %v1785_v12 = vpop.f32.mrf.mxu0 }
 0xe8a   :  { %v15401_v19 = vsub.f32 %v1785_v12, %v14271_v43 }
 0xe8b   :  { %v1787_v13 = vpop.f32.mrf.mxu0 }
 0xe8c   :  { %v15398_v47 = vsub.f32 %v1787_v13, %v14271_v43  ;;  %19081 = vst [vmem:[#allocation180_spill] sm:$0xff] %v15401_v19  ;;  %v4694_v22 = vmul.f32 %v15401_v19, %v15401_v19  ;;  %v5548_v43 = vmul.f32 0.0051020407, %v14015_v14  ;;  %v5549_v13 = vmul.f32 0.0051020407, %v14081_v25  ;;  %v5717_v25 = vld [vmem:[%s18064_s3 + $0x268] sm:$0xff] }
 0xe8d   :  { %6684 = vperm.xlu1 %9510, %v6218_v24   ;;  %v1791_v26 = vpop.f32.mrf.mxu0  ;;  %v3268_v14 = vmul.f32 0.0051020407, %v15298_v62  ;;  %v509_v62 = vld [vmem:[%s18063_s2 + $0xa08] sm:$0xff] }
 0xe8e   :  { %19080 = vst [vmem:[#allocation181_spill] sm:$0xff] %v15398_v47  ;;  %v4695_v44 = vmul.f32 %v15398_v47, %v15398_v47  ;;  %v15411_v24 = vsub.f32 %v1791_v26, %v14332_v32  ;;  %v5884_v12 = vadd.f32 0.001, %v5548_v43  ;;  %v5885_v26 = vadd.f32 0.001, %v5549_v13  ;;  %9500 = vmatprep.mubr.msk.f32.mxu1 %vm524_vm1, %v509_v62  ;;  %9332 = vmatprep.mubr.msk.f32.mxu0 %vm524_vm1, %v509_v62 }
 0xe8f   :  { %v1793_v4 = vpop.f32.mrf.mxu0 }
 0xe90   :  { %v15404_v48 = vsub.f32 %v1793_v4, %v14332_v32  ;;  %19083 = vst [vmem:[#allocation9_spill] sm:$0xff] %v15411_v24  ;;  %v5260_v57 = vsel %vm2102_vm0, %v4695_v44, 0.0  ;;  %v4696_v40 = vmul.f32 %v15411_v24, %v15411_v24  ;;  %9664 = vrsqrt.f32 %v5884_v12 }
 0xe91   :  { %4025 = vperm.xlu0 %9511, %v3267_v59   ;;  %v3043_v59 = vpop.f32.mrf.mxu1  ;;  %9666 = vrsqrt.f32 %v5885_v26 }
 0xe92   :  { %19082 = vst [vmem:[#allocation46_spill] sm:$0xff] %v15404_v48  ;;  %v4697_v31 = vmul.f32 %v15404_v48, %v15404_v48  ;;  %v5716_v59 = vld [vmem:[%s18064_s3 + $0x260] sm:$0xff] }
 0xe94   :  { %v5264_v60 = vsel %vm2102_vm0, %v4697_v31, 0.0  ;;  %v3269_v31 = vmul.f32 0.0051020407, %v15304_v0 }
 0xe95   :  { %6689 = vperm.xlu0 %9511, %v6219_v28   ;;  %v5261_v28 = vadd.f32 %v5260_v57, %v4694_v22  ;;  %v5265_v32 = vadd.f32 %v5264_v60, %v4696_v40  ;;  %v508_v57 = vld [vmem:[%s18063_s2 + $0xa00] sm:$0xff]  ;;  %v511_v40 = vld [vmem:[%s18063_s2 + $0xa18] sm:$0xff]  ;;  %v1797_v60 = vpop.f32.mrf.mxu0 }
 0xe96   :  { %3080 = vmatmul.mubr.f32.gmra.mxu1 %v508_v57  ;;  %2054 = vmatmul.mubr.f32.gmra.mxu0 %v508_v57 }
 0xe97   :  { %9501 = vmatprep.mubr.msk.f32.mxu1 %vm524_vm1, %v511_v40  ;;  %9333 = vmatprep.mubr.msk.f32.mxu0 %vm524_vm1, %v511_v40 }
 0xe9d   :  { %v9665_v44 = vpop.eup %9664 }
 0xe9e   :  { %v6220_v22 = vmul.f32 %v9665_v44, %v5716_v59  ;;  %v9667_v43 = vpop.eup %9666 }
 0xe9f   :  { %v6221_v0 = vmul.f32 %v9667_v43, %v5717_v25 }
 0xeb1   :  { %5262 = vadd.xlane.f32.xlu1 %v5261_v28  ;;  %v15423_v50 = vpop.f32.mrf.mxu1  ;;  %v1799_v28 = vpop.f32.mrf.mxu0 }
 0xeb2   :  { %v15450_v13 = vsub.f32 %v1799_v28, %v14353_v21  ;;  %v5551_v28 = vmul.f32 0.0051020407, %v14163_v42  ;;  %v5719_v42 = vld [vmem:[%s18064_s3 + $0x278] sm:$0xff] }
 0xeb3   :  { %v3048_v4 = vpop.f32.mrf.mxu1  ;;  %v1803_v12 = vpop.f32.mrf.mxu0 }
 0xeb4   :  { %5266 = vadd.xlane.f32.xlu0 %v5265_v32  ;;  %v510_v32 = vld [vmem:[%s18063_s2 + $0xa10] sm:$0xff]  ;;  %19084 = vst [vmem:[#allocation72_spill] sm:$0xff] %v15450_v13  ;;  %v15453_v4 = vsub.f32 %v1797_v60, %v14353_v21  ;;  %v4699_v44 = vmul.f32 %v15450_v13, %v15450_v13  ;;  %v5550_v21 = vmul.f32 0.0051020407, %v14097_v55  ;;  %v3270_v55 = vmul.f32 0.0051020407, %v15365_v38 }
 0xeb5   :  { %v1805_v26 = vpop.f32.mrf.mxu0  ;;  %3085 = vmatmul.mubr.f32.gmra.mxu1 %v510_v32  ;;  %2060 = vmatmul.mubr.f32.gmra.mxu0 %v510_v32  ;;  %v513_v38 = vld [vmem:[%s18063_s2 + $0xa28] sm:$0xff] }
 0xeb6   :  { %19085 = vst [vmem:[#allocation8_spill] sm:$0xff] %v15453_v4  ;;  %v4698_v43 = vmul.f32 %v15453_v4, %v15453_v4  ;;  %v5268_v62 = vsel %vm2102_vm0, %v4699_v44, 0.0  ;;  %v5886_v60 = vadd.f32 0.001, %v5550_v21  ;;  %9502 = vmatprep.mubr.msk.f32.mxu1 %vm524_vm1, %v513_v38  ;;  %9334 = vmatprep.mubr.msk.f32.mxu0 %vm524_vm1, %v513_v38 }
 0xeb8   :  { %9668 = vrsqrt.f32 %v5886_v60 }
 0xeba   :  { %v15460_v59 = vpop.f32.mrf.mxu1 }
 0xec2   :  { %4030 = vperm.xlu1 %9510, %v3268_v14   ;;  %v15456_v14 = vsub.f32 %v1805_v26, %v14414_v3 }
 0xec4   :  { %19086 = vst [vmem:[#allocation183_spill] sm:$0xff] %v15456_v14  ;;  %v4701_v25 = vmul.f32 %v15456_v14, %v15456_v14 }
 0xec5   :  { %v9669_v44 = vpop.eup %9668 }
 0xec6   :  { %6694 = vperm.xlu1 %9510, %v6220_v22   ;;  %v15463_v22 = vsub.f32 %v1803_v12, %v14414_v3  ;;  %v5272_v40 = vsel %vm2102_vm0, %v4701_v25, 0.0  ;;  %v5887_v12 = vadd.f32 0.001, %v5551_v28  ;;  %v3271_v25 = vmul.f32 0.0051020407, %v15371_v46 }
 0xec8   :  { %19087 = vst [vmem:[#allocation182_spill] sm:$0xff] %v15463_v22  ;;  %v4700_v57 = vmul.f32 %v15463_v22, %v15463_v22  ;;  %9670 = vrsqrt.f32 %v5887_v12 }
 0xeca   :  { %4035 = vperm.xlu0 %9511, %v3269_v31   ;;  %v3053_v31 = vpop.f32.mrf.mxu1  ;;  %v5273_v3 = vadd.f32 %v5272_v40, %v4700_v57  ;;  %v515_v57 = vld [vmem:[%s18063_s2 + $0xa38] sm:$0xff]  ;;  %v1809_v40 = vpop.f32.mrf.mxu0 }
 0xecb   :  { %v5718_v31 = vld [vmem:[%s18064_s3 + $0x270] sm:$0xff] }
 0xece   :  { %6699 = vperm.xlu0 %9511, %v6221_v0   ;;  %v5269_v0 = vadd.f32 %v5268_v62, %v4698_v43  ;;  %v6222_v43 = vmul.f32 %v9669_v44, %v5718_v31  ;;  %v512_v62 = vld [vmem:[%s18063_s2 + $0xa20] sm:$0xff] }
 0xecf   :  { %3090 = vmatmul.mubr.f32.gmra.mxu1 %v512_v62  ;;  %2066 = vmatmul.mubr.f32.gmra.mxu0 %v512_v62 }
 0xed0   :  { %9503 = vmatprep.mubr.msk.f32.mxu1 %vm524_vm1, %v515_v57  ;;  %9335 = vmatprep.mubr.msk.f32.mxu0 %vm524_vm1, %v515_v57 }
 0xed5   :  { %v9671_v21 = vpop.eup %9670 }
 0xed6   :  { %v6223_v46 = vmul.f32 %v9671_v21, %v5719_v42 }
 0xee9   :  { %v15475_v32 = vpop.f32.mrf.mxu1 }
 0xeea   :  { %5270 = vadd.xlane.f32.xlu1 %v5269_v0  ;;  %v1811_v0 = vpop.f32.mrf.mxu0 }
 0xeeb   :  { %v3058_v26 = vpop.f32.mrf.mxu1  ;;  %v15502_v28 = vsub.f32 %v1811_v0, %v14435_v51  ;;  %v5553_v0 = vmul.f32 0.0051020407, %v14245_v39  ;;  %v5721_v39 = vld [vmem:[%s18064_s3 + $0x288] sm:$0xff] }
 0xeec   :  { %v1815_v60 = vpop.f32.mrf.mxu0  ;;  %v15505_v26 = vsub.f32 %v1809_v40, %v14435_v51  ;;  %v5552_v51 = vmul.f32 0.0051020407, %v14179_v6  ;;  %v3272_v6 = vmul.f32 0.0051020407, %v15408_v1  ;;  %v517_v1 = vld [vmem:[%s18063_s2 + $0xa48] sm:$0xff] }
 0xeed   :  { %5274 = vadd.xlane.f32.xlu0 %v5273_v3  ;;  %v514_v3 = vld [vmem:[%s18063_s2 + $0xa30] sm:$0xff]  ;;  %19088 = vst [vmem:[#allocation45_spill] sm:$0xff] %v15502_v28  ;;  %v4703_v44 = vmul.f32 %v15502_v28, %v15502_v28 }
 0xeee   :  { %v1817_v12 = vpop.f32.mrf.mxu0  ;;  %3095 = vmatmul.mubr.f32.gmra.mxu1 %v514_v3  ;;  %2072 = vmatmul.mubr.f32.gmra.mxu0 %v514_v3  ;;  %19089 = vst [vmem:[#allocation132_spill] sm:$0xff] %v15505_v26  ;;  %v4702_v21 = vmul.f32 %v15505_v26, %v15505_v26  ;;  %v5888_v40 = vadd.f32 0.001, %v5552_v51 }
 0xeef   :  { %v5276_v38 = vsel %vm2102_vm0, %v4703_v44, 0.0  ;;  %9504 = vmatprep.mubr.msk.f32.mxu1 %vm524_vm1, %v517_v1  ;;  %9336 = vmatprep.mubr.msk.f32.mxu0 %vm524_vm1, %v517_v1 }
 0xef0   :  { %9672 = vrsqrt.f32 %v5888_v40 }
 0xef4   :  { %v15512_v31 = vpop.f32.mrf.mxu1 }
 0xefb   :  { %4040 = vperm.xlu1 %9510, %v3270_v55   ;;  %v15508_v55 = vsub.f32 %v1817_v12, %v14496_v45 }
 0xefd   :  { %19090 = vst [vmem:[#allocation126_spill] sm:$0xff] %v15508_v55  ;;  %v4705_v42 = vmul.f32 %v15508_v55, %v15508_v55  ;;  %v9673_v44 = vpop.eup %9672 }
 0xeff   :  { %6704 = vperm.xlu1 %9510, %v6222_v43   ;;  %v15515_v43 = vsub.f32 %v1815_v60, %v14496_v45  ;;  %v5280_v57 = vsel %vm2102_vm0, %v4705_v42, 0.0  ;;  %v5889_v60 = vadd.f32 0.001, %v5553_v0  ;;  %v3273_v42 = vmul.f32 0.0051020407, %v15423_v50 }
 0xf01   :  { %19091 = vst [vmem:[#allocation48_spill] sm:$0xff] %v15515_v43  ;;  %v4704_v62 = vmul.f32 %v15515_v43, %v15515_v43  ;;  %9674 = vrsqrt.f32 %v5889_v60 }
 0xf03   :  { %4045 = vperm.xlu0 %9511, %v3271_v25   ;;  %v3063_v25 = vpop.f32.mrf.mxu1  ;;  %v5281_v45 = vadd.f32 %v5280_v57, %v4704_v62  ;;  %v519_v62 = vld [vmem:[%s18063_s2 + $0xa58] sm:$0xff]  ;;  %v1821_v57 = vpop.f32.mrf.mxu0 }
 0xf04   :  { %v5720_v25 = vld [vmem:[%s18064_s3 + $0x280] sm:$0xff] }
 0xf07   :  { %6709 = vperm.xlu0 %9511, %v6223_v46   ;;  %v5277_v46 = vadd.f32 %v5276_v38, %v4702_v21  ;;  %v6224_v21 = vmul.f32 %v9673_v44, %v5720_v25  ;;  %v516_v38 = vld [vmem:[%s18063_s2 + $0xa40] sm:$0xff] }
 0xf08   :  { %3100 = vmatmul.mubr.f32.gmra.mxu1 %v516_v38  ;;  %2078 = vmatmul.mubr.f32.gmra.mxu0 %v516_v38 }
 0xf09   :  { %9505 = vmatprep.mubr.msk.f32.mxu1 %vm524_vm1, %v519_v62  ;;  %9337 = vmatprep.mubr.msk.f32.mxu0 %vm524_vm1, %v519_v62 }
 0xf0e   :  { %v9675_v51 = vpop.eup %9674 }
 0xf0f   :  { %v6225_v50 = vmul.f32 %v9675_v51, %v5721_v39 }
 0xf11   :  { %v15527_v3 = vpop.f32.mrf.mxu1 }
 0xf13   :  { %v3068_v12 = vpop.f32.mrf.mxu1 }
 0xf14   :  { %v15557_v12 = vsub.f32 %v1821_v57, %v14517_v30 }
 0xf16   :  { %19093 = vst [vmem:[#allocation142_spill] sm:$0xff] %v15557_v12  ;;  %v4706_v51 = vmul.f32 %v15557_v12, %v15557_v12 }
 0xf23   :  { %5278 = vadd.xlane.f32.xlu1 %v5277_v46  ;;  %v1823_v46 = vpop.f32.mrf.mxu0 }
 0xf24   :  { %v15554_v0 = vsub.f32 %v1823_v46, %v14517_v30  ;;  %v5554_v30 = vmul.f32 0.0051020407, %v14261_v17  ;;  %v5555_v46 = vmul.f32 0.0051020407, %v14327_v27  ;;  %v3274_v17 = vmul.f32 0.0051020407, %v15460_v59 }
 0xf25   :  { %v1827_v40 = vpop.f32.mrf.mxu0  ;;  %v15564_v25 = vpop.f32.mrf.mxu1  ;;  %v5723_v27 = vld [vmem:[%s18064_s3 + $0x298] sm:$0xff]  ;;  %v521_v59 = vld [vmem:[%s18063_s2 + $0xa68] sm:$0xff] }
 0xf26   :  { %5282 = vadd.xlane.f32.xlu0 %v5281_v45  ;;  %v518_v45 = vld [vmem:[%s18063_s2 + $0xa50] sm:$0xff]  ;;  %19092 = vst [vmem:[#allocation83_spill] sm:$0xff] %v15554_v0  ;;  %v4707_v44 = vmul.f32 %v15554_v0, %v15554_v0  ;;  %v5890_v57 = vadd.f32 0.001, %v5554_v30 }
 0xf27   :  { %v1829_v60 = vpop.f32.mrf.mxu0  ;;  %3105 = vmatmul.mubr.f32.gmra.mxu1 %v518_v45  ;;  %2084 = vmatmul.mubr.f32.gmra.mxu0 %v518_v45 }
 0xf28   :  { %v5284_v1 = vsel %vm2102_vm0, %v4707_v44, 0.0  ;;  %9676 = vrsqrt.f32 %v5890_v57  ;;  %9506 = vmatprep.mubr.msk.f32.mxu1 %vm524_vm1, %v521_v59  ;;  %9338 = vmatprep.mubr.msk.f32.mxu0 %vm524_vm1, %v521_v59 }
 0xf34   :  { %4050 = vperm.xlu1 %9510, %v3272_v6   ;;  %v15560_v6 = vsub.f32 %v1829_v60, %v14578_v23 }
 0xf35   :  { %v9677_v44 = vpop.eup %9676 }
 0xf36   :  { %19094 = vst [vmem:[#allocation7_spill] sm:$0xff] %v15560_v6  ;;  %v4709_v39 = vmul.f32 %v15560_v6, %v15560_v6 }
 0xf38   :  { %6714 = vperm.xlu1 %9510, %v6224_v21   ;;  %v15567_v21 = vsub.f32 %v1827_v40, %v14578_v23  ;;  %v5288_v62 = vsel %vm2102_vm0, %v4709_v39, 0.0  ;;  %v5891_v40 = vadd.f32 0.001, %v5555_v46  ;;  %v3275_v39 = vmul.f32 0.0051020407, %v15475_v32 }
 0xf3a   :  { %19095 = vst [vmem:[#allocation63_spill] sm:$0xff] %v15567_v21  ;;  %v4708_v38 = vmul.f32 %v15567_v21, %v15567_v21  ;;  %9678 = vrsqrt.f32 %v5891_v40 }
 0xf3c   :  { %4055 = vperm.xlu0 %9511, %v3273_v42   ;;  %v3073_v42 = vpop.f32.mrf.mxu1  ;;  %v5289_v23 = vadd.f32 %v5288_v62, %v4708_v38  ;;  %v523_v38 = vld [vmem:[%s18063_s2 + $0xa78] sm:$0xff]  ;;  %v1833_v62 = vpop.f32.mrf.mxu0 }
 0xf3d   :  { %v5722_v42 = vld [vmem:[%s18064_s3 + $0x290] sm:$0xff] }
 0xf3e   :  { %v15579_v45 = vpop.f32.mrf.mxu1 }
 0xf40   :  { %6719 = vperm.xlu0 %9511, %v6225_v50   ;;  %v5285_v50 = vadd.f32 %v5284_v1, %v4706_v51  ;;  %v3078_v60 = vpop.f32.mrf.mxu1  ;;  %v6226_v51 = vmul.f32 %v9677_v44, %v5722_v42  ;;  %v520_v1 = vld [vmem:[%s18063_s2 + $0xa60] sm:$0xff] }
 0xf41   :  { %3110 = vmatmul.mubr.f32.gmra.mxu1 %v520_v1  ;;  %2090 = vmatmul.mubr.f32.gmra.mxu0 %v520_v1  ;;  %v15609_v60 = vsub.f32 %v1833_v62, %v14599_v29 }
 0xf42   :  { %9507 = vmatprep.mubr.msk.f32.mxu1 %vm524_vm1, %v523_v38  ;;  %9339 = vmatprep.mubr.msk.f32.mxu0 %vm524_vm1, %v523_v38 }
 0xf43   :  { %19097 = vst [vmem:[#allocation47_spill] sm:$0xff] %v15609_v60 }
 0xf47   :  { %v9679_v30 = vpop.eup %9678 }
 0xf48   :  { %v6227_v32 = vmul.f32 %v9679_v30, %v5723_v27  ;;  %v4710_v30 = vmul.f32 %v15609_v60, %v15609_v60 }
 0xf56   :  { %v15616_v42 = vpop.f32.mrf.mxu1 }
 0xf5c   :  { %5286 = vadd.xlane.f32.xlu1 %v5285_v50  ;;  %v1835_v50 = vpop.f32.mrf.mxu0 }
 0xf5d   :  { %v15606_v46 = vsub.f32 %v1835_v50, %v14599_v29  ;;  %v5556_v29 = vmul.f32 0.0051020407, %v14343_v7  ;;  %v5557_v50 = vmul.f32 0.0051020407, %v14409_v34  ;;  %v3276_v7 = vmul.f32 0.0051020407, %v15512_v31 }
 0xf5e   :  { %v1839_v57 = vpop.f32.mrf.mxu0  ;;  %v5725_v34 = vld [vmem:[%s18064_s3 + $0x2a8] sm:$0xff] }
 0xf5f   :  { %5290 = vadd.xlane.f32.xlu0 %v5289_v23  ;;  %v522_v23 = vld [vmem:[%s18063_s2 + $0xa70] sm:$0xff]  ;;  %19096 = vst [vmem:[#allocation64_spill] sm:$0xff] %v15606_v46  ;;  %v4711_v44 = vmul.f32 %v15606_v46, %v15606_v46  ;;  %v5892_v62 = vadd.f32 0.001, %v5556_v29 }
 0xf60   :  { %v1841_v40 = vpop.f32.mrf.mxu0  ;;  %3115 = vmatmul.mubr.f32.gmra.mxu1 %v522_v23  ;;  %2096 = vmatmul.mubr.f32.gmra.mxu0 %v522_v23 }
 0xf61   :  { %v5292_v59 = vsel %vm2102_vm0, %v4711_v44, 0.0  ;;  %9680 = vrsqrt.f32 %v5892_v62 }
 0xf6d   :  { %4060 = vperm.xlu1 %9510, %v3274_v17   ;;  %v15612_v17 = vsub.f32 %v1841_v40, %v14660_v11 }
 0xf6e   :  { %v9681_v44 = vpop.eup %9680 }
 0xf6f   :  { %19098 = vst [vmem:[#allocation66_spill] sm:$0xff] %v15612_v17  ;;  %v4713_v27 = vmul.f32 %v15612_v17, %v15612_v17 }
 0xf71   :  { %6724 = vperm.xlu1 %9510, %v6226_v51   ;;  %v15619_v51 = vsub.f32 %v1839_v57, %v14660_v11  ;;  %v5296_v38 = vsel %vm2102_vm0, %v4713_v27, 0.0  ;;  %v5893_v57 = vadd.f32 0.001, %v5557_v50  ;;  %v3277_v27 = vmul.f32 0.0051020407, %v15527_v3 }
 0xf73   :  { %19099 = vst [vmem:[#allocation2_spill] sm:$0xff] %v15619_v51  ;;  %v4712_v1 = vmul.f32 %v15619_v51, %v15619_v51  ;;  %9682 = vrsqrt.f32 %v5893_v57 }
 0xf75   :  { %4065 = vperm.xlu0 %9511, %v3275_v39   ;;  %v3083_v39 = vpop.f32.mrf.mxu1  ;;  %v5297_v11 = vadd.f32 %v5296_v38, %v4712_v1  ;;  %v1845_v1 = vpop.f32.mrf.mxu0 }
 0xf76   :  { %v5724_v39 = vld [vmem:[%s18064_s3 + $0x2a0] sm:$0xff] }
 0xf77   :  { %v15631_v23 = vpop.f32.mrf.mxu1  ;;  %v1847_v31 = vpop.f32.mrf.mxu0 }
 0xf79   :  { %6729 = vperm.xlu0 %9511, %v6227_v32   ;;  %v5293_v32 = vadd.f32 %v5292_v59, %v4710_v30  ;;  %v3088_v40 = vpop.f32.mrf.mxu1  ;;  %v6228_v30 = vmul.f32 %v9681_v44, %v5724_v39  ;;  %v1851_v38 = vpop.f32.mrf.mxu0 }
 0xf80   :  { %v9683_v29 = vpop.eup %9682 }
 0xf81   :  { %v6229_v59 = vmul.f32 %v9683_v29, %v5725_v34 }
 0xf8f   :  { %v15652_v40 = vpop.f32.mrf.mxu1 }
 0xf91   :  { %v3093_v44 = vpop.f32.mrf.mxu1 }
 0xf95   :  { %5294 = vadd.xlane.f32.xlu1 %v5293_v32  ;;  %v19100_v32 = vld [vmem:[#allocation30_spill] sm:$0xff] }
 0xf96   :  { %v15642_v62 = vsub.f32 %v1847_v31, %v19100_v32  ;;  %v15645_v50 = vsub.f32 %v1845_v1, %v19100_v32 }
 0xf98   :  { %5298 = vadd.xlane.f32.xlu0 %v5297_v11  ;;  %19101 = vst [vmem:[#allocation50_spill] sm:$0xff] %v15642_v62  ;;  %v1853_v11 = vpop.f32.mrf.mxu0  ;;  %19102 = vst [vmem:[#allocation154_spill] sm:$0xff] %v15645_v50  ;;  %v4715_v57 = vmul.f32 %v15642_v62, %v15642_v62  ;;  %v4714_v39 = vmul.f32 %v15645_v50, %v15645_v50 }
 0xf99   :  { %v15648_v3 = vsub.f32 %v1853_v11, %v14742_v8 }
 0xf9a   :  { %v5300_v34 = vsel %vm2102_vm0, %v4715_v57, 0.0  ;;  %v3278_v57 = vmul.f32 0.0051020407, %v15564_v25 }
 0xf9b   :  { %19103 = vst [vmem:[#allocation78_spill] sm:$0xff] %v15648_v3  ;;  %v5301_v31 = vadd.f32 %v5300_v34, %v4714_v39 }
 0xfa6   :  { %4070 = vperm.xlu1 %9510, %v3276_v7   ;;  %v15655_v7 = vsub.f32 %v1851_v38, %v14742_v8  ;;  %v19106_v38 = vld [vmem:[#allocation26_spill] sm:$0xff] }
 0xfa7   :  { %v5559_v11 = vmul.f32 0.0051020407, %v19106_v38 }
 0xfa8   :  { %19104 = vst [vmem:[#allocation80_spill] sm:$0xff] %v15655_v7 }
 0xfa9   :  { %v5895_v44 = vadd.f32 0.001, %v5559_v11 }
 0xfaa   :  { %6734 = vperm.xlu1 %9510, %v6228_v30   ;;  %v4717_v30 = vmul.f32 %v15648_v3, %v15648_v3 }
 0xfac   :  { %v5304_v1 = vsel %vm2102_vm0, %v4717_v30, 0.0  ;;  %v5726_v30 = vld [vmem:[%s18064_s3 + $0x2b0] sm:$0xff] }
 0xfae   :  { %4075 = vperm.xlu0 %9511, %v3277_v27   ;;  %v19105_v27 = vld [vmem:[#allocation108_spill] sm:$0xff]  ;;  %v15667_v17 = vpop.f32.mrf.mxu1 }
 0xfaf   :  { %v5558_v29 = vmul.f32 0.0051020407, %v19105_v27 }
 0xfb0   :  { %v3098_v3 = vpop.f32.mrf.mxu1 }
 0xfb1   :  { %v5894_v32 = vadd.f32 0.001, %v5558_v29  ;;  %v3279_v29 = vmul.f32 0.0051020407, %v15579_v45 }
 0xfb2   :  { %6739 = vperm.xlu0 %9511, %v6229_v59   ;;  %v4716_v59 = vmul.f32 %v15655_v7, %v15655_v7 }
 0xfb3   :  { %9684 = vrsqrt.f32 %v5894_v32  ;;  %v19107_v32 = vld [vmem:[#allocation124_spill] sm:$0xff] }
 0xfb4   :  { %v5305_v8 = vadd.f32 %v5304_v1, %v4716_v59  ;;  %9686 = vrsqrt.f32 %v5895_v44  ;;  %v5727_v59 = vld [vmem:[%s18064_s3 + $0x2b8] sm:$0xff]  ;;  %v1857_v1 = vpop.f32.mrf.mxu0 }
 0xfb5   :  { %v15681_v11 = vsub.f32 %v1857_v1, %v19107_v32 }
 0xfb6   :  { %v1859_v25 = vpop.f32.mrf.mxu0 }
 0xfb7   :  { %19109 = vst [vmem:[#allocation65_spill] sm:$0xff] %v15681_v11 }
 0xfc0   :  { %v9685_v27 = vpop.eup %9684 }
 0xfc1   :  { %v6230_v39 = vmul.f32 %v9685_v27, %v5726_v30  ;;  %v9687_v34 = vpop.eup %9686 }
 0xfc2   :  { %v6231_v3 = vmul.f32 %v9687_v34, %v5727_v59  ;;  %v19112_v34 = vld [vmem:[#allocation160_spill] sm:$0xff] }
 0xfc3   :  { %v5560_v59 = vmul.f32 0.0051020407, %v19112_v34 }
 0xfce   :  { %5302 = vadd.xlane.f32.xlu1 %v5301_v31  ;;  %v1863_v31 = vpop.f32.mrf.mxu0 }
 0xfcf   :  { %v15691_v27 = vsub.f32 %v1863_v31, %v14824_v2  ;;  %v19113_v31 = vld [vmem:[#allocation113_spill] sm:$0xff] }
 0xfd0   :  { %v1865_v38 = vpop.f32.mrf.mxu0 }
 0xfd1   :  { %5306 = vadd.xlane.f32.xlu0 %v5305_v8  ;;  %v15678_v8 = vsub.f32 %v1859_v25, %v19107_v32  ;;  %v15684_v45 = vsub.f32 %v1865_v38, %v14824_v2  ;;  %19111 = vst [vmem:[#allocation134_spill] sm:$0xff] %v15691_v27  ;;  %v4720_v1 = vmul.f32 %v15691_v27, %v15691_v27  ;;  %v5896_v38 = vadd.f32 0.001, %v5560_v59 }
 0xfd2   :  { %v3281_v59 = vmul.f32 0.0051020407, %v15631_v23 }
 0xfd3   :  { %19108 = vst [vmem:[#allocation4_spill] sm:$0xff] %v15678_v8  ;;  %19110 = vst [vmem:[#allocation49_spill] sm:$0xff] %v15684_v45  ;;  %v4719_v44 = vmul.f32 %v15678_v8, %v15678_v8  ;;  %9688 = vrsqrt.f32 %v5896_v38 }
 0xfdf   :  { %4080 = vperm.xlu1 %9510, %v3278_v57   ;;  %v15688_v57 = vpop.f32.mrf.mxu1 }
 0xfe0   :  { %v9689_v34 = vpop.eup %9688 }
 0xfe1   :  { %v3103_v30 = vpop.f32.mrf.mxu1 }
 0xfe2   :  { %v5561_v30 = vmul.f32 0.0051020407, %v19113_v31 }
 0xfe3   :  { %6744 = vperm.xlu1 %9510, %v6230_v39   ;;  %v4718_v39 = vmul.f32 %v15681_v11, %v15681_v11 }
 0xfe4   :  { %v5897_v7 = vadd.f32 0.001, %v5561_v30 }
 0xfe6   :  { %9690 = vrsqrt.f32 %v5897_v7  ;;  %v1869_v7 = vpop.f32.mrf.mxu0 }
 0xfe7   :  { %4085 = vperm.xlu0 %9511, %v3279_v29   ;;  %v4721_v29 = vmul.f32 %v15684_v45, %v15684_v45  ;;  %v15703_v51 = vpop.f32.mrf.mxu1 }
 0xfe9   :  { %v5312_v25 = vsel %vm2102_vm0, %v4721_v29, 0.0  ;;  %v3108_v45 = vpop.f32.mrf.mxu1  ;;  %v5728_v29 = vld [vmem:[%s18064_s3 + $0x2c0] sm:$0xff] }
 0xfea   :  { %v5313_v2 = vadd.f32 %v5312_v25, %v4720_v1  ;;  %v5729_v1 = vld [vmem:[%s18064_s3 + $0x2c8] sm:$0xff] }
 0xfeb   :  { %6749 = vperm.xlu0 %9511, %v6231_v3   ;;  %v5308_v3 = vsel %vm2102_vm0, %v4719_v44, 0.0  ;;  %v3280_v44 = vmul.f32 0.0051020407, %v15616_v42  ;;  %v1871_v42 = vpop.f32.mrf.mxu0 }
 0xfec   :  { %v5309_v32 = vadd.f32 %v5308_v3, %v4718_v39  ;;  %v6232_v39 = vmul.f32 %v9689_v34, %v5728_v29 }
 0xfed   :  { %v1875_v25 = vpop.f32.mrf.mxu0 }
 0xfef   :  { %v1877_v38 = vpop.f32.mrf.mxu0 }
 0xff0   :  { %v15720_v23 = vsub.f32 %v1877_v38, %v14906_v18 }
 0xff2   :  { %19116 = vst [vmem:[#allocation79_spill] sm:$0xff] %v15720_v23 }
 0xff3   :  { %v9691_v3 = vpop.eup %9690 }
 0xff4   :  { %v6233_v45 = vmul.f32 %v9691_v3, %v5729_v1 }
0x1001   :  { %v15724_v30 = vpop.f32.mrf.mxu1 }
0x1003   :  { %v3113_v34 = vpop.f32.mrf.mxu1 }
0x1007   :  { %5310 = vadd.xlane.f32.xlu1 %v5309_v32  ;;  %v15714_v32 = vsub.f32 %v1871_v42, %v14845_v16 }
0x1009   :  { %19114 = vst [vmem:[#allocation129_spill] sm:$0xff] %v15714_v32  ;;  %v4723_v31 = vmul.f32 %v15714_v32, %v15714_v32 }
0x100a   :  { %5314 = vadd.xlane.f32.xlu0 %v5313_v2  ;;  %v15717_v2 = vsub.f32 %v1869_v7, %v14845_v16  ;;  %v19118_v16 = vld [vmem:[#allocation28_spill] sm:$0xff] }
0x100b   :  { %v5316_v3 = vsel %vm2102_vm0, %v4723_v31, 0.0  ;;  %v3282_v31 = vmul.f32 0.0051020407, %v15652_v40 }
0x100c   :  { %19115 = vst [vmem:[#allocation52_spill] sm:$0xff] %v15717_v2  ;;  %v4722_v29 = vmul.f32 %v15717_v2, %v15717_v2 }
0x100e   :  { %v5317_v7 = vadd.f32 %v5316_v3, %v4722_v29 }
0x1018   :  { %4090 = vperm.xlu1 %9510, %v3280_v44   ;;  %v15727_v44 = vsub.f32 %v1875_v25, %v14906_v18  ;;  %v19119_v25 = vld [vmem:[#allocation118_spill] sm:$0xff] }
0x1019   :  { %v5563_v38 = vmul.f32 0.0051020407, %v19119_v25 }
0x101a   :  { %19117 = vst [vmem:[#allocation138_spill] sm:$0xff] %v15727_v44  ;;  %v4724_v1 = vmul.f32 %v15727_v44, %v15727_v44 }
0x101b   :  { %v5899_v34 = vadd.f32 0.001, %v5563_v38 }
0x101c   :  { %6754 = vperm.xlu1 %9510, %v6232_v39   ;;  %v4725_v39 = vmul.f32 %v15720_v23, %v15720_v23 }
0x1020   :  { %4095 = vperm.xlu0 %9511, %v3281_v59   ;;  %v5562_v59 = vmul.f32 0.0051020407, %v19118_v16  ;;  %v15739_v27 = vpop.f32.mrf.mxu1 }
0x1022   :  { %v5898_v42 = vadd.f32 0.001, %v5562_v59  ;;  %v3118_v23 = vpop.f32.mrf.mxu1  ;;  %v3283_v59 = vmul.f32 0.0051020407, %v15667_v17 }
0x1024   :  { %6759 = vperm.xlu0 %9511, %v6233_v45   ;;  %v5320_v45 = vsel %vm2102_vm0, %v4725_v39, 0.0  ;;  %9692 = vrsqrt.f32 %v5898_v42  ;;  %v5730_v39 = vld [vmem:[%s18064_s3 + $0x2d0] sm:$0xff] }
0x1025   :  { %v5321_v18 = vadd.f32 %v5320_v45, %v4724_v1  ;;  %9694 = vrsqrt.f32 %v5899_v34  ;;  %v5731_v1 = vld [vmem:[%s18064_s3 + $0x2d8] sm:$0xff]  ;;  %v1881_v45 = vpop.f32.mrf.mxu0 }
0x1026   :  { %v15753_v25 = vsub.f32 %v1881_v45, %v14927_v33  ;;  %v19125_v45 = vld [vmem:[#allocation121_spill] sm:$0xff] }
0x1027   :  { %v1883_v40 = vpop.f32.mrf.mxu0 }
0x1028   :  { %v15750_v42 = vsub.f32 %v1883_v40, %v14927_v33  ;;  %19121 = vst [vmem:[#allocation68_spill] sm:$0xff] %v15753_v25  ;;  %v5565_v40 = vmul.f32 0.0051020407, %v19125_v45 }
0x102a   :  { %19120 = vst [vmem:[#allocation67_spill] sm:$0xff] %v15750_v42  ;;  %v4727_v38 = vmul.f32 %v15750_v42, %v15750_v42 }
0x102c   :  { %v5324_v33 = vsel %vm2102_vm0, %v4727_v38, 0.0  ;;  %v5732_v38 = vld [vmem:[%s18064_s3 + $0x2e0] sm:$0xff] }
0x1031   :  { %v9693_v16 = vpop.eup %9692 }
0x1032   :  { %v6234_v29 = vmul.f32 %v9693_v16, %v5730_v39  ;;  %v9695_v3 = vpop.eup %9694  ;;  %v19124_v39 = vld [vmem:[#allocation117_spill] sm:$0xff] }
0x1033   :  { %v6235_v23 = vmul.f32 %v9695_v3, %v5731_v1 }
0x1040   :  { %5318 = vadd.xlane.f32.xlu1 %v5317_v7  ;;  %v1887_v7 = vpop.f32.mrf.mxu0 }
0x1041   :  { %v15761_v34 = vsub.f32 %v1887_v7, %v14988_v54  ;;  %v5901_v7 = vadd.f32 0.001, %v5565_v40 }
0x1043   :  { %5322 = vadd.xlane.f32.xlu0 %v5321_v18  ;;  %v1889_v18 = vpop.f32.mrf.mxu0  ;;  %19123 = vst [vmem:[#allocation6_spill] sm:$0xff] %v15761_v34 }
0x1044   :  { %v15756_v17 = vsub.f32 %v1889_v18, %v14988_v54  ;;  %v3284_v18 = vmul.f32 0.0051020407, %v15688_v57 }
0x1046   :  { %19122 = vst [vmem:[#allocation51_spill] sm:$0xff] %v15756_v17  ;;  %v4729_v16 = vmul.f32 %v15756_v17, %v15756_v17 }
0x1048   :  { %v5328_v3 = vsel %vm2102_vm0, %v4729_v16, 0.0 }
0x1051   :  { %4100 = vperm.xlu1 %9510, %v3282_v31   ;;  %v4726_v31 = vmul.f32 %v15753_v25, %v15753_v25 }
0x1053   :  { %v5325_v1 = vadd.f32 %v5324_v33, %v4726_v31  ;;  %v3285_v31 = vmul.f32 0.0051020407, %v15703_v51 }
0x1055   :  { %6764 = vperm.xlu1 %9510, %v6234_v29   ;;  %v5564_v29 = vmul.f32 0.0051020407, %v19124_v39 }
0x1059   :  { %4105 = vperm.xlu0 %9511, %v3283_v59   ;;  %v4728_v59 = vmul.f32 %v15761_v34, %v15761_v34 }
0x105b   :  { %v5329_v54 = vadd.f32 %v5328_v3, %v4728_v59  ;;  %v1893_v59 = vpop.f32.mrf.mxu0 }
0x105d   :  { %6769 = vperm.xlu0 %9511, %v6235_v23   ;;  %v5900_v23 = vadd.f32 0.001, %v5564_v29  ;;  %v5733_v29 = vld [vmem:[%s18064_s3 + $0x2e8] sm:$0xff]  ;;  %v1895_v57 = vpop.f32.mrf.mxu0 }
0x105f   :  { %9696 = vrsqrt.f32 %v5900_v23  ;;  %v1899_v3 = vpop.f32.mrf.mxu0 }
0x1060   :  { %9698 = vrsqrt.f32 %v5901_v7  ;;  %v15793_v45 = vsub.f32 %v1899_v3, %v15070_v58  ;;  %v3286_v3 = vmul.f32 0.0051020407, %v15724_v30 }
0x1061   :  { %v1901_v23 = vpop.f32.mrf.mxu0 }
0x1062   :  { %v15788_v51 = vsub.f32 %v1901_v23, %v15070_v58  ;;  %19129 = vst [vmem:[#allocation153_spill] sm:$0xff] %v15793_v45 }
0x1064   :  { %19128 = vst [vmem:[#allocation84_spill] sm:$0xff] %v15788_v51  ;;  %v4733_v7 = vmul.f32 %v15788_v51, %v15788_v51 }
0x106c   :  { %v9697_v39 = vpop.eup %9696 }
0x106d   :  { %v6236_v17 = vmul.f32 %v9697_v39, %v5732_v38  ;;  %v9699_v16 = vpop.eup %9698  ;;  %v4732_v38 = vmul.f32 %v15793_v45, %v15793_v45 }
0x106e   :  { %v6237_v33 = vmul.f32 %v9699_v16, %v5733_v29 }
0x1079   :  { %5326 = vadd.xlane.f32.xlu1 %v5325_v1  ;;  %v15782_v1 = vsub.f32 %v1895_v57, %v15009_v37 }
0x107b   :  { %19126 = vst [vmem:[#allocation69_spill] sm:$0xff] %v15782_v1 }
0x107c   :  { %5330 = vadd.xlane.f32.xlu0 %v5329_v54  ;;  %v15785_v54 = vsub.f32 %v1893_v59, %v15009_v37 }
0x107e   :  { %19127 = vst [vmem:[#allocation54_spill] sm:$0xff] %v15785_v54  ;;  %v4730_v40 = vmul.f32 %v15785_v54, %v15785_v54 }
0x108a   :  { %4110 = vperm.xlu1 %9510, %v3284_v18   ;;  %v19130_v18 = vld [vmem:[#allocation32_spill] sm:$0xff] }
0x108b   :  { %v5566_v39 = vmul.f32 0.0051020407, %v19130_v18 }
0x108d   :  { %v5902_v29 = vadd.f32 0.001, %v5566_v39  ;;  %v5735_v39 = vld [vmem:[%s18064_s3 + $0x2f8] sm:$0xff] }
0x108e   :  { %6774 = vperm.xlu1 %9510, %v6236_v17   ;;  %v4731_v17 = vmul.f32 %v15782_v1, %v15782_v1 }
0x108f   :  { %9700 = vrsqrt.f32 %v5902_v29 }
0x1090   :  { %v5332_v37 = vsel %vm2102_vm0, %v4731_v17, 0.0  ;;  %v5734_v17 = vld [vmem:[%s18064_s3 + $0x2f0] sm:$0xff] }
0x1091   :  { %v5333_v16 = vadd.f32 %v5332_v37, %v4730_v40  ;;  %v3287_v40 = vmul.f32 0.0051020407, %v15739_v27 }
0x1092   :  { %4115 = vperm.xlu0 %9511, %v3285_v31   ;;  %v5336_v31 = vsel %vm2102_vm0, %v4733_v7, 0.0 }
0x1093   :  { %v5337_v58 = vadd.f32 %v5336_v31, %v4732_v38  ;;  %v1905_v38 = vpop.f32.mrf.mxu0 }
0x1095   :  { %v1907_v30 = vpop.f32.mrf.mxu0 }
0x1096   :  { %6779 = vperm.xlu0 %9511, %v6237_v33   ;;  %v19131_v33 = vld [vmem:[#allocation34_spill] sm:$0xff] }
0x1097   :  { %v5567_v59 = vmul.f32 0.0051020407, %v19131_v33  ;;  %v1911_v31 = vpop.f32.mrf.mxu0  ;;  %v19135_v33 = vld [vmem:[#allocation130_spill] sm:$0xff] }
0x1099   :  { %v5903_v57 = vadd.f32 0.001, %v5567_v59  ;;  %v1913_v29 = vpop.f32.mrf.mxu0  ;;  %v5568_v59 = vmul.f32 0.0051020407, %v19135_v33 }
0x109a   :  { %v15820_v27 = vsub.f32 %v1913_v29, %v15163_v49  ;;  %v5736_v29 = vld [vmem:[%s18064_s3 + $0x300] sm:$0xff] }
0x109b   :  { %9702 = vrsqrt.f32 %v5903_v57 }
0x109c   :  { %v9701_v23 = vpop.eup %9700  ;;  %19134 = vst [vmem:[#allocation53_spill] sm:$0xff] %v15820_v27 }
0x109d   :  { %v6238_v18 = vmul.f32 %v9701_v23, %v5734_v17  ;;  %v4737_v17 = vmul.f32 %v15820_v27, %v15820_v27 }
0x10a8   :  { %v9703_v7 = vpop.eup %9702 }
0x10a9   :  { %v6239_v37 = vmul.f32 %v9703_v7, %v5735_v39  ;;  %v5344_v7 = vsel %vm2102_vm0, %v4737_v17, 0.0  ;;  %v1917_v17 = vpop.f32.mrf.mxu0 }
0x10b2   :  { %5334 = vadd.xlane.f32.xlu1 %v5333_v16  ;;  %v15814_v16 = vsub.f32 %v1907_v30, %v15091_v41 }
0x10b4   :  { %19132 = vst [vmem:[#allocation131_spill] sm:$0xff] %v15814_v16  ;;  %v4735_v57 = vmul.f32 %v15814_v16, %v15814_v16 }
0x10b5   :  { %5338 = vadd.xlane.f32.xlu0 %v5337_v58  ;;  %v15817_v58 = vsub.f32 %v1905_v38, %v15091_v41 }
0x10b6   :  { %v5340_v41 = vsel %vm2102_vm0, %v4735_v57, 0.0  ;;  %v5737_v57 = vld [vmem:[%s18064_s3 + $0x308] sm:$0xff] }
0x10b7   :  { %19133 = vst [vmem:[#allocation139_spill] sm:$0xff] %v15817_v58  ;;  %v4734_v23 = vmul.f32 %v15817_v58, %v15817_v58 }
0x10b9   :  { %v5341_v39 = vadd.f32 %v5340_v41, %v4734_v23 }
0x10c3   :  { %4120 = vperm.xlu1 %9510, %v3286_v3   ;;  %v15826_v3 = vsub.f32 %v1911_v31, %v15163_v49 }
0x10c5   :  { %19136 = vst [vmem:[#allocation5_spill] sm:$0xff] %v15826_v3 }
0x10c7   :  { %6784 = vperm.xlu1 %9510, %v6238_v18   ;;  %v5904_v18 = vadd.f32 0.001, %v5568_v59 }
0x10c9   :  { %9704 = vrsqrt.f32 %v5904_v18  ;;  %v1919_v18 = vpop.f32.mrf.mxu0 }
0x10cb   :  { %4125 = vperm.xlu0 %9511, %v3287_v40   ;;  %v4736_v40 = vmul.f32 %v15826_v3, %v15826_v3  ;;  %v1923_v41 = vpop.f32.mrf.mxu0 }
0x10cd   :  { %v5345_v49 = vadd.f32 %v5344_v7, %v4736_v40  ;;  %v15844_v40 = vsub.f32 %v1919_v18, %v15173_v9  ;;  %v1925_v7 = vpop.f32.mrf.mxu0  ;;  %v5571_v18 = vmul.f32 0.0051020407, %v14983_v36 }
0x10cf   :  { %6789 = vperm.xlu0 %9511, %v6239_v37   ;;  %v19137_v37 = vld [vmem:[#allocation36_spill] sm:$0xff]  ;;  %19138 = vst [vmem:[#allocation71_spill] sm:$0xff] %v15844_v40  ;;  %v1929_v36 = vpop.f32.mrf.mxu0 }
0x10d0   :  { %v5569_v38 = vmul.f32 0.0051020407, %v19137_v37  ;;  %v15850_v37 = vsub.f32 %v1925_v7, %v15245_v56 }
0x10d2   :  { %v5905_v30 = vadd.f32 0.001, %v5569_v38  ;;  %19140 = vst [vmem:[#allocation140_spill] sm:$0xff] %v15850_v37  ;;  %v19141_v38 = vld [vmem:[#allocation149_spill] sm:$0xff] }
0x10d4   :  { %9706 = vrsqrt.f32 %v5905_v30  ;;  %v4739_v30 = vmul.f32 %v15844_v40, %v15844_v40 }
0x10d6   :  { %v9705_v31 = vpop.eup %9704 }
0x10d7   :  { %v6240_v33 = vmul.f32 %v9705_v31, %v5736_v29  ;;  %v15856_v31 = vsub.f32 %v1923_v41, %v15245_v56  ;;  %v5907_v41 = vadd.f32 0.001, %v5571_v18 }
0x10d9   :  { %19142 = vst [vmem:[#allocation73_spill] sm:$0xff] %v15856_v31 }
0x10e1   :  { %v9707_v59 = vpop.eup %9706 }
0x10e2   :  { %v6241_v23 = vmul.f32 %v9707_v59, %v5737_v57  ;;  %v4740_v57 = vmul.f32 %v15856_v31, %v15856_v31 }
0x10eb   :  { %5342 = vadd.xlane.f32.xlu1 %v5341_v39  ;;  %v15847_v39 = vsub.f32 %v1917_v17, %v15173_v9  ;;  %v5348_v9 = vsel %vm2102_vm0, %v4739_v30, 0.0 }
0x10ed   :  { %19139 = vst [vmem:[#allocation56_spill] sm:$0xff] %v15847_v39  ;;  %v4738_v29 = vmul.f32 %v15847_v39, %v15847_v39 }
0x10ee   :  { %5346 = vadd.xlane.f32.xlu0 %v5345_v49  ;;  %v5570_v49 = vmul.f32 0.0051020407, %v19141_v38  ;;  %v5738_v38 = vld [vmem:[%s18064_s3 + $0x310] sm:$0xff] }
0x10ef   :  { %v5349_v17 = vadd.f32 %v5348_v9, %v4738_v29  ;;  %v5739_v29 = vld [vmem:[%s18064_s3 + $0x318] sm:$0xff] }
0x10f0   :  { %v5906_v59 = vadd.f32 0.001, %v5570_v49 }
0x10f2   :  { %9708 = vrsqrt.f32 %v5906_v59  ;;  %v1931_v59 = vpop.f32.mrf.mxu0 }
0x10f3   :  { %9710 = vrsqrt.f32 %v5907_v41 }
0x10f4   :  { %v1935_v9 = vpop.f32.mrf.mxu0 }
0x10fc   :  { %6794 = vperm.xlu1 %9510, %v6240_v33   ;;  %v4741_v33 = vmul.f32 %v15850_v37, %v15850_v37 }
0x10ff   :  { %v9709_v7 = vpop.eup %9708 }
0x1100   :  { %v6242_v49 = vmul.f32 %v9709_v7, %v5738_v38  ;;  %v9711_v30 = vpop.eup %9710  ;;  %v15886_v38 = vsub.f32 %v1935_v9, %v15327_v20 }
0x1102   :  { %19147 = vst [vmem:[#allocation133_spill] sm:$0xff] %v15886_v38 }
0x1104   :  { %6799 = vperm.xlu0 %9511, %v6241_v23   ;;  %v5352_v23 = vsel %vm2102_vm0, %v4741_v33, 0.0  ;;  %v6243_v33 = vmul.f32 %v9711_v30, %v5739_v29 }
0x1105   :  { %v5353_v56 = vadd.f32 %v5352_v23, %v4740_v57  ;;  %v15874_v57 = vsub.f32 %v1931_v59, %v15255_v10  ;;  %v1937_v23 = vpop.f32.mrf.mxu0 }
0x1106   :  { %v15880_v18 = vsub.f32 %v1937_v23, %v15327_v20  ;;  %v5573_v23 = vmul.f32 0.0051020407, %v15065_v15 }
0x1107   :  { %19143 = vst [vmem:[#allocation74_spill] sm:$0xff] %v15874_v57  ;;  %v4743_v7 = vmul.f32 %v15874_v57, %v15874_v57  ;;  %v1941_v15 = vpop.f32.mrf.mxu0 }
0x1108   :  { %19145 = vst [vmem:[#allocation141_spill] sm:$0xff] %v15880_v18  ;;  %v4745_v30 = vmul.f32 %v15880_v18, %v15880_v18  ;;  %v5909_v9 = vadd.f32 0.001, %v5573_v23 }
0x1120   :  { %5350 = vadd.xlane.f32.xlu1 %v5349_v17  ;;  %v15877_v17 = vsub.f32 %v1929_v36, %v15255_v10  ;;  %v5356_v10 = vsel %vm2102_vm0, %v4743_v7, 0.0  ;;  %v5360_v36 = vsel %vm2102_vm0, %v4745_v30, 0.0 }
0x1122   :  { %19144 = vst [vmem:[#allocation55_spill] sm:$0xff] %v15877_v17 }
0x1123   :  { %5354 = vadd.xlane.f32.xlu0 %v5353_v56  ;;  %v19146_v56 = vld [vmem:[#allocation38_spill] sm:$0xff] }
0x1124   :  { %v5572_v41 = vmul.f32 0.0051020407, %v19146_v56 }
0x1126   :  { %v5908_v29 = vadd.f32 0.001, %v5572_v41  ;;  %v5740_v41 = vld [vmem:[%s18064_s3 + $0x320] sm:$0xff] }
0x1128   :  { %9712 = vrsqrt.f32 %v5908_v29  ;;  %v15903_v29 = vpop.xlane.xlu0 %5234 }
0x1129   :  { %9714 = vrsqrt.f32 %v5909_v9 }
0x1131   :  { %6804 = vperm.xlu1 %9510, %v6242_v49   ;;  %v4742_v49 = vmul.f32 %v15877_v17, %v15877_v17 }
0x1133   :  { %v5357_v59 = vadd.f32 %v5356_v10, %v4742_v49  ;;  %v5741_v49 = vld [vmem:[%s18064_s3 + $0x328] sm:$0xff]  ;;  %v1943_v10 = vpop.f32.mrf.mxu0 }
0x1135   :  { %v9713_v56 = vpop.eup %9712 }
0x1136   :  { %v6244_v7 = vmul.f32 %v9713_v56, %v5740_v41  ;;  %v9715_v18 = vpop.eup %9714 }
0x1137   :  { %v6245_v30 = vmul.f32 %v9715_v18, %v5741_v49 }
0x1139   :  { %6809 = vperm.xlu0 %9511, %v6243_v33   ;;  %v4744_v33 = vmul.f32 %v15886_v38, %v15886_v38 }
0x113b   :  { %v5361_v20 = vadd.f32 %v5360_v36, %v4744_v33  ;;  %v15905_v33 = vpop.xlane.xlu1 %5238  ;;  %v1947_v36 = vpop.f32.mrf.mxu0 }
0x113d   :  { %v1949_v9 = vpop.f32.mrf.mxu0 }
0x1155   :  { %5358 = vadd.xlane.f32.xlu1 %v5357_v59  ;;  %v3996_v59 = vpop.permute.xlu0 %3995 }
0x1156   :  { %v15907_v23 = vsub.f32 %v1943_v10, %v3996_v59  ;;  %v15909_v56 = vsub.f32 %v1941_v15, %v3996_v59 }
0x1158   :  { %5362 = vadd.xlane.f32.xlu0 %v5361_v20  ;;  %19148 = vst [vmem:[#allocation58_spill] sm:$0xff] %v15907_v23  ;;  %v4001_v20 = vpop.permute.xlu1 %4000  ;;  %19149 = vst [vmem:[#allocation89_spill] sm:$0xff] %v15909_v56  ;;  %v4747_v18 = vmul.f32 %v15907_v23, %v15907_v23 }
0x1159   :  { %v15911_v41 = vsub.f32 %v1949_v9, %v4001_v20  ;;  %v15916_v49 = vsub.f32 %v1947_v36, %v4001_v20 }
0x115a   :  { %v5364_v31 = vsel %vm2102_vm0, %v4747_v18, 0.0 }
0x115b   :  { %19150 = vst [vmem:[#allocation75_spill] sm:$0xff] %v15911_v41  ;;  %19152 = vst [vmem:[#allocation76_spill] sm:$0xff] %v15916_v49  ;;  %v4749_v10 = vmul.f32 %v15911_v41, %v15911_v41  ;;  %v4748_v15 = vmul.f32 %v15916_v49, %v15916_v49 }
0x115d   :  { %v5368_v59 = vsel %vm2102_vm0, %v4749_v10, 0.0  ;;  %v1953_v10 = vpop.f32.mrf.mxu0 }
0x115e   :  { %v5369_v36 = vadd.f32 %v5368_v59, %v4748_v15 }
0x115f   :  { %v1955_v59 = vpop.f32.mrf.mxu0 }
0x1166   :  { %6814 = vperm.xlu1 %9510, %v6244_v7   ;;  %v19151_v7 = vld [vmem:[#allocation40_spill] sm:$0xff] }
0x1167   :  { %v5574_v38 = vmul.f32 0.0051020407, %v19151_v7  ;;  %v5575_v7 = vmul.f32 0.0051020407, %v15147_v52  ;;  %v15933_v52 = vpop.permute.xlu0 %6659 }
0x1169   :  { %v5910_v37 = vadd.f32 0.001, %v5574_v38  ;;  %v5911_v20 = vadd.f32 0.001, %v5575_v7  ;;  %v5742_v38 = vld [vmem:[%s18064_s3 + $0x330] sm:$0xff]  ;;  %v1959_v7 = vpop.f32.mrf.mxu0 }
0x116b   :  { %9716 = vrsqrt.f32 %v5910_v37  ;;  %v15937_v15 = vpop.xlane.xlu0 %5242 }
0x116c   :  { %9718 = vrsqrt.f32 %v5911_v20 }
0x116e   :  { %6819 = vperm.xlu0 %9511, %v6245_v30   ;;  %v4746_v30 = vmul.f32 %v15909_v56, %v15909_v56 }
0x1170   :  { %v5365_v9 = vadd.f32 %v5364_v31, %v4746_v30  ;;  %v5743_v31 = vld [vmem:[%s18064_s3 + $0x338] sm:$0xff]  ;;  %v15935_v30 = vpop.permute.xlu1 %6664 }
0x1178   :  { %v9717_v27 = vpop.eup %9716 }
0x1179   :  { %v6246_v18 = vmul.f32 %v9717_v27, %v5742_v38  ;;  %v9719_v41 = vpop.eup %9718  ;;  %v4006_v27 = vpop.permute.xlu0 %4005 }
0x117a   :  { %v6247_v37 = vmul.f32 %v9719_v41, %v5743_v31  ;;  %v1961_v38 = vpop.f32.mrf.mxu0  ;;  %v19156_v31 = vld [vmem:[#allocation136_spill] sm:$0xff] }
0x118a   :  { %5366 = vadd.xlane.f32.xlu1 %v5365_v9  ;;  %v15939_v9 = vpop.xlane.xlu1 %5246 }
0x118d   :  { %5370 = vadd.xlane.f32.xlu0 %v5369_v36  ;;  %v15941_v36 = vsub.f32 %v1955_v59, %v4006_v27 }
0x118e   :  { %v4011_v20 = vpop.permute.xlu1 %4010 }
0x118f   :  { %19153 = vst [vmem:[#allocation57_spill] sm:$0xff] %v15941_v36  ;;  %v15945_v41 = vsub.f32 %v1961_v38, %v4011_v20  ;;  %v4751_v49 = vmul.f32 %v15941_v36, %v15941_v36  ;;  %v15950_v3 = vsub.f32 %v1959_v7, %v4011_v20 }
0x1191   :  { %19155 = vst [vmem:[#allocation10_spill] sm:$0xff] %v15945_v41  ;;  %19157 = vst [vmem:[#allocation60_spill] sm:$0xff] %v15950_v3  ;;  %v4753_v59 = vmul.f32 %v15945_v41, %v15945_v41  ;;  %v5372_v23 = vsel %vm2102_vm0, %v4751_v49, 0.0 }
0x119b   :  { %6824 = vperm.xlu1 %9510, %v6246_v18   ;;  %v15943_v18 = vsub.f32 %v1953_v10, %v4006_v27  ;;  %v4752_v10 = vmul.f32 %v15950_v3, %v15950_v3  ;;  %v5376_v27 = vsel %vm2102_vm0, %v4753_v59, 0.0  ;;  %v1965_v59 = vpop.f32.mrf.mxu0 }
0x119d   :  { %19154 = vst [vmem:[#allocation148_spill] sm:$0xff] %v15943_v18  ;;  %v4750_v51 = vmul.f32 %v15943_v18, %v15943_v18  ;;  %v5377_v7 = vadd.f32 %v5376_v27, %v4752_v10  ;;  %v1967_v27 = vpop.f32.mrf.mxu0 }
0x119f   :  { %v5373_v38 = vadd.f32 %v5372_v23, %v4750_v51  ;;  %v5745_v51 = vld [vmem:[%s18064_s3 + $0x348] sm:$0xff]  ;;  %v15969_v23 = vpop.permute.xlu1 %6674 }
0x11a3   :  { %6829 = vperm.xlu0 %9511, %v6247_v37   ;;  %v5576_v37 = vmul.f32 0.0051020407, %v19156_v31  ;;  %v5577_v31 = vmul.f32 0.0051020407, %v15229_v61  ;;  %v15967_v61 = vpop.permute.xlu0 %6669 }
0x11a5   :  { %v5912_v45 = vadd.f32 0.001, %v5576_v37  ;;  %v5913_v20 = vadd.f32 0.001, %v5577_v31  ;;  %v5744_v37 = vld [vmem:[%s18064_s3 + $0x340] sm:$0xff]  ;;  %v1971_v31 = vpop.f32.mrf.mxu0 }
0x11a7   :  { %9720 = vrsqrt.f32 %v5912_v45  ;;  %v15971_v10 = vpop.xlane.xlu0 %5250 }
0x11a8   :  { %9722 = vrsqrt.f32 %v5913_v20 }
0x11b4   :  { %v9721_v36 = vpop.eup %9720 }
0x11b5   :  { %v6248_v49 = vmul.f32 %v9721_v36, %v5744_v37  ;;  %v9723_v41 = vpop.eup %9722  ;;  %v4016_v36 = vpop.permute.xlu0 %4015 }
0x11b6   :  { %v6249_v45 = vmul.f32 %v9723_v41, %v5745_v51  ;;  %v1973_v37 = vpop.f32.mrf.mxu0  ;;  %v19161_v51 = vld [vmem:[#allocation177_spill] sm:$0xff] }
0x11bf   :  { %5374 = vadd.xlane.f32.xlu1 %v5373_v38  ;;  %v15973_v38 = vpop.xlane.xlu1 %5254 }
0x11c2   :  { %5378 = vadd.xlane.f32.xlu0 %v5377_v7  ;;  %v15975_v7 = vsub.f32 %v1967_v27, %v4016_v36 }
0x11c3   :  { %v4021_v20 = vpop.permute.xlu1 %4020 }
0x11c4   :  { %19158 = vst [vmem:[#allocation92_spill] sm:$0xff] %v15975_v7  ;;  %v15979_v41 = vsub.f32 %v1973_v37, %v4021_v20  ;;  %v4755_v3 = vmul.f32 %v15975_v7, %v15975_v7  ;;  %v15984_v18 = vsub.f32 %v1971_v31, %v4021_v20 }
0x11c6   :  { %19160 = vst [vmem:[#allocation135_spill] sm:$0xff] %v15979_v41  ;;  %19162 = vst [vmem:[#allocation59_spill] sm:$0xff] %v15984_v18  ;;  %v4757_v27 = vmul.f32 %v15979_v41, %v15979_v41  ;;  %v5380_v57 = vsel %vm2102_vm0, %v4755_v3, 0.0 }
0x11d0   :  { %6834 = vperm.xlu1 %9510, %v6248_v49   ;;  %v15977_v49 = vsub.f32 %v1965_v59, %v4016_v36  ;;  %v4756_v59 = vmul.f32 %v15984_v18, %v15984_v18  ;;  %v5384_v36 = vsel %vm2102_vm0, %v4757_v27, 0.0  ;;  %v1977_v27 = vpop.f32.mrf.mxu0 }
0x11d2   :  { %19159 = vst [vmem:[#allocation145_spill] sm:$0xff] %v15977_v49  ;;  %v4754_v56 = vmul.f32 %v15977_v49, %v15977_v49  ;;  %v5385_v31 = vadd.f32 %v5384_v36, %v4756_v59  ;;  %v1979_v36 = vpop.f32.mrf.mxu0 }
0x11d4   :  { %v5381_v37 = vadd.f32 %v5380_v57, %v4754_v56  ;;  %v5747_v57 = vld [vmem:[%s18064_s3 + $0x358] sm:$0xff]  ;;  %v16003_v56 = vpop.permute.xlu1 %6684 }
0x11d8   :  { %6839 = vperm.xlu0 %9511, %v6249_v45   ;;  %v5578_v45 = vmul.f32 0.0051020407, %v19161_v51  ;;  %v5579_v51 = vmul.f32 0.0051020407, %v15311_v63  ;;  %v16001_v63 = vpop.permute.xlu0 %6679 }
0x11da   :  { %v5914_v34 = vadd.f32 0.001, %v5578_v45  ;;  %v5915_v20 = vadd.f32 0.001, %v5579_v51  ;;  %v5746_v45 = vld [vmem:[%s18064_s3 + $0x350] sm:$0xff]  ;;  %v1983_v51 = vpop.f32.mrf.mxu0 }
0x11dc   :  { %9724 = vrsqrt.f32 %v5914_v34  ;;  %v16005_v59 = vpop.xlane.xlu0 %5258 }
0x11dd   :  { %9726 = vrsqrt.f32 %v5915_v20 }
0x11e9   :  { %v9725_v7 = vpop.eup %9724 }
0x11ea   :  { %v6250_v3 = vmul.f32 %v9725_v7, %v5746_v45  ;;  %v9727_v41 = vpop.eup %9726  ;;  %v4026_v7 = vpop.permute.xlu0 %4025 }
0x11eb   :  { %v6251_v34 = vmul.f32 %v9727_v41, %v5747_v57  ;;  %v1985_v45 = vpop.f32.mrf.mxu0  ;;  %v5580_v57 = vmul.f32 0.0051020407, %v15903_v29 }
0x11ed   :  { %v5916_v17 = vadd.f32 0.001, %v5580_v57  ;;  %v5748_v57 = vld [vmem:[%s18064_s3 + $0x360] sm:$0xff] }
0x11ef   :  { %9728 = vrsqrt.f32 %v5916_v17 }
0x11f4   :  { %5382 = vadd.xlane.f32.xlu1 %v5381_v37  ;;  %v16007_v37 = vpop.xlane.xlu1 %5262 }
0x11f7   :  { %5386 = vadd.xlane.f32.xlu0 %v5385_v31  ;;  %v16009_v31 = vsub.f32 %v1979_v36, %v4026_v7 }
0x11f8   :  { %v4031_v20 = vpop.permute.xlu1 %4030 }
0x11f9   :  { %19163 = vst [vmem:[#allocation81_spill] sm:$0xff] %v16009_v31  ;;  %v16013_v41 = vsub.f32 %v1985_v45, %v4031_v20  ;;  %v16018_v18 = vsub.f32 %v1983_v51, %v4031_v20  ;;  %v5581_v45 = vmul.f32 0.0051020407, %v15905_v33  ;;  %v16035_v33 = vpop.permute.xlu0 %6689 }
0x11fb   :  { %19165 = vst [vmem:[#allocation62_spill] sm:$0xff] %v16013_v41  ;;  %19166 = vst [vmem:[#allocation18_spill] sm:$0xff] %v16018_v18  ;;  %v4761_v36 = vmul.f32 %v16013_v41, %v16013_v41  ;;  %v5917_v20 = vadd.f32 0.001, %v5581_v45 }
0x11fd   :  { %9730 = vrsqrt.f32 %v5917_v20 }
0x1205   :  { %6844 = vperm.xlu1 %9510, %v6250_v3   ;;  %v16011_v3 = vsub.f32 %v1977_v27, %v4026_v7  ;;  %v4760_v27 = vmul.f32 %v16018_v18, %v16018_v18  ;;  %v5392_v7 = vsel %vm2102_vm0, %v4761_v36, 0.0  ;;  %v1989_v36 = vpop.f32.mrf.mxu0 }
0x1207   :  { %19164 = vst [vmem:[#allocation82_spill] sm:$0xff] %v16011_v3  ;;  %v4758_v49 = vmul.f32 %v16011_v3, %v16011_v3  ;;  %v5393_v51 = vadd.f32 %v5392_v7, %v4760_v27  ;;  %v16039_v27 = vpop.xlane.xlu0 %5266  ;;  %v1991_v7 = vpop.f32.mrf.mxu0 }
0x1209   :  { %v1995_v45 = vpop.f32.mrf.mxu0 }
0x120d   :  { %6849 = vperm.xlu0 %9511, %v6251_v34   ;;  %v4759_v34 = vmul.f32 %v16009_v31, %v16009_v31  ;;  %v9729_v31 = vpop.eup %9728 }
0x120e   :  { %v9731_v41 = vpop.eup %9730 }
0x120f   :  { %v5388_v44 = vsel %vm2102_vm0, %v4759_v34, 0.0  ;;  %v6252_v34 = vmul.f32 %v9729_v31, %v5748_v57  ;;  %v4036_v31 = vpop.permute.xlu0 %4035  ;;  %v1997_v57 = vpop.f32.mrf.mxu0 }
0x1210   :  { %v5389_v29 = vadd.f32 %v5388_v44, %v4758_v49  ;;  %v5749_v44 = vld [vmem:[%s18064_s3 + $0x368] sm:$0xff]  ;;  %v16037_v49 = vpop.permute.xlu1 %6694 }
0x1211   :  { %v6253_v17 = vmul.f32 %v9731_v41, %v5749_v44  ;;  %v5582_v44 = vmul.f32 0.0051020407, %v15937_v15 }
0x1213   :  { %v5918_v40 = vadd.f32 0.001, %v5582_v44  ;;  %v5750_v44 = vld [vmem:[%s18064_s3 + $0x370] sm:$0xff] }
0x1215   :  { %9732 = vrsqrt.f32 %v5918_v40 }
0x1229   :  { %5390 = vadd.xlane.f32.xlu1 %v5389_v29  ;;  %v16041_v29 = vpop.xlane.xlu1 %5270 }
0x122c   :  { %5394 = vadd.xlane.f32.xlu0 %v5393_v51  ;;  %v16043_v51 = vsub.f32 %v1991_v7, %v4036_v31 }
0x122d   :  { %v4041_v20 = vpop.permute.xlu1 %4040 }
0x122e   :  { %19167 = vst [vmem:[#allocation151_spill] sm:$0xff] %v16043_v51  ;;  %v16047_v41 = vsub.f32 %v1997_v57, %v4041_v20  ;;  %v16052_v18 = vsub.f32 %v1995_v45, %v4041_v20  ;;  %v5583_v57 = vmul.f32 0.0051020407, %v15939_v9  ;;  %v16069_v9 = vpop.permute.xlu0 %6699 }
0x1230   :  { %19169 = vst [vmem:[#allocation61_spill] sm:$0xff] %v16047_v41  ;;  %19170 = vst [vmem:[#allocation30_spill] sm:$0xff] %v16052_v18  ;;  %v4765_v7 = vmul.f32 %v16047_v41, %v16047_v41  ;;  %v5919_v20 = vadd.f32 0.001, %v5583_v57 }
0x1232   :  { %9734 = vrsqrt.f32 %v5919_v20 }
0x123a   :  { %6854 = vperm.xlu1 %9510, %v6252_v34   ;;  %v16045_v34 = vsub.f32 %v1989_v36, %v4036_v31  ;;  %v4764_v36 = vmul.f32 %v16052_v18, %v16052_v18  ;;  %v5400_v31 = vsel %vm2102_vm0, %v4765_v7, 0.0  ;;  %v2001_v7 = vpop.f32.mrf.mxu0 }
0x123c   :  { %19168 = vst [vmem:[#allocation12_spill] sm:$0xff] %v16045_v34  ;;  %v4762_v3 = vmul.f32 %v16045_v34, %v16045_v34  ;;  %v5401_v45 = vadd.f32 %v5400_v31, %v4764_v36  ;;  %v16073_v36 = vpop.xlane.xlu0 %5274  ;;  %v2003_v31 = vpop.f32.mrf.mxu0 }
0x123e   :  { %v2007_v57 = vpop.f32.mrf.mxu0 }
0x1242   :  { %6859 = vperm.xlu0 %9511, %v6253_v17   ;;  %v4763_v17 = vmul.f32 %v16043_v51, %v16043_v51  ;;  %v9733_v51 = vpop.eup %9732 }
0x1243   :  { %v9735_v41 = vpop.eup %9734 }
0x1244   :  { %v5396_v39 = vsel %vm2102_vm0, %v4763_v17, 0.0  ;;  %v6254_v17 = vmul.f32 %v9733_v51, %v5750_v44  ;;  %v4046_v51 = vpop.permute.xlu0 %4045  ;;  %v2009_v44 = vpop.f32.mrf.mxu0 }
0x1245   :  { %v5397_v15 = vadd.f32 %v5396_v39, %v4762_v3  ;;  %v5751_v39 = vld [vmem:[%s18064_s3 + $0x378] sm:$0xff]  ;;  %v16071_v3 = vpop.permute.xlu1 %6704 }
0x1246   :  { %v6255_v40 = vmul.f32 %v9735_v41, %v5751_v39  ;;  %v5584_v39 = vmul.f32 0.0051020407, %v15971_v10 }
0x1248   :  { %v5920_v16 = vadd.f32 0.001, %v5584_v39  ;;  %v5752_v39 = vld [vmem:[%s18064_s3 + $0x380] sm:$0xff] }
0x124a   :  { %9736 = vrsqrt.f32 %v5920_v16 }
0x125e   :  { %5398 = vadd.xlane.f32.xlu1 %v5397_v15  ;;  %v16075_v15 = vpop.xlane.xlu1 %5278 }
0x1261   :  { %5402 = vadd.xlane.f32.xlu0 %v5401_v45  ;;  %v16077_v45 = vsub.f32 %v2003_v31, %v4046_v51 }
0x1262   :  { %v4051_v20 = vpop.permute.xlu1 %4050 }
0x1263   :  { %19171 = vst [vmem:[#allocation108_spill] sm:$0xff] %v16077_v45  ;;  %v16081_v41 = vsub.f32 %v2009_v44, %v4051_v20  ;;  %v16086_v18 = vsub.f32 %v2007_v57, %v4051_v20  ;;  %v5585_v44 = vmul.f32 0.0051020407, %v15973_v38  ;;  %v16103_v38 = vpop.permute.xlu0 %6709 }
0x1265   :  { %19173 = vst [vmem:[#allocation124_spill] sm:$0xff] %v16081_v41  ;;  %19174 = vst [vmem:[#allocation160_spill] sm:$0xff] %v16086_v18  ;;  %v4769_v31 = vmul.f32 %v16081_v41, %v16081_v41  ;;  %v5921_v20 = vadd.f32 0.001, %v5585_v44 }
0x1267   :  { %9738 = vrsqrt.f32 %v5921_v20 }
0x126f   :  { %6864 = vperm.xlu1 %9510, %v6254_v17   ;;  %v16079_v17 = vsub.f32 %v2001_v7, %v4046_v51  ;;  %v4768_v7 = vmul.f32 %v16086_v18, %v16086_v18  ;;  %v5408_v51 = vsel %vm2102_vm0, %v4769_v31, 0.0  ;;  %v2013_v31 = vpop.f32.mrf.mxu0 }
0x1271   :  { %19172 = vst [vmem:[#allocation26_spill] sm:$0xff] %v16079_v17  ;;  %v4766_v34 = vmul.f32 %v16079_v17, %v16079_v17  ;;  %v5409_v57 = vadd.f32 %v5408_v51, %v4768_v7  ;;  %v16107_v7 = vpop.xlane.xlu0 %5282  ;;  %v2015_v51 = vpop.f32.mrf.mxu0 }
0x1273   :  { %v2019_v44 = vpop.f32.mrf.mxu0 }
0x1277   :  { %6869 = vperm.xlu0 %9511, %v6255_v40   ;;  %v4767_v40 = vmul.f32 %v16077_v45, %v16077_v45  ;;  %v9737_v45 = vpop.eup %9736 }
0x1278   :  { %v9739_v41 = vpop.eup %9738 }
0x1279   :  { %v5404_v58 = vsel %vm2102_vm0, %v4767_v40, 0.0  ;;  %v6256_v40 = vmul.f32 %v9737_v45, %v5752_v39  ;;  %v4056_v45 = vpop.permute.xlu0 %4055  ;;  %v2021_v39 = vpop.f32.mrf.mxu0 }
0x127a   :  { %v5405_v10 = vadd.f32 %v5404_v58, %v4766_v34  ;;  %v5753_v58 = vld [vmem:[%s18064_s3 + $0x388] sm:$0xff]  ;;  %v16105_v34 = vpop.permute.xlu1 %6714 }
0x127b   :  { %v6257_v16 = vmul.f32 %v9739_v41, %v5753_v58  ;;  %v5586_v58 = vmul.f32 0.0051020407, %v16005_v59 }
0x127d   :  { %v5922_v1 = vadd.f32 0.001, %v5586_v58  ;;  %v5754_v58 = vld [vmem:[%s18064_s3 + $0x390] sm:$0xff] }
0x127f   :  { %9740 = vrsqrt.f32 %v5922_v1 }
0x1293   :  { %5406 = vadd.xlane.f32.xlu1 %v5405_v10  ;;  %v16109_v10 = vpop.xlane.xlu1 %5286 }
0x1296   :  { %5410 = vadd.xlane.f32.xlu0 %v5409_v57  ;;  %v16111_v57 = vsub.f32 %v2015_v51, %v4056_v45 }
0x1297   :  { %v4061_v20 = vpop.permute.xlu1 %4060 }
0x1298   :  { %19175 = vst [vmem:[#allocation113_spill] sm:$0xff] %v16111_v57  ;;  %v16115_v41 = vsub.f32 %v2021_v39, %v4061_v20  ;;  %v16120_v18 = vsub.f32 %v2019_v44, %v4061_v20  ;;  %v5587_v39 = vmul.f32 0.0051020407, %v16007_v37  ;;  %v16137_v37 = vpop.permute.xlu0 %6719 }
0x129a   :  { %19177 = vst [vmem:[#allocation118_spill] sm:$0xff] %v16115_v41  ;;  %19178 = vst [vmem:[#allocation117_spill] sm:$0xff] %v16120_v18  ;;  %v4773_v51 = vmul.f32 %v16115_v41, %v16115_v41  ;;  %v5923_v20 = vadd.f32 0.001, %v5587_v39 }
0x129c   :  { %9742 = vrsqrt.f32 %v5923_v20 }
0x12a4   :  { %6874 = vperm.xlu1 %9510, %v6256_v40   ;;  %v16113_v40 = vsub.f32 %v2013_v31, %v4056_v45  ;;  %v4772_v31 = vmul.f32 %v16120_v18, %v16120_v18  ;;  %v5416_v45 = vsel %vm2102_vm0, %v4773_v51, 0.0  ;;  %v2025_v51 = vpop.f32.mrf.mxu0 }
0x12a6   :  { %19176 = vst [vmem:[#allocation28_spill] sm:$0xff] %v16113_v40  ;;  %v4770_v17 = vmul.f32 %v16113_v40, %v16113_v40  ;;  %v5417_v44 = vadd.f32 %v5416_v45, %v4772_v31  ;;  %v16141_v31 = vpop.xlane.xlu0 %5290  ;;  %v2027_v45 = vpop.f32.mrf.mxu0 }
0x12a8   :  { %v2031_v39 = vpop.f32.mrf.mxu0 }
0x12ac   :  { %6879 = vperm.xlu0 %9511, %v6257_v16   ;;  %v4771_v16 = vmul.f32 %v16111_v57, %v16111_v57  ;;  %v9741_v57 = vpop.eup %9740 }
0x12ad   :  { %v9743_v41 = vpop.eup %9742 }
0x12ae   :  { %v5412_v54 = vsel %vm2102_vm0, %v4771_v16, 0.0  ;;  %v6258_v16 = vmul.f32 %v9741_v57, %v5754_v58  ;;  %v4066_v57 = vpop.permute.xlu0 %4065  ;;  %v2033_v58 = vpop.f32.mrf.mxu0 }
0x12af   :  { %v5413_v59 = vadd.f32 %v5412_v54, %v4770_v17  ;;  %v5755_v54 = vld [vmem:[%s18064_s3 + $0x398] sm:$0xff]  ;;  %v16139_v17 = vpop.permute.xlu1 %6724 }
0x12b0   :  { %v6259_v1 = vmul.f32 %v9743_v41, %v5755_v54  ;;  %v5588_v54 = vmul.f32 0.0051020407, %v16039_v27 }
0x12b2   :  { %v5924_v42 = vadd.f32 0.001, %v5588_v54  ;;  %v5756_v54 = vld [vmem:[%s18064_s3 + $0x3a0] sm:$0xff] }
0x12b4   :  { %9744 = vrsqrt.f32 %v5924_v42 }
0x12c8   :  { %5414 = vadd.xlane.f32.xlu1 %v5413_v59  ;;  %v16143_v59 = vpop.xlane.xlu1 %5294 }
0x12cb   :  { %5418 = vadd.xlane.f32.xlu0 %v5417_v44  ;;  %v16145_v44 = vsub.f32 %v2027_v45, %v4066_v57 }
0x12cc   :  { %v4071_v20 = vpop.permute.xlu1 %4070 }
0x12cd   :  { %19179 = vst [vmem:[#allocation121_spill] sm:$0xff] %v16145_v44  ;;  %v16149_v41 = vsub.f32 %v2033_v58, %v4071_v20  ;;  %v16154_v18 = vsub.f32 %v2031_v39, %v4071_v20  ;;  %v5589_v58 = vmul.f32 0.0051020407, %v16041_v29  ;;  %v16171_v29 = vpop.permute.xlu0 %6729 }
0x12cf   :  { %19181 = vst [vmem:[#allocation34_spill] sm:$0xff] %v16149_v41  ;;  %19182 = vst [vmem:[#allocation130_spill] sm:$0xff] %v16154_v18  ;;  %v4777_v45 = vmul.f32 %v16149_v41, %v16149_v41  ;;  %v5925_v20 = vadd.f32 0.001, %v5589_v58 }
0x12d1   :  { %9746 = vrsqrt.f32 %v5925_v20 }
0x12d9   :  { %6884 = vperm.xlu1 %9510, %v6258_v16   ;;  %v16147_v16 = vsub.f32 %v2025_v51, %v4066_v57  ;;  %v4776_v51 = vmul.f32 %v16154_v18, %v16154_v18  ;;  %v5424_v57 = vsel %vm2102_vm0, %v4777_v45, 0.0  ;;  %v2037_v45 = vpop.f32.mrf.mxu0 }
0x12db   :  { %19180 = vst [vmem:[#allocation32_spill] sm:$0xff] %v16147_v16  ;;  %v4774_v40 = vmul.f32 %v16147_v16, %v16147_v16  ;;  %v5425_v39 = vadd.f32 %v5424_v57, %v4776_v51  ;;  %v16175_v51 = vpop.xlane.xlu0 %5298  ;;  %v2039_v57 = vpop.f32.mrf.mxu0 }
0x12dd   :  { %v2043_v58 = vpop.f32.mrf.mxu0 }
0x12e1   :  { %6889 = vperm.xlu0 %9511, %v6259_v1   ;;  %v4775_v1 = vmul.f32 %v16145_v44, %v16145_v44  ;;  %v9745_v44 = vpop.eup %9744 }
0x12e2   :  { %v9747_v41 = vpop.eup %9746 }
0x12e3   :  { %v5420_v25 = vsel %vm2102_vm0, %v4775_v1, 0.0  ;;  %v6260_v1 = vmul.f32 %v9745_v44, %v5756_v54  ;;  %v4076_v44 = vpop.permute.xlu0 %4075  ;;  %v2045_v54 = vpop.f32.mrf.mxu0 }
0x12e4   :  { %v5421_v27 = vadd.f32 %v5420_v25, %v4774_v40  ;;  %v5757_v25 = vld [vmem:[%s18064_s3 + $0x3a8] sm:$0xff]  ;;  %v16173_v40 = vpop.permute.xlu1 %6734 }
0x12e5   :  { %v6261_v42 = vmul.f32 %v9747_v41, %v5757_v25  ;;  %v5590_v25 = vmul.f32 0.0051020407, %v16073_v36 }
0x12e7   :  { %v5926_v32 = vadd.f32 0.001, %v5590_v25  ;;  %v5758_v25 = vld [vmem:[%s18064_s3 + $0x3b0] sm:$0xff] }
0x12e9   :  { %9748 = vrsqrt.f32 %v5926_v32 }
0x12fd   :  { %5422 = vadd.xlane.f32.xlu1 %v5421_v27  ;;  %v16177_v27 = vpop.xlane.xlu1 %5302 }
0x1300   :  { %5426 = vadd.xlane.f32.xlu0 %v5425_v39  ;;  %v16179_v39 = vsub.f32 %v2039_v57, %v4076_v44 }
0x1301   :  { %v4081_v20 = vpop.permute.xlu1 %4080 }
0x1302   :  { %19183 = vst [vmem:[#allocation36_spill] sm:$0xff] %v16179_v39  ;;  %v16183_v41 = vsub.f32 %v2045_v54, %v4081_v20  ;;  %v16188_v18 = vsub.f32 %v2043_v58, %v4081_v20  ;;  %v5591_v54 = vmul.f32 0.0051020407, %v16075_v15  ;;  %v16205_v15 = vpop.permute.xlu0 %6739 }
0x1304   :  { %19185 = vst [vmem:[#allocation38_spill] sm:$0xff] %v16183_v41  ;;  %19186 = vst [vmem:[#allocation40_spill] sm:$0xff] %v16188_v18  ;;  %v4781_v57 = vmul.f32 %v16183_v41, %v16183_v41  ;;  %v5927_v20 = vadd.f32 0.001, %v5591_v54 }
0x1306   :  { %9750 = vrsqrt.f32 %v5927_v20 }
0x130e   :  { %6894 = vperm.xlu1 %9510, %v6260_v1   ;;  %v16181_v1 = vsub.f32 %v2037_v45, %v4076_v44  ;;  %v4780_v45 = vmul.f32 %v16188_v18, %v16188_v18  ;;  %v5432_v44 = vsel %vm2102_vm0, %v4781_v57, 0.0  ;;  %v2049_v57 = vpop.f32.mrf.mxu0 }
0x1310   :  { %19184 = vst [vmem:[#allocation149_spill] sm:$0xff] %v16181_v1  ;;  %v4778_v16 = vmul.f32 %v16181_v1, %v16181_v1  ;;  %v5433_v58 = vadd.f32 %v5432_v44, %v4780_v45  ;;  %v16209_v45 = vpop.xlane.xlu0 %5306  ;;  %v2051_v44 = vpop.f32.mrf.mxu0 }
0x1312   :  { %v2055_v54 = vpop.f32.mrf.mxu0 }
0x1316   :  { %6899 = vperm.xlu0 %9511, %v6261_v42   ;;  %v4779_v42 = vmul.f32 %v16179_v39, %v16179_v39  ;;  %v9749_v39 = vpop.eup %9748 }
0x1317   :  { %v9751_v41 = vpop.eup %9750 }
0x1318   :  { %v5428_v2 = vsel %vm2102_vm0, %v4779_v42, 0.0  ;;  %v6262_v42 = vmul.f32 %v9749_v39, %v5758_v25  ;;  %v4086_v39 = vpop.permute.xlu0 %4085  ;;  %v2057_v25 = vpop.f32.mrf.mxu0 }
0x1319   :  { %v5429_v36 = vadd.f32 %v5428_v2, %v4778_v16  ;;  %v5759_v2 = vld [vmem:[%s18064_s3 + $0x3b8] sm:$0xff]  ;;  %v16207_v16 = vpop.permute.xlu1 %6744 }
0x131a   :  { %v6263_v32 = vmul.f32 %v9751_v41, %v5759_v2  ;;  %v5592_v2 = vmul.f32 0.0051020407, %v16107_v7 }
0x131c   :  { %v5928_v6 = vadd.f32 0.001, %v5592_v2  ;;  %v5760_v2 = vld [vmem:[%s18064_s3 + $0x3c0] sm:$0xff] }
0x131e   :  { %9752 = vrsqrt.f32 %v5928_v6 }
0x1332   :  { %5430 = vadd.xlane.f32.xlu1 %v5429_v36  ;;  %v16211_v36 = vpop.xlane.xlu1 %5310 }
0x1335   :  { %5434 = vadd.xlane.f32.xlu0 %v5433_v58  ;;  %v16213_v58 = vsub.f32 %v2051_v44, %v4086_v39 }
0x1336   :  { %v4091_v20 = vpop.permute.xlu1 %4090 }
0x1337   :  { %19187 = vst [vmem:[#allocation136_spill] sm:$0xff] %v16213_v58  ;;  %v16217_v41 = vsub.f32 %v2057_v25, %v4091_v20  ;;  %v16222_v18 = vsub.f32 %v2055_v54, %v4091_v20  ;;  %v5593_v25 = vmul.f32 0.0051020407, %v16109_v10  ;;  %v16239_v10 = vpop.permute.xlu0 %6749 }
0x1339   :  { %19189 = vst [vmem:[#allocation184_spill] sm:$0xff] %v16217_v41  ;;  %19190 = vst [vmem:[#allocation185_spill] sm:$0xff] %v16222_v18  ;;  %v4785_v44 = vmul.f32 %v16217_v41, %v16217_v41  ;;  %v5929_v20 = vadd.f32 0.001, %v5593_v25 }
0x133b   :  { %9754 = vrsqrt.f32 %v5929_v20 }
0x1343   :  { %6904 = vperm.xlu1 %9510, %v6262_v42   ;;  %v16215_v42 = vsub.f32 %v2049_v57, %v4086_v39  ;;  %v4784_v57 = vmul.f32 %v16222_v18, %v16222_v18  ;;  %v5440_v39 = vsel %vm2102_vm0, %v4785_v44, 0.0  ;;  %v2061_v44 = vpop.f32.mrf.mxu0 }
0x1345   :  { %19188 = vst [vmem:[#allocation177_spill] sm:$0xff] %v16215_v42  ;;  %v4782_v1 = vmul.f32 %v16215_v42, %v16215_v42  ;;  %v5441_v54 = vadd.f32 %v5440_v39, %v4784_v57  ;;  %v16243_v57 = vpop.xlane.xlu0 %5314  ;;  %v2063_v39 = vpop.f32.mrf.mxu0 }
0x1346   :  { %v5600_v13 = vmul.f32 0.0051020407, %v16243_v57 }
0x1347   :  { %v2067_v25 = vpop.f32.mrf.mxu0 }
0x134b   :  { %6909 = vperm.xlu0 %9511, %v6263_v32   ;;  %v4783_v32 = vmul.f32 %v16213_v58, %v16213_v58  ;;  %v9753_v58 = vpop.eup %9752 }
0x134c   :  { %v9755_v41 = vpop.eup %9754 }
0x134d   :  { %v5436_v21 = vsel %vm2102_vm0, %v4783_v32, 0.0  ;;  %v6264_v32 = vmul.f32 %v9753_v58, %v5760_v2  ;;  %v4096_v58 = vpop.permute.xlu0 %4095  ;;  %v2069_v2 = vpop.f32.mrf.mxu0 }
0x134e   :  { %v5437_v7 = vadd.f32 %v5436_v21, %v4782_v1  ;;  %v5761_v21 = vld [vmem:[%s18064_s3 + $0x3c8] sm:$0xff]  ;;  %v16241_v1 = vpop.permute.xlu1 %6754 }
0x134f   :  { %v6265_v6 = vmul.f32 %v9755_v41, %v5761_v21  ;;  %v5594_v21 = vmul.f32 0.0051020407, %v16141_v31 }
0x1351   :  { %v5930_v8 = vadd.f32 0.001, %v5594_v21  ;;  %v5762_v21 = vld [vmem:[%s18064_s3 + $0x3d0] sm:$0xff] }
0x1353   :  { %9756 = vrsqrt.f32 %v5930_v8 }
0x1367   :  { %5438 = vadd.xlane.f32.xlu1 %v5437_v7  ;;  %v16245_v7 = vpop.xlane.xlu1 %5318 }
0x136a   :  { %5442 = vadd.xlane.f32.xlu0 %v5441_v54  ;;  %v16247_v54 = vsub.f32 %v2063_v39, %v4096_v58 }
0x136b   :  { %v4101_v20 = vpop.permute.xlu1 %4100 }
0x136c   :  { %19191 = vst [vmem:[#allocation186_spill] sm:$0xff] %v16247_v54  ;;  %v16251_v41 = vsub.f32 %v2069_v2, %v4101_v20  ;;  %v16256_v18 = vsub.f32 %v2067_v25, %v4101_v20  ;;  %v5595_v2 = vmul.f32 0.0051020407, %v16143_v59  ;;  %v16273_v59 = vpop.permute.xlu0 %6759 }
0x136e   :  { %19193 = vst [vmem:[#allocation188_spill] sm:$0xff] %v16251_v41  ;;  %19194 = vst [vmem:[#allocation189_spill] sm:$0xff] %v16256_v18  ;;  %v4789_v39 = vmul.f32 %v16251_v41, %v16251_v41  ;;  %v5931_v20 = vadd.f32 0.001, %v5595_v2 }
0x1370   :  { %9758 = vrsqrt.f32 %v5931_v20 }
0x1378   :  { %6914 = vperm.xlu1 %9510, %v6264_v32   ;;  %v16249_v32 = vsub.f32 %v2061_v44, %v4096_v58  ;;  %v4788_v44 = vmul.f32 %v16256_v18, %v16256_v18  ;;  %v5448_v58 = vsel %vm2102_vm0, %v4789_v39, 0.0  ;;  %v2073_v39 = vpop.f32.mrf.mxu0 }
0x137a   :  { %19192 = vst [vmem:[#allocation187_spill] sm:$0xff] %v16249_v32  ;;  %v4786_v42 = vmul.f32 %v16249_v32, %v16249_v32  ;;  %v5449_v25 = vadd.f32 %v5448_v58, %v4788_v44  ;;  %v16277_v44 = vpop.xlane.xlu0 %5322  ;;  %v2075_v58 = vpop.f32.mrf.mxu0 }
0x137c   :  { %v2079_v2 = vpop.f32.mrf.mxu0 }
0x1380   :  { %6919 = vperm.xlu0 %9511, %v6265_v6   ;;  %v4787_v6 = vmul.f32 %v16247_v54, %v16247_v54  ;;  %v9757_v54 = vpop.eup %9756 }
0x1381   :  { %v9759_v41 = vpop.eup %9758 }
0x1382   :  { %v5444_v11 = vsel %vm2102_vm0, %v4787_v6, 0.0  ;;  %v6266_v6 = vmul.f32 %v9757_v54, %v5762_v21  ;;  %v4106_v54 = vpop.permute.xlu0 %4105  ;;  %v2081_v21 = vpop.f32.mrf.mxu0 }
0x1383   :  { %v5445_v31 = vadd.f32 %v5444_v11, %v4786_v42  ;;  %v5763_v11 = vld [vmem:[%s18064_s3 + $0x3d8] sm:$0xff]  ;;  %v16275_v42 = vpop.permute.xlu1 %6764 }
0x1384   :  { %v6267_v8 = vmul.f32 %v9759_v41, %v5763_v11  ;;  %v5596_v11 = vmul.f32 0.0051020407, %v16175_v51 }
0x1386   :  { %v5932_v55 = vadd.f32 0.001, %v5596_v11  ;;  %v5764_v11 = vld [vmem:[%s18064_s3 + $0x3e0] sm:$0xff] }
0x1388   :  { %9760 = vrsqrt.f32 %v5932_v55 }
0x139c   :  { %5446 = vadd.xlane.f32.xlu1 %v5445_v31  ;;  %v16279_v31 = vpop.xlane.xlu1 %5326 }
0x139f   :  { %5450 = vadd.xlane.f32.xlu0 %v5449_v25  ;;  %v16281_v25 = vsub.f32 %v2075_v58, %v4106_v54 }
0x13a0   :  { %v4111_v20 = vpop.permute.xlu1 %4110 }
0x13a1   :  { %19195 = vst [vmem:[#allocation190_spill] sm:$0xff] %v16281_v25  ;;  %v16285_v41 = vsub.f32 %v2081_v21, %v4111_v20  ;;  %v16290_v18 = vsub.f32 %v2079_v2, %v4111_v20  ;;  %v5597_v21 = vmul.f32 0.0051020407, %v16177_v27  ;;  %v16307_v27 = vpop.permute.xlu0 %6769 }
0x13a3   :  { %19197 = vst [vmem:[#allocation192_spill] sm:$0xff] %v16285_v41  ;;  %19198 = vst [vmem:[#allocation193_spill] sm:$0xff] %v16290_v18  ;;  %v4793_v58 = vmul.f32 %v16285_v41, %v16285_v41  ;;  %v5933_v20 = vadd.f32 0.001, %v5597_v21 }
0x13a5   :  { %9762 = vrsqrt.f32 %v5933_v20 }
0x13ad   :  { %6924 = vperm.xlu1 %9510, %v6266_v6   ;;  %v16283_v6 = vsub.f32 %v2073_v39, %v4106_v54  ;;  %v4792_v39 = vmul.f32 %v16290_v18, %v16290_v18  ;;  %v5456_v54 = vsel %vm2102_vm0, %v4793_v58, 0.0  ;;  %v2085_v58 = vpop.f32.mrf.mxu0 }
0x13af   :  { %19196 = vst [vmem:[#allocation191_spill] sm:$0xff] %v16283_v6  ;;  %v4790_v32 = vmul.f32 %v16283_v6, %v16283_v6  ;;  %v5457_v2 = vadd.f32 %v5456_v54, %v4792_v39  ;;  %v16311_v39 = vpop.xlane.xlu0 %5330  ;;  %v2087_v54 = vpop.f32.mrf.mxu0 }
0x13b1   :  { %v2091_v21 = vpop.f32.mrf.mxu0 }
0x13b5   :  { %6929 = vperm.xlu0 %9511, %v6267_v8   ;;  %v4791_v8 = vmul.f32 %v16281_v25, %v16281_v25  ;;  %v9761_v25 = vpop.eup %9760 }
0x13b6   :  { %v9763_v41 = vpop.eup %9762 }
0x13b7   :  { %v5452_v43 = vsel %vm2102_vm0, %v4791_v8, 0.0  ;;  %v6268_v8 = vmul.f32 %v9761_v25, %v5764_v11  ;;  %v2093_v11 = vpop.f32.mrf.mxu0 }
0x13b8   :  { %v5453_v51 = vadd.f32 %v5452_v43, %v4790_v32  ;;  %v5765_v43 = vld [vmem:[%s18064_s3 + $0x3e8] sm:$0xff]  ;;  %v16309_v32 = vpop.permute.xlu1 %6774 }
0x13b9   :  { %v6269_v55 = vmul.f32 %v9763_v41, %v5765_v43  ;;  %v5598_v41 = vmul.f32 0.0051020407, %v16209_v45 }
0x13bb   :  { %v5934_v50 = vadd.f32 0.001, %v5598_v41  ;;  %v5601_v41 = vmul.f32 0.0051020407, %v16245_v7 }
0x13bd   :  { %9764 = vrsqrt.f32 %v5934_v50  ;;  %v5766_v50 = vld [vmem:[%s18064_s3 + $0x3f0] sm:$0xff] }
0x13ca   :  { %v9765_v22 = vpop.eup %9764 }
0x13d1   :  { %5454 = vadd.xlane.f32.xlu1 %v5453_v51  ;;  %v5335_v51 = vpop.xlane.xlu1 %5334 }
0x13d4   :  { %5458 = vadd.xlane.f32.xlu0 %v5457_v2  ;;  %v4116_v2 = vpop.permute.xlu0 %4115 }
0x13d5   :  { %v16313_v25 = vsub.f32 %v2087_v54, %v4116_v2  ;;  %v4121_v20 = vpop.permute.xlu1 %4120 }
0x13d6   :  { %v16317_v18 = vsub.f32 %v2093_v11, %v4121_v20 }
0x13d7   :  { %19199 = vst [vmem:[#allocation194_spill] sm:$0xff] %v16313_v25  ;;  %v4795_v43 = vmul.f32 %v16313_v25, %v16313_v25 }
0x13d8   :  { %19201 = vst [vmem:[#allocation196_spill] sm:$0xff] %v16317_v18  ;;  %v4797_v54 = vmul.f32 %v16317_v18, %v16317_v18  ;;  %v16337_v14 = vpop.permute.xlu0 %6779 }
0x13d9   :  { %v16328_v62 = vpop.permute.xlu1 %6784 }
0x13da   :  { %v5464_v45 = vsel %vm2102_vm0, %v4797_v54, 0.0  ;;  %v5937_v54 = vadd.f32 0.001, %v5601_v41 }
0x13dd   :  { %v5343_v11 = vpop.xlane.xlu1 %5342 }
0x13e1   :  { %v16335_v18 = vpop.permute.xlu1 %6794 }
0x13e2   :  { %6934 = vperm.xlu1 %9510, %v6268_v8   ;;  %v16315_v8 = vsub.f32 %v2085_v58, %v4116_v2  ;;  %v5460_v58 = vsel %vm2102_vm0, %v4795_v43, 0.0 }
0x13e4   :  { %19200 = vst [vmem:[#allocation195_spill] sm:$0xff] %v16315_v8  ;;  %v4794_v6 = vmul.f32 %v16315_v8, %v16315_v8 }
0x13e5   :  { %v5351_v43 = vpop.xlane.xlu1 %5350 }
0x13e6   :  { %v5461_v25 = vadd.f32 %v5460_v58, %v4794_v6  ;;  %v6270_v58 = vmul.f32 %v9765_v22, %v5766_v50  ;;  %v7557_v22 = vld [vmem:[%s18062_s4 + $0x228] sm:$0xff] }
0x13e9   :  { %v16345_v6 = vpop.permute.xlu1 %6804 }
0x13ea   :  { %6939 = vperm.xlu0 %9511, %v6269_v55   ;;  %v16322_v55 = vsub.f32 %v2091_v21, %v4121_v20  ;;  %v5599_v21 = vmul.f32 0.0051020407, %v16211_v36 }
0x13ec   :  { %19202 = vst [vmem:[#allocation197_spill] sm:$0xff] %v16322_v55  ;;  %v4796_v2 = vmul.f32 %v16322_v55, %v16322_v55  ;;  %v5935_v8 = vadd.f32 0.001, %v5599_v21  ;;  %v16340_v55 = vpop.xlane.xlu0 %5338  ;;  %v5767_v21 = vld [vmem:[%s18064_s3 + $0x3f8] sm:$0xff] }
0x13ee   :  { %v5465_v20 = vadd.f32 %v5464_v45, %v4796_v2  ;;  %9766 = vrsqrt.f32 %v5935_v8  ;;  %v5359_v8 = vpop.xlane.xlu1 %5358 }
0x13ef   :  { %9768 = vrsqrt.f32 %v5937_v54 }
0x13f0   :  { %v4126_v36 = vpop.permute.xlu0 %4125 }
0x13f2   :  { %v16355_v60 = vpop.permute.xlu1 %6814 }
0x13f4   :  { %v16348_v45 = vpop.permute.xlu0 %6789 }
0x13f8   :  { %v16353_v46 = vpop.xlane.xlu0 %5346 }
0x13fb   :  { %v9767_v7 = vpop.eup %9766 }
0x13fc   :  { %v6271_v41 = vmul.f32 %v9767_v7, %v5767_v21  ;;  %v9769_v54 = vpop.eup %9768  ;;  %v16360_v50 = vpop.permute.xlu0 %6799 }
0x13fd   :  { %v2097_v21 = vpop.f32.mrf.mxu0 }
0x13fe   :  { %v16384_v35 = vsub.f32 %v2097_v21, %v4126_v36  ;;  %v5611_v21 = vmul.f32 0.0051020407, %v5359_v8 }
0x1400   :  { %v16365_v7 = vpop.xlane.xlu0 %5354  ;;  %19204 = vst [vmem:[#allocation199_spill] sm:$0xff] %v16384_v35  ;;  %v5947_v4 = vadd.f32 0.001, %v5611_v21 }
0x1404   :  { %v16372_v0 = vpop.permute.xlu0 %6809 }
0x1406   :  { %5462 = vadd.xlane.f32.xlu1 %v5461_v25  ;;  %v5603_v25 = vmul.f32 0.0051020407, %v16279_v31 }
0x1408   :  { %v5939_v2 = vadd.f32 0.001, %v5603_v25  ;;  %v5367_v25 = vpop.xlane.xlu1 %5366  ;;  %v16379_v12 = vpop.xlane.xlu0 %5362 }
0x1409   :  { %5466 = vadd.xlane.f32.xlu0 %v5465_v20  ;;  %v5605_v20 = vmul.f32 0.0051020407, %v5335_v51  ;;  %v5607_v51 = vmul.f32 0.0051020407, %v5343_v11  ;;  %v2099_v11 = vpop.f32.mrf.mxu0  ;;  %v5613_v8 = vmul.f32 0.0051020407, %v5367_v25 }
0x140a   :  { %9770 = vrsqrt.f32 %v5939_v2 }
0x140b   :  { %v5941_v31 = vadd.f32 0.001, %v5605_v20  ;;  %v7559_v20 = vld [vmem:[%s18062_s4 + $0x238] sm:$0xff]  ;;  %v5943_v48 = vadd.f32 0.001, %v5607_v51  ;;  %v7561_v51 = vld [vmem:[%s18062_s4 + $0x248] sm:$0xff] }
0x140d   :  { %9772 = vrsqrt.f32 %v5941_v31 }
0x140e   :  { %9774 = vrsqrt.f32 %v5943_v48 }
0x1417   :  { %6944 = vperm.xlu1 %9510, %v6270_v58   ;;  %v5769_v58 = vld [vmem:[%s18064_s3 + $0x408] sm:$0xff]  ;;  %v9771_v24 = vpop.eup %9770 }
0x1418   :  { %v6273_v2 = vmul.f32 %v9769_v54, %v5769_v58  ;;  %v5609_v54 = vmul.f32 0.0051020407, %v5351_v43  ;;  %v16389_v43 = vpop.permute.xlu0 %6819 }
0x141a   :  { %v5945_v28 = vadd.f32 0.001, %v5609_v54  ;;  %v9773_v26 = vpop.eup %9772 }
0x141c   :  { %9776 = vrsqrt.f32 %v5945_v28  ;;  %v16399_v54 = vpop.xlane.xlu0 %5370 }
0x141f   :  { %6949 = vperm.xlu0 %9511, %v6271_v41   ;;  %v16367_v41 = vpop.permute.xlu1 %6824 }
0x1420   :  { %v16405_v28 = vpop.permute.xlu0 %6829 }
0x1423   :  { %8003 = vperm.xlu0 %9511, %v7557_v22   ;;  %v5771_v22 = vld [vmem:[%s18064_s3 + $0x418] sm:$0xff]  ;;  %v5375_v31 = vpop.xlane.xlu1 %5374 }
0x1424   :  { %v6275_v58 = vmul.f32 %v9771_v24, %v5771_v22  ;;  %v16412_v21 = vpop.xlane.xlu0 %5378 }
0x1427   :  { %6959 = vperm.xlu0 %9511, %v6273_v2   ;;  %v16377_v2 = vsub.f32 %v2099_v11, %v4126_v36  ;;  %v16391_v24 = vpop.permute.xlu1 %6834  ;;  %v4798_v36 = vmul.f32 %v16384_v35, %v16384_v35  ;;  %v5936_v11 = vadd.f32 0.001, %v5600_v13  ;;  %v5602_v35 = vmul.f32 0.0051020407, %v16277_v44  ;;  %v5775_v13 = vld [vmem:[%s18064_s3 + $0x438] sm:$0xff]  ;;  %v7565_v44 = vld [vmem:[%s18062_s4 + $0x268] sm:$0xff] }
0x1429   :  { %19203 = vst [vmem:[#allocation198_spill] sm:$0xff] %v16377_v2  ;;  %v4799_v48 = vmul.f32 %v16377_v2, %v16377_v2  ;;  %v7563_v2 = vld [vmem:[%s18062_s4 + $0x258] sm:$0xff]  ;;  %9778 = vrsqrt.f32 %v5936_v11 }
0x142a   :  { %9780 = vrsqrt.f32 %v5947_v4  ;;  %v5777_v4 = vld [vmem:[%s18064_s3 + $0x448] sm:$0xff] }
0x142b   :  { %8013 = vperm.xlu0 %9511, %v7559_v20   ;;  %v5773_v20 = vld [vmem:[%s18064_s3 + $0x428] sm:$0xff]  ;;  %v5468_v57 = vsel %vm2102_vm0, %v4799_v48, 0.0 }
0x142c   :  { %v6277_v22 = vmul.f32 %v9773_v26, %v5773_v20  ;;  %v5469_v47 = vadd.f32 %v5468_v57, %v4798_v36  ;;  %v5938_v20 = vadd.f32 0.001, %v5602_v35  ;;  %v5615_v35 = vmul.f32 0.0051020407, %v5375_v31 }
0x142d   :  { %v5606_v31 = vmul.f32 0.0051020407, %v16340_v55 }
0x142e   :  { %9782 = vrsqrt.f32 %v5938_v20  ;;  %v5951_v20 = vadd.f32 0.001, %v5615_v35  ;;  %v7558_v35 = vld [vmem:[%s18062_s4 + $0x230] sm:$0xff] }
0x142f   :  { %6969 = vperm.xlu0 %9511, %v6275_v58   ;;  %v5383_v58 = vpop.xlane.xlu1 %5382 }
0x1433   :  { %8023 = vperm.xlu0 %9511, %v7561_v51   ;;  %v9775_v51 = vpop.eup %9774  ;;  %v16410_v26 = vpop.permute.xlu1 %6844 }
0x1434   :  { %19205 = vst [vmem:[#allocation200_spill] sm:$0xff] %v16410_v26  ;;  %v6279_v48 = vmul.f32 %v9775_v51, %v5775_v13  ;;  %v9777_v11 = vpop.eup %9776 }
0x1435   :  { %v6281_v25 = vmul.f32 %v9777_v11, %v5777_v4  ;;  %v5779_v4 = vld [vmem:[%s18064_s3 + $0x458] sm:$0xff] }
0x1437   :  { %6979 = vperm.xlu0 %9511, %v6277_v22   ;;  %v5391_v36 = vpop.xlane.xlu1 %5390  ;;  %v5949_v22 = vadd.f32 0.001, %v5613_v8  ;;  %v9779_v8 = vpop.eup %9778 }
0x1439   :  { %9784 = vrsqrt.f32 %v5949_v22 }
0x143b   :  { %8033 = vperm.xlu0 %9511, %v7563_v2   ;;  %5470 = vadd.xlane.f32.xlu1 %v5469_v47  ;;  %v5604_v2 = vmul.f32 0.0051020407, %v16311_v39  ;;  %v16418_v47 = vpop.permute.xlu0 %6839  ;;  %v16425_v13 = vpop.permute.xlu1 %6854  ;;  %v5768_v39 = vld [vmem:[%s18064_s3 + $0x400] sm:$0xff] }
0x143c   :  { %19206 = vst [vmem:[#allocation201_spill] sm:$0xff] %v16425_v13 }
0x143d   :  { %v5940_v57 = vadd.f32 0.001, %v5604_v2  ;;  %v6272_v2 = vmul.f32 %v9779_v8, %v5768_v39  ;;  %v5770_v8 = vld [vmem:[%s18064_s3 + $0x410] sm:$0xff] }
0x143f   :  { %6989 = vperm.xlu0 %9511, %v6279_v48   ;;  %v16423_v51 = vpop.xlane.xlu0 %5386  ;;  %v7567_v48 = vld [vmem:[%s18062_s4 + $0x278] sm:$0xff]  ;;  %9786 = vrsqrt.f32 %v5940_v57  ;;  %v5399_v11 = vpop.xlane.xlu1 %5398  ;;  %v5942_v57 = vadd.f32 0.001, %v5606_v31 }
0x1440   :  { %9788 = vrsqrt.f32 %v5951_v20 }
0x1441   :  { %9790 = vrsqrt.f32 %v5942_v57 }
0x1443   :  { %8043 = vperm.xlu0 %9511, %v7565_v44   ;;  %v9781_v44 = vpop.eup %9780  ;;  %v16434_v22 = vpop.permute.xlu0 %6849 }
0x1444   :  { %v6283_v19 = vmul.f32 %v9781_v44, %v5779_v4  ;;  %v9783_v55 = vpop.eup %9782  ;;  %v16447_v39 = vpop.permute.xlu1 %6864  ;;  %v5608_v44 = vmul.f32 0.0051020407, %v16353_v46 }
0x1445   :  { %19207 = vst [vmem:[#allocation202_spill] sm:$0xff] %v16447_v39 }
0x1446   :  { %v9785_v20 = vpop.eup %9784  ;;  %v5944_v57 = vadd.f32 0.001, %v5608_v44 }
0x1447   :  { %6999 = vperm.xlu0 %9511, %v6281_v25   ;;  %v5617_v25 = vmul.f32 0.0051020407, %v5383_v58  ;;  %v16442_v13 = vpop.xlane.xlu0 %5394  ;;  %v7569_v58 = vld [vmem:[%s18062_s4 + $0x288] sm:$0xff] }
0x1448   :  { %v5407_v4 = vpop.xlane.xlu1 %5406 }
0x144b   :  { %8053 = vperm.xlu0 %9511, %v7567_v48   ;;  %v5953_v48 = vadd.f32 0.001, %v5617_v25  ;;  %v16453_v31 = vpop.permute.xlu0 %6859  ;;  %v7560_v25 = vld [vmem:[%s18062_s4 + $0x240] sm:$0xff] }
0x144c   :  { %6954 = vperm.xlu1 %9510, %v6272_v2   ;;  %v6274_v2 = vmul.f32 %v9783_v55, %v5770_v8  ;;  %v9787_v46 = vpop.eup %9786  ;;  %v5772_v55 = vld [vmem:[%s18064_s3 + $0x420] sm:$0xff]  ;;  %v7571_v8 = vld [vmem:[%s18062_s4 + $0x298] sm:$0xff]  ;;  %v16472_v44 = vpop.permute.xlu1 %6874 }
0x144d   :  { %9792 = vrsqrt.f32 %v5953_v48  ;;  %v5610_v48 = vmul.f32 0.0051020407, %v16365_v7  ;;  %19209 = vst [vmem:[#allocation204_spill] sm:$0xff] %v16472_v44 }
0x144e   :  { %9794 = vrsqrt.f32 %v5944_v57 }
0x144f   :  { %7009 = vperm.xlu0 %9511, %v6283_v19   ;;  %v5781_v19 = vld [vmem:[%s18064_s3 + $0x468] sm:$0xff]  ;;  %v16461_v5 = vpop.xlane.xlu0 %5402  ;;  %v5946_v57 = vadd.f32 0.001, %v5610_v48 }
0x1450   :  { %8008 = vperm.xlu1 %9510, %v7558_v35   ;;  %v5619_v35 = vmul.f32 0.0051020407, %v5391_v36  ;;  %v6285_v39 = vmul.f32 %v9785_v20, %v5781_v19  ;;  %v5621_v19 = vmul.f32 0.0051020407, %v5399_v11  ;;  %v5415_v53 = vpop.xlane.xlu1 %5414  ;;  %v7573_v11 = vld [vmem:[%s18062_s4 + $0x2a8] sm:$0xff] }
0x1452   :  { %v5955_v36 = vadd.f32 0.001, %v5619_v35  ;;  %v7562_v35 = vld [vmem:[%s18062_s4 + $0x250] sm:$0xff] }
0x1453   :  { %8063 = vperm.xlu0 %9511, %v7569_v58   ;;  %v9789_v58 = vpop.eup %9788  ;;  %v16470_v20 = vpop.permute.xlu0 %6869 }
0x1454   :  { %6964 = vperm.xlu1 %9510, %v6274_v2   ;;  %19208 = vst [vmem:[#allocation203_spill] sm:$0xff] %v16470_v20  ;;  %v6276_v2 = vmul.f32 %v9787_v46, %v5772_v55  ;;  %9796 = vrsqrt.f32 %v5955_v36  ;;  %v9791_v20 = vpop.eup %9790  ;;  %v5774_v46 = vld [vmem:[%s18064_s3 + $0x430] sm:$0xff]  ;;  %v5957_v55 = vadd.f32 0.001, %v5621_v19  ;;  %v5612_v36 = vmul.f32 0.0051020407, %v16379_v12 }
0x1455   :  { %9798 = vrsqrt.f32 %v5946_v57  ;;  %v6278_v48 = vmul.f32 %v9791_v20, %v5774_v46  ;;  %v7564_v19 = vld [vmem:[%s18062_s4 + $0x260] sm:$0xff] }
0x1456   :  { %9800 = vrsqrt.f32 %v5957_v55  ;;  %v5948_v57 = vadd.f32 0.001, %v5612_v36  ;;  %v5776_v20 = vld [vmem:[%s18064_s3 + $0x440] sm:$0xff] }
0x1457   :  { %7019 = vperm.xlu0 %9511, %v6285_v39   ;;  %v5783_v39 = vld [vmem:[%s18064_s3 + $0x478] sm:$0xff]  ;;  %v16480_v7 = vpop.xlane.xlu0 %5410 }
0x1458   :  { %8018 = vperm.xlu1 %9510, %v7560_v25   ;;  %v6287_v25 = vmul.f32 %v9789_v58, %v5783_v39  ;;  %v16494_v39 = vpop.permute.xlu1 %6884  ;;  %9802 = vrsqrt.f32 %v5948_v57 }
0x1459   :  { %19211 = vst [vmem:[#allocation206_spill] sm:$0xff] %v16494_v39 }
0x145b   :  { %8073 = vperm.xlu0 %9511, %v7571_v8   ;;  %v9793_v8 = vpop.eup %9792  ;;  %v16489_v58 = vpop.permute.xlu0 %6879 }
0x145c   :  { %6974 = vperm.xlu1 %9510, %v6276_v2   ;;  %19210 = vst [vmem:[#allocation205_spill] sm:$0xff] %v16489_v58  ;;  %v5785_v2 = vld [vmem:[%s18064_s3 + $0x488] sm:$0xff]  ;;  %v9795_v44 = vpop.eup %9794  ;;  %v5423_v46 = vpop.xlane.xlu1 %5422 }
0x145f   :  { %7029 = vperm.xlu0 %9511, %v6287_v25   ;;  %v5623_v25 = vmul.f32 0.0051020407, %v5407_v4  ;;  %v16499_v12 = vpop.xlane.xlu0 %5418  ;;  %v7575_v4 = vld [vmem:[%s18062_s4 + $0x2b8] sm:$0xff] }
0x1460   :  { %8028 = vperm.xlu1 %9510, %v7562_v35   ;;  %v6289_v35 = vmul.f32 %v9793_v8, %v5785_v2  ;;  %v5614_v8 = vmul.f32 0.0051020407, %v16399_v54  ;;  %v5787_v2 = vld [vmem:[%s18064_s3 + $0x498] sm:$0xff]  ;;  %v16518_v54 = vpop.permute.xlu1 %6894 }
0x1461   :  { %v9797_v55 = vpop.eup %9796  ;;  %19213 = vst [vmem:[#allocation208_spill] sm:$0xff] %v16518_v54 }
0x1462   :  { %v5950_v39 = vadd.f32 0.001, %v5614_v8 }
0x1463   :  { %8083 = vperm.xlu0 %9511, %v7573_v11   ;;  %v5959_v11 = vadd.f32 0.001, %v5623_v25  ;;  %v16508_v36 = vpop.permute.xlu0 %6889  ;;  %v7566_v25 = vld [vmem:[%s18062_s4 + $0x270] sm:$0xff] }
0x1464   :  { %6984 = vperm.xlu1 %9510, %v6278_v48   ;;  %19212 = vst [vmem:[#allocation207_spill] sm:$0xff] %v16508_v36  ;;  %v6280_v48 = vmul.f32 %v9795_v44, %v5776_v20  ;;  %v9799_v36 = vpop.eup %9798  ;;  %v5778_v44 = vld [vmem:[%s18064_s3 + $0x450] sm:$0xff]  ;;  %v5431_v8 = vpop.xlane.xlu1 %5430 }
0x1465   :  { %9804 = vrsqrt.f32 %v5959_v11  ;;  %v5616_v11 = vmul.f32 0.0051020407, %v16412_v21 }
0x1466   :  { %9806 = vrsqrt.f32 %v5950_v39 }
0x1467   :  { %7039 = vperm.xlu0 %9511, %v6289_v35   ;;  %v5625_v35 = vmul.f32 0.0051020407, %v5415_v53  ;;  %v16516_v57 = vpop.xlane.xlu0 %5426  ;;  %v7577_v53 = vld [vmem:[%s18062_s4 + $0x2c8] sm:$0xff]  ;;  %v5952_v39 = vadd.f32 0.001, %v5616_v11 }
0x1468   :  { %8038 = vperm.xlu1 %9510, %v7564_v19   ;;  %v6291_v19 = vmul.f32 %v9797_v55, %v5787_v2  ;;  %v5789_v2 = vld [vmem:[%s18064_s3 + $0x4a8] sm:$0xff] }
0x1469   :  { %v5961_v20 = vadd.f32 0.001, %v5625_v35  ;;  %v7568_v35 = vld [vmem:[%s18062_s4 + $0x280] sm:$0xff] }
0x146b   :  { %8093 = vperm.xlu0 %9511, %v7575_v4   ;;  %v9801_v4 = vpop.eup %9800  ;;  %v16527_v55 = vpop.permute.xlu0 %6899  ;;  %9808 = vrsqrt.f32 %v5961_v20 }
0x146c   :  { %6994 = vperm.xlu1 %9510, %v6280_v48   ;;  %19214 = vst [vmem:[#allocation209_spill] sm:$0xff] %v16527_v55  ;;  %v6282_v48 = vmul.f32 %v9799_v36, %v5778_v44  ;;  %v9803_v21 = vpop.eup %9802  ;;  %v5780_v36 = vld [vmem:[%s18064_s3 + $0x460] sm:$0xff]  ;;  %v16540_v44 = vpop.permute.xlu1 %6904  ;;  %9810 = vrsqrt.f32 %v5952_v39 }
0x146d   :  { %19215 = vst [vmem:[#allocation210_spill] sm:$0xff] %v16540_v44 }
0x146f   :  { %7049 = vperm.xlu0 %9511, %v6291_v19   ;;  %v5627_v19 = vmul.f32 0.0051020407, %v5423_v46  ;;  %v16535_v54 = vpop.xlane.xlu0 %5434  ;;  %v7579_v46 = vld [vmem:[%s18062_s4 + $0x2d8] sm:$0xff] }
0x1470   :  { %8048 = vperm.xlu1 %9510, %v7566_v25   ;;  %v6293_v25 = vmul.f32 %v9801_v4, %v5789_v2  ;;  %v5618_v4 = vmul.f32 0.0051020407, %v16423_v51  ;;  %v5791_v2 = vld [vmem:[%s18064_s3 + $0x4b8] sm:$0xff] }
0x1472   :  { %v9805_v20 = vpop.eup %9804  ;;  %v5954_v39 = vadd.f32 0.001, %v5618_v4 }
0x1473   :  { %8103 = vperm.xlu0 %9511, %v7577_v53   ;;  %v5963_v53 = vadd.f32 0.001, %v5627_v19  ;;  %v16546_v11 = vpop.permute.xlu0 %6909  ;;  %v6295_v44 = vmul.f32 %v9805_v20, %v5791_v2  ;;  %v7570_v19 = vld [vmem:[%s18062_s4 + $0x290] sm:$0xff]  ;;  %v9807_v51 = vpop.eup %9806 }
0x1474   :  { %7004 = vperm.xlu1 %9510, %v6282_v48   ;;  %19216 = vst [vmem:[#allocation211_spill] sm:$0xff] %v16546_v11  ;;  %v6284_v48 = vmul.f32 %v9803_v21, %v5780_v36  ;;  %v5782_v21 = vld [vmem:[%s18064_s3 + $0x470] sm:$0xff]  ;;  %v7581_v36 = vld [vmem:[%s18062_s4 + $0x2e8] sm:$0xff] }
0x1475   :  { %9812 = vrsqrt.f32 %v5963_v53  ;;  %v5620_v53 = vmul.f32 0.0051020407, %v16442_v13 }
0x1476   :  { %9814 = vrsqrt.f32 %v5954_v39 }
0x1477   :  { %7059 = vperm.xlu0 %9511, %v6293_v25   ;;  %v5439_v25 = vpop.xlane.xlu1 %5438  ;;  %v16554_v55 = vpop.xlane.xlu0 %5442  ;;  %v5956_v39 = vadd.f32 0.001, %v5620_v53 }
0x1478   :  { %8058 = vperm.xlu1 %9510, %v7568_v35   ;;  %v5629_v35 = vmul.f32 0.0051020407, %v5431_v8  ;;  %v5631_v2 = vmul.f32 0.0051020407, %v5439_v25  ;;  %v7583_v25 = vld [vmem:[%s18062_s4 + $0x2f8] sm:$0xff] }
0x147a   :  { %v5965_v8 = vadd.f32 0.001, %v5629_v35  ;;  %v7572_v35 = vld [vmem:[%s18062_s4 + $0x2a0] sm:$0xff] }
0x147b   :  { %8113 = vperm.xlu0 %9511, %v7579_v46   ;;  %v9809_v46 = vpop.eup %9808  ;;  %v16563_v20 = vpop.permute.xlu1 %6914 }
0x147c   :  { %7014 = vperm.xlu1 %9510, %v6284_v48   ;;  %19217 = vst [vmem:[#allocation212_spill] sm:$0xff] %v16563_v20  ;;  %v16565_v4 = vpop.permute.xlu0 %6919  ;;  %v6286_v48 = vmul.f32 %v9807_v51, %v5782_v21  ;;  %9816 = vrsqrt.f32 %v5965_v8  ;;  %v9811_v20 = vpop.eup %9810  ;;  %v5784_v51 = vld [vmem:[%s18064_s3 + $0x480] sm:$0xff]  ;;  %v5967_v21 = vadd.f32 0.001, %v5631_v2  ;;  %v5622_v8 = vmul.f32 0.0051020407, %v16461_v5 }
0x147d   :  { %19218 = vst [vmem:[#allocation213_spill] sm:$0xff] %v16565_v4  ;;  %9818 = vrsqrt.f32 %v5956_v39  ;;  %v6288_v53 = vmul.f32 %v9811_v20, %v5784_v51  ;;  %v7574_v2 = vld [vmem:[%s18062_s4 + $0x2b0] sm:$0xff] }
0x147e   :  { %9820 = vrsqrt.f32 %v5967_v21  ;;  %v5958_v39 = vadd.f32 0.001, %v5622_v8  ;;  %v5786_v20 = vld [vmem:[%s18064_s3 + $0x490] sm:$0xff] }
0x147f   :  { %7069 = vperm.xlu0 %9511, %v6295_v44   ;;  %v5793_v44 = vld [vmem:[%s18064_s3 + $0x4c8] sm:$0xff]  ;;  %v5447_v13 = vpop.xlane.xlu1 %5446 }
0x1480   :  { %8068 = vperm.xlu1 %9510, %v7570_v19   ;;  %v6297_v19 = vmul.f32 %v9809_v46, %v5793_v44  ;;  %v16573_v11 = vpop.xlane.xlu0 %5450  ;;  %9822 = vrsqrt.f32 %v5958_v39 }
0x1483   :  { %8123 = vperm.xlu0 %9511, %v7581_v36   ;;  %v9813_v36 = vpop.eup %9812  ;;  %v16587_v44 = vpop.permute.xlu1 %6924 }
0x1484   :  { %7024 = vperm.xlu1 %9510, %v6286_v48   ;;  %v16582_v46 = vpop.permute.xlu0 %6929  ;;  %v5795_v48 = vld [vmem:[%s18064_s3 + $0x4d8] sm:$0xff]  ;;  %19220 = vst [vmem:[#allocation215_spill] sm:$0xff] %v16587_v44 }
0x1485   :  { %19219 = vst [vmem:[#allocation214_spill] sm:$0xff] %v16582_v46  ;;  %v9815_v46 = vpop.eup %9814 }
0x1487   :  { %7079 = vperm.xlu0 %9511, %v6297_v19   ;;  %v5633_v19 = vmul.f32 0.0051020407, %v5447_v13  ;;  %v5455_v51 = vpop.xlane.xlu1 %5454  ;;  %v7585_v13 = vld [vmem:[%s18062_s4 + $0x308] sm:$0xff] }
0x1488   :  { %8078 = vperm.xlu1 %9510, %v7572_v35   ;;  %v6299_v35 = vmul.f32 %v9813_v36, %v5795_v48  ;;  %v16592_v5 = vpop.xlane.xlu0 %5458  ;;  %v5624_v36 = vmul.f32 0.0051020407, %v16480_v7  ;;  %v5797_v48 = vld [vmem:[%s18064_s3 + $0x4e8] sm:$0xff] }
0x1489   :  { %v9817_v21 = vpop.eup %9816 }
0x148a   :  { %v5960_v44 = vadd.f32 0.001, %v5624_v36 }
0x148b   :  { %8133 = vperm.xlu0 %9511, %v7583_v25   ;;  %v5969_v25 = vadd.f32 0.001, %v5633_v19  ;;  %v7576_v19 = vld [vmem:[%s18062_s4 + $0x2c0] sm:$0xff]  ;;  %v16609_v39 = vpop.permute.xlu1 %6934 }
0x148c   :  { %7034 = vperm.xlu1 %9510, %v6288_v53   ;;  %v16601_v8 = vpop.permute.xlu0 %6939  ;;  %v6290_v53 = vmul.f32 %v9815_v46, %v5786_v20  ;;  %19222 = vst [vmem:[#allocation217_spill] sm:$0xff] %v16609_v39  ;;  %v5788_v46 = vld [vmem:[%s18064_s3 + $0x4a0] sm:$0xff]  ;;  %v7587_v20 = vld [vmem:[%s18062_s4 + $0x318] sm:$0xff]  ;;  %v19225_v39 = vld [vmem:[#allocation11_spill] sm:$0xff] }
0x148d   :  { %19221 = vst [vmem:[#allocation216_spill] sm:$0xff] %v16601_v8  ;;  %9824 = vrsqrt.f32 %v5969_v25  ;;  %v9819_v8 = vpop.eup %9818  ;;  %v5626_v25 = vmul.f32 0.0051020407, %v16499_v12  ;;  %v7578_v12 = vld [vmem:[%s18062_s4 + $0x2d0] sm:$0xff] }
0x148e   :  { %9826 = vrsqrt.f32 %v5960_v44 }
0x148f   :  { %7089 = vperm.xlu0 %9511, %v6299_v35   ;;  %v5635_v35 = vmul.f32 0.0051020407, %v5455_v51 }
0x1490   :  { %8088 = vperm.xlu1 %9510, %v7574_v2   ;;  %v6301_v2 = vmul.f32 %v9817_v21, %v5797_v48  ;;  %v5463_v21 = vpop.xlane.xlu1 %5462  ;;  %v5799_v48 = vld [vmem:[%s18064_s3 + $0x4f8] sm:$0xff] }
0x1491   :  { %v5971_v51 = vadd.f32 0.001, %v5635_v35  ;;  %v7291_v35 = vmul.f32 %v15933_v52, %v19225_v39  ;;  %v5637_v44 = vmul.f32 0.0051020407, %v5463_v21  ;;  %v5801_v21 = vld [vmem:[%s18064_s3 + $0x508] sm:$0xff] }
0x1492   :  { %v16611_v7 = vpop.xlane.xlu0 %5466 }
0x1493   :  { %8143 = vperm.xlu0 %9511, %v7585_v13   ;;  %v9821_v13 = vpop.eup %9820  ;;  %9828 = vrsqrt.f32 %v5971_v51  ;;  %v5973_v39 = vadd.f32 0.001, %v5637_v44  ;;  %v5628_v51 = vmul.f32 0.0051020407, %v16516_v57  ;;  %v7580_v57 = vld [vmem:[%s18062_s4 + $0x2e0] sm:$0xff] }
0x1494   :  { %7044 = vperm.xlu1 %9510, %v6290_v53   ;;  %v6292_v53 = vmul.f32 %v9819_v8, %v5788_v46  ;;  %v6303_v4 = vmul.f32 %v9821_v13, %v5799_v48  ;;  %v5962_v8 = vadd.f32 0.001, %v5626_v25  ;;  %v19227_v48 = vld [vmem:[#allocation88_spill] sm:$0xff] }
0x1496   :  { %9830 = vrsqrt.f32 %v5962_v8  ;;  %v5792_v8 = vld [vmem:[%s18064_s3 + $0x4c0] sm:$0xff] }
0x1497   :  { %7099 = vperm.xlu0 %9511, %v6301_v2   ;;  %v19224_v2 = vld [vmem:[#allocation86_spill] sm:$0xff]  ;;  %9832 = vrsqrt.f32 %v5973_v39 }
0x1498   :  { %8098 = vperm.xlu1 %9510, %v7576_v19   ;;  %v7290_v19 = vmul.f32 %v15933_v52, %v19224_v2  ;;  %v7589_v52 = vld [vmem:[%s18062_s4 + $0x328] sm:$0xff]  ;;  %v7295_v2 = vmul.f32 %v15967_v61, %v19227_v48 }
0x149a   :  { %v16620_v36 = vpop.permute.xlu0 %6949 }
0x149b   :  { %19223 = vst [vmem:[#allocation218_spill] sm:$0xff] %v16620_v36  ;;  %8153 = vperm.xlu0 %9511, %v7587_v20   ;;  %v9823_v36 = vpop.eup %9822  ;;  %v5790_v20 = vld [vmem:[%s18064_s3 + $0x4b0] sm:$0xff] }
0x149c   :  { %7054 = vperm.xlu1 %9510, %v6292_v53   ;;  %v6294_v25 = vmul.f32 %v9823_v36, %v5790_v20  ;;  %v19226_v53 = vld [vmem:[#allocation87_spill] sm:$0xff]  ;;  %v5630_v20 = vmul.f32 0.0051020407, %v16535_v54  ;;  %v7582_v54 = vld [vmem:[%s18062_s4 + $0x2f0] sm:$0xff] }
0x149e   :  { %v8004_v46 = vpop.permute.xlu0 %8003  ;;  %v5966_v48 = vadd.f32 0.001, %v5630_v20 }
0x149f   :  { %v8634_v58 = vadd.f32 %v8004_v46, %v7290_v19  ;;  %v8635_v26 = vadd.f32 %v8004_v46, %v7291_v35  ;;  %7109 = vperm.xlu0 %9511, %v6303_v4   ;;  %v9825_v4 = vpop.eup %9824  ;;  %v5964_v19 = vadd.f32 0.001, %v5628_v51  ;;  %v19228_v51 = vld [vmem:[#allocation156_spill] sm:$0xff] }
0x14a0   :  { %8108 = vperm.xlu1 %9510, %v7578_v12   ;;  %v9827_v35 = vpop.eup %9826 }
0x14a1   :  { %8970 = vst [vmem:[%s18065_s5 + $0x450] sm:$0xff] %v8634_v58  ;;  %8971 = vst.msk [vmem:[%s18065_s5 + $0x458] sm:$0xff] %vm2102_vm0, %v8635_v26  ;;  %v7294_v58 = vmul.f32 %v15967_v61, %v19226_v53  ;;  %v6305_v26 = vmul.f32 %v9825_v4, %v5801_v21  ;;  %v7591_v61 = vld [vmem:[%s18062_s4 + $0x338] sm:$0xff]  ;;  %v9829_v46 = vpop.eup %9828  ;;  %9834 = vrsqrt.f32 %v5964_v19  ;;  %v6296_v39 = vmul.f32 %v9827_v35, %v5792_v8  ;;  %v19229_v21 = vld [vmem:[#allocation16_spill] sm:$0xff] }
0x14a2   :  { %v16646_v13 = vpop.permute.xlu0 %6959  ;;  %v5803_v4 = vld [vmem:[%s18064_s3 + $0x518] sm:$0xff]  ;;  %v7299_v53 = vmul.f32 %v16001_v63, %v19229_v21  ;;  %9836 = vrsqrt.f32 %v5966_v48  ;;  %v5796_v48 = vld [vmem:[%s18064_s3 + $0x4e0] sm:$0xff] }
0x14a3   :  { %8163 = vperm.xlu0 %9511, %v7589_v52  }
0x14a4   :  { %7064 = vperm.xlu1 %9510, %v6294_v25   ;;  %v7298_v25 = vmul.f32 %v16001_v63, %v19228_v51  ;;  %v7593_v63 = vld [vmem:[%s18062_s4 + $0x348] sm:$0xff] }
0x14a6   :  { %v8014_v36 = vpop.permute.xlu0 %8013 }
0x14a7   :  { %v8638_v44 = vadd.f32 %v8014_v36, %v7294_v58  ;;  %v8639_v12 = vadd.f32 %v8014_v36, %v7295_v2  ;;  %7119 = vperm.xlu0 %9511, %v6305_v26   ;;  %v6307_v58 = vmul.f32 %v9829_v46, %v5803_v4  ;;  %v9831_v26 = vpop.eup %9830  ;;  %v5794_v36 = vld [vmem:[%s18064_s3 + $0x4d0] sm:$0xff]  ;;  %v19230_v46 = vld [vmem:[#allocation15_spill] sm:$0xff] }
0x14a8   :  { %8118 = vperm.xlu1 %9510, %v7580_v57   ;;  %v9833_v35 = vpop.eup %9832  ;;  %v6298_v8 = vmul.f32 %v9831_v26, %v5794_v36  ;;  %v7302_v20 = vmul.f32 %v16035_v33, %v19230_v46 }
0x14a9   :  { %8974 = vst [vmem:[%s18065_s5 + $0x470] sm:$0xff] %v8638_v44  ;;  %8975 = vst.msk [vmem:[%s18065_s5 + $0x478] sm:$0xff] %vm2102_vm0, %v8639_v12  ;;  %v5632_v44 = vmul.f32 0.0051020407, %v16554_v55  ;;  %v7584_v55 = vld [vmem:[%s18062_s4 + $0x300] sm:$0xff] }
0x14aa   :  { %v16672_v52 = vpop.permute.xlu0 %6969 }
0x14ab   :  { %8173 = vperm.xlu0 %9511, %v7591_v61   ;;  %v5805_v61 = vld [vmem:[%s18064_s3 + $0x528] sm:$0xff] }
0x14ac   :  { %7074 = vperm.xlu1 %9510, %v6296_v39   ;;  %v19231_v39 = vld [vmem:[#allocation91_spill] sm:$0xff]  ;;  %v6309_v51 = vmul.f32 %v9833_v35, %v5805_v61 }
0x14ad   :  { %v7303_v4 = vmul.f32 %v16035_v33, %v19231_v39  ;;  %v7595_v33 = vld [vmem:[%s18062_s4 + $0x358] sm:$0xff]  ;;  %v5798_v39 = vld [vmem:[%s18064_s3 + $0x4f0] sm:$0xff] }
0x14ae   :  { %v8024_v2 = vpop.permute.xlu0 %8023 }
0x14af   :  { %v8642_v57 = vadd.f32 %v8024_v2, %v7298_v25  ;;  %v8643_v19 = vadd.f32 %v8024_v2, %v7299_v53  ;;  %7129 = vperm.xlu0 %9511, %v6307_v58   ;;  %v5968_v25 = vadd.f32 0.001, %v5632_v44  ;;  %v9835_v53 = vpop.eup %9834  ;;  %v5634_v2 = vmul.f32 0.0051020407, %v16573_v11  ;;  %v7586_v44 = vld [vmem:[%s18062_s4 + $0x310] sm:$0xff] }
0x14b0   :  { %8128 = vperm.xlu1 %9510, %v7582_v54   ;;  %v9837_v46 = vpop.eup %9836 }
0x14b1   :  { %8978 = vst [vmem:[%s18065_s5 + $0x490] sm:$0xff] %v8642_v57  ;;  %8979 = vst.msk [vmem:[%s18065_s5 + $0x498] sm:$0xff] %vm2102_vm0, %v8643_v19  ;;  %9838 = vrsqrt.f32 %v5968_v25  ;;  %v6300_v57 = vmul.f32 %v9835_v53, %v5796_v48  ;;  %v19232_v19 = vld [vmem:[#allocation150_spill] sm:$0xff] }
0x14b2   :  { %v16698_v12 = vpop.permute.xlu0 %6979  ;;  %v7306_v36 = vmul.f32 %v16069_v9, %v19232_v19 }
0x14b3   :  { %8183 = vperm.xlu0 %9511, %v7593_v63   ;;  %v19233_v63 = vld [vmem:[#allocation159_spill] sm:$0xff] }
0x14b4   :  { %7084 = vperm.xlu1 %9510, %v6298_v8   ;;  %v7307_v35 = vmul.f32 %v16069_v9, %v19233_v63  ;;  %v5970_v8 = vadd.f32 0.001, %v5634_v2  ;;  %v5636_v9 = vmul.f32 0.0051020407, %v16592_v5 }
0x14b6   :  { %v8034_v21 = vpop.permute.xlu0 %8033  ;;  %9840 = vrsqrt.f32 %v5970_v8  ;;  %v5972_v2 = vadd.f32 0.001, %v5636_v9 }
0x14b7   :  { %v8646_v58 = vadd.f32 %v8034_v21, %v7302_v20  ;;  %v8647_v54 = vadd.f32 %v8034_v21, %v7303_v4  ;;  %7139 = vperm.xlu0 %9511, %v6309_v51   ;;  %v16736_v4 = vpop.permute.xlu1 %6944  ;;  %v19234_v21 = vld [vmem:[#allocation17_spill] sm:$0xff] }
0x14b8   :  { %8138 = vperm.xlu1 %9510, %v7584_v55   ;;  %v6302_v55 = vmul.f32 %v9837_v46, %v5798_v39  ;;  %v7310_v53 = vmul.f32 %v16103_v38, %v19234_v21  ;;  %v19236_v46 = vld [vmem:[#allocation14_spill] sm:$0xff]  ;;  %v19239_v21 = vld [vmem:[#allocation20_spill] sm:$0xff] }
0x14b9   :  { %8982 = vst [vmem:[%s18065_s5 + $0x4b0] sm:$0xff] %v8646_v58  ;;  %8983 = vst.msk [vmem:[%s18065_s5 + $0x4b8] sm:$0xff] %vm2102_vm0, %v8647_v54  ;;  %v19235_v58 = vld [vmem:[#allocation95_spill] sm:$0xff] }
0x14ba   :  { %v16724_v26 = vpop.permute.xlu0 %6989  ;;  %v7311_v54 = vmul.f32 %v16103_v38, %v19235_v58  ;;  %v5638_v38 = vmul.f32 0.0051020407, %v16611_v7  ;;  %v7590_v7 = vld [vmem:[%s18062_s4 + $0x330] sm:$0xff] }
0x14bb   :  { %8193 = vperm.xlu0 %9511, %v7595_v33   ;;  %v7588_v33 = vld [vmem:[%s18062_s4 + $0x320] sm:$0xff] }
0x14bc   :  { %7094 = vperm.xlu1 %9510, %v6300_v57  }
0x14be   :  { %v8044_v61 = vpop.permute.xlu0 %8043  ;;  %v9839_v19 = vpop.eup %9838 }
0x14bf   :  { %v8650_v20 = vadd.f32 %v8044_v61, %v7306_v36  ;;  %v8651_v11 = vadd.f32 %v8044_v61, %v7307_v35  ;;  %v5800_v35 = vld [vmem:[%s18064_s3 + $0x500] sm:$0xff] }
0x14c0   :  { %8148 = vperm.xlu1 %9510, %v7586_v44   ;;  %v6304_v61 = vmul.f32 %v9839_v19, %v5800_v35 }
0x14c1   :  { %8986 = vst [vmem:[%s18065_s5 + $0x4d0] sm:$0xff] %v8650_v20  ;;  %8987 = vst.msk [vmem:[%s18065_s5 + $0x4d8] sm:$0xff] %vm2102_vm0, %v8651_v11  ;;  %v7292_v20 = vmul.f32 %v15935_v30, %v19236_v46  ;;  %v19237_v11 = vld [vmem:[#allocation85_spill] sm:$0xff] }
0x14c2   :  { %v16746_v51 = vpop.permute.xlu0 %6999  ;;  %v7293_v39 = vmul.f32 %v15935_v30, %v19237_v11  ;;  %v19242_v11 = vld [vmem:[#allocation99_spill] sm:$0xff] }
0x14c4   :  { %7104 = vperm.xlu1 %9510, %v6302_v55   ;;  %v5471_v25 = vpop.xlane.xlu1 %5470  ;;  %v19238_v55 = vld [vmem:[#allocation162_spill] sm:$0xff] }
0x14c5   :  { %v5639_v48 = vmul.f32 0.0051020407, %v5471_v25  ;;  %v7314_v25 = vmul.f32 %v16137_v37, %v19238_v55 }
0x14c6   :  { %v8054_v57 = vpop.permute.xlu0 %8053 }
0x14c7   :  { %v5975_v5 = vadd.f32 0.001, %v5639_v48  ;;  %v8654_v36 = vadd.f32 %v8054_v57, %v7310_v53  ;;  %v8655_v63 = vadd.f32 %v8054_v57, %v7311_v54  ;;  %v7315_v53 = vmul.f32 %v16137_v37, %v19239_v21  ;;  %v5802_v57 = vld [vmem:[%s18064_s3 + $0x510] sm:$0xff] }
0x14c8   :  { %8158 = vperm.xlu1 %9510, %v7588_v33   ;;  %v16758_v44 = vpop.permute.xlu1 %6954  ;;  %v5974_v48 = vadd.f32 0.001, %v5638_v38  ;;  %v19241_v38 = vld [vmem:[#allocation13_spill] sm:$0xff] }
0x14c9   :  { %9842 = vrsqrt.f32 %v5975_v5  ;;  %8990 = vst [vmem:[%s18065_s5 + $0x4f0] sm:$0xff] %v8654_v36  ;;  %8991 = vst.msk [vmem:[%s18065_s5 + $0x4f8] sm:$0xff] %vm2102_vm0, %v8655_v63  ;;  %v19240_v63 = vld [vmem:[#allocation90_spill] sm:$0xff] }
0x14ca   :  { %9844 = vrsqrt.f32 %v5972_v2  ;;  %v16768_v8 = vpop.permute.xlu0 %7009  ;;  %v9841_v2 = vpop.eup %9840  ;;  %v7296_v35 = vmul.f32 %v15969_v23, %v19240_v63 }
0x14cb   :  { %9846 = vrsqrt.f32 %v5974_v48  ;;  %v6306_v36 = vmul.f32 %v9841_v2, %v5802_v57  ;;  %v7597_v57 = vld [vmem:[%s18062_s4 + $0x368] sm:$0xff] }
0x14cc   :  { %7114 = vperm.xlu1 %9510, %v6304_v61   ;;  %v8009_v9 = vpop.permute.xlu1 %8008  ;;  %v7297_v61 = vmul.f32 %v15969_v23, %v19241_v38 }
0x14cd   :  { %v8636_v58 = vadd.f32 %v8009_v9, %v7292_v20  ;;  %v8637_v54 = vadd.f32 %v8009_v9, %v7293_v39  ;;  %v5807_v20 = vld [vmem:[%s18064_s3 + $0x538] sm:$0xff]  ;;  %v7318_v39 = vmul.f32 %v16171_v29, %v19242_v11  ;;  %v19243_v9 = vld [vmem:[#allocation100_spill] sm:$0xff] }
0x14ce   :  { %v8064_v33 = vpop.permute.xlu0 %8063  ;;  %v7319_v55 = vmul.f32 %v16171_v29, %v19243_v9  ;;  %v19247_v11 = vld [vmem:[#allocation101_spill] sm:$0xff] }
0x14cf   :  { %8972 = vst [vmem:[%s18065_s5 + $0x460] sm:$0xff] %v8636_v58  ;;  %8973 = vst.msk [vmem:[%s18065_s5 + $0x468] sm:$0xff] %vm2102_vm0, %v8637_v54  ;;  %v8658_v30 = vadd.f32 %v8064_v33, %v7314_v25  ;;  %v8659_v37 = vadd.f32 %v8064_v33, %v7315_v53  ;;  %v7592_v53 = vld [vmem:[%s18062_s4 + $0x340] sm:$0xff] }
0x14d0   :  { %8168 = vperm.xlu1 %9510, %v7590_v7   ;;  %v16791_v19 = vpop.permute.xlu1 %6964  ;;  %v5804_v33 = vld [vmem:[%s18064_s3 + $0x520] sm:$0xff] }
0x14d1   :  { %8994 = vst [vmem:[%s18065_s5 + $0x510] sm:$0xff] %v8658_v30  ;;  %8995 = vst.msk [vmem:[%s18065_s5 + $0x518] sm:$0xff] %vm2102_vm0, %v8659_v37 }
0x14d2   :  { %v16800_v5 = vpop.permute.xlu0 %7019 }
0x14d4   :  { %7124 = vperm.xlu1 %9510, %v6306_v36   ;;  %v8019_v46 = vpop.permute.xlu1 %8018  ;;  %v19244_v36 = vld [vmem:[#allocation158_spill] sm:$0xff] }
0x14d5   :  { %v8640_v25 = vadd.f32 %v8019_v46, %v7296_v35  ;;  %v8641_v21 = vadd.f32 %v8019_v46, %v7297_v61  ;;  %v7300_v63 = vmul.f32 %v16003_v56, %v19244_v36  ;;  %v19245_v35 = vld [vmem:[#allocation143_spill] sm:$0xff]  ;;  %v19246_v46 = vld [vmem:[#allocation22_spill] sm:$0xff] }
0x14d6   :  { %v9843_v58 = vpop.eup %9842  ;;  %v8074_v23 = vpop.permute.xlu0 %8073  ;;  %v7301_v38 = vmul.f32 %v16003_v56, %v19245_v35  ;;  %v7599_v56 = vld [vmem:[%s18062_s4 + $0x378] sm:$0xff]  ;;  %v19250_v35 = vld [vmem:[#allocation104_spill] sm:$0xff] }
0x14d7   :  { %v9845_v54 = vpop.eup %9844  ;;  %8976 = vst [vmem:[%s18065_s5 + $0x480] sm:$0xff] %v8640_v25  ;;  %8977 = vst.msk [vmem:[%s18065_s5 + $0x488] sm:$0xff] %vm2102_vm0, %v8641_v21  ;;  %v8662_v7 = vadd.f32 %v8074_v23, %v7318_v39  ;;  %v8663_v29 = vadd.f32 %v8074_v23, %v7319_v55  ;;  %v6311_v48 = vmul.f32 %v9843_v58, %v5807_v20  ;;  %v7594_v25 = vld [vmem:[%s18062_s4 + $0x350] sm:$0xff] }
0x14d8   :  { %8178 = vperm.xlu1 %9510, %v7592_v53   ;;  %v16826_v2 = vpop.permute.xlu1 %6974  ;;  %v6308_v37 = vmul.f32 %v9845_v54, %v5804_v33  ;;  %v7322_v20 = vmul.f32 %v16205_v15, %v19246_v46  ;;  %v7323_v39 = vmul.f32 %v16205_v15, %v19247_v11  ;;  %v9847_v53 = vpop.eup %9846  ;;  %v5806_v23 = vld [vmem:[%s18064_s3 + $0x530] sm:$0xff]  ;;  %v19248_v33 = vld [vmem:[#allocation93_spill] sm:$0xff] }
0x14d9   :  { %8998 = vst [vmem:[%s18065_s5 + $0x530] sm:$0xff] %v8662_v7  ;;  %8999 = vst.msk [vmem:[%s18065_s5 + $0x538] sm:$0xff] %vm2102_vm0, %v8663_v29  ;;  %7149 = vperm.xlu0 %9511, %v6311_v48   ;;  %v6310_v29 = vmul.f32 %v9847_v53, %v5806_v23  ;;  %v7601_v48 = vld [vmem:[%s18062_s4 + $0x388] sm:$0xff]  ;;  %v19253_v23 = vld [vmem:[#allocation161_spill] sm:$0xff] }
0x14da   :  { %v16835_v30 = vpop.permute.xlu0 %7029  ;;  %v7605_v53 = vld [vmem:[%s18062_s4 + $0x3a8] sm:$0xff] }
0x14dc   :  { %7134 = vperm.xlu1 %9510, %v6308_v37   ;;  %v8029_v61 = vpop.permute.xlu1 %8028  ;;  %v7304_v37 = vmul.f32 %v16037_v49, %v19248_v33  ;;  %v19254_v33 = vld [vmem:[#allocation105_spill] sm:$0xff] }
0x14dd   :  { %v8644_v9 = vadd.f32 %v8029_v61, %v7300_v63  ;;  %v8645_v55 = vadd.f32 %v8029_v61, %v7301_v38  ;;  %8203 = vperm.xlu0 %9511, %v7597_v57   ;;  %v19249_v57 = vld [vmem:[#allocation94_spill] sm:$0xff]  ;;  %v7326_v38 = vmul.f32 %v16239_v10, %v19250_v35 }
0x14de   :  { %v8084_v21 = vpop.permute.xlu0 %8083  ;;  %v7305_v36 = vmul.f32 %v16037_v49, %v19249_v57  ;;  %v19251_v61 = vld [vmem:[#allocation170_spill] sm:$0xff]  ;;  %v7603_v49 = vld [vmem:[%s18062_s4 + $0x398] sm:$0xff] }
0x14df   :  { %8980 = vst [vmem:[%s18065_s5 + $0x4a0] sm:$0xff] %v8644_v9  ;;  %8981 = vst.msk [vmem:[%s18065_s5 + $0x4a8] sm:$0xff] %vm2102_vm0, %v8645_v55  ;;  %v8666_v15 = vadd.f32 %v8084_v21, %v7322_v20  ;;  %v8667_v58 = vadd.f32 %v8084_v21, %v7323_v39  ;;  %v7327_v46 = vmul.f32 %v16239_v10, %v19251_v61  ;;  %v7596_v39 = vld [vmem:[%s18062_s4 + $0x360] sm:$0xff]  ;;  %v7598_v21 = vld [vmem:[%s18062_s4 + $0x370] sm:$0xff] }
0x14e0   :  { %8188 = vperm.xlu1 %9510, %v7594_v25   ;;  %v16864_v54 = vpop.permute.xlu1 %6984  ;;  %v19255_v57 = vld [vmem:[#allocation106_spill] sm:$0xff] }
0x14e1   :  { %9002 = vst [vmem:[%s18065_s5 + $0x550] sm:$0xff] %v8666_v15  ;;  %9003 = vst.msk [vmem:[%s18065_s5 + $0x558] sm:$0xff] %vm2102_vm0, %v8667_v58  ;;  %8213 = vperm.xlu0 %9511, %v7599_v56   ;;  %v19252_v15 = vld [vmem:[#allocation96_spill] sm:$0xff] }
0x14e2   :  { %v16873_v7 = vpop.permute.xlu0 %7039  ;;  %v7308_v58 = vmul.f32 %v16071_v3, %v19252_v15  ;;  %v19258_v15 = vld [vmem:[#allocation23_spill] sm:$0xff] }
0x14e4   :  { %7144 = vperm.xlu1 %9510, %v6310_v29   ;;  %v8039_v63 = vpop.permute.xlu1 %8038  ;;  %v7309_v29 = vmul.f32 %v16071_v3, %v19253_v23  ;;  %v7607_v3 = vld [vmem:[%s18062_s4 + $0x3b8] sm:$0xff]  ;;  %v19259_v23 = vld [vmem:[#allocation107_spill] sm:$0xff] }
0x14e5   :  { %v8648_v20 = vadd.f32 %v8039_v63, %v7304_v37  ;;  %v8649_v11 = vadd.f32 %v8039_v63, %v7305_v36  ;;  %8223 = vperm.xlu0 %9511, %v7601_v48   ;;  %v7330_v37 = vmul.f32 %v16273_v59, %v19254_v33  ;;  %v7331_v36 = vmul.f32 %v16273_v59, %v19255_v57 }
0x14e6   :  { %v8094_v9 = vpop.permute.xlu0 %8093 }
0x14e7   :  { %8984 = vst [vmem:[%s18065_s5 + $0x4c0] sm:$0xff] %v8648_v20  ;;  %8985 = vst.msk [vmem:[%s18065_s5 + $0x4c8] sm:$0xff] %vm2102_vm0, %v8649_v11  ;;  %v8670_v10 = vadd.f32 %v8094_v9, %v7326_v38  ;;  %v8671_v55 = vadd.f32 %v8094_v9, %v7327_v46  ;;  %v7600_v38 = vld [vmem:[%s18062_s4 + $0x380] sm:$0xff]  ;;  %v7602_v11 = vld [vmem:[%s18062_s4 + $0x390] sm:$0xff] }
0x14e8   :  { %8198 = vperm.xlu1 %9510, %v7596_v39   ;;  %v16899_v25 = vpop.permute.xlu1 %6994  ;;  %v7609_v9 = vld [vmem:[%s18062_s4 + $0x3c8] sm:$0xff] }
0x14e9   :  { %9006 = vst [vmem:[%s18065_s5 + $0x570] sm:$0xff] %v8670_v10  ;;  %9007 = vst.msk [vmem:[%s18065_s5 + $0x578] sm:$0xff] %vm2102_vm0, %v8671_v55  ;;  %8233 = vperm.xlu0 %9511, %v7603_v49   ;;  %v19256_v49 = vld [vmem:[#allocation97_spill] sm:$0xff]  ;;  %v19257_v55 = vld [vmem:[#allocation98_spill] sm:$0xff] }
0x14ea   :  { %v16911_v56 = vpop.permute.xlu0 %7049  ;;  %v7312_v10 = vmul.f32 %v16105_v34, %v19256_v49  ;;  %v19262_v49 = vld [vmem:[#allocation111_spill] sm:$0xff] }
0x14ec   :  { %8208 = vperm.xlu1 %9510, %v7598_v21   ;;  %v8049_v48 = vpop.permute.xlu1 %8048  ;;  %v7313_v21 = vmul.f32 %v16105_v34, %v19257_v55  ;;  %v7611_v34 = vld [vmem:[%s18062_s4 + $0x3d8] sm:$0xff]  ;;  %v19263_v55 = vld [vmem:[#allocation112_spill] sm:$0xff] }
0x14ed   :  { %v8652_v63 = vadd.f32 %v8049_v48, %v7308_v58  ;;  %v8653_v35 = vadd.f32 %v8049_v48, %v7309_v29  ;;  %8243 = vperm.xlu0 %9511, %v7605_v53   ;;  %v7334_v58 = vmul.f32 %v16307_v27, %v19258_v15  ;;  %v7335_v29 = vmul.f32 %v16307_v27, %v19259_v23 }
0x14ee   :  { %v8104_v61 = vpop.permute.xlu0 %8103 }
0x14ef   :  { %8988 = vst [vmem:[%s18065_s5 + $0x4e0] sm:$0xff] %v8652_v63  ;;  %8989 = vst.msk [vmem:[%s18065_s5 + $0x4e8] sm:$0xff] %vm2102_vm0, %v8653_v35  ;;  %v8674_v59 = vadd.f32 %v8104_v61, %v7330_v37  ;;  %v8675_v46 = vadd.f32 %v8104_v61, %v7331_v36  ;;  %v7604_v37 = vld [vmem:[%s18062_s4 + $0x3a0] sm:$0xff]  ;;  %v7606_v35 = vld [vmem:[%s18062_s4 + $0x3b0] sm:$0xff] }
0x14f0   :  { %8218 = vperm.xlu1 %9510, %v7600_v38   ;;  %v16937_v20 = vpop.permute.xlu1 %7004  ;;  %v7613_v61 = vld [vmem:[%s18062_s4 + $0x3e8] sm:$0xff] }
0x14f1   :  { %9010 = vst [vmem:[%s18065_s5 + $0x590] sm:$0xff] %v8674_v59  ;;  %9011 = vst.msk [vmem:[%s18065_s5 + $0x598] sm:$0xff] %vm2102_vm0, %v8675_v46  ;;  %8253 = vperm.xlu0 %9511, %v7607_v3   ;;  %v19260_v3 = vld [vmem:[#allocation165_spill] sm:$0xff]  ;;  %v19261_v46 = vld [vmem:[#allocation152_spill] sm:$0xff] }
0x14f2   :  { %v16949_v39 = vpop.permute.xlu0 %7059  ;;  %v7316_v59 = vmul.f32 %v16139_v17, %v19260_v3  ;;  %v19266_v3 = vld [vmem:[#allocation116_spill] sm:$0xff] }
0x14f4   :  { %8228 = vperm.xlu1 %9510, %v7602_v11   ;;  %v8059_v53 = vpop.permute.xlu1 %8058  ;;  %v7317_v11 = vmul.f32 %v16139_v17, %v19261_v46  ;;  %v7615_v17 = vld [vmem:[%s18062_s4 + $0x3f8] sm:$0xff]  ;;  %v19267_v46 = vld [vmem:[#allocation163_spill] sm:$0xff] }
0x14f5   :  { %v8656_v48 = vadd.f32 %v8059_v53, %v7312_v10  ;;  %v8657_v33 = vadd.f32 %v8059_v53, %v7313_v21  ;;  %8263 = vperm.xlu0 %9511, %v7609_v9   ;;  %v7338_v10 = vmul.f32 %v16337_v14, %v19262_v49  ;;  %v7339_v21 = vmul.f32 %v16337_v14, %v19263_v55 }
0x14f6   :  { %v8114_v57 = vpop.permute.xlu0 %8113 }
0x14f7   :  { %8992 = vst [vmem:[%s18065_s5 + $0x500] sm:$0xff] %v8656_v48  ;;  %8993 = vst.msk [vmem:[%s18065_s5 + $0x508] sm:$0xff] %vm2102_vm0, %v8657_v33  ;;  %v8678_v27 = vadd.f32 %v8114_v57, %v7334_v58  ;;  %v8679_v36 = vadd.f32 %v8114_v57, %v7335_v29  ;;  %v7608_v58 = vld [vmem:[%s18062_s4 + $0x3c0] sm:$0xff]  ;;  %v7610_v33 = vld [vmem:[%s18062_s4 + $0x3d0] sm:$0xff] }
0x14f8   :  { %8238 = vperm.xlu1 %9510, %v7604_v37   ;;  %v16975_v63 = vpop.permute.xlu1 %7014  ;;  %v7617_v57 = vld [vmem:[%s18062_s4 + $0x408] sm:$0xff] }
0x14f9   :  { %9014 = vst [vmem:[%s18065_s5 + $0x5b0] sm:$0xff] %v8678_v27  ;;  %9015 = vst.msk [vmem:[%s18065_s5 + $0x5b8] sm:$0xff] %vm2102_vm0, %v8679_v36  ;;  %8273 = vperm.xlu0 %9511, %v7611_v34   ;;  %v19264_v34 = vld [vmem:[#allocation102_spill] sm:$0xff]  ;;  %v19265_v36 = vld [vmem:[#allocation19_spill] sm:$0xff] }
0x14fa   :  { %v16987_v38 = vpop.permute.xlu0 %7069  ;;  %v7320_v27 = vmul.f32 %v16173_v40, %v19264_v34  ;;  %v19270_v34 = vld [vmem:[#allocation119_spill] sm:$0xff] }
0x14fc   :  { %8248 = vperm.xlu1 %9510, %v7606_v35   ;;  %v8069_v9 = vpop.permute.xlu1 %8068  ;;  %v7321_v35 = vmul.f32 %v16173_v40, %v19265_v36  ;;  %v7619_v40 = vld [vmem:[%s18062_s4 + $0x418] sm:$0xff]  ;;  %v19271_v36 = vld [vmem:[#allocation120_spill] sm:$0xff] }
0x14fd   :  { %v8660_v53 = vadd.f32 %v8069_v9, %v7316_v59  ;;  %v8661_v15 = vadd.f32 %v8069_v9, %v7317_v11  ;;  %8283 = vperm.xlu0 %9511, %v7613_v61   ;;  %v7342_v59 = vmul.f32 %v16348_v45, %v19266_v3  ;;  %v7343_v11 = vmul.f32 %v16348_v45, %v19267_v46 }
0x14fe   :  { %v8124_v23 = vpop.permute.xlu0 %8123 }
0x14ff   :  { %8996 = vst [vmem:[%s18065_s5 + $0x520] sm:$0xff] %v8660_v53  ;;  %8997 = vst.msk [vmem:[%s18065_s5 + $0x528] sm:$0xff] %vm2102_vm0, %v8661_v15  ;;  %v8682_v14 = vadd.f32 %v8124_v23, %v7338_v10  ;;  %v8683_v29 = vadd.f32 %v8124_v23, %v7339_v21  ;;  %v7612_v10 = vld [vmem:[%s18062_s4 + $0x3e0] sm:$0xff]  ;;  %v7614_v15 = vld [vmem:[%s18062_s4 + $0x3f0] sm:$0xff] }
0x1500   :  { %8258 = vperm.xlu1 %9510, %v7608_v58   ;;  %v17013_v48 = vpop.permute.xlu1 %7024  ;;  %v7621_v23 = vld [vmem:[%s18062_s4 + $0x428] sm:$0xff] }
0x1501   :  { %9018 = vst [vmem:[%s18065_s5 + $0x5d0] sm:$0xff] %v8682_v14  ;;  %9019 = vst.msk [vmem:[%s18065_s5 + $0x5d8] sm:$0xff] %vm2102_vm0, %v8683_v29  ;;  %8293 = vperm.xlu0 %9511, %v7615_v17   ;;  %v19268_v17 = vld [vmem:[#allocation155_spill] sm:$0xff]  ;;  %v19269_v29 = vld [vmem:[#allocation164_spill] sm:$0xff] }
0x1502   :  { %v17025_v37 = vpop.permute.xlu0 %7079  ;;  %v7324_v14 = vmul.f32 %v16207_v16, %v19268_v17  ;;  %v19274_v17 = vld [vmem:[#allocation31_spill] sm:$0xff] }
0x1504   :  { %8268 = vperm.xlu1 %9510, %v7610_v33   ;;  %v8079_v61 = vpop.permute.xlu1 %8078  ;;  %v7325_v33 = vmul.f32 %v16207_v16, %v19269_v29  ;;  %v7623_v16 = vld [vmem:[%s18062_s4 + $0x438] sm:$0xff]  ;;  %v19275_v29 = vld [vmem:[#allocation123_spill] sm:$0xff] }
0x1505   :  { %v8664_v9 = vadd.f32 %v8079_v61, %v7320_v27  ;;  %v8665_v49 = vadd.f32 %v8079_v61, %v7321_v35  ;;  %8303 = vperm.xlu0 %9511, %v7617_v57   ;;  %v7346_v27 = vmul.f32 %v16360_v50, %v19270_v34  ;;  %v7347_v35 = vmul.f32 %v16360_v50, %v19271_v36 }
0x1506   :  { %v8134_v55 = vpop.permute.xlu0 %8133 }
0x1507   :  { %9000 = vst [vmem:[%s18065_s5 + $0x540] sm:$0xff] %v8664_v9  ;;  %9001 = vst.msk [vmem:[%s18065_s5 + $0x548] sm:$0xff] %vm2102_vm0, %v8665_v49  ;;  %v8686_v45 = vadd.f32 %v8134_v55, %v7342_v59  ;;  %v8687_v21 = vadd.f32 %v8134_v55, %v7343_v11  ;;  %v7616_v59 = vld [vmem:[%s18062_s4 + $0x400] sm:$0xff]  ;;  %v7618_v49 = vld [vmem:[%s18062_s4 + $0x410] sm:$0xff] }
0x1508   :  { %8278 = vperm.xlu1 %9510, %v7612_v10   ;;  %v17051_v53 = vpop.permute.xlu1 %7034  ;;  %v7625_v55 = vld [vmem:[%s18062_s4 + $0x448] sm:$0xff] }
0x1509   :  { %9022 = vst [vmem:[%s18065_s5 + $0x5f0] sm:$0xff] %v8686_v45  ;;  %9023 = vst.msk [vmem:[%s18065_s5 + $0x5f8] sm:$0xff] %vm2102_vm0, %v8687_v21  ;;  %8313 = vperm.xlu0 %9511, %v7619_v40   ;;  %v19272_v40 = vld [vmem:[#allocation21_spill] sm:$0xff]  ;;  %v19273_v21 = vld [vmem:[#allocation103_spill] sm:$0xff] }
0x150a   :  { %v17063_v58 = vpop.permute.xlu0 %7089  ;;  %v7328_v45 = vmul.f32 %v16241_v1, %v19272_v40  ;;  %v19278_v40 = vld [vmem:[#allocation33_spill] sm:$0xff] }
0x150c   :  { %8288 = vperm.xlu1 %9510, %v7614_v15   ;;  %v8089_v57 = vpop.permute.xlu1 %8088  ;;  %v7329_v15 = vmul.f32 %v16241_v1, %v19273_v21  ;;  %v7627_v1 = vld [vmem:[%s18062_s4 + $0x458] sm:$0xff]  ;;  %v19279_v21 = vld [vmem:[#allocation128_spill] sm:$0xff] }
0x150d   :  { %v8668_v61 = vadd.f32 %v8089_v57, %v7324_v14  ;;  %v8669_v3 = vadd.f32 %v8089_v57, %v7325_v33  ;;  %8323 = vperm.xlu0 %9511, %v7621_v23   ;;  %v7350_v14 = vmul.f32 %v16372_v0, %v19274_v17  ;;  %v7351_v33 = vmul.f32 %v16372_v0, %v19275_v29 }
0x150e   :  { %v8144_v46 = vpop.permute.xlu0 %8143 }
0x150f   :  { %9004 = vst [vmem:[%s18065_s5 + $0x560] sm:$0xff] %v8668_v61  ;;  %9005 = vst.msk [vmem:[%s18065_s5 + $0x568] sm:$0xff] %vm2102_vm0, %v8669_v3  ;;  %v8690_v50 = vadd.f32 %v8144_v46, %v7346_v27  ;;  %v8691_v11 = vadd.f32 %v8144_v46, %v7347_v35  ;;  %v7620_v27 = vld [vmem:[%s18062_s4 + $0x420] sm:$0xff]  ;;  %v7622_v3 = vld [vmem:[%s18062_s4 + $0x430] sm:$0xff] }
0x1510   :  { %8298 = vperm.xlu1 %9510, %v7616_v59   ;;  %v17089_v9 = vpop.permute.xlu1 %7044  ;;  %v7629_v46 = vld [vmem:[%s18062_s4 + $0x468] sm:$0xff] }
0x1511   :  { %9026 = vst [vmem:[%s18065_s5 + $0x610] sm:$0xff] %v8690_v50  ;;  %9027 = vst.msk [vmem:[%s18065_s5 + $0x618] sm:$0xff] %vm2102_vm0, %v8691_v11  ;;  %8333 = vperm.xlu0 %9511, %v7623_v16   ;;  %v19276_v16 = vld [vmem:[#allocation157_spill] sm:$0xff]  ;;  %v19277_v11 = vld [vmem:[#allocation24_spill] sm:$0xff] }
0x1512   :  { %v17101_v10 = vpop.permute.xlu0 %7099  ;;  %v7332_v50 = vmul.f32 %v16275_v42, %v19276_v16  ;;  %v19282_v16 = vld [vmem:[#allocation35_spill] sm:$0xff] }
0x1514   :  { %8308 = vperm.xlu1 %9510, %v7618_v49   ;;  %v8099_v23 = vpop.permute.xlu1 %8098  ;;  %v7333_v49 = vmul.f32 %v16275_v42, %v19277_v11  ;;  %v7631_v42 = vld [vmem:[%s18062_s4 + $0x478] sm:$0xff]  ;;  %v19283_v11 = vld [vmem:[#allocation147_spill] sm:$0xff] }
0x1515   :  { %v8672_v57 = vadd.f32 %v8099_v23, %v7328_v45  ;;  %v8673_v34 = vadd.f32 %v8099_v23, %v7329_v15  ;;  %8343 = vperm.xlu0 %9511, %v7625_v55   ;;  %v7354_v45 = vmul.f32 %v16389_v43, %v19278_v40  ;;  %v7355_v15 = vmul.f32 %v16389_v43, %v19279_v21 }
0x1516   :  { %v8154_v36 = vpop.permute.xlu0 %8153 }
0x1517   :  { %9008 = vst [vmem:[%s18065_s5 + $0x580] sm:$0xff] %v8672_v57  ;;  %9009 = vst.msk [vmem:[%s18065_s5 + $0x588] sm:$0xff] %vm2102_vm0, %v8673_v34  ;;  %v8694_v0 = vadd.f32 %v8154_v36, %v7350_v14  ;;  %v8695_v35 = vadd.f32 %v8154_v36, %v7351_v33  ;;  %v7624_v14 = vld [vmem:[%s18062_s4 + $0x440] sm:$0xff]  ;;  %v7626_v34 = vld [vmem:[%s18062_s4 + $0x450] sm:$0xff] }
0x1518   :  { %8318 = vperm.xlu1 %9510, %v7620_v27   ;;  %v17127_v61 = vpop.permute.xlu1 %7054  ;;  %v7633_v36 = vld [vmem:[%s18062_s4 + $0x488] sm:$0xff] }
0x1519   :  { %9030 = vst [vmem:[%s18065_s5 + $0x630] sm:$0xff] %v8694_v0  ;;  %9031 = vst.msk [vmem:[%s18065_s5 + $0x638] sm:$0xff] %vm2102_vm0, %v8695_v35  ;;  %8353 = vperm.xlu0 %9511, %v7627_v1   ;;  %v19280_v1 = vld [vmem:[#allocation109_spill] sm:$0xff]  ;;  %v19281_v35 = vld [vmem:[#allocation110_spill] sm:$0xff] }
0x151a   :  { %v17139_v59 = vpop.permute.xlu0 %7109  ;;  %v7336_v0 = vmul.f32 %v16309_v32, %v19280_v1  ;;  %v19286_v1 = vld [vmem:[#allocation168_spill] sm:$0xff] }
0x151c   :  { %8328 = vperm.xlu1 %9510, %v7622_v3   ;;  %v8109_v55 = vpop.permute.xlu1 %8108  ;;  %v7337_v3 = vmul.f32 %v16309_v32, %v19281_v35  ;;  %v7635_v32 = vld [vmem:[%s18062_s4 + $0x498] sm:$0xff] }
0x151d   :  { %v8676_v23 = vadd.f32 %v8109_v55, %v7332_v50  ;;  %v8677_v17 = vadd.f32 %v8109_v55, %v7333_v49  ;;  %8363 = vperm.xlu0 %9511, %v7629_v46   ;;  %v7358_v50 = vmul.f32 %v16405_v28, %v19282_v16  ;;  %v7359_v49 = vmul.f32 %v16405_v28, %v19283_v11  ;;  %v19287_v35 = vld [vmem:[#allocation169_spill] sm:$0xff] }
0x151e   :  { %v8164_v29 = vpop.permute.xlu0 %8163 }
0x151f   :  { %9012 = vst [vmem:[%s18065_s5 + $0x5a0] sm:$0xff] %v8676_v23  ;;  %9013 = vst.msk [vmem:[%s18065_s5 + $0x5a8] sm:$0xff] %vm2102_vm0, %v8677_v17  ;;  %v8698_v43 = vadd.f32 %v8164_v29, %v7354_v45  ;;  %v8699_v33 = vadd.f32 %v8164_v29, %v7355_v15  ;;  %v7628_v45 = vld [vmem:[%s18062_s4 + $0x460] sm:$0xff]  ;;  %v7630_v17 = vld [vmem:[%s18062_s4 + $0x470] sm:$0xff] }
0x1520   :  { %8338 = vperm.xlu1 %9510, %v7624_v14   ;;  %v17165_v57 = vpop.permute.xlu1 %7064  ;;  %v7637_v29 = vld [vmem:[%s18062_s4 + $0x4a8] sm:$0xff] }
0x1521   :  { %9034 = vst [vmem:[%s18065_s5 + $0x650] sm:$0xff] %v8698_v43  ;;  %9035 = vst.msk [vmem:[%s18065_s5 + $0x658] sm:$0xff] %vm2102_vm0, %v8699_v33  ;;  %8373 = vperm.xlu0 %9511, %v7631_v42   ;;  %v19284_v42 = vld [vmem:[#allocation114_spill] sm:$0xff]  ;;  %v19285_v33 = vld [vmem:[#allocation25_spill] sm:$0xff] }
0x1522   :  { %v17177_v27 = vpop.permute.xlu0 %7119  ;;  %v7340_v43 = vmul.f32 %v16328_v62, %v19284_v42  ;;  %v19290_v42 = vld [vmem:[#allocation172_spill] sm:$0xff] }
0x1524   :  { %8348 = vperm.xlu1 %9510, %v7626_v34   ;;  %v8119_v46 = vpop.permute.xlu1 %8118  ;;  %v7341_v34 = vmul.f32 %v16328_v62, %v19285_v33  ;;  %v7639_v62 = vld [vmem:[%s18062_s4 + $0x4b8] sm:$0xff] }
0x1525   :  { %v8680_v55 = vadd.f32 %v8119_v46, %v7336_v0  ;;  %v8681_v40 = vadd.f32 %v8119_v46, %v7337_v3  ;;  %8383 = vperm.xlu0 %9511, %v7633_v36   ;;  %v7362_v0 = vmul.f32 %v16418_v47, %v19286_v1  ;;  %v7363_v3 = vmul.f32 %v16418_v47, %v19287_v35  ;;  %v19291_v33 = vld [vmem:[#allocation173_spill] sm:$0xff] }
0x1526   :  { %v8174_v21 = vpop.permute.xlu0 %8173 }
0x1527   :  { %9016 = vst [vmem:[%s18065_s5 + $0x5c0] sm:$0xff] %v8680_v55  ;;  %9017 = vst.msk [vmem:[%s18065_s5 + $0x5c8] sm:$0xff] %vm2102_vm0, %v8681_v40  ;;  %v8702_v28 = vadd.f32 %v8174_v21, %v7358_v50  ;;  %v8703_v15 = vadd.f32 %v8174_v21, %v7359_v49  ;;  %v7632_v50 = vld [vmem:[%s18062_s4 + $0x480] sm:$0xff]  ;;  %v7634_v40 = vld [vmem:[%s18062_s4 + $0x490] sm:$0xff] }
0x1528   :  { %8358 = vperm.xlu1 %9510, %v7628_v45   ;;  %v17203_v23 = vpop.permute.xlu1 %7074  ;;  %v7641_v21 = vld [vmem:[%s18062_s4 + $0x4c8] sm:$0xff] }
0x1529   :  { %9038 = vst [vmem:[%s18065_s5 + $0x670] sm:$0xff] %v8702_v28  ;;  %9039 = vst.msk [vmem:[%s18065_s5 + $0x678] sm:$0xff] %vm2102_vm0, %v8703_v15  ;;  %8393 = vperm.xlu0 %9511, %v7635_v32   ;;  %v19288_v32 = vld [vmem:[#allocation27_spill] sm:$0xff] }
0x152a   :  { %v17215_v14 = vpop.permute.xlu0 %7129  ;;  %v7344_v28 = vmul.f32 %v16335_v18, %v19288_v32  ;;  %v19289_v15 = vld [vmem:[#allocation115_spill] sm:$0xff] }
0x152c   :  { %8368 = vperm.xlu1 %9510, %v7630_v17   ;;  %v8129_v36 = vpop.permute.xlu1 %8128  ;;  %v7345_v17 = vmul.f32 %v16335_v18, %v19289_v15  ;;  %v7643_v18 = vld [vmem:[%s18062_s4 + $0x4d8] sm:$0xff] }
0x152d   :  { %v8684_v46 = vadd.f32 %v8129_v36, %v7340_v43  ;;  %v8685_v16 = vadd.f32 %v8129_v36, %v7341_v34  ;;  %8403 = vperm.xlu0 %9511, %v7637_v29   ;;  %v7366_v43 = vmul.f32 %v16434_v22, %v19290_v42  ;;  %v7367_v34 = vmul.f32 %v16434_v22, %v19291_v33  ;;  %v7647_v15 = vld [vmem:[%s18062_s4 + $0x4f8] sm:$0xff]  ;;  %v19295_v33 = vld [vmem:[#allocation127_spill] sm:$0xff] }
0x152e   :  { %v8184_v11 = vpop.permute.xlu0 %8183  ;;  %v19294_v42 = vld [vmem:[#allocation125_spill] sm:$0xff] }
0x152f   :  { %9020 = vst [vmem:[%s18065_s5 + $0x5e0] sm:$0xff] %v8684_v46  ;;  %9021 = vst.msk [vmem:[%s18065_s5 + $0x5e8] sm:$0xff] %vm2102_vm0, %v8685_v16  ;;  %v8706_v47 = vadd.f32 %v8184_v11, %v7362_v0  ;;  %v8707_v49 = vadd.f32 %v8184_v11, %v7363_v3  ;;  %v7636_v0 = vld [vmem:[%s18062_s4 + $0x4a0] sm:$0xff]  ;;  %v7638_v16 = vld [vmem:[%s18062_s4 + $0x4b0] sm:$0xff] }
0x1530   :  { %8378 = vperm.xlu1 %9510, %v7632_v50   ;;  %v17241_v55 = vpop.permute.xlu1 %7084  ;;  %v7645_v50 = vld [vmem:[%s18062_s4 + $0x4e8] sm:$0xff]  ;;  %v19292_v11 = vld [vmem:[#allocation122_spill] sm:$0xff] }
0x1531   :  { %9042 = vst [vmem:[%s18065_s5 + $0x690] sm:$0xff] %v8706_v47  ;;  %9043 = vst.msk [vmem:[%s18065_s5 + $0x698] sm:$0xff] %vm2102_vm0, %v8707_v49  ;;  %8413 = vperm.xlu0 %9511, %v7639_v62   ;;  %v7348_v62 = vmul.f32 %v16345_v6, %v19292_v11  ;;  %v19293_v47 = vld [vmem:[#allocation29_spill] sm:$0xff]  ;;  %v19297_v11 = vld [vmem:[#allocation146_spill] sm:$0xff] }
0x1532   :  { %v17253_v45 = vpop.permute.xlu0 %7139  ;;  %v7349_v49 = vmul.f32 %v16345_v6, %v19293_v47 }
0x1534   :  { %8388 = vperm.xlu1 %9510, %v7634_v40   ;;  %v8139_v29 = vpop.permute.xlu1 %8138 }
0x1535   :  { %v8688_v36 = vadd.f32 %v8139_v29, %v7344_v28  ;;  %v8689_v1 = vadd.f32 %v8139_v29, %v7345_v17  ;;  %8423 = vperm.xlu0 %9511, %v7641_v21   ;;  %v7640_v28 = vld [vmem:[%s18062_s4 + $0x4c0] sm:$0xff]  ;;  %v7642_v17 = vld [vmem:[%s18062_s4 + $0x4d0] sm:$0xff]  ;;  %v7649_v29 = vld [vmem:[%s18062_s4 + $0x508] sm:$0xff] }
0x1536   :  { %v8194_v35 = vpop.permute.xlu0 %8193 }
0x1537   :  { %9024 = vst [vmem:[%s18065_s5 + $0x600] sm:$0xff] %v8688_v36  ;;  %9025 = vst.msk [vmem:[%s18065_s5 + $0x608] sm:$0xff] %vm2102_vm0, %v8689_v1  ;;  %v8710_v22 = vadd.f32 %v8194_v35, %v7366_v43  ;;  %v8711_v3 = vadd.f32 %v8194_v35, %v7367_v34  ;;  %v7352_v43 = vmul.f32 %v16355_v60, %v19294_v42  ;;  %v7644_v35 = vld [vmem:[%s18062_s4 + $0x4e0] sm:$0xff] }
0x1538   :  { %8398 = vperm.xlu1 %9510, %v7636_v0   ;;  %v17279_v46 = vpop.permute.xlu1 %7094  ;;  %v7353_v34 = vmul.f32 %v16355_v60, %v19295_v33 }
0x1539   :  { %9046 = vst [vmem:[%s18065_s5 + $0x6b0] sm:$0xff] %v8710_v22  ;;  %9047 = vst.msk [vmem:[%s18065_s5 + $0x6b8] sm:$0xff] %vm2102_vm0, %v8711_v3  ;;  %8433 = vperm.xlu0 %9511, %v7643_v18   ;;  %v7651_v18 = vld [vmem:[%s18062_s4 + $0x518] sm:$0xff]  ;;  %v7646_v22 = vld [vmem:[%s18062_s4 + $0x4f0] sm:$0xff] }
0x153a   :  { %v7653_v3 = vld [vmem:[%s18062_s4 + $0x528] sm:$0xff] }
0x153c   :  { %8408 = vperm.xlu1 %9510, %v7638_v16   ;;  %v8149_v40 = vpop.permute.xlu1 %8148  ;;  %v19296_v16 = vld [vmem:[#allocation144_spill] sm:$0xff] }
0x153d   :  { %v8692_v21 = vadd.f32 %v8149_v40, %v7348_v62  ;;  %v8693_v32 = vadd.f32 %v8149_v40, %v7349_v49  ;;  %8443 = vperm.xlu0 %9511, %v7645_v50   ;;  %v7356_v50 = vmul.f32 %v16367_v41, %v19296_v16  ;;  %v7357_v62 = vmul.f32 %v16367_v41, %v19297_v11  ;;  %v7654_v11 = vld [vmem:[%s18062_s4 + $0x530] sm:$0xff] }
0x153f   :  { %9028 = vst [vmem:[%s18065_s5 + $0x620] sm:$0xff] %v8692_v21  ;;  %9029 = vst.msk [vmem:[%s18065_s5 + $0x628] sm:$0xff] %vm2102_vm0, %v8693_v32  ;;  %v7648_v21 = vld [vmem:[%s18062_s4 + $0x500] sm:$0xff]  ;;  %v7655_v32 = vld [vmem:[%s18062_s4 + $0x538] sm:$0xff] }
0x1540   :  { %8418 = vperm.xlu1 %9510, %v7640_v28   ;;  %v17311_v6 = vpop.permute.xlu1 %7104  ;;  %v7650_v28 = vld [vmem:[%s18062_s4 + $0x510] sm:$0xff] }
0x1541   :  { %8453 = vperm.xlu0 %9511, %v7647_v15   ;;  %v19298_v15 = vld [vmem:[#allocation166_spill] sm:$0xff] }
0x1544   :  { %8428 = vperm.xlu1 %9510, %v7642_v17   ;;  %v8159_v36 = vpop.permute.xlu1 %8158  ;;  %v7360_v17 = vmul.f32 %v16391_v24, %v19298_v15  ;;  %v19307_v15 = vld [vmem:[#allocation176_spill] sm:$0xff] }
0x1545   :  { %v8696_v1 = vadd.f32 %v8159_v36, %v7352_v43  ;;  %v8697_v0 = vadd.f32 %v8159_v36, %v7353_v34  ;;  %8463 = vperm.xlu0 %9511, %v7649_v29   ;;  %v19299_v29 = vld [vmem:[#allocation167_spill] sm:$0xff] }
0x1546   :  { %v7361_v42 = vmul.f32 %v16391_v24, %v19299_v29 }
0x1547   :  { %9032 = vst [vmem:[%s18065_s5 + $0x640] sm:$0xff] %v8696_v1  ;;  %9033 = vst.msk [vmem:[%s18065_s5 + $0x648] sm:$0xff] %vm2102_vm0, %v8697_v0  ;;  %v7652_v1 = vld [vmem:[%s18062_s4 + $0x520] sm:$0xff]  ;;  %v19300_v0 = vld [vmem:[#allocation175_spill] sm:$0xff] }
0x1548   :  { %8438 = vperm.xlu1 %9510, %v7644_v35   ;;  %v17336_v60 = vpop.permute.xlu1 %7114  ;;  %v7370_v35 = vmul.f32 %v16453_v31, %v19300_v0  ;;  %v19308_v0 = vld [vmem:[#allocation179_spill] sm:$0xff] }
0x1549   :  { %8473 = vperm.xlu0 %9511, %v7651_v18   ;;  %v19301_v18 = vld [vmem:[#allocation3_spill] sm:$0xff] }
0x154c   :  { %8448 = vperm.xlu1 %9510, %v7646_v22   ;;  %v8169_v47 = vpop.permute.xlu1 %8168  ;;  %v7371_v22 = vmul.f32 %v16453_v31, %v19301_v18  ;;  %v19302_v31 = vld [vmem:[#allocation171_spill] sm:$0xff] }
0x154d   :  { %v8700_v49 = vadd.f32 %v8169_v47, %v7356_v50  ;;  %v8701_v40 = vadd.f32 %v8169_v47, %v7357_v62  ;;  %8483 = vperm.xlu0 %9511, %v7653_v3   ;;  %v19303_v62 = vld [vmem:[#allocation200_spill] sm:$0xff] }
0x154e   :  { %v7364_v47 = vmul.f32 %v19303_v62, %v19302_v31 }
0x154f   :  { %9036 = vst [vmem:[%s18065_s5 + $0x660] sm:$0xff] %v8700_v49  ;;  %9037 = vst.msk [vmem:[%s18065_s5 + $0x668] sm:$0xff] %vm2102_vm0, %v8701_v40  ;;  %v19304_v49 = vld [vmem:[#allocation37_spill] sm:$0xff] }
0x1550   :  { %8458 = vperm.xlu1 %9510, %v7648_v21   ;;  %v17361_v41 = vpop.permute.xlu1 %7124  ;;  %v7365_v40 = vmul.f32 %v19303_v62, %v19304_v49  ;;  %v19305_v21 = vld [vmem:[#allocation44_spill] sm:$0xff]  ;;  %v19311_v62 = vld [vmem:[#allocation42_spill] sm:$0xff] }
0x1551   :  { %8493 = vperm.xlu0 %9511, %v7655_v32   ;;  %v19306_v32 = vld [vmem:[#allocation203_spill] sm:$0xff] }
0x1554   :  { %v17370_v43 = vpop.permute.xlu0 %7149  ;;  %8468 = vperm.xlu1 %9510, %v7650_v28   ;;  %v8179_v33 = vpop.permute.xlu1 %8178  ;;  %v7374_v28 = vmul.f32 %v19306_v32, %v19305_v21 }
0x1555   :  { %v8704_v34 = vadd.f32 %v8179_v33, %v7360_v17  ;;  %v8705_v36 = vadd.f32 %v8179_v33, %v7361_v42  ;;  %v7375_v17 = vmul.f32 %v19306_v32, %v19307_v15  ;;  %v19314_v32 = vld [vmem:[#allocation180_spill] sm:$0xff] }
0x1557   :  { %9040 = vst [vmem:[%s18065_s5 + $0x680] sm:$0xff] %v8704_v34  ;;  %9041 = vst.msk [vmem:[%s18065_s5 + $0x688] sm:$0xff] %vm2102_vm0, %v8705_v36 }
0x1558   :  { %v8204_v24 = vpop.permute.xlu0 %8203  ;;  %8478 = vperm.xlu1 %9510, %v7652_v1   ;;  %v17386_v3 = vpop.permute.xlu1 %7134 }
0x1559   :  { %v8714_v16 = vadd.f32 %v8204_v24, %v7370_v35  ;;  %v8715_v50 = vadd.f32 %v8204_v24, %v7371_v22  ;;  %v19309_v35 = vld [vmem:[#allocation205_spill] sm:$0xff] }
0x155a   :  { %v7378_v18 = vmul.f32 %v19309_v35, %v19308_v0  ;;  %v19310_v22 = vld [vmem:[#allocation137_spill] sm:$0xff] }
0x155b   :  { %9050 = vst [vmem:[%s18065_s5 + $0x6d0] sm:$0xff] %v8714_v16  ;;  %9051 = vst.msk [vmem:[%s18065_s5 + $0x6d8] sm:$0xff] %vm2102_vm0, %v8715_v50  ;;  %v7379_v24 = vmul.f32 %v19309_v35, %v19310_v22  ;;  %v19317_v35 = vld [vmem:[#allocation41_spill] sm:$0xff] }
0x155c   :  { %v8214_v29 = vpop.permute.xlu0 %8213  ;;  %8488 = vperm.xlu1 %9510, %v7654_v11   ;;  %v8189_v42 = vpop.permute.xlu1 %8188 }
0x155d   :  { %v8718_v33 = vadd.f32 %v8214_v29, %v7374_v28  ;;  %v8719_v34 = vadd.f32 %v8214_v29, %v7375_v17  ;;  %v8708_v36 = vadd.f32 %v8189_v42, %v7364_v47  ;;  %v8709_v1 = vadd.f32 %v8189_v42, %v7365_v40  ;;  %v19312_v47 = vld [vmem:[#allocation201_spill] sm:$0xff]  ;;  %v19313_v40 = vld [vmem:[#allocation39_spill] sm:$0xff] }
0x155e   :  { %v7368_v49 = vmul.f32 %v19312_v47, %v19311_v62  ;;  %v7369_v21 = vmul.f32 %v19312_v47, %v19313_v40  ;;  %v19315_v28 = vld [vmem:[#allocation207_spill] sm:$0xff]  ;;  %v19316_v17 = vld [vmem:[#allocation181_spill] sm:$0xff]  ;;  %v19320_v62 = vld [vmem:[#allocation8_spill] sm:$0xff] }
0x155f   :  { %9054 = vst [vmem:[%s18065_s5 + $0x6f0] sm:$0xff] %v8718_v33  ;;  %9055 = vst.msk [vmem:[%s18065_s5 + $0x6f8] sm:$0xff] %vm2102_vm0, %v8719_v34  ;;  %v7382_v15 = vmul.f32 %v19315_v28, %v19314_v32  ;;  %v7383_v29 = vmul.f32 %v19315_v28, %v19316_v17  ;;  %v19321_v47 = vld [vmem:[#allocation209_spill] sm:$0xff]  ;;  %v19322_v40 = vld [vmem:[#allocation72_spill] sm:$0xff] }
0x1560   :  { %9044 = vst [vmem:[%s18065_s5 + $0x6a0] sm:$0xff] %v8708_v36  ;;  %9045 = vst.msk [vmem:[%s18065_s5 + $0x6a8] sm:$0xff] %vm2102_vm0, %v8709_v1  ;;  %v8224_v16 = vpop.permute.xlu0 %8223  ;;  %v17424_v50 = vpop.permute.xlu1 %7144  ;;  %v7387_v32 = vmul.f32 %v19321_v47, %v19322_v40 }
0x1561   :  { %v8722_v11 = vadd.f32 %v8224_v16, %v7378_v18  ;;  %v8723_v31 = vadd.f32 %v8224_v16, %v7379_v24  ;;  %v19318_v18 = vld [vmem:[#allocation202_spill] sm:$0xff] }
0x1562   :  { %v7372_v22 = vmul.f32 %v19318_v18, %v19317_v35  ;;  %v19319_v24 = vld [vmem:[#allocation174_spill] sm:$0xff]  ;;  %v19326_v35 = vld [vmem:[#allocation132_spill] sm:$0xff] }
0x1563   :  { %9058 = vst [vmem:[%s18065_s5 + $0x710] sm:$0xff] %v8722_v11  ;;  %9059 = vst.msk [vmem:[%s18065_s5 + $0x718] sm:$0xff] %vm2102_vm0, %v8723_v31  ;;  %v7373_v16 = vmul.f32 %v19318_v18, %v19319_v24  ;;  %v7386_v11 = vmul.f32 %v19321_v47, %v19320_v62  ;;  %v19327_v18 = vld [vmem:[#allocation211_spill] sm:$0xff]  ;;  %v19328_v24 = vld [vmem:[#allocation45_spill] sm:$0xff] }
0x1564   :  { %v8234_v42 = vpop.permute.xlu0 %8233  ;;  %v8199_v33 = vpop.permute.xlu1 %8198  ;;  %v7391_v62 = vmul.f32 %v19327_v18, %v19328_v24 }
0x1565   :  { %v8726_v34 = vadd.f32 %v8234_v42, %v7382_v15  ;;  %v8727_v36 = vadd.f32 %v8234_v42, %v7383_v29  ;;  %v8712_v1 = vadd.f32 %v8199_v33, %v7368_v49  ;;  %v8713_v0 = vadd.f32 %v8199_v33, %v7369_v21  ;;  %v19323_v29 = vld [vmem:[#allocation70_spill] sm:$0xff]  ;;  %v19324_v42 = vld [vmem:[#allocation204_spill] sm:$0xff] }
0x1566   :  { %v7376_v33 = vmul.f32 %v19324_v42, %v19323_v29  ;;  %v19332_v29 = vld [vmem:[#allocation142_spill] sm:$0xff] }
0x1567   :  { %9062 = vst [vmem:[%s18065_s5 + $0x730] sm:$0xff] %v8726_v34  ;;  %9063 = vst.msk [vmem:[%s18065_s5 + $0x738] sm:$0xff] %vm2102_vm0, %v8727_v36  ;;  %v19325_v34 = vld [vmem:[#allocation77_spill] sm:$0xff] }
0x1568   :  { %9048 = vst [vmem:[%s18065_s5 + $0x6c0] sm:$0xff] %v8712_v1  ;;  %9049 = vst.msk [vmem:[%s18065_s5 + $0x6c8] sm:$0xff] %vm2102_vm0, %v8713_v0  ;;  %v8244_v31 = vpop.permute.xlu0 %8243  ;;  %v8209_v49 = vpop.permute.xlu1 %8208  ;;  %v7377_v36 = vmul.f32 %v19324_v42, %v19325_v34  ;;  %v7390_v1 = vmul.f32 %v19327_v18, %v19326_v35  ;;  %v19333_v42 = vld [vmem:[#allocation213_spill] sm:$0xff]  ;;  %v19334_v34 = vld [vmem:[#allocation83_spill] sm:$0xff] }
0x1569   :  { %v8730_v21 = vadd.f32 %v8244_v31, %v7386_v11  ;;  %v8731_v28 = vadd.f32 %v8244_v31, %v7387_v32  ;;  %v8716_v15 = vadd.f32 %v8209_v49, %v7372_v22  ;;  %v8717_v17 = vadd.f32 %v8209_v49, %v7373_v16  ;;  %v19329_v32 = vld [vmem:[#allocation43_spill] sm:$0xff]  ;;  %v19330_v31 = vld [vmem:[#allocation206_spill] sm:$0xff] }
0x156a   :  { %v7380_v49 = vmul.f32 %v19330_v31, %v19329_v32  ;;  %v7395_v35 = vmul.f32 %v19333_v42, %v19334_v34  ;;  %v19338_v32 = vld [vmem:[#allocation47_spill] sm:$0xff] }
0x156b   :  { %9066 = vst [vmem:[%s18065_s5 + $0x750] sm:$0xff] %v8730_v21  ;;  %9067 = vst.msk [vmem:[%s18065_s5 + $0x758] sm:$0xff] %vm2102_vm0, %v8731_v28  ;;  %v19331_v21 = vld [vmem:[#allocation178_spill] sm:$0xff] }
0x156c   :  { %9052 = vst [vmem:[%s18065_s5 + $0x6e0] sm:$0xff] %v8716_v15  ;;  %9053 = vst.msk [vmem:[%s18065_s5 + $0x6e8] sm:$0xff] %vm2102_vm0, %v8717_v17  ;;  %v8254_v0 = vpop.permute.xlu0 %8253  ;;  %v8219_v22 = vpop.permute.xlu1 %8218  ;;  %v7381_v28 = vmul.f32 %v19330_v31, %v19331_v21  ;;  %v7394_v15 = vmul.f32 %v19333_v42, %v19332_v29  ;;  %v19339_v31 = vld [vmem:[#allocation214_spill] sm:$0xff]  ;;  %v19340_v21 = vld [vmem:[#allocation64_spill] sm:$0xff] }
0x156d   :  { %v8734_v16 = vadd.f32 %v8254_v0, %v7390_v1  ;;  %v8735_v47 = vadd.f32 %v8254_v0, %v7391_v62  ;;  %v8720_v11 = vadd.f32 %v8219_v22, %v7376_v33  ;;  %v8721_v40 = vadd.f32 %v8219_v22, %v7377_v36  ;;  %v19335_v62 = vld [vmem:[#allocation9_spill] sm:$0xff]  ;;  %v19336_v0 = vld [vmem:[#allocation208_spill] sm:$0xff] }
0x156e   :  { %v7384_v22 = vmul.f32 %v19336_v0, %v19335_v62  ;;  %v7399_v29 = vmul.f32 %v19339_v31, %v19340_v21  ;;  %v19344_v62 = vld [vmem:[#allocation154_spill] sm:$0xff] }
0x156f   :  { %9070 = vst [vmem:[%s18065_s5 + $0x770] sm:$0xff] %v8734_v16  ;;  %9071 = vst.msk [vmem:[%s18065_s5 + $0x778] sm:$0xff] %vm2102_vm0, %v8735_v47  ;;  %v19337_v16 = vld [vmem:[#allocation46_spill] sm:$0xff] }
0x1570   :  { %9056 = vst [vmem:[%s18065_s5 + $0x700] sm:$0xff] %v8720_v11  ;;  %9057 = vst.msk [vmem:[%s18065_s5 + $0x708] sm:$0xff] %vm2102_vm0, %v8721_v40  ;;  %v8264_v17 = vpop.permute.xlu0 %8263  ;;  %v8229_v33 = vpop.permute.xlu1 %8228  ;;  %v7385_v47 = vmul.f32 %v19336_v0, %v19337_v16  ;;  %v7398_v11 = vmul.f32 %v19339_v31, %v19338_v32  ;;  %v19345_v0 = vld [vmem:[#allocation216_spill] sm:$0xff]  ;;  %v19346_v16 = vld [vmem:[#allocation50_spill] sm:$0xff] }
0x1571   :  { %v8738_v36 = vadd.f32 %v8264_v17, %v7394_v15  ;;  %v8739_v18 = vadd.f32 %v8264_v17, %v7395_v35  ;;  %v8724_v1 = vadd.f32 %v8229_v33, %v7380_v49  ;;  %v8725_v24 = vadd.f32 %v8229_v33, %v7381_v28  ;;  %v19341_v35 = vld [vmem:[#allocation182_spill] sm:$0xff] }
0x1572   :  { %v19342_v17 = vld [vmem:[#allocation210_spill] sm:$0xff]  ;;  %v7403_v32 = vmul.f32 %v19345_v0, %v19346_v16 }
0x1573   :  { %9074 = vst [vmem:[%s18065_s5 + $0x790] sm:$0xff] %v8738_v36  ;;  %9075 = vst.msk [vmem:[%s18065_s5 + $0x798] sm:$0xff] %vm2102_vm0, %v8739_v18  ;;  %v7388_v33 = vmul.f32 %v19342_v17, %v19341_v35  ;;  %v19343_v36 = vld [vmem:[#allocation183_spill] sm:$0xff]  ;;  %v19350_v35 = vld [vmem:[#allocation65_spill] sm:$0xff] }
0x1574   :  { %9060 = vst [vmem:[%s18065_s5 + $0x720] sm:$0xff] %v8724_v1  ;;  %9061 = vst.msk [vmem:[%s18065_s5 + $0x728] sm:$0xff] %vm2102_vm0, %v8725_v24  ;;  %v8274_v40 = vpop.permute.xlu0 %8273  ;;  %v8239_v49 = vpop.permute.xlu1 %8238  ;;  %v7389_v18 = vmul.f32 %v19342_v17, %v19343_v36  ;;  %v7402_v1 = vmul.f32 %v19345_v0, %v19344_v62  ;;  %v19351_v17 = vld [vmem:[#allocation218_spill] sm:$0xff]  ;;  %v19352_v36 = vld [vmem:[#allocation4_spill] sm:$0xff] }
0x1575   :  { %v8742_v28 = vadd.f32 %v8274_v40, %v7398_v11  ;;  %v8743_v42 = vadd.f32 %v8274_v40, %v7399_v29  ;;  %v8728_v15 = vadd.f32 %v8239_v49, %v7384_v22  ;;  %v8729_v34 = vadd.f32 %v8239_v49, %v7385_v47  ;;  %v19347_v29 = vld [vmem:[#allocation48_spill] sm:$0xff] }
0x1576   :  { %v19348_v40 = vld [vmem:[#allocation212_spill] sm:$0xff]  ;;  %v7407_v62 = vmul.f32 %v19351_v17, %v19352_v36  ;;  %v19359_v36 = vld [vmem:[#allocation217_spill] sm:$0xff] }
0x1577   :  { %9078 = vst [vmem:[%s18065_s5 + $0x7b0] sm:$0xff] %v8742_v28  ;;  %9079 = vst.msk [vmem:[%s18065_s5 + $0x7b8] sm:$0xff] %vm2102_vm0, %v8743_v42  ;;  %v7392_v49 = vmul.f32 %v19348_v40, %v19347_v29  ;;  %v19349_v28 = vld [vmem:[#allocation126_spill] sm:$0xff]  ;;  %v19356_v29 = vld [vmem:[#allocation52_spill] sm:$0xff] }
0x1578   :  { %9064 = vst [vmem:[%s18065_s5 + $0x740] sm:$0xff] %v8728_v15  ;;  %9065 = vst.msk [vmem:[%s18065_s5 + $0x748] sm:$0xff] %vm2102_vm0, %v8729_v34  ;;  %v8284_v24 = vpop.permute.xlu0 %8283  ;;  %v8249_v22 = vpop.permute.xlu1 %8248  ;;  %v7393_v42 = vmul.f32 %v19348_v40, %v19349_v28  ;;  %v7406_v15 = vmul.f32 %v19351_v17, %v19350_v35  ;;  %v19357_v40 = vld [vmem:[#allocation129_spill] sm:$0xff] }
0x1579   :  { %v8746_v47 = vadd.f32 %v8284_v24, %v7402_v1  ;;  %v8747_v31 = vadd.f32 %v8284_v24, %v7403_v32  ;;  %v8732_v11 = vadd.f32 %v8249_v22, %v7388_v33  ;;  %v8733_v21 = vadd.f32 %v8249_v22, %v7389_v18  ;;  %v19353_v32 = vld [vmem:[#allocation63_spill] sm:$0xff] }
0x157a   :  { %v19354_v24 = vld [vmem:[#allocation215_spill] sm:$0xff]  ;;  %v7411_v28 = vmul.f32 %v16646_v13, %v19357_v40  ;;  %v19364_v40 = vld [vmem:[#allocation78_spill] sm:$0xff] }
0x157b   :  { %9082 = vst [vmem:[%s18065_s5 + $0x7d0] sm:$0xff] %v8746_v47  ;;  %9083 = vst.msk [vmem:[%s18065_s5 + $0x7d8] sm:$0xff] %vm2102_vm0, %v8747_v31  ;;  %v7396_v22 = vmul.f32 %v19354_v24, %v19353_v32  ;;  %v19355_v47 = vld [vmem:[#allocation7_spill] sm:$0xff] }
0x157c   :  { %9068 = vst [vmem:[%s18065_s5 + $0x760] sm:$0xff] %v8732_v11  ;;  %9069 = vst.msk [vmem:[%s18065_s5 + $0x768] sm:$0xff] %vm2102_vm0, %v8733_v21  ;;  %v8294_v34 = vpop.permute.xlu0 %8293  ;;  %v8259_v33 = vpop.permute.xlu1 %8258  ;;  %v7397_v31 = vmul.f32 %v19354_v24, %v19355_v47  ;;  %v7410_v11 = vmul.f32 %v16646_v13, %v19356_v29  ;;  %v19363_v29 = vld [vmem:[#allocation80_spill] sm:$0xff] }
0x157d   :  { %v8750_v18 = vadd.f32 %v8294_v34, %v7406_v15  ;;  %v8751_v0 = vadd.f32 %v8294_v34, %v7407_v62  ;;  %v8736_v1 = vadd.f32 %v8259_v33, %v7392_v49  ;;  %v8737_v16 = vadd.f32 %v8259_v33, %v7393_v42  ;;  %v19358_v15 = vld [vmem:[#allocation2_spill] sm:$0xff] }
0x157e   :  { %v7400_v62 = vmul.f32 %v19359_v36, %v19358_v15  ;;  %v19360_v34 = vld [vmem:[#allocation66_spill] sm:$0xff] }
0x157f   :  { %9086 = vst [vmem:[%s18065_s5 + $0x7f0] sm:$0xff] %v8750_v18  ;;  %9087 = vst.msk [vmem:[%s18065_s5 + $0x7f8] sm:$0xff] %vm2102_vm0, %v8751_v0  ;;  %v7401_v33 = vmul.f32 %v19359_v36, %v19360_v34  ;;  %v19361_v18 = vld [vmem:[#allocation68_spill] sm:$0xff] }
0x1580   :  { %9072 = vst [vmem:[%s18065_s5 + $0x780] sm:$0xff] %v8736_v1  ;;  %9073 = vst.msk [vmem:[%s18065_s5 + $0x788] sm:$0xff] %vm2102_vm0, %v8737_v16  ;;  %v8304_v21 = vpop.permute.xlu0 %8303  ;;  %v8269_v13 = vpop.permute.xlu1 %8268  ;;  %v7414_v0 = vmul.f32 %v16672_v52, %v19361_v18  ;;  %v19362_v1 = vld [vmem:[#allocation67_spill] sm:$0xff] }
0x1581   :  { %v8754_v49 = vadd.f32 %v8304_v21, %v7410_v11  ;;  %v8755_v42 = vadd.f32 %v8304_v21, %v7411_v28  ;;  %v8740_v35 = vadd.f32 %v8269_v13, %v7396_v22  ;;  %v8741_v17 = vadd.f32 %v8269_v13, %v7397_v31  ;;  %v19365_v21 = vld [vmem:[#allocation54_spill] sm:$0xff] }
0x1582   :  { %v7415_v32 = vmul.f32 %v16672_v52, %v19362_v1  ;;  %v7404_v11 = vmul.f32 %v16736_v4, %v19363_v29  ;;  %v7405_v28 = vmul.f32 %v16736_v4, %v19364_v40  ;;  %v7418_v13 = vmul.f32 %v16698_v12, %v19365_v21 }
0x1583   :  { %9090 = vst [vmem:[%s18065_s5 + $0x810] sm:$0xff] %v8754_v49  ;;  %9091 = vst.msk [vmem:[%s18065_s5 + $0x818] sm:$0xff] %vm2102_vm0, %v8755_v42  ;;  %v19366_v49 = vld [vmem:[#allocation69_spill] sm:$0xff] }
0x1584   :  { %9076 = vst [vmem:[%s18065_s5 + $0x7a0] sm:$0xff] %v8740_v35  ;;  %9077 = vst.msk [vmem:[%s18065_s5 + $0x7a8] sm:$0xff] %vm2102_vm0, %v8741_v17  ;;  %v8314_v16 = vpop.permute.xlu0 %8313  ;;  %v8279_v52 = vpop.permute.xlu1 %8278  ;;  %v7419_v42 = vmul.f32 %v16698_v12, %v19366_v49 }
0x1585   :  { %v8758_v24 = vadd.f32 %v8314_v16, %v7414_v0  ;;  %v8759_v22 = vadd.f32 %v8314_v16, %v7415_v32  ;;  %v8744_v47 = vadd.f32 %v8279_v52, %v7400_v62  ;;  %v8745_v31 = vadd.f32 %v8279_v52, %v7401_v33  ;;  %v19367_v62 = vld [vmem:[#allocation139_spill] sm:$0xff]  ;;  %v19369_v0 = vld [vmem:[#allocation134_spill] sm:$0xff]  ;;  %v19370_v32 = vld [vmem:[#allocation49_spill] sm:$0xff] }
0x1586   :  { %v7422_v34 = vmul.f32 %v16724_v26, %v19367_v62  ;;  %v19368_v33 = vld [vmem:[#allocation131_spill] sm:$0xff]  ;;  %v7408_v1 = vmul.f32 %v16758_v44, %v19369_v0  ;;  %v7409_v16 = vmul.f32 %v16758_v44, %v19370_v32 }
0x1587   :  { %9094 = vst [vmem:[%s18065_s5 + $0x830] sm:$0xff] %v8758_v24  ;;  %9095 = vst.msk [vmem:[%s18065_s5 + $0x838] sm:$0xff] %vm2102_vm0, %v8759_v22  ;;  %v7423_v18 = vmul.f32 %v16724_v26, %v19368_v33 }
0x1588   :  { %9080 = vst [vmem:[%s18065_s5 + $0x7c0] sm:$0xff] %v8744_v47  ;;  %9081 = vst.msk [vmem:[%s18065_s5 + $0x7c8] sm:$0xff] %vm2102_vm0, %v8745_v31  ;;  %v8324_v4 = vpop.permute.xlu0 %8323  ;;  %v8289_v12 = vpop.permute.xlu1 %8288  ;;  %v19371_v31 = vld [vmem:[#allocation56_spill] sm:$0xff] }
0x1589   :  { %v8762_v35 = vadd.f32 %v8324_v4, %v7418_v13  ;;  %v8763_v17 = vadd.f32 %v8324_v4, %v7419_v42  ;;  %v8748_v15 = vadd.f32 %v8289_v12, %v7404_v11  ;;  %v8749_v36 = vadd.f32 %v8289_v12, %v7405_v28  ;;  %v19372_v11 = vld [vmem:[#allocation71_spill] sm:$0xff]  ;;  %v19373_v28 = vld [vmem:[#allocation138_spill] sm:$0xff] }
0x158a   :  { %v7426_v29 = vmul.f32 %v16746_v51, %v19371_v31  ;;  %v7427_v40 = vmul.f32 %v16746_v51, %v19372_v11  ;;  %v7412_v21 = vmul.f32 %v16791_v19, %v19373_v28  ;;  %v19374_v13 = vld [vmem:[#allocation79_spill] sm:$0xff] }
0x158b   :  { %9098 = vst [vmem:[%s18065_s5 + $0x850] sm:$0xff] %v8762_v35  ;;  %9099 = vst.msk [vmem:[%s18065_s5 + $0x858] sm:$0xff] %vm2102_vm0, %v8763_v17  ;;  %v7413_v49 = vmul.f32 %v16791_v19, %v19374_v13  ;;  %v19375_v17 = vld [vmem:[#allocation55_spill] sm:$0xff] }
0x158c   :  { %9084 = vst [vmem:[%s18065_s5 + $0x7e0] sm:$0xff] %v8748_v15  ;;  %9085 = vst.msk [vmem:[%s18065_s5 + $0x7e8] sm:$0xff] %vm2102_vm0, %v8749_v36  ;;  %v8334_v26 = vpop.permute.xlu0 %8333  ;;  %v8299_v44 = vpop.permute.xlu1 %8298  ;;  %v7430_v15 = vmul.f32 %v16768_v8, %v19375_v17  ;;  %v19376_v36 = vld [vmem:[#allocation74_spill] sm:$0xff] }
0x158d   :  { %v8766_v52 = vadd.f32 %v8334_v26, %v7422_v34  ;;  %v8767_v24 = vadd.f32 %v8334_v26, %v7423_v18  ;;  %v8752_v22 = vadd.f32 %v8299_v44, %v7408_v1  ;;  %v8753_v47 = vadd.f32 %v8299_v44, %v7409_v16  ;;  %v19377_v34 = vld [vmem:[#allocation6_spill] sm:$0xff]  ;;  %v19378_v18 = vld [vmem:[#allocation51_spill] sm:$0xff]  ;;  %v19379_v44 = vld [vmem:[#allocation89_spill] sm:$0xff] }
0x158e   :  { %v7431_v62 = vmul.f32 %v16768_v8, %v19376_v36  ;;  %v7416_v33 = vmul.f32 %v16826_v2, %v19377_v34  ;;  %v7417_v0 = vmul.f32 %v16826_v2, %v19378_v18 }
0x158f   :  { %9102 = vst [vmem:[%s18065_s5 + $0x870] sm:$0xff] %v8766_v52  ;;  %9103 = vst.msk [vmem:[%s18065_s5 + $0x878] sm:$0xff] %vm2102_vm0, %v8767_v24  ;;  %v7434_v52 = vmul.f32 %v16800_v5, %v19379_v44  ;;  %v19380_v24 = vld [vmem:[#allocation58_spill] sm:$0xff] }
0x1590   :  { %9088 = vst [vmem:[%s18065_s5 + $0x800] sm:$0xff] %v8752_v22  ;;  %9089 = vst.msk [vmem:[%s18065_s5 + $0x808] sm:$0xff] %vm2102_vm0, %v8753_v47  ;;  %v8344_v51 = vpop.permute.xlu0 %8343  ;;  %v8309_v19 = vpop.permute.xlu1 %8308  ;;  %v7435_v22 = vmul.f32 %v16800_v5, %v19380_v24  ;;  %v19381_v47 = vld [vmem:[#allocation153_spill] sm:$0xff] }
0x1591   :  { %v8770_v42 = vadd.f32 %v8344_v51, %v7426_v29  ;;  %v8771_v4 = vadd.f32 %v8344_v51, %v7427_v40  ;;  %v8756_v12 = vadd.f32 %v8309_v19, %v7412_v21  ;;  %v8757_v35 = vadd.f32 %v8309_v19, %v7413_v49  ;;  %v19382_v29 = vld [vmem:[#allocation84_spill] sm:$0xff]  ;;  %v19384_v19 = vld [vmem:[#allocation57_spill] sm:$0xff] }
0x1592   :  { %v7420_v31 = vmul.f32 %v16864_v54, %v19381_v47  ;;  %v7421_v11 = vmul.f32 %v16864_v54, %v19382_v29  ;;  %v19383_v49 = vld [vmem:[#allocation148_spill] sm:$0xff] }
0x1593   :  { %9106 = vst [vmem:[%s18065_s5 + $0x890] sm:$0xff] %v8770_v42  ;;  %9107 = vst.msk [vmem:[%s18065_s5 + $0x898] sm:$0xff] %vm2102_vm0, %v8771_v4  ;;  %v7438_v51 = vmul.f32 %v16835_v30, %v19383_v49  ;;  %v7439_v42 = vmul.f32 %v16835_v30, %v19384_v19  ;;  %v19385_v4 = vld [vmem:[#allocation5_spill] sm:$0xff] }
0x1594   :  { %9092 = vst [vmem:[%s18065_s5 + $0x820] sm:$0xff] %v8756_v12  ;;  %9093 = vst.msk [vmem:[%s18065_s5 + $0x828] sm:$0xff] %vm2102_vm0, %v8757_v35  ;;  %v8354_v8 = vpop.permute.xlu0 %8353  ;;  %v8319_v2 = vpop.permute.xlu1 %8318  ;;  %v7424_v12 = vmul.f32 %v16899_v25, %v19385_v4  ;;  %v19386_v35 = vld [vmem:[#allocation53_spill] sm:$0xff] }
0x1595   :  { %v8774_v1 = vadd.f32 %v8354_v8, %v7430_v15  ;;  %v8775_v32 = vadd.f32 %v8354_v8, %v7431_v62  ;;  %v8760_v16 = vadd.f32 %v8319_v2, %v7416_v33  ;;  %v8761_v26 = vadd.f32 %v8319_v2, %v7417_v0  ;;  %v19387_v33 = vld [vmem:[#allocation145_spill] sm:$0xff]  ;;  %v19388_v0 = vld [vmem:[#allocation92_spill] sm:$0xff] }
0x1596   :  { %v7425_v17 = vmul.f32 %v16899_v25, %v19386_v35  ;;  %v7442_v18 = vmul.f32 %v16873_v7, %v19387_v33  ;;  %v7443_v8 = vmul.f32 %v16873_v7, %v19388_v0  ;;  %v19389_v2 = vld [vmem:[#allocation73_spill] sm:$0xff] }
0x1597   :  { %9110 = vst [vmem:[%s18065_s5 + $0x8b0] sm:$0xff] %v8774_v1  ;;  %9111 = vst.msk [vmem:[%s18065_s5 + $0x8b8] sm:$0xff] %vm2102_vm0, %v8775_v32  ;;  %v7428_v1 = vmul.f32 %v16937_v20, %v19389_v2  ;;  %v19390_v32 = vld [vmem:[#allocation140_spill] sm:$0xff] }
0x1598   :  { %9096 = vst [vmem:[%s18065_s5 + $0x840] sm:$0xff] %v8760_v16  ;;  %9097 = vst.msk [vmem:[%s18065_s5 + $0x848] sm:$0xff] %vm2102_vm0, %v8761_v26  ;;  %v8364_v5 = vpop.permute.xlu0 %8363  ;;  %v8329_v54 = vpop.permute.xlu1 %8328  ;;  %v7429_v16 = vmul.f32 %v16937_v20, %v19390_v32 }
0x1599   :  { %v8778_v40 = vadd.f32 %v8364_v5, %v7434_v52  ;;  %v8779_v28 = vadd.f32 %v8364_v5, %v7435_v22  ;;  %v8764_v21 = vadd.f32 %v8329_v54, %v7420_v31  ;;  %v8765_v13 = vadd.f32 %v8329_v54, %v7421_v11  ;;  %v19391_v22 = vld [vmem:[#allocation82_spill] sm:$0xff]  ;;  %v19392_v31 = vld [vmem:[#allocation81_spill] sm:$0xff] }
0x159a   :  { %v7446_v47 = vmul.f32 %v16911_v56, %v19391_v22  ;;  %v7447_v29 = vmul.f32 %v16911_v56, %v19392_v31  ;;  %v19393_v11 = vld [vmem:[#allocation133_spill] sm:$0xff] }
0x159b   :  { %9114 = vst [vmem:[%s18065_s5 + $0x8d0] sm:$0xff] %v8778_v40  ;;  %9115 = vst.msk [vmem:[%s18065_s5 + $0x8d8] sm:$0xff] %vm2102_vm0, %v8779_v28  ;;  %v7432_v5 = vmul.f32 %v16975_v63, %v19393_v11  ;;  %v19394_v54 = vld [vmem:[#allocation141_spill] sm:$0xff] }
0x159c   :  { %9100 = vst [vmem:[%s18065_s5 + $0x860] sm:$0xff] %v8764_v21  ;;  %9101 = vst.msk [vmem:[%s18065_s5 + $0x868] sm:$0xff] %vm2102_vm0, %v8765_v13  ;;  %v8374_v30 = vpop.permute.xlu0 %8373  ;;  %v8339_v25 = vpop.permute.xlu1 %8338  ;;  %v7433_v40 = vmul.f32 %v16975_v63, %v19394_v54 }
0x159d   :  { %v8782_v15 = vadd.f32 %v8374_v30, %v7438_v51  ;;  %v8783_v36 = vadd.f32 %v8374_v30, %v7439_v42  ;;  %v8768_v62 = vadd.f32 %v8339_v25, %v7424_v12  ;;  %v8769_v34 = vadd.f32 %v8339_v25, %v7425_v17  ;;  %v19395_v51 = vld [vmem:[#allocation12_spill] sm:$0xff]  ;;  %v19396_v42 = vld [vmem:[#allocation151_spill] sm:$0xff] }
0x159e   :  { %v7450_v19 = vmul.f32 %v16949_v39, %v19395_v51  ;;  %v7451_v4 = vmul.f32 %v16949_v39, %v19396_v42  ;;  %v19397_v12 = vld [vmem:[#allocation76_spill] sm:$0xff]  ;;  %v19398_v17 = vld [vmem:[#allocation75_spill] sm:$0xff] }
0x159f   :  { %9118 = vst [vmem:[%s18065_s5 + $0x8f0] sm:$0xff] %v8782_v15  ;;  %9119 = vst.msk [vmem:[%s18065_s5 + $0x8f8] sm:$0xff] %vm2102_vm0, %v8783_v36  ;;  %v7436_v35 = vmul.f32 %v17013_v48, %v19397_v12  ;;  %v7437_v30 = vmul.f32 %v17013_v48, %v19398_v17 }
0x15a0   :  { %9104 = vst [vmem:[%s18065_s5 + $0x880] sm:$0xff] %v8768_v62  ;;  %9105 = vst.msk [vmem:[%s18065_s5 + $0x888] sm:$0xff] %vm2102_vm0, %v8769_v34  ;;  %v8384_v7 = vpop.permute.xlu0 %8383  ;;  %v8349_v20 = vpop.permute.xlu1 %8348  ;;  %v19399_v34 = vld [vmem:[#allocation26_spill] sm:$0xff] }
0x15a1   :  { %v8786_v26 = vadd.f32 %v8384_v7, %v7442_v18  ;;  %v8787_v44 = vadd.f32 %v8384_v7, %v7443_v8  ;;  %v8772_v52 = vadd.f32 %v8349_v20, %v7428_v1  ;;  %v8773_v24 = vadd.f32 %v8349_v20, %v7429_v16  ;;  %v19400_v18 = vld [vmem:[#allocation108_spill] sm:$0xff]  ;;  %v19402_v1 = vld [vmem:[#allocation10_spill] sm:$0xff] }
0x15a2   :  { %v7454_v33 = vmul.f32 %v16987_v38, %v19399_v34  ;;  %v7455_v0 = vmul.f32 %v16987_v38, %v19400_v18  ;;  %v19401_v8 = vld [vmem:[#allocation60_spill] sm:$0xff]  ;;  %v7441_v32 = vmul.f32 %v17051_v53, %v19402_v1 }
0x15a3   :  { %9122 = vst [vmem:[%s18065_s5 + $0x910] sm:$0xff] %v8786_v26  ;;  %9123 = vst.msk [vmem:[%s18065_s5 + $0x918] sm:$0xff] %vm2102_vm0, %v8787_v44  ;;  %v7440_v2 = vmul.f32 %v17051_v53, %v19401_v8  ;;  %v19403_v44 = vld [vmem:[#allocation28_spill] sm:$0xff] }
0x15a4   :  { %9108 = vst [vmem:[%s18065_s5 + $0x8a0] sm:$0xff] %v8772_v52  ;;  %9109 = vst.msk [vmem:[%s18065_s5 + $0x8a8] sm:$0xff] %vm2102_vm0, %v8773_v24  ;;  %v8394_v56 = vpop.permute.xlu0 %8393  ;;  %v8359_v63 = vpop.permute.xlu1 %8358  ;;  %v7458_v52 = vmul.f32 %v17025_v37, %v19403_v44  ;;  %v19404_v24 = vld [vmem:[#allocation113_spill] sm:$0xff] }
0x15a5   :  { %v8790_v28 = vadd.f32 %v8394_v56, %v7446_v47  ;;  %v8791_v21 = vadd.f32 %v8394_v56, %v7447_v29  ;;  %v8776_v13 = vadd.f32 %v8359_v63, %v7432_v5  ;;  %v8777_v49 = vadd.f32 %v8359_v63, %v7433_v40  ;;  %v19405_v47 = vld [vmem:[#allocation59_spill] sm:$0xff]  ;;  %v19407_v63 = vld [vmem:[#allocation32_spill] sm:$0xff] }
0x15a6   :  { %v7459_v22 = vmul.f32 %v17025_v37, %v19404_v24  ;;  %v7444_v31 = vmul.f32 %v17089_v9, %v19405_v47  ;;  %v19406_v29 = vld [vmem:[#allocation135_spill] sm:$0xff] }
0x15a7   :  { %9126 = vst [vmem:[%s18065_s5 + $0x930] sm:$0xff] %v8790_v28  ;;  %9127 = vst.msk [vmem:[%s18065_s5 + $0x938] sm:$0xff] %vm2102_vm0, %v8791_v21  ;;  %v7445_v11 = vmul.f32 %v17089_v9, %v19406_v29  ;;  %v7462_v28 = vmul.f32 %v17063_v58, %v19407_v63  ;;  %v19408_v21 = vld [vmem:[#allocation121_spill] sm:$0xff] }
0x15a8   :  { %9112 = vst [vmem:[%s18065_s5 + $0x8c0] sm:$0xff] %v8776_v13  ;;  %9113 = vst.msk [vmem:[%s18065_s5 + $0x8c8] sm:$0xff] %vm2102_vm0, %v8777_v49  ;;  %v8404_v39 = vpop.permute.xlu0 %8403  ;;  %v8369_v48 = vpop.permute.xlu1 %8368  ;;  %v7463_v13 = vmul.f32 %v17063_v58, %v19408_v21  ;;  %v19409_v49 = vld [vmem:[#allocation18_spill] sm:$0xff] }
0x15a9   :  { %v8794_v25 = vadd.f32 %v8404_v39, %v7450_v19  ;;  %v8795_v15 = vadd.f32 %v8404_v39, %v7451_v4  ;;  %v8780_v36 = vadd.f32 %v8369_v48, %v7436_v35  ;;  %v8781_v62 = vadd.f32 %v8369_v48, %v7437_v30  ;;  %v19410_v19 = vld [vmem:[#allocation62_spill] sm:$0xff]  ;;  %v19411_v30 = vld [vmem:[#allocation149_spill] sm:$0xff]  ;;  %v19412_v48 = vld [vmem:[#allocation36_spill] sm:$0xff] }
0x15aa   :  { %v7448_v51 = vmul.f32 %v17127_v61, %v19409_v49  ;;  %v7449_v42 = vmul.f32 %v17127_v61, %v19410_v19  ;;  %v7466_v39 = vmul.f32 %v17101_v10, %v19411_v30 }
0x15ab   :  { %9130 = vst [vmem:[%s18065_s5 + $0x950] sm:$0xff] %v8794_v25  ;;  %9131 = vst.msk [vmem:[%s18065_s5 + $0x958] sm:$0xff] %vm2102_vm0, %v8795_v15  ;;  %v7467_v25 = vmul.f32 %v17101_v10, %v19412_v48  ;;  %v19413_v15 = vld [vmem:[#allocation30_spill] sm:$0xff] }
0x15ac   :  { %9116 = vst [vmem:[%s18065_s5 + $0x8e0] sm:$0xff] %v8780_v36  ;;  %9117 = vst.msk [vmem:[%s18065_s5 + $0x8e8] sm:$0xff] %vm2102_vm0, %v8781_v62  ;;  %v8414_v38 = vpop.permute.xlu0 %8413  ;;  %v8379_v53 = vpop.permute.xlu1 %8378  ;;  %v7452_v36 = vmul.f32 %v17165_v57, %v19413_v15  ;;  %v19414_v62 = vld [vmem:[#allocation61_spill] sm:$0xff] }
0x15ad   :  { %v8798_v16 = vadd.f32 %v8414_v38, %v7454_v33  ;;  %v8799_v7 = vadd.f32 %v8414_v38, %v7455_v0  ;;  %v8784_v20 = vadd.f32 %v8379_v53, %v7440_v2  ;;  %v8785_v26 = vadd.f32 %v8379_v53, %v7441_v32  ;;  %v19415_v2 = vld [vmem:[#allocation177_spill] sm:$0xff]  ;;  %v19416_v32 = vld [vmem:[#allocation136_spill] sm:$0xff] }
0x15ae   :  { %v7453_v34 = vmul.f32 %v17165_v57, %v19414_v62  ;;  %v7470_v1 = vmul.f32 %v17139_v59, %v19415_v2  ;;  %v7471_v38 = vmul.f32 %v17139_v59, %v19416_v32  ;;  %v19417_v53 = vld [vmem:[#allocation160_spill] sm:$0xff] }
0x15af   :  { %9134 = vst [vmem:[%s18065_s5 + $0x970] sm:$0xff] %v8798_v16  ;;  %9135 = vst.msk [vmem:[%s18065_s5 + $0x978] sm:$0xff] %vm2102_vm0, %v8799_v7  ;;  %v7456_v16 = vmul.f32 %v17203_v23, %v19417_v53  ;;  %v19418_v7 = vld [vmem:[#allocation124_spill] sm:$0xff] }
0x15b0   :  { %9120 = vst [vmem:[%s18065_s5 + $0x900] sm:$0xff] %v8784_v20  ;;  %9121 = vst.msk [vmem:[%s18065_s5 + $0x908] sm:$0xff] %vm2102_vm0, %v8785_v26  ;;  %v8424_v37 = vpop.permute.xlu0 %8423  ;;  %v8389_v9 = vpop.permute.xlu1 %8388  ;;  %v7457_v20 = vmul.f32 %v17203_v23, %v19418_v7 }
0x15b1   :  { %v8802_v5 = vadd.f32 %v8424_v37, %v7458_v52  ;;  %v8803_v54 = vadd.f32 %v8424_v37, %v7459_v22  ;;  %v8788_v40 = vadd.f32 %v8389_v9, %v7444_v31  ;;  %v8789_v56 = vadd.f32 %v8389_v9, %v7445_v11  ;;  %v19419_v22 = vld [vmem:[#allocation187_spill] sm:$0xff]  ;;  %v19420_v31 = vld [vmem:[#allocation186_spill] sm:$0xff]  ;;  %v19421_v11 = vld [vmem:[#allocation117_spill] sm:$0xff] }
0x15b2   :  { %v7474_v47 = vmul.f32 %v17177_v27, %v19419_v22  ;;  %v7475_v29 = vmul.f32 %v17177_v27, %v19420_v31  ;;  %v7460_v37 = vmul.f32 %v17241_v55, %v19421_v11  ;;  %v19422_v9 = vld [vmem:[#allocation118_spill] sm:$0xff] }
0x15b3   :  { %9138 = vst [vmem:[%s18065_s5 + $0x990] sm:$0xff] %v8802_v5  ;;  %9139 = vst.msk [vmem:[%s18065_s5 + $0x998] sm:$0xff] %vm2102_vm0, %v8803_v54  ;;  %v7461_v5 = vmul.f32 %v17241_v55, %v19422_v9 }
0x15b4   :  { %9124 = vst [vmem:[%s18065_s5 + $0x920] sm:$0xff] %v8788_v40  ;;  %9125 = vst.msk [vmem:[%s18065_s5 + $0x928] sm:$0xff] %vm2102_vm0, %v8789_v56  ;;  %v8434_v58 = vpop.permute.xlu0 %8433  ;;  %v8399_v61 = vpop.permute.xlu1 %8398 }
0x15b5   :  { %v8806_v4 = vadd.f32 %v8434_v58, %v7462_v28  ;;  %v8807_v12 = vadd.f32 %v8434_v58, %v7463_v13  ;;  %v8792_v35 = vadd.f32 %v8399_v61, %v7448_v51  ;;  %v8793_v17 = vadd.f32 %v8399_v61, %v7449_v42  ;;  %v19423_v28 = vld [vmem:[#allocation191_spill] sm:$0xff]  ;;  %v19424_v13 = vld [vmem:[#allocation190_spill] sm:$0xff] }
0x15b6   :  { %v7478_v21 = vmul.f32 %v17215_v14, %v19423_v28  ;;  %v7479_v49 = vmul.f32 %v17215_v14, %v19424_v13  ;;  %v19425_v51 = vld [vmem:[#allocation130_spill] sm:$0xff] }
0x15b7   :  { %9142 = vst [vmem:[%s18065_s5 + $0x9b0] sm:$0xff] %v8806_v4  ;;  %9143 = vst.msk [vmem:[%s18065_s5 + $0x9b8] sm:$0xff] %vm2102_vm0, %v8807_v12  ;;  %v7464_v19 = vmul.f32 %v17279_v46, %v19425_v51  ;;  %v19426_v42 = vld [vmem:[#allocation34_spill] sm:$0xff] }
0x15b8   :  { %9128 = vst [vmem:[%s18065_s5 + $0x940] sm:$0xff] %v8792_v35  ;;  %9129 = vst.msk [vmem:[%s18065_s5 + $0x948] sm:$0xff] %vm2102_vm0, %v8793_v17  ;;  %v8444_v10 = vpop.permute.xlu0 %8443  ;;  %v8409_v57 = vpop.permute.xlu1 %8408  ;;  %v7465_v58 = vmul.f32 %v17279_v46, %v19426_v42  ;;  %v19427_v17 = vld [vmem:[#allocation195_spill] sm:$0xff] }
0x15b9   :  { %v8810_v33 = vadd.f32 %v8444_v10, %v7466_v39  ;;  %v8811_v18 = vadd.f32 %v8444_v10, %v7467_v25  ;;  %v8796_v0 = vadd.f32 %v8409_v57, %v7452_v36  ;;  %v8797_v8 = vadd.f32 %v8409_v57, %v7453_v34  ;;  %v19428_v39 = vld [vmem:[#allocation194_spill] sm:$0xff]  ;;  %v19429_v25 = vld [vmem:[#allocation40_spill] sm:$0xff] }
0x15ba   :  { %v7482_v30 = vmul.f32 %v17253_v45, %v19427_v17  ;;  %v7483_v48 = vmul.f32 %v17253_v45, %v19428_v39  ;;  %v7468_v15 = vmul.f32 %v17311_v6, %v19429_v25  ;;  %v19430_v36 = vld [vmem:[#allocation38_spill] sm:$0xff] }
0x15bb   :  { %9146 = vst [vmem:[%s18065_s5 + $0x9d0] sm:$0xff] %v8810_v33  ;;  %9147 = vst.msk [vmem:[%s18065_s5 + $0x9d8] sm:$0xff] %vm2102_vm0, %v8811_v18  ;;  %v7469_v62 = vmul.f32 %v17311_v6, %v19430_v36  ;;  %v19431_v18 = vld [vmem:[#allocation185_spill] sm:$0xff] }
0x15bc   :  { %9132 = vst [vmem:[%s18065_s5 + $0x960] sm:$0xff] %v8796_v0  ;;  %9133 = vst.msk [vmem:[%s18065_s5 + $0x968] sm:$0xff] %vm2102_vm0, %v8797_v8  ;;  %v8454_v59 = vpop.permute.xlu0 %8453  ;;  %v8419_v23 = vpop.permute.xlu1 %8418  ;;  %v7472_v0 = vmul.f32 %v17336_v60, %v19431_v18  ;;  %v19432_v8 = vld [vmem:[#allocation184_spill] sm:$0xff] }
0x15bd   :  { %v8814_v26 = vadd.f32 %v8454_v59, %v7470_v1  ;;  %v8815_v44 = vadd.f32 %v8454_v59, %v7471_v38  ;;  %v8800_v52 = vadd.f32 %v8419_v23, %v7456_v16  ;;  %v8801_v24 = vadd.f32 %v8419_v23, %v7457_v20  ;;  %v19433_v1 = vld [vmem:[#allocation199_spill] sm:$0xff]  ;;  %v19434_v38 = vld [vmem:[#allocation198_spill] sm:$0xff]  ;;  %v19435_v23 = vld [vmem:[#allocation189_spill] sm:$0xff] }
0x15be   :  { %v7473_v2 = vmul.f32 %v17336_v60, %v19432_v8  ;;  %v7486_v32 = vmul.f32 %v17370_v43, %v19433_v1  ;;  %v7487_v53 = vmul.f32 %v17370_v43, %v19434_v38 }
0x15bf   :  { %9150 = vst [vmem:[%s18065_s5 + $0x9f0] sm:$0xff] %v8814_v26  ;;  %9151 = vst.msk [vmem:[%s18065_s5 + $0x9f8] sm:$0xff] %vm2102_vm0, %v8815_v44  ;;  %v7476_v26 = vmul.f32 %v17361_v41, %v19435_v23  ;;  %v19436_v44 = vld [vmem:[#allocation188_spill] sm:$0xff] }
0x15c0   :  { %9136 = vst [vmem:[%s18065_s5 + $0x980] sm:$0xff] %v8800_v52  ;;  %9137 = vst.msk [vmem:[%s18065_s5 + $0x988] sm:$0xff] %vm2102_vm0, %v8801_v24  ;;  %v8464_v27 = vpop.permute.xlu0 %8463  ;;  %v8429_v55 = vpop.permute.xlu1 %8428  ;;  %v7477_v52 = vmul.f32 %v17361_v41, %v19436_v44 }
0x15c1   :  { %v8818_v54 = vadd.f32 %v8464_v27, %v7474_v47  ;;  %v8819_v40 = vadd.f32 %v8464_v27, %v7475_v29  ;;  %v8804_v56 = vadd.f32 %v8429_v55, %v7460_v37  ;;  %v8805_v63 = vadd.f32 %v8429_v55, %v7461_v5  ;;  %v19437_v47 = vld [vmem:[#allocation193_spill] sm:$0xff]  ;;  %v19438_v29 = vld [vmem:[#allocation192_spill] sm:$0xff] }
0x15c2   :  { %v7480_v31 = vmul.f32 %v17386_v3, %v19437_v47  ;;  %v7481_v11 = vmul.f32 %v17386_v3, %v19438_v29  ;;  %v19439_v27 = vld [vmem:[#allocation197_spill] sm:$0xff] }
0x15c3   :  { %9154 = vst [vmem:[%s18065_s5 + $0xa10] sm:$0xff] %v8818_v54  ;;  %9155 = vst.msk [vmem:[%s18065_s5 + $0xa18] sm:$0xff] %vm2102_vm0, %v8819_v40  ;;  %v7484_v55 = vmul.f32 %v17424_v50, %v19439_v27  ;;  %v19440_v54 = vld [vmem:[#allocation196_spill] sm:$0xff] }
0x15c4   :  { %9140 = vst [vmem:[%s18065_s5 + $0x9a0] sm:$0xff] %v8804_v56  ;;  %9141 = vst.msk [vmem:[%s18065_s5 + $0x9a8] sm:$0xff] %vm2102_vm0, %v8805_v63  ;;  %v8474_v14 = vpop.permute.xlu0 %8473  ;;  %v8439_v46 = vpop.permute.xlu1 %8438  ;;  %v7485_v40 = vmul.f32 %v17424_v50, %v19440_v54 }
0x15c5   :  { %v8822_v61 = vadd.f32 %v8474_v14, %v7478_v21  ;;  %v8823_v4 = vadd.f32 %v8474_v14, %v7479_v49  ;;  %v8808_v12 = vadd.f32 %v8439_v46, %v7464_v19  ;;  %v8809_v35 = vadd.f32 %v8439_v46, %v7465_v58 }
0x15c7   :  { %9158 = vst [vmem:[%s18065_s5 + $0xa30] sm:$0xff] %v8822_v61  ;;  %9159 = vst.msk [vmem:[%s18065_s5 + $0xa38] sm:$0xff] %vm2102_vm0, %v8823_v4 }
0x15c8   :  { %9144 = vst [vmem:[%s18065_s5 + $0x9c0] sm:$0xff] %v8808_v12  ;;  %9145 = vst.msk [vmem:[%s18065_s5 + $0x9c8] sm:$0xff] %vm2102_vm0, %v8809_v35  ;;  %v8484_v45 = vpop.permute.xlu0 %8483  ;;  %v8449_v6 = vpop.permute.xlu1 %8448 }
0x15c9   :  { %v8826_v34 = vadd.f32 %v8484_v45, %v7482_v30  ;;  %v8827_v10 = vadd.f32 %v8484_v45, %v7483_v48  ;;  %v8812_v57 = vadd.f32 %v8449_v6, %v7468_v15  ;;  %v8813_v33 = vadd.f32 %v8449_v6, %v7469_v62 }
0x15cb   :  { %9162 = vst [vmem:[%s18065_s5 + $0xa50] sm:$0xff] %v8826_v34  ;;  %9163 = vst.msk [vmem:[%s18065_s5 + $0xa58] sm:$0xff] %vm2102_vm0, %v8827_v10 }
0x15cc   :  { %9148 = vst [vmem:[%s18065_s5 + $0x9e0] sm:$0xff] %v8812_v57  ;;  %9149 = vst.msk [vmem:[%s18065_s5 + $0x9e8] sm:$0xff] %vm2102_vm0, %v8813_v33  ;;  %v8494_v60 = vpop.permute.xlu0 %8493  ;;  %v8459_v43 = vpop.permute.xlu1 %8458 }
0x15cd   :  { %v8830_v16 = vadd.f32 %v8494_v60, %v7486_v32  ;;  %v8831_v7 = vadd.f32 %v8494_v60, %v7487_v53  ;;  %v8816_v20 = vadd.f32 %v8459_v43, %v7472_v0  ;;  %v8817_v59 = vadd.f32 %v8459_v43, %v7473_v2 }
0x15cf   :  { %9166 = vst [vmem:[%s18065_s5 + $0xa70] sm:$0xff] %v8830_v16  ;;  %9167 = vst.msk [vmem:[%s18065_s5 + $0xa78] sm:$0xff] %vm2102_vm0, %v8831_v7 }
0x15d0   :  { %9152 = vst [vmem:[%s18065_s5 + $0xa00] sm:$0xff] %v8816_v20  ;;  %9153 = vst.msk [vmem:[%s18065_s5 + $0xa08] sm:$0xff] %vm2102_vm0, %v8817_v59  ;;  %v8469_v24 = vpop.permute.xlu1 %8468 }
0x15d1   :  { %v8820_v41 = vadd.f32 %v8469_v24, %v7476_v26  ;;  %v8821_v22 = vadd.f32 %v8469_v24, %v7477_v52 }
0x15d3   :  { %9156 = vst [vmem:[%s18065_s5 + $0xa20] sm:$0xff] %v8820_v41  ;;  %9157 = vst.msk [vmem:[%s18065_s5 + $0xa28] sm:$0xff] %vm2102_vm0, %v8821_v22 }
0x15d4   :  { %v8479_v37 = vpop.permute.xlu1 %8478 }
0x15d5   :  { %v8824_v9 = vadd.f32 %v8479_v37, %v7480_v31  ;;  %v8825_v5 = vadd.f32 %v8479_v37, %v7481_v11 }
0x15d7   :  { %9160 = vst [vmem:[%s18065_s5 + $0xa40] sm:$0xff] %v8824_v9  ;;  %9161 = vst.msk [vmem:[%s18065_s5 + $0xa48] sm:$0xff] %vm2102_vm0, %v8825_v5 }
0x15d8   :  { %v8489_v3 = vpop.permute.xlu1 %8488 }
0x15d9   :  { %v8828_v56 = vadd.f32 %v8489_v3, %v7484_v55  ;;  %v8829_v63 = vadd.f32 %v8489_v3, %v7485_v40 }
0x15db   :  { %9164 = vst [vmem:[%s18065_s5 + $0xa60] sm:$0xff] %v8828_v56  ;;  %9165 = vst.msk [vmem:[%s18065_s5 + $0xa68] sm:$0xff] %vm2102_vm0, %v8829_v63 }

</bundles_post_ra>
